<compile_context>
chip_gen: v5e
topology: v5e:2x2
jax: 0.10.0
libtpu: 0.0.40
codegen_flags: <defaults>
</compile_context>

<pallas_src>
import functools

import jax
import jax.numpy as jnp
from jax import lax
from jax.experimental import pallas as pl
from jax.experimental.pallas import tpu as pltpu


def _vmem_limit_bytes():
    """Generation-aware VMEM limit: ~85% of physical, capped, with fallback."""
    try:
        cap = pltpu.get_tpu_info().vmem_capacity_bytes
    except Exception:
        cap = 64 * 1024 * 1024  # conservative (v7x-sized) fallback
    return max(32 * 1024 * 1024, min(int(cap * 0.85), 112 * 1024 * 1024))


def attention_kernel(x_ref, wq_ref, wkv_ref, wp_ref, bp_ref, o_ref,
                     k_scr, v_scr, q_scr, acc_ref, *,
                     num_heads, q_tile, exp_dtype):
    # x_ref:   (1, N, C)   bf16, full sequence of the current batch element
    # wq_ref:  (C, C)      Wq^T with softmax scale folded, bf16
    # wkv_ref: (2C, C)     [Wk; Wv] non-transposed (rows = output features), bf16
    # wp_ref:  (C, C)      Wp^T, bf16
    # bp_ref:  (1, C)      proj bias, f32
    # o_ref:   (1, TQ, C)  output tile
    # k_scr/v_scr: (H, hd, N) bf16 — per-head K^T / V^T, lane-dense, persistent
    # q_scr:   (H, TQ, hd) bf16 — per-tile head-major Q
    # acc_ref: (TQ, C) f32 — output-projection accumulator
    C = wq_ref.shape[0]
    hd = C // num_heads
    t = pl.program_id(1)

    # ---- K/V projection: once per batch element, weight-first per head -----
    # k_scr[h] = Wk_h @ x^T = (x @ Wk_h^T)^T  -> (hd, N), lane-dense.
    # No (N, 2C) f32 intermediate; one (hd, N) tile live per loop iteration.
    @pl.when(t == 0)
    def _():
        @pl.loop(0, num_heads)
        def _(h):
            xb = x_ref[0]                                       # (N, C) bf16
            rk = pl.multiple_of(h * hd, hd)
            rv = pl.multiple_of(C + h * hd, hd)
            ktn = lax.dot_general(wkv_ref[pl.ds(rk, hd), :], xb,
                                  (((1,), (1,)), ((), ())),
                                  preferred_element_type=jnp.float32)
            k_scr[h] = ktn.astype(jnp.bfloat16)                 # (hd, N)
            vtn = lax.dot_general(wkv_ref[pl.ds(rv, hd), :], xb,
                                  (((1,), (1,)), ((), ())),
                                  preferred_element_type=jnp.float32)
            v_scr[h] = vtn.astype(jnp.bfloat16)                 # (hd, N)

    # ---- Q projection for this tile: one MXU-efficient (TQ,C)x(C,C) matmul --
    row0 = pl.multiple_of(t * q_tile, q_tile)
    xq = x_ref[0, pl.ds(row0, q_tile), :]                       # (TQ, C) bf16
    q = jnp.dot(xq, wq_ref[...], preferred_element_type=jnp.float32)
    q = q.astype(jnp.bfloat16)                                  # hoisted cast
    for h in range(num_heads):                                  # static: stores only
        q_scr[h] = q[:, h * hd:(h + 1) * hd]                    # (TQ, hd)

    # ---- Per-head attention with fused output projection (pl.loop) ----------
    acc_ref[...] = jnp.zeros_like(acc_ref)

    @pl.loop(0, num_heads)
    def _(h):
        qh = q_scr[h]                                           # (TQ, hd) bf16
        s = jnp.dot(qh, k_scr[h],
                    preferred_element_type=jnp.float32)         # (TQ, N) f32
        m = jnp.max(s, axis=-1, keepdims=True)
        p = jnp.exp((s - m).astype(exp_dtype))                  # unnormalized
        l = jnp.sum(p.astype(jnp.float32), axis=-1, keepdims=True)  # f32 denom
        # ctx = p @ V_h : contract the N axes of p (TQ, N) and V^T (hd, N).
        ctx = lax.dot_general(p.astype(jnp.bfloat16), v_scr[h],
                              (((1,), (1,)), ((), ())),
                              preferred_element_type=jnp.float32)    # (TQ, hd)
        ctx = ctx * pl.reciprocal(l, approx=True)               # deferred norm
        r0 = pl.multiple_of(h * hd, hd)
        acc_ref[...] += jnp.dot(ctx.astype(jnp.bfloat16),
                                wp_ref[pl.ds(r0, hd), :],
                                preferred_element_type=jnp.float32)  # (TQ, C)

    o_ref[0] = (acc_ref[...] + bp_ref[0]).astype(o_ref.dtype)


def attention_forward(x, wqkv_t, wp_t, bp, num_heads, q_tile=None,
                      softmax_exp_dtype=jnp.float32):
    """x: (B,N,C) ; wqkv_t: (C,3C)=Wqkv^T ; wp_t: (C,C)=Wp^T ; bp: (1,C) or (C,)."""
    B, N, C = x.shape
    assert C % num_heads == 0
    hd = C // num_heads
    scale = float(hd) ** (-0.5)

    if q_tile is None:
        if N % 256 == 0:
            q_tile = 256          # v6e/v7x MXU is 256-wide
        elif N % 128 == 0:
            q_tile = 128
        else:
            q_tile = N
    assert N % q_tile == 0
    num_q_tiles = N // q_tile

    # Host-side weight prep: fold scale into Wq, transpose KV weight so the
    # kernel can row-slice per-head (hd, C) output-feature blocks, cast to bf16.
    wq_t = (wqkv_t[:, :C] * scale).astype(jnp.bfloat16)          # (C, C)
    wkv = jnp.transpose(wqkv_t[:, C:]).astype(jnp.bfloat16)      # (2C, C) = [Wk; Wv]
    wp_bf = wp_t.astype(jnp.bfloat16)                            # (C, C)
    bp_f32 = bp.astype(jnp.float32).reshape(1, C)
    x_bf = x.astype(jnp.bfloat16)                                # halves x DMA/VMEM

    kernel = functools.partial(attention_kernel, num_heads=num_heads,
                               q_tile=q_tile, exp_dtype=softmax_exp_dtype)

    single = pl.Buffered(1)   # constant-index inputs: single-buffered

    return pl.pallas_call(
        kernel,
        out_shape=jax.ShapeDtypeStruct((B, N, C), x.dtype),
        grid_spec=pltpu.PrefetchScalarGridSpec(
            num_scalar_prefetch=0,
            grid=(B, num_q_tiles),
            in_specs=[
                # x: constant block index across the q-tile axis -> DMA'd once per b
                pl.BlockSpec((1, N, C), lambda b, t: (b, 0, 0)),
                # Weights/bias: constant index maps -> loaded once, single-buffered.
                pl.BlockSpec((C, C), lambda b, t: (0, 0), pipeline_mode=single),
                pl.BlockSpec((2 * C, C), lambda b, t: (0, 0), pipeline_mode=single),
                pl.BlockSpec((C, C), lambda b, t: (0, 0), pipeline_mode=single),
                pl.BlockSpec((1, C), lambda b, t: (0, 0), pipeline_mode=single),
            ],
            out_specs=pl.BlockSpec((1, q_tile, C), lambda b, t: (b, t, 0)),
            scratch_shapes=[
                pltpu.VMEM((num_heads, hd, N), jnp.bfloat16),      # K^T, lane-dense
                pltpu.VMEM((num_heads, hd, N), jnp.bfloat16),      # V^T, lane-dense
                pltpu.VMEM((num_heads, q_tile, hd), jnp.bfloat16),  # head-major Q
                pltpu.VMEM((q_tile, C), jnp.float32),              # output accumulator
            ],
        ),
        compiler_params=pltpu.CompilerParams(
            # NOTE: the q-tile axis must remain "arbitrary" while the K/V
            # scratch is filled under pl.when(t == 0) (see module docstring).
            dimension_semantics=("parallel", "arbitrary"),
            vmem_limit_bytes=_vmem_limit_bytes(),
        ),
    )(x_bf, wq_t, wkv, wp_bf, bp_f32)


def attention_reference(x, wqkv_t, wp_t, bp, num_heads):
    """Pure-JAX f32 reference mirroring the PyTorch forward."""
    B, N, C = x.shape
    hd = C // num_heads
    scale = float(hd) ** (-0.5)
    qkv = x @ wqkv_t                                         # (B, N, 3C)
    qkv = qkv.reshape(B, N, 3, num_heads, hd).transpose(2, 0, 3, 1, 4)
    q, k, v = qkv[0], qkv[1], qkv[2]                         # (B, H, N, hd)
    attn = jnp.einsum('bhnd,bhmd->bhnm', q, k) * scale
    attn = jax.nn.softmax(attn, axis=-1)
    ctx = jnp.einsum('bhnm,bhmd->bhnd', attn, v)             # (B, H, N, hd)
    ctx = ctx.transpose(0, 2, 1, 3).reshape(B, N, C)
    return ctx @ wp_t + bp.reshape(1, 1, C)


if __name__ == "__main__":
    B, N, C = 2, 512, 256
    num_heads = 4                                            # head_dim = 64

    key = jax.random.PRNGKey(0)
    kx, kqkv, kp, kb = jax.random.split(key, 4)

    x = jax.random.normal(kx, (B, N, C), dtype=jnp.float32)
    # nn.Linear(dim, 3*dim, bias=False): weight (3C, C) -> pass transposed (C, 3C)
    wqkv_t = (jax.random.normal(kqkv, (3 * C, C), dtype=jnp.float32) * 0.05).T
    # nn.Linear(dim, dim): weight (C, C) + bias (C,)
    wp_t = (jax.random.normal(kp, (C, C), dtype=jnp.float32) * 0.05).T
    bp = (jax.random.normal(kb, (C,), dtype=jnp.float32) * 0.05).reshape(1, C)

    out = attention_forward(x, wqkv_t, wp_t, bp, num_heads)
    out = jax.block_until_ready(out)

    ref = attention_reference(x, wqkv_t, wp_t, bp, num_heads)
    # bf16 MXU operands + approx reciprocal -> tolerance re-baselined vs f32 ref.
    max_err = jnp.max(jnp.abs(out - ref))
    assert jnp.allclose(out, ref, atol=3e-2, rtol=3e-2), (
        f"mismatch vs reference, max abs err={max_err}")

    print("KERNEL_OK")
</pallas_src>

<mosaic_0001>
module attributes {stable_mosaic.version = 11 : i64} {
  func.func @attention_kernel(%arg0: i32, %arg1: i32, %arg2: memref<1x512x256xbf16, #tpu.memory_space<vmem>>, %arg3: memref<256x256xbf16, #tpu.memory_space<vmem>>, %arg4: memref<512x256xbf16, #tpu.memory_space<vmem>>, %arg5: memref<256x256xbf16, #tpu.memory_space<vmem>>, %arg6: memref<1x256xf32, #tpu.memory_space<vmem>>, %arg7: memref<1x256x256xf32, #tpu.memory_space<vmem>>, %arg8: memref<4x64x512xbf16, #tpu.memory_space<vmem>>, %arg9: memref<4x64x512xbf16, #tpu.memory_space<vmem>>, %arg10: memref<4x256x64xbf16, #tpu.memory_space<vmem>>, %arg11: memref<256x256xf32, #tpu.memory_space<vmem>>) attributes {dimension_semantics = [#tpu.dimension_semantics<parallel>, #tpu.dimension_semantics<arbitrary>], iteration_bounds = array<i64: 2, 2>, scalar_prefetch = 0 : i64, scratch_operands = 4 : i64, tpu.core_type = #tpu.core_type<tc>, window_params = [{transform_indices = @transform_0, window_bounds = array<i64: 1, 512, 256>}, {pipeline_mode = #tpu.pipeline_mode<synchronous>, transform_indices = @transform_1, window_bounds = array<i64: 256, 256>}, {pipeline_mode = #tpu.pipeline_mode<synchronous>, transform_indices = @transform_2, window_bounds = array<i64: 512, 256>}, {pipeline_mode = #tpu.pipeline_mode<synchronous>, transform_indices = @transform_3, window_bounds = array<i64: 256, 256>}, {pipeline_mode = #tpu.pipeline_mode<synchronous>, transform_indices = @transform_4, window_bounds = array<i64: 1, 256>}, {transform_indices = @transform_5, window_bounds = array<i64: 1, 256, 256>}]} {
    %c0_i32 = arith.constant 0 : i32
    %0 = arith.cmpi eq, %arg1, %c0_i32 : i32
    %1 = arith.extui %0 : i1 to i32
    %c0_i32_0 = arith.constant 0 : i32
    %2 = arith.cmpi ne, %1, %c0_i32_0 : i32
    scf.if %2 {
      %c0_i32_25 = arith.constant 0 : i32
      %c4_i32_26 = arith.constant 4 : i32
      %39 = arith.addi %c0_i32_25, %c4_i32_26 : i32
      %c1_i32_27 = arith.constant 1 : i32
      scf.for %arg12 = %c0_i32_25 to %39 step %c1_i32_27  : i32 {
        %c1_i32_29 = arith.constant 1 : i32
        %40 = arith.muli %arg12, %c1_i32_29 : i32
        %c0_i32_30 = arith.constant 0 : i32
        %41 = arith.addi %c0_i32_30, %40 : i32
        %c0_31 = arith.constant 0 : index
        %c0_32 = arith.constant 0 : index
        %c0_33 = arith.constant 0 : index
        %42 = vector.load %arg2[%c0_31, %c0_32, %c0_33] : memref<1x512x256xbf16, #tpu.memory_space<vmem>>, vector<1x512x256xbf16>
        %43 = vector.shape_cast %42 : vector<1x512x256xbf16> to vector<512x256xbf16>
        %c64_i32 = arith.constant 64 : i32
        %44 = arith.muli %41, %c64_i32 : i32
        %45 = tpu.assume_multiple %44, 64 : i32
        %c64_i32_34 = arith.constant 64 : i32
        %46 = arith.muli %41, %c64_i32_34 : i32
        %c256_i32_35 = arith.constant 256 : i32
        %47 = arith.addi %c256_i32_35, %46 : i32
        %48 = tpu.assume_multiple %47, 64 : i32
        %49 = arith.index_cast %45 : i32 to index
        %c0_36 = arith.constant 0 : index
        %50 = vector.load %arg4[%49, %c0_36] : memref<512x256xbf16, #tpu.memory_space<vmem>>, vector<64x256xbf16>
        %cst_37 = arith.constant dense<0.000000e+00> : vector<64x512xf32>
        %51 = tpu.matmul %50, %43, %cst_37 {dimension_numbers = #tpu.dot_dimension_numbers<[1], [1], [0], [0], [0, 0, 1, 0], [], []>} : vector<64x256xbf16>, vector<512x256xbf16>, vector<64x512xf32> -> vector<64x512xf32>
        %52 = arith.truncf %51 : vector<64x512xf32> to vector<64x512xbf16>
        %53 = arith.index_cast %41 : i32 to index
        %c0_38 = arith.constant 0 : index
        %c0_39 = arith.constant 0 : index
        %54 = vector.load %arg8[%53, %c0_38, %c0_39] : memref<4x64x512xbf16, #tpu.memory_space<vmem>>, vector<1x64x512xbf16>
        %55 = vector.shape_cast %54 : vector<1x64x512xbf16> to vector<64x512xbf16>
        %56 = vector.shape_cast %52 : vector<64x512xbf16> to vector<1x64x512xbf16>
        tpu.vector_store %arg8[%53, %c0_38, %c0_39], %56 {strides = array<i32>} : memref<4x64x512xbf16, #tpu.memory_space<vmem>>, vector<1x64x512xbf16>,
        %57 = arith.index_cast %48 : i32 to index
        %c0_40 = arith.constant 0 : index
        %58 = vector.load %arg4[%57, %c0_40] : memref<512x256xbf16, #tpu.memory_space<vmem>>, vector<64x256xbf16>
        %cst_41 = arith.constant dense<0.000000e+00> : vector<64x512xf32>
        %59 = tpu.matmul %58, %43, %cst_41 {dimension_numbers = #tpu.dot_dimension_numbers<[1], [1], [0], [0], [0, 0, 1, 0], [], []>} : vector<64x256xbf16>, vector<512x256xbf16>, vector<64x512xf32> -> vector<64x512xf32>
        %60 = arith.truncf %59 : vector<64x512xf32> to vector<64x512xbf16>
        %61 = arith.index_cast %41 : i32 to index
        %c0_42 = arith.constant 0 : index
        %c0_43 = arith.constant 0 : index
        %62 = vector.load %arg9[%61, %c0_42, %c0_43] : memref<4x64x512xbf16, #tpu.memory_space<vmem>>, vector<1x64x512xbf16>
        %63 = vector.shape_cast %62 : vector<1x64x512xbf16> to vector<64x512xbf16>
        %64 = vector.shape_cast %60 : vector<64x512xbf16> to vector<1x64x512xbf16>
        tpu.vector_store %arg9[%61, %c0_42, %c0_43], %64 {strides = array<i32>} : memref<4x64x512xbf16, #tpu.memory_space<vmem>>, vector<1x64x512xbf16>,
      }
      %c4_i32_28 = arith.constant 4 : i32
    } else {
    }
    %c256_i32 = arith.constant 256 : i32
    %3 = arith.muli %arg1, %c256_i32 : i32
    %4 = tpu.assume_multiple %3, 256 : i32
    %c0 = arith.constant 0 : index
    %5 = arith.index_cast %4 : i32 to index
    %c0_1 = arith.constant 0 : index
    %6 = vector.load %arg2[%c0, %5, %c0_1] : memref<1x512x256xbf16, #tpu.memory_space<vmem>>, vector<1x256x256xbf16>
    %7 = vector.shape_cast %6 : vector<1x256x256xbf16> to vector<256x256xbf16>
    %c0_2 = arith.constant 0 : index
    %c0_3 = arith.constant 0 : index
    %8 = vector.load %arg3[%c0_2, %c0_3] : memref<256x256xbf16, #tpu.memory_space<vmem>>, vector<256x256xbf16>
    %cst = arith.constant dense<0.000000e+00> : vector<256x256xf32>
    %9 = tpu.matmul %7, %8, %cst {dimension_numbers = #tpu.dot_dimension_numbers<[1], [0], [0], [1], [0, 0, 1, 1], [], []>} : vector<256x256xbf16>, vector<256x256xbf16>, vector<256x256xf32> -> vector<256x256xf32>
    %10 = arith.truncf %9 : vector<256x256xf32> to vector<256x256xbf16>
    %11 = vector.extract_strided_slice %10 {offsets = [0, 0], sizes = [256, 64], strides = [1, 1]} : vector<256x256xbf16> to vector<256x64xbf16>
    %c0_4 = arith.constant 0 : index
    %c0_5 = arith.constant 0 : index
    %c0_6 = arith.constant 0 : index
    %12 = vector.load %arg10[%c0_4, %c0_5, %c0_6] : memref<4x256x64xbf16, #tpu.memory_space<vmem>>, vector<1x256x64xbf16>
    %13 = vector.shape_cast %12 : vector<1x256x64xbf16> to vector<256x64xbf16>
    %14 = vector.shape_cast %11 : vector<256x64xbf16> to vector<1x256x64xbf16>
    tpu.vector_store %arg10[%c0_4, %c0_5, %c0_6], %14 {strides = array<i32>} : memref<4x256x64xbf16, #tpu.memory_space<vmem>>, vector<1x256x64xbf16>,
    %15 = vector.extract_strided_slice %10 {offsets = [0, 64], sizes = [256, 64], strides = [1, 1]} : vector<256x256xbf16> to vector<256x64xbf16>
    %c1 = arith.constant 1 : index
    %c0_7 = arith.constant 0 : index
    %c0_8 = arith.constant 0 : index
    %16 = vector.load %arg10[%c1, %c0_7, %c0_8] : memref<4x256x64xbf16, #tpu.memory_space<vmem>>, vector<1x256x64xbf16>
    %17 = vector.shape_cast %16 : vector<1x256x64xbf16> to vector<256x64xbf16>
    %18 = vector.shape_cast %15 : vector<256x64xbf16> to vector<1x256x64xbf16>
    tpu.vector_store %arg10[%c1, %c0_7, %c0_8], %18 {strides = array<i32>} : memref<4x256x64xbf16, #tpu.memory_space<vmem>>, vector<1x256x64xbf16>,
    %19 = vector.extract_strided_slice %10 {offsets = [0, 128], sizes = [256, 64], strides = [1, 1]} : vector<256x256xbf16> to vector<256x64xbf16>
    %c2 = arith.constant 2 : index
    %c0_9 = arith.constant 0 : index
    %c0_10 = arith.constant 0 : index
    %20 = vector.load %arg10[%c2, %c0_9, %c0_10] : memref<4x256x64xbf16, #tpu.memory_space<vmem>>, vector<1x256x64xbf16>
    %21 = vector.shape_cast %20 : vector<1x256x64xbf16> to vector<256x64xbf16>
    %22 = vector.shape_cast %19 : vector<256x64xbf16> to vector<1x256x64xbf16>
    tpu.vector_store %arg10[%c2, %c0_9, %c0_10], %22 {strides = array<i32>} : memref<4x256x64xbf16, #tpu.memory_space<vmem>>, vector<1x256x64xbf16>,
    %23 = vector.extract_strided_slice %10 {offsets = [0, 192], sizes = [256, 64], strides = [1, 1]} : vector<256x256xbf16> to vector<256x64xbf16>
    %c3 = arith.constant 3 : index
    %c0_11 = arith.constant 0 : index
    %c0_12 = arith.constant 0 : index
    %24 = vector.load %arg10[%c3, %c0_11, %c0_12] : memref<4x256x64xbf16, #tpu.memory_space<vmem>>, vector<1x256x64xbf16>
    %25 = vector.shape_cast %24 : vector<1x256x64xbf16> to vector<256x64xbf16>
    %26 = vector.shape_cast %23 : vector<256x64xbf16> to vector<1x256x64xbf16>
    tpu.vector_store %arg10[%c3, %c0_11, %c0_12], %26 {strides = array<i32>} : memref<4x256x64xbf16, #tpu.memory_space<vmem>>, vector<1x256x64xbf16>,
    %cst_13 = arith.constant 0.000000e+00 : f32
    %27 = vector.broadcast %cst_13 : f32 to vector<256x256xf32>
    %c0_14 = arith.constant 0 : index
    %c0_15 = arith.constant 0 : index
    %28 = vector.load %arg11[%c0_14, %c0_15] : memref<256x256xf32, #tpu.memory_space<vmem>>, vector<256x256xf32>
    tpu.vector_store %arg11[%c0_14, %c0_15], %27 {strides = array<i32>} : memref<256x256xf32, #tpu.memory_space<vmem>>, vector<256x256xf32>,
    %c0_i32_16 = arith.constant 0 : i32
    %c4_i32 = arith.constant 4 : i32
    %29 = arith.addi %c0_i32_16, %c4_i32 : i32
    %c1_i32 = arith.constant 1 : i32
    scf.for %arg12 = %c0_i32_16 to %29 step %c1_i32  : i32 {
      %c1_i32_25 = arith.constant 1 : i32
      %39 = arith.muli %arg12, %c1_i32_25 : i32
      %c0_i32_26 = arith.constant 0 : i32
      %40 = arith.addi %c0_i32_26, %39 : i32
      %41 = arith.index_cast %40 : i32 to index
      %c0_27 = arith.constant 0 : index
      %c0_28 = arith.constant 0 : index
      %42 = vector.load %arg10[%41, %c0_27, %c0_28] : memref<4x256x64xbf16, #tpu.memory_space<vmem>>, vector<1x256x64xbf16>
      %43 = vector.shape_cast %42 : vector<1x256x64xbf16> to vector<256x64xbf16>
      %44 = arith.index_cast %40 : i32 to index
      %c0_29 = arith.constant 0 : index
      %c0_30 = arith.constant 0 : index
      %45 = vector.load %arg8[%44, %c0_29, %c0_30] : memref<4x64x512xbf16, #tpu.memory_space<vmem>>, vector<1x64x512xbf16>
      %46 = vector.shape_cast %45 : vector<1x64x512xbf16> to vector<64x512xbf16>
      %cst_31 = arith.constant dense<0.000000e+00> : vector<256x512xf32>
      %47 = tpu.matmul %43, %46, %cst_31 {dimension_numbers = #tpu.dot_dimension_numbers<[1], [0], [0], [1], [0, 0, 1, 1], [], []>} : vector<256x64xbf16>, vector<64x512xbf16>, vector<256x512xf32> -> vector<256x512xf32>
      %cst_32 = arith.constant dense<0xFF800000> : vector<256xf32>
      %48 = vector.multi_reduction <maximumf>, %47, %cst_32 [1] : vector<256x512xf32> to vector<256xf32>
      %49 = vector.shape_cast %48 : vector<256xf32> to vector<256x1xf32>
      %50 = vector.broadcast %49 : vector<256x1xf32> to vector<256x512xf32>
      %51 = arith.subf %47, %50 : vector<256x512xf32>
      %52 = math.exp %51 : vector<256x512xf32>
      %cst_33 = arith.constant dense<0.000000e+00> : vector<256xf32>
      %53 = vector.multi_reduction <add>, %52, %cst_33 [1] : vector<256x512xf32> to vector<256xf32>
      %54 = vector.shape_cast %53 : vector<256xf32> to vector<256x1xf32>
      %55 = arith.truncf %52 : vector<256x512xf32> to vector<256x512xbf16>
      %56 = arith.index_cast %40 : i32 to index
      %c0_34 = arith.constant 0 : index
      %c0_35 = arith.constant 0 : index
      %57 = vector.load %arg9[%56, %c0_34, %c0_35] : memref<4x64x512xbf16, #tpu.memory_space<vmem>>, vector<1x64x512xbf16>
      %58 = vector.shape_cast %57 : vector<1x64x512xbf16> to vector<64x512xbf16>
      %cst_36 = arith.constant dense<0.000000e+00> : vector<256x64xf32>
      %59 = tpu.matmul %55, %58, %cst_36 {dimension_numbers = #tpu.dot_dimension_numbers<[1], [1], [0], [0], [0, 0, 1, 0], [], []>} : vector<256x512xbf16>, vector<64x512xbf16>, vector<256x64xf32> -> vector<256x64xf32>
      %60 = tpu.reciprocal %54 {approx = true} : vector<256x1xf32> -> vector<256x1xf32>
      %61 = vector.broadcast %60 : vector<256x1xf32> to vector<256x64xf32>
      %62 = arith.mulf %59, %61 : vector<256x64xf32>
      %c64_i32 = arith.constant 64 : i32
      %63 = arith.muli %40, %c64_i32 : i32
      %64 = tpu.assume_multiple %63, 64 : i32
      %c0_37 = arith.constant 0 : index
      %c0_38 = arith.constant 0 : index
      %65 = vector.load %arg11[%c0_37, %c0_38] : memref<256x256xf32, #tpu.memory_space<vmem>>, vector<256x256xf32>
      %66 = arith.truncf %62 : vector<256x64xf32> to vector<256x64xbf16>
      %67 = arith.index_cast %64 : i32 to index
      %c0_39 = arith.constant 0 : index
      %68 = vector.load %arg5[%67, %c0_39] : memref<256x256xbf16, #tpu.memory_space<vmem>>, vector<64x256xbf16>
      %cst_40 = arith.constant dense<0.000000e+00> : vector<256x256xf32>
      %69 = tpu.matmul %66, %68, %cst_40 {dimension_numbers = #tpu.dot_dimension_numbers<[1], [0], [0], [1], [0, 0, 1, 1], [], []>} : vector<256x64xbf16>, vector<64x256xbf16>, vector<256x256xf32> -> vector<256x256xf32>
      %70 = arith.addf %65, %69 : vector<256x256xf32>
      %c0_41 = arith.constant 0 : index
      %c0_42 = arith.constant 0 : index
      %71 = vector.load %arg11[%c0_41, %c0_42] : memref<256x256xf32, #tpu.memory_space<vmem>>, vector<256x256xf32>
      tpu.vector_store %arg11[%c0_41, %c0_42], %70 {strides = array<i32>} : memref<256x256xf32, #tpu.memory_space<vmem>>, vector<256x256xf32>,
    }
    %c4_i32_17 = arith.constant 4 : i32
    %c0_18 = arith.constant 0 : index
    %c0_19 = arith.constant 0 : index
    %30 = vector.load %arg11[%c0_18, %c0_19] : memref<256x256xf32, #tpu.memory_space<vmem>>, vector<256x256xf32>
    %c0_20 = arith.constant 0 : index
    %c0_21 = arith.constant 0 : index
    %31 = vector.load %arg6[%c0_20, %c0_21] : memref<1x256xf32, #tpu.memory_space<vmem>>, vector<1x256xf32>
    %32 = vector.shape_cast %31 : vector<1x256xf32> to vector<256xf32>
    %33 = vector.shape_cast %32 : vector<256xf32> to vector<1x256xf32>
    %34 = vector.broadcast %33 : vector<1x256xf32> to vector<256x256xf32>
    %35 = arith.addf %30, %34 : vector<256x256xf32>
    %c0_22 = arith.constant 0 : index
    %c0_23 = arith.constant 0 : index
    %c0_24 = arith.constant 0 : index
    %36 = vector.load %arg7[%c0_22, %c0_23, %c0_24] : memref<1x256x256xf32, #tpu.memory_space<vmem>>, vector<1x256x256xf32>
    %37 = vector.shape_cast %36 : vector<1x256x256xf32> to vector<256x256xf32>
    %38 = vector.shape_cast %35 : vector<256x256xf32> to vector<1x256x256xf32>
    tpu.vector_store %arg7[%c0_22, %c0_23, %c0_24], %38 {strides = array<i32>} : memref<1x256x256xf32, #tpu.memory_space<vmem>>, vector<1x256x256xf32>,
    return
  }
  func.func @transform_0(%arg0: i32, %arg1: i32) -> (i32, i32, i32) {
    %c0_i32 = arith.constant 0 : i32
    %c0_i32_0 = arith.constant 0 : i32
    %c0_i32_1 = arith.constant 0 : i32
    return %arg0, %c0_i32, %c0_i32_0 : i32, i32, i32
  }
  func.func @transform_1(%arg0: i32, %arg1: i32) -> (i32, i32) {
    %c0_i32 = arith.constant 0 : i32
    %c0_i32_0 = arith.constant 0 : i32
    %c0_i32_1 = arith.constant 0 : i32
    return %c0_i32, %c0_i32_0 : i32, i32
  }
  func.func @transform_2(%arg0: i32, %arg1: i32) -> (i32, i32) {
    %c0_i32 = arith.constant 0 : i32
    %c0_i32_0 = arith.constant 0 : i32
    %c0_i32_1 = arith.constant 0 : i32
    return %c0_i32, %c0_i32_0 : i32, i32
  }
  func.func @transform_3(%arg0: i32, %arg1: i32) -> (i32, i32) {
    %c0_i32 = arith.constant 0 : i32
    %c0_i32_0 = arith.constant 0 : i32
    %c0_i32_1 = arith.constant 0 : i32
    return %c0_i32, %c0_i32_0 : i32, i32
  }
  func.func @transform_4(%arg0: i32, %arg1: i32) -> (i32, i32) {
    %c0_i32 = arith.constant 0 : i32
    %c0_i32_0 = arith.constant 0 : i32
    %c0_i32_1 = arith.constant 0 : i32
    return %c0_i32, %c0_i32_0 : i32, i32
  }
  func.func @transform_5(%arg0: i32, %arg1: i32) -> (i32, i32, i32) {
    %c0_i32 = arith.constant 0 : i32
    %c0_i32_0 = arith.constant 0 : i32
    return %arg0, %arg1, %c0_i32 : i32, i32, i32
  }
}

</mosaic_0001>

<bundles_post_ra>
// kernel: tpu_custom_call.1
= control target key start
LH: loop header
LB: loop body
LE: loop exit
PB: predicated region body
PF: predicated region fallthrough
CT: control target
= control target key end

     0   :  { %s9626_s0 = inlined_call_operand.hbm [shape: bf16[2,512,256], index: 0, kind: input, shape index: {}]   ;;  %s9627_s1 = inlined_call_operand.hbm [shape: bf16[256,256], index: 1, kind: input, shape index: {}]   ;;  %s9628_s2 = inlined_call_operand.hbm [shape: bf16[512,256], index: 2, kind: input, shape index: {}]   ;;  %s9629_s3 = inlined_call_operand.hbm [shape: bf16[256,256], index: 3, kind: input, shape index: {}]   ;;  %s9630_s4 = inlined_call_operand.vmem [shape: f32[1,256], index: 4, kind: input, shape index: {}]   ;;  %s9631_s5 = inlined_call_operand.hbm [shape: f32[2,512,256], index: 5, kind: output, shape index: {}]  }
   0x1   :  { %9731 = sst [smem:[#allocation97_spill]] %s9627_s1 }
   0x2   :  { %9732 = sst [smem:[#allocation98_spill]] %s9628_s2 }
   0x3   :  { %9733 = sst [smem:[#allocation99_spill]] %s9629_s3 }
   0x4   :  { %9734 = sst [smem:[#allocation100_spill]] %s9631_s5 }
   0x5   :  { %10 = vsyncpa [#allocation7], 0 }
   0x6   :  { %12 = vsyncpa [#allocation7 + $0x1], 0 }
   0x7   :  { %13 = vsyncpa [#allocation10], 0 }
   0x8   :  { %14 = vsyncpa [#allocation13], 0 }
   0x9   :  { %15 = vsyncpa [#allocation8], 0 }
   0xa   :  { %17 = vsyncpa [#allocation8 + $0x1], 0  ;;  %s7274_s18 = smov 0   ;;  %s7276_s19 = smov 0  }
   0xb   :  { %s7278_s20 = smov 0   ;;  %s7280_s21 = smov 0  }
   0xc   :  { %s7282_s22 = smov 0   ;;  %s7284_s23 = smov 0  }
   0xd   :  { %s7286_s24 = smov 0   ;;  %s7288_s25 = smov 0  }
   0xe   :  { %s7290_s26 = smov 0   ;;  %s7292_s27 = smov 0  }
   0xf   :  { %s7294_s28 = smov 0  }
  0x10 LB: > { %9735 = sst [smem:[#allocation19_spill]] %s7185_s18  ;;  %s5335_s29 = sadd.s32 4294967295, %s7225_s28   ;;  %s7225_s28 = sphi %s7294_s28, %s23_s28   ;;  %s7221_s27 = sphi %s7292_s27, %s9963_s27   ;;  %s7217_s26 = sphi %s7290_s26, %s9954_s26   ;;  %s7213_s25 = sphi %s7288_s25, %s9962_s25   ;;  %s7209_s24 = sphi %s7286_s24, %s9953_s24   ;;  %s7205_s23 = sphi %s7284_s23, %s9961_s23   ;;  %s7201_s22 = sphi %s7282_s22, %s9960_s22   ;;  %s7197_s21 = sphi %s7280_s21, %s9959_s21   ;;  %s7193_s20 = sphi %s7278_s20, %s9958_s20   ;;  %s7189_s19 = sphi %s7276_s19, %s9957_s19   ;;  %s7185_s18 = sphi %s7274_s18, %s9956_s18  }
  0x11   : > { %9736 = sst [smem:[#allocation20_spill]] %s7217_s26  ;;  %s5336_s30 = sadd.s32 4294967294, %s7225_s28  }
  0x12   : > { %p55_p0 = scmp.ne.s32.totalorder %s7201_s22, %s7197_s21  ;;  %p7330_p1 = scmp.eq.s32.totalorder %s5335_s29, 0 }
  0x13   : > { %p164_p2 = scmp.ne.s32.totalorder %s7193_s20, %s7189_s19  ;;  %p165_p3 = scmp.eq.s32.totalorder %s5335_s29, 3 }
  0x14   : > { %p7338_p4 = por %p7330_p1, %p55_p0  ;;  %p170_p5 = scmp.ne.s32.totalorder %s7189_s19, %s7185_s18 }
  0x15   : > { %p7344_p6 = por %p165_p3, %p164_p2  ;;  %p171_p7 = scmp.eq.s32.totalorder %s5336_s30, 3 }
  0x16   : > { %p5337_p8 = scmp.ge.s32.totalorder %s7225_s28, 1  ;;  %p178_p9 = scmp.lt.s32.totalorder %s7225_s28, 5 }
  0x17   : > { %s9739_s8 = scalar_select %p7344_p6, 1, 0 }
  0x18   : > { %p7350_p10 = por %p171_p7, %p170_p5  ;;  %p7354_p11 = pnand %p5337_p8, %p178_p9 }
  0x19   : > { %9740 = sst [smem:[#allocation21_spill]] %s9739_s8  ;;  %s7235_s14 = smov [#allocation9]  }
  0x1a   : > { %s9741_s9 = scalar_select %p7350_p10, 1, 0 }
  0x1b   : > { %s9744_s1 = sld [smem:[#allocation97_spill]]  ;;  %p6508_p12 = pneg %p7354_p11 }
  0x1c   : > { %9742 = sst [smem:[#allocation22_spill]] %s9741_s9  ;;  %s191_s15 = sshll.u32 %s7235_s14, 4  ;;  %s192_s15 = int_to_ptr.vmem [resolvable:$true] %s191_s15 }
  0x1d   : > { %p7365_p13 = pnand %p6508_p12, %p7330_p1  ;;  %s9746_s2 = sld [smem:[#allocation98_spill]] }
  0x1e   : > { %s9632_s30 = smov 128   ;;  %s9633_s11 = smov 8  }
  0x1f   : > { %s9747_s3 = sld [smem:[#allocation99_spill]]  ;;  %s7238_s21 = smov [#allocation11]  }
  0x20   : > { %s35_s12 = sadd.s32 1, %s7221_s27  ;;  %s42_s14 = sadd.s32 1, %s7205_s23 }
  0x21   : > { %s189_s13 = sshll.u32 %s9744_s1, 4  ;;  %s205_s1 = sshll.u32 %s7238_s21, 4  ;;  %s190_s13 = int_to_ptr.hbm [resolvable:$true] %s189_s13  ;;  %s206_s1 = int_to_ptr.vmem [resolvable:$true] %s205_s1 }
  0x22   : > { %6511 = dma.hbm_to_vmem [thread:$0]  (!%p7365_p13), %s190_s13, 4096, %s192_s15, [#allocation10], %s9632_s30, %s9632_s30, %s9633_s11  }
  0x23   : > { %s203_s29 = sshll.u32 %s9746_s2, 4  ;;  %s7239_s2 = smov [#allocation12]   ;;  %s204_s29 = int_to_ptr.hbm [resolvable:$true] %s203_s29 }
  0x24   : > { %6514 = dma.hbm_to_vmem [thread:$0]  (!%p7365_p13), %s204_s29, 8192, %s206_s1, [#allocation10], %s9632_s30, %s9632_s30, %s9633_s11  }
  0x25   : > { %s217_s17 = sshll.u32 %s9747_s3, 4  ;;  %s219_s13 = sshll.u32 %s7239_s2, 4  ;;  %s218_s17 = int_to_ptr.hbm [resolvable:$true] %s217_s17  ;;  %s220_s13 = int_to_ptr.vmem [resolvable:$true] %s219_s13 }
  0x26   : > { %6517 = dma.hbm_to_vmem [thread:$0]  (!%p7365_p13), %s218_s17, 4096, %s220_s13, [#allocation13], %s9632_s30, %s9632_s30, %s9633_s11  }
  0x27   : > { %s32_s15 = sadd.s32 1, %s7217_s26  ;;  %p49_p2 = scmp.ne.s32.totalorder %s7205_s23, %s7201_s22 }
  0x28   : > { %p33_p0 = scmp.ge.s32.totalorder %s32_s15, 2  ;;  %p50_p3 = scmp.eq.s32.totalorder %s7225_s28, 0 }
  0x29   : > { %s154_s16 = sadd.s32 1, %s7193_s20  ;;  %p6529_p8 = scmp.lt.s32.totalorder %s7225_s28, 4 }
  0x2a   : > { %s9965_s15 = smov (%p33_p0, %s32_s15), 0  ;;  %s9967_s12 = smov (!%p33_p0, %s35_s12), %s7221_s27 }
  0x2b   : > { %9748 = sst [smem:[#allocation23_spill]] %s9965_s15  ;;  %p7399_p5 = por %p50_p3, %p49_p2 }
  0x2c   : > { %s150_s2 = ssub.s32 %s7217_s26, %s9965_s15  ;;  %p37_p7 = scmp.ge.s32.totalorder %s9967_s12, 2 }
  0x2d   : > { %s236_s29 = sand.u32 1, %s7205_s23   ;;  %s6273_s30 = sshll.u32 %s7221_s27, 9 }
  0x2e   : > { %s9969_s12 = smov (%p37_p7, %s9967_s12), 0  ;;  %s5342_s17 = sshll.u32 %s236_s29, 9 }
  0x2f   : > { %9750 = sst [smem:[#allocation24_spill]] %s9969_s12  ;;  %s39_s21 = ssub.s32 %s7221_s27, %s9969_s12 }
  0x30   : > { %p40_p9 = scmp.eq.s32.totalorder %s39_s21, 0  ;;  %s151_s13 = sor.u32 %s150_s2, %s39_s21 }
  0x31   : > { %p152_p12 = scmp.eq.s32.totalorder %s151_s13, 0  ;;  %s245_s9 = scalar_lea.hbm %s9626_s0, %s6273_s30 }
  0x32   : > { %s7414_s11 = scalar_select %p40_p9, %s7205_s23, %s42_s14  }
  0x33   : > { %s7417_s3 = scalar_select %p152_p12, %s7193_s20, %s154_s16  }
  0x34   : > { %s240_s18 = scalar_lea.vmem [#allocation6], %s5342_s17  ;;  %s246_s5 = sshll.u32 %s245_s9, 4  ;;  %s247_s5 = int_to_ptr.hbm [resolvable:$true] %s246_s5 }
  0x35   : > { %s248_s8 = sshll.u32 %s240_s18, 4  ;;  %p6519_p13 = pnand %p6529_p8, %p7399_p5  ;;  %s249_s8 = int_to_ptr.vmem [resolvable:$true] %s248_s8 }
  0x36   : > { %s237_s12 = scalar_lea.sflag [#allocation7], %s236_s29  ;;  %s9751_s2 = smov 8  }
  0x37   : > { %s9752_s21 = smov 128   ;;  %260 = sbr.rel (%p7354_p11) target bundleno = 2141 (0x85d), region = 40 }
  0x38   : > { %6521 = dma.hbm_to_vmem [thread:$0]  (!%p6519_p13), %s247_s5, 8192, %s249_s8, %s237_s12, %s9752_s21, %s9752_s21, %s9751_s2  }
  0x39   : > { %s262_s26 = sand.u32 (!%p7354_p11), 1, %s7201_s22  }
  0x3a   : > { %s5346_s30 = sshll.u32 (!%p7354_p11), %s262_s26, 9  ;;  %s263_s15 = scalar_lea.sflag (!%p7354_p11), [#allocation7], %s262_s26 }
  0x3b   : > { %s7432_s18 = scalar_lea.vmem (!%p7354_p11), [#allocation6], %s5346_s30 }
  0x3c   : > { %7168 = dma.done.wait (%p7338_p4), %s263_s15, 8192  }
  0x3d   : > { %7170 = vsyncadd (%p7338_p4), %s263_s15, 4294959104 }
  0x3e   : > { %7172 = dma.done.wait (%p7330_p1), [#allocation10], 12288  }
  0x3f   : > { %7174 = vsyncadd (%p7330_p1), [#allocation10], 4294955008 }
  0x40   : > { %7176 = dma.done.wait (%p7330_p1), [#allocation13], 4096  }
  0x41   : > { %7178 = vsyncadd (%p7330_p1), [#allocation13], 4294963200  ;;  %s306_s5 = sand.u32 1, %s7189_s19   ;;  %p5351_p4 = scmp.ne.s32.totalorder %s7209_s24, 0 }
  0x42   : > { %s5350_s8 = sshll.u32 %s306_s5, 9  ;;  %s7452_s7 = smov (!%p5351_p4), 0  }
  0x43   : > { %s7449_s9 = scalar_lea.vmem [#allocation14], %s5350_s8  ;;  %314 = sbr.rel (%p5351_p4) target bundleno = 531 (0x213), region = 60 }
  0x48 LB: >> { %v5445_v0 = vld [vmem:[%s7432_s18 + $0x70] sm:$0xf]  ;;  %v6289_v1 = vld [vmem:[%s7432_s18 + $0x74] sm:$0xf0]  ;;  %v6288_v2 = vld [vmem:[%s7432_s18 + $0x74] sm:$0xf]  ;;  %s7229_s7 = sphi %s7452_s7, %s320_s7  }
  0x49   : >> { %v7460_v3 = vor.u32 %v6289_v1, %v5445_v0  ;;  %v5447_v4 = vld [vmem:[%s7432_s18 + $0x78] sm:$0xf0]  ;;  %v5509_v5 = vld [vmem:[%s7432_s18 + $0xf0] sm:$0xf]  ;;  %v6305_v6 = vld [vmem:[%s7432_s18 + $0xf4] sm:$0xf0] }
  0x4a   : >> { %v7465_v7 = vor.u32 %v6288_v2, %v5447_v4  ;;  %v7467_v8 = vor.u32 %v6305_v6, %v5509_v5  ;;  %v6304_v9 = vld [vmem:[%s7432_s18 + $0xf4] sm:$0xf]  ;;  %v5511_v10 = vld [vmem:[%s7432_s18 + $0xf8] sm:$0xf0]  ;;  %v5437_v12 = vld [vmem:[%s7432_s18 + $0x60] sm:$0xf] }
  0x4b   : >> { %760 = vmatpush.bf16.xpose.msra.mxu0 %v7460_v3  ;;  %v7472_v11 = vor.u32 %v6304_v9, %v5511_v10  ;;  %v6287_v13 = vld [vmem:[%s7432_s18 + $0x64] sm:$0xf0]  ;;  %v6286_v14 = vld [vmem:[%s7432_s18 + $0x64] sm:$0xf]  ;;  %v5439_v15 = vld [vmem:[%s7432_s18 + $0x68] sm:$0xf0] }
  0x4c   : >> { %789 = vmatpush.bf16.xpose.msra.mxu1 %v7465_v7  ;;  %818 = vmatpush.bf16.xpose.msra.mxu2 %v7467_v8  ;;  %v5501_v16 = vld [vmem:[%s7432_s18 + $0xe0] sm:$0xf]  ;;  %v6303_v17 = vld [vmem:[%s7432_s18 + $0xe4] sm:$0xf0]  ;;  %v6302_v18 = vld [vmem:[%s7432_s18 + $0xe4] sm:$0xf]  ;;  %v7485_v20 = vor.u32 %v6287_v13, %v5437_v12  ;;  %v7487_v21 = vor.u32 %v6286_v14, %v5439_v15 }
  0x4d   : >> { %847 = vmatpush.bf16.xpose.msra.mxu3 %v7472_v11  ;;  %v5503_v19 = vld [vmem:[%s7432_s18 + $0xe8] sm:$0xf0]  ;;  %v7489_v22 = vor.u32 %v6303_v17, %v5501_v16  ;;  %v5429_v24 = vld [vmem:[%s7432_s18 + $0x50] sm:$0xf]  ;;  %v6285_v25 = vld [vmem:[%s7432_s18 + $0x54] sm:$0xf0] }
  0x4e   : >> { %v7491_v23 = vor.u32 %v6302_v18, %v5503_v19  ;;  %v6284_v26 = vld [vmem:[%s7432_s18 + $0x54] sm:$0xf]  ;;  %v5431_v27 = vld [vmem:[%s7432_s18 + $0x58] sm:$0xf0]  ;;  %v5493_v28 = vld [vmem:[%s7432_s18 + $0xd0] sm:$0xf]  ;;  %v7505_v32 = vor.u32 %v6285_v25, %v5429_v24 }
  0x4f   : >> { %v6301_v29 = vld [vmem:[%s7432_s18 + $0xd4] sm:$0xf0]  ;;  %v6300_v30 = vld [vmem:[%s7432_s18 + $0xd4] sm:$0xf]  ;;  %v5495_v31 = vld [vmem:[%s7432_s18 + $0xd8] sm:$0xf0]  ;;  %v7507_v33 = vor.u32 %v6284_v26, %v5431_v27 }
  0x50   : >> { %v7509_v34 = vor.u32 %v6301_v29, %v5493_v28  ;;  %v7511_v35 = vor.u32 %v6300_v30, %v5495_v31  ;;  %v5421_v36 = vld [vmem:[%s7432_s18 + $0x40] sm:$0xf]  ;;  %v6283_v37 = vld [vmem:[%s7432_s18 + $0x44] sm:$0xf0]  ;;  %v6282_v38 = vld [vmem:[%s7432_s18 + $0x44] sm:$0xf] }
  0x51   : >> { %v5423_v39 = vld [vmem:[%s7432_s18 + $0x48] sm:$0xf0]  ;;  %v5485_v40 = vld [vmem:[%s7432_s18 + $0xc0] sm:$0xf]  ;;  %v6299_v41 = vld [vmem:[%s7432_s18 + $0xc4] sm:$0xf0]  ;;  %v7525_v44 = vor.u32 %v6283_v37, %v5421_v36 }
  0x52   : >> { %v6298_v42 = vld [vmem:[%s7432_s18 + $0xc4] sm:$0xf]  ;;  %v5487_v43 = vld [vmem:[%s7432_s18 + $0xc8] sm:$0xf0]  ;;  %v7527_v45 = vor.u32 %v6282_v38, %v5423_v39  ;;  %v7529_v46 = vor.u32 %v6299_v41, %v5485_v40  ;;  %v5413_v48 = vld [vmem:[%s7432_s18 + $0x30] sm:$0xf] }
  0x53   : >> { %761 = vmatpush.bf16.xpose.msra.mxu0 %v7485_v20  ;;  %v7531_v47 = vor.u32 %v6298_v42, %v5487_v43  ;;  %v6281_v49 = vld [vmem:[%s7432_s18 + $0x34] sm:$0xf0]  ;;  %v6280_v50 = vld [vmem:[%s7432_s18 + $0x34] sm:$0xf]  ;;  %v5415_v51 = vld [vmem:[%s7432_s18 + $0x38] sm:$0xf0] }
  0x54   : >> { %790 = vmatpush.bf16.xpose.msra.mxu1 %v7487_v21  ;;  %819 = vmatpush.bf16.xpose.msra.mxu2 %v7489_v22  ;;  %v5477_v52 = vld [vmem:[%s7432_s18 + $0xb0] sm:$0xf]  ;;  %v6297_v53 = vld [vmem:[%s7432_s18 + $0xb4] sm:$0xf0]  ;;  %v6296_v54 = vld [vmem:[%s7432_s18 + $0xb4] sm:$0xf]  ;;  %v7545_v56 = vor.u32 %v6281_v49, %v5413_v48  ;;  %v7547_v57 = vor.u32 %v6280_v50, %v5415_v51 }
  0x55   : >> { %848 = vmatpush.bf16.xpose.msra.mxu3 %v7491_v23  ;;  %v5479_v55 = vld [vmem:[%s7432_s18 + $0xb8] sm:$0xf0]  ;;  %v7549_v58 = vor.u32 %v6297_v53, %v5477_v52  ;;  %v5405_v60 = vld [vmem:[%s7432_s18 + $0x20] sm:$0xf]  ;;  %v6279_v61 = vld [vmem:[%s7432_s18 + $0x24] sm:$0xf0] }
  0x56   : >> { %v7551_v59 = vor.u32 %v6296_v54, %v5479_v55  ;;  %v6278_v62 = vld [vmem:[%s7432_s18 + $0x24] sm:$0xf]  ;;  %v5407_v63 = vld [vmem:[%s7432_s18 + $0x28] sm:$0xf0]  ;;  %v5469_v0 = vld [vmem:[%s7432_s18 + $0xa0] sm:$0xf]  ;;  %v7565_v5 = vor.u32 %v6279_v61, %v5405_v60 }
  0x57   : >> { %v6295_v1 = vld [vmem:[%s7432_s18 + $0xa4] sm:$0xf0]  ;;  %v6294_v2 = vld [vmem:[%s7432_s18 + $0xa4] sm:$0xf]  ;;  %v5471_v4 = vld [vmem:[%s7432_s18 + $0xa8] sm:$0xf0]  ;;  %v7567_v6 = vor.u32 %v6278_v62, %v5407_v63 }
  0x58   : >> { %v7569_v9 = vor.u32 %v6295_v1, %v5469_v0  ;;  %v7571_v10 = vor.u32 %v6294_v2, %v5471_v4  ;;  %v5397_v12 = vld [vmem:[%s7432_s18 + $0x10] sm:$0xf]  ;;  %v6277_v13 = vld [vmem:[%s7432_s18 + $0x14] sm:$0xf0]  ;;  %v6276_v14 = vld [vmem:[%s7432_s18 + $0x14] sm:$0xf] }
  0x59   : >> { %v5399_v15 = vld [vmem:[%s7432_s18 + $0x18] sm:$0xf0]  ;;  %v5461_v16 = vld [vmem:[%s7432_s18 + $0x90] sm:$0xf]  ;;  %v6293_v17 = vld [vmem:[%s7432_s18 + $0x94] sm:$0xf0]  ;;  %v7585_v24 = vor.u32 %v6277_v13, %v5397_v12 }
  0x5a   : >> { %v6292_v18 = vld [vmem:[%s7432_s18 + $0x94] sm:$0xf]  ;;  %v5463_v19 = vld [vmem:[%s7432_s18 + $0x98] sm:$0xf0]  ;;  %v7587_v25 = vor.u32 %v6276_v14, %v5399_v15  ;;  %v7589_v26 = vor.u32 %v6293_v17, %v5461_v16  ;;  %v5389_v28 = vld [vmem:[%s7432_s18] sm:$0xf] }
  0x5b   : >> { %762 = vmatpush.bf16.xpose.msra.mxu0 %v7505_v32  ;;  %v7591_v27 = vor.u32 %v6292_v18, %v5463_v19  ;;  %v6275_v29 = vld [vmem:[%s7432_s18 + $0x4] sm:$0xf0]  ;;  %s5352_s6 = sshll.u32 %s7229_s7, 6  ;;  %v6274_v30 = vld [vmem:[%s7432_s18 + $0x4] sm:$0xf]  ;;  %s6347_s29 = sshll.u32 %s7229_s7, 7 }
  0x5c   : >> { %791 = vmatpush.bf16.xpose.msra.mxu1 %v7507_v33  ;;  %820 = vmatpush.bf16.xpose.msra.mxu2 %v7509_v34  ;;  %v5391_v31 = vld [vmem:[%s7432_s18 + $0x8] sm:$0xf0]  ;;  %v5453_v36 = vld [vmem:[%s7432_s18 + $0x80] sm:$0xf]  ;;  %v6291_v37 = vld [vmem:[%s7432_s18 + $0x84] sm:$0xf0]  ;;  %v7609_v43 = vor.u32 %v6275_v29, %v5389_v28 }
  0x5d   : >> { %849 = vmatpush.bf16.xpose.msra.mxu3 %v7511_v35  ;;  %v6290_v38 = vld [vmem:[%s7432_s18 + $0x84] sm:$0xf]  ;;  %v5455_v39 = vld [vmem:[%s7432_s18 + $0x88] sm:$0xf0]  ;;  %v5637_v40 = vld [vmem:[%s7432_s18 + $0x1f0] sm:$0xf]  ;;  %v7614_v51 = vor.u32 %v6274_v30, %v5391_v31  ;;  %v7616_v52 = vor.u32 %v6291_v37, %v5453_v36 }
  0x5e   : >> { %v6337_v41 = vld [vmem:[%s7432_s18 + $0x1f4] sm:$0xf0]  ;;  %v6336_v42 = vld [vmem:[%s7432_s18 + $0x1f4] sm:$0xf]  ;;  %v5639_v48 = vld [vmem:[%s7432_s18 + $0x1f8] sm:$0xf0]  ;;  %v7620_v55 = vor.u32 %v6290_v38, %v5455_v39 }
  0x5f   : >> { %v5573_v49 = vld [vmem:[%s7432_s18 + $0x170] sm:$0xf]  ;;  %v6321_v50 = vld [vmem:[%s7432_s18 + $0x174] sm:$0xf0]  ;;  %v6320_v53 = vld [vmem:[%s7432_s18 + $0x174] sm:$0xf]  ;;  %v7622_v60 = vor.u32 %v6337_v41, %v5637_v40  ;;  %v7624_v61 = vor.u32 %v6336_v42, %v5639_v48 }
  0x60   : >> { %v5575_v54 = vld [vmem:[%s7432_s18 + $0x178] sm:$0xf0]  ;;  %v7626_v62 = vor.u32 %v6321_v50, %v5573_v49  ;;  %s7631_s10 = scalar_lea.vmem [#allocation11], %s5352_s6  ;;  %v5629_v13 = vld [vmem:[%s7432_s18 + $0x1e0] sm:$0xf]  ;;  %s386_s12 = sadd.s32 256, %s5352_s6 }
  0x61   : >> { %v5357_v63 = vld [vmem:[%s7631_s10] sm:$0xf]  ;;  %v6340_v0 = vld [vmem:[%s7631_s10 + $0x4] sm:$0xf0]  ;;  %v7635_v1 = vor.u32 %v6320_v53, %v5575_v54  ;;  %v6339_v2 = vld [vmem:[%s7631_s10 + $0x4] sm:$0xf] }
  0x62   : >> { %v5359_v4 = vld [vmem:[%s7631_s10 + $0x8] sm:$0xf0]  ;;  %v7643_v12 = vor.u32 %v6340_v0, %v5357_v63  ;;  %v6335_v14 = vld [vmem:[%s7432_s18 + $0x1e4] sm:$0xf0]  ;;  %v6334_v15 = vld [vmem:[%s7432_s18 + $0x1e4] sm:$0xf] }
  0x63   : >> { %763 = vmatpush.bf16.xpose.msra.mxu0 %v7525_v44  ;;  %v7650_v16 = vor.u32 %v6339_v2, %v5359_v4  ;;  %v5631_v17 = vld [vmem:[%s7432_s18 + $0x1e8] sm:$0xf0]  ;;  %v5565_v18 = vld [vmem:[%s7432_s18 + $0x160] sm:$0xf]  ;;  %v6319_v19 = vld [vmem:[%s7432_s18 + $0x164] sm:$0xf0]  ;;  %v7658_v30 = vor.u32 %v6335_v14, %v5629_v13 }
  0x64   : >> { %792 = vmatpush.bf16.xpose.msra.mxu1 %v7527_v45  ;;  %821 = vmatpush.bf16.xpose.msra.mxu2 %v7529_v46  ;;  %v6318_v28 = vld [vmem:[%s7432_s18 + $0x164] sm:$0xf]  ;;  %v5567_v29 = vld [vmem:[%s7432_s18 + $0x168] sm:$0xf0]  ;;  %v7661_v31 = vor.u32 %v6334_v15, %v5631_v17  ;;  %v7663_v36 = vor.u32 %v6319_v19, %v5565_v18  ;;  %v5621_v38 = vld [vmem:[%s7432_s18 + $0x1d0] sm:$0xf] }
  0x65   : >> { %850 = vmatpush.bf16.xpose.msra.mxu3 %v7531_v47  ;;  %v7667_v37 = vor.u32 %v6318_v28, %v5567_v29  ;;  %v6333_v39 = vld [vmem:[%s7432_s18 + $0x1d4] sm:$0xf0]  ;;  %v6332_v40 = vld [vmem:[%s7432_s18 + $0x1d4] sm:$0xf]  ;;  %v5623_v41 = vld [vmem:[%s7432_s18 + $0x1d8] sm:$0xf0] }
  0x66   : >> { %v5557_v42 = vld [vmem:[%s7432_s18 + $0x150] sm:$0xf]  ;;  %v6317_v48 = vld [vmem:[%s7432_s18 + $0x154] sm:$0xf0]  ;;  %v6316_v49 = vld [vmem:[%s7432_s18 + $0x154] sm:$0xf]  ;;  %v7682_v53 = vor.u32 %v6333_v39, %v5621_v38  ;;  %v7684_v54 = vor.u32 %v6332_v40, %v5623_v41 }
  0x67   : >> { %9753 = vst [vmem:[#allocation25_spill] sm:$0xff] %v7667_v37  ;;  %v5559_v50 = vld [vmem:[%s7432_s18 + $0x158] sm:$0xf0]  ;;  %v7686_v63 = vor.u32 %v6317_v48, %v5557_v42  ;;  %v5365_v0 = vld [vmem:[%s7631_s10 + $0x10] sm:$0xf]  ;;  %s1027_s14 = sshra.s32 %s386_s12, 3 }
  0x68   : >> { %9754 = vst [vmem:[#allocation26_spill] sm:$0xff] %v7682_v53  ;;  %v6342_v2 = vld [vmem:[%s7631_s10 + $0x14] sm:$0xf0]  ;;  %v7690_v4 = vor.u32 %v6316_v49, %v5559_v50  ;;  %v6341_v13 = vld [vmem:[%s7631_s10 + $0x14] sm:$0xf]  ;;  %s6348_s1 = sshll.u32 %s1027_s14, 3 }
  0x69   : >> { %9755 = vst [vmem:[#allocation27_spill] sm:$0xff] %v7684_v54  ;;  %v5367_v14 = vld [vmem:[%s7631_s10 + $0x18] sm:$0xf0]  ;;  %v7695_v15 = vor.u32 %v6342_v2, %v5365_v0  ;;  %v5613_v17 = vld [vmem:[%s7432_s18 + $0x1c0] sm:$0xf]  ;;  %s7886_s16 = scalar_lea.vmem [#allocation11], %s6348_s1 }
  0x6a   : >> { %9756 = vst [vmem:[#allocation28_spill] sm:$0xff] %v7686_v63  ;;  %v6331_v18 = vld [vmem:[%s7432_s18 + $0x1c4] sm:$0xf0]  ;;  %v6330_v19 = vld [vmem:[%s7432_s18 + $0x1c4] sm:$0xf]  ;;  %v7702_v28 = vor.u32 %v6341_v13, %v5367_v14  ;;  %s7913_s17 = scalar_lea.vmem [#allocation2], %s6347_s29 }
  0x6b   : >> { %764 = vmatpush.bf16.xpose.msra.mxu0 %v7545_v56  ;;  %9757 = vst [vmem:[#allocation29_spill] sm:$0xff] %v7690_v4  ;;  %v5615_v29 = vld [vmem:[%s7432_s18 + $0x1c8] sm:$0xf0]  ;;  %v5549_v38 = vld [vmem:[%s7432_s18 + $0x140] sm:$0xf]  ;;  %v7710_v42 = vor.u32 %v6331_v18, %v5613_v17  ;;  %s8001_s13 = scalar_lea.vmem [#allocation3], %s6347_s29 }
  0x6c   : >> { %793 = vmatpush.bf16.xpose.msra.mxu1 %v7547_v57  ;;  %822 = vmatpush.bf16.xpose.msra.mxu2 %v7549_v58  ;;  %v6315_v39 = vld [vmem:[%s7432_s18 + $0x144] sm:$0xf0]  ;;  %v6314_v40 = vld [vmem:[%s7432_s18 + $0x144] sm:$0xf]  ;;  %v5551_v41 = vld [vmem:[%s7432_s18 + $0x148] sm:$0xf0]  ;;  %v7713_v48 = vor.u32 %v6330_v19, %v5615_v29 }
  0x6d   : >> { %851 = vmatpush.bf16.xpose.msra.mxu3 %v7551_v59  ;;  %9758 = vst [vmem:[#allocation30_spill] sm:$0xff] %v7710_v42  ;;  %v7715_v49 = vor.u32 %v6315_v39, %v5549_v38  ;;  %v7719_v50 = vor.u32 %v6314_v40, %v5551_v41  ;;  %v5605_v0 = vld [vmem:[%s7432_s18 + $0x1b0] sm:$0xf]  ;;  %v6329_v2 = vld [vmem:[%s7432_s18 + $0x1b4] sm:$0xf0]  ;;  %s320_s7 = sadd.s32 1, %s7229_s7  }
  0x6e   : >> { %9759 = vst [vmem:[#allocation31_spill] sm:$0xff] %v7713_v48  ;;  %v6328_v13 = vld [vmem:[%s7432_s18 + $0x1b4] sm:$0xf]  ;;  %v5607_v14 = vld [vmem:[%s7432_s18 + $0x1b8] sm:$0xf0]  ;;  %v7734_v38 = vor.u32 %v6329_v2, %v5605_v0  ;;  %p317_p1 = scmp.ge.s32.totalorder %s320_s7, 4  }
  0x6f   : >> { %9760 = vst [vmem:[#allocation32_spill] sm:$0xff] %v7715_v49  ;;  %v5541_v17 = vld [vmem:[%s7432_s18 + $0x130] sm:$0xf]  ;;  %v6313_v18 = vld [vmem:[%s7432_s18 + $0x134] sm:$0xf0]  ;;  %v7736_v39 = vor.u32 %v6328_v13, %v5607_v14 }
  0x70   : >> { %9761 = vst [vmem:[#allocation33_spill] sm:$0xff] %v7719_v50  ;;  %v6312_v19 = vld [vmem:[%s7432_s18 + $0x134] sm:$0xf]  ;;  %v5543_v29 = vld [vmem:[%s7432_s18 + $0x138] sm:$0xf0]  ;;  %v7738_v40 = vor.u32 %v6313_v18, %v5541_v17 }
  0x71   : >> { %9762 = vst [vmem:[#allocation34_spill] sm:$0xff] %v7734_v38  ;;  %v5373_v41 = vld [vmem:[%s7631_s10 + $0x20] sm:$0xf]  ;;  %v6327_v2 = vld [vmem:[%s7432_s18 + $0x1a4] sm:$0xf0] }
  0x72   : >> { %9763 = vst [vmem:[#allocation35_spill] sm:$0xff] %v7736_v39  ;;  %v5597_v0 = vld [vmem:[%s7432_s18 + $0x1a0] sm:$0xf]  ;;  %v6326_v13 = vld [vmem:[%s7432_s18 + $0x1a4] sm:$0xf] }
  0x73   : >> { %765 = vmatpush.bf16.xpose.msra.mxu0 %v7565_v5  ;;  %9764 = vst [vmem:[#allocation36_spill] sm:$0xff] %v7738_v40  ;;  %v5599_v17 = vld [vmem:[%s7432_s18 + $0x1a8] sm:$0xf0]  ;;  %v5533_v18 = vld [vmem:[%s7432_s18 + $0x120] sm:$0xf] }
  0x74   : >> { %794 = vmatpush.bf16.xpose.msra.mxu1 %v7567_v6  ;;  %823 = vmatpush.bf16.xpose.msra.mxu2 %v7569_v9 }
  0x75   : >> { %852 = vmatpush.bf16.xpose.msra.mxu3 %v7571_v10 }
  0x7b   : >> { %766 = vmatpush.bf16.xpose.msra.mxu0 %v7585_v24 }
  0x7c   : >> { %795 = vmatpush.bf16.xpose.msra.mxu1 %v7587_v25  ;;  %824 = vmatpush.bf16.xpose.msra.mxu2 %v7589_v26 }
  0x7d   : >> { %853 = vmatpush.bf16.xpose.msra.mxu3 %v7591_v27 }
  0x83   : >> { %767 = vmatpush.bf16.xpose.msra.mxu0 %v7609_v43 }
  0x84   : >> { %796 = vmatpush.bf16.xpose.msra.mxu1 %v7614_v51  ;;  %825 = vmatpush.bf16.xpose.msra.mxu2 %v7616_v52 }
  0x85   : >> { %854 = vmatpush.bf16.xpose.msra.mxu3 %v7620_v55 }
  0x8a   : >> { %768 = vmatmul.bf16.vlgmr.msra.gmra.mxu0 %v7643_v12 }
  0x8b   : >> { %876 = vmatpush.bf16.xpose.msrb.mxu0 %v7626_v62  ;;  %797 = vmatmul.bf16.vlgmr.msra.gmra.mxu1 %v7650_v16 }
  0x8c   : >> { %934 = vmatpush.bf16.xpose.msrb.mxu2 %v7622_v60  ;;  %905 = vmatpush.bf16.xpose.msrb.mxu1 %v7635_v1 }
  0x8d   : >> { %963 = vmatpush.bf16.xpose.msrb.mxu3 %v7624_v61  ;;  %826 = vmatmul.bf16.vlgmr.msra.gmra.mxu2 %v7643_v12 }
  0x8e   : >> { %855 = vmatmul.bf16.vlgmr.msra.gmra.mxu3 %v7650_v16 }
  0x93   : >> { %877 = vmatpush.bf16.xpose.msrb.mxu0 %v7663_v36 }
  0x94   : >> { %935 = vmatpush.bf16.xpose.msrb.mxu2 %v7658_v30  ;;  %906 = vmatpush.bf16.xpose.msrb.mxu1 %v7667_v37 }
  0x95   : >> { %964 = vmatpush.bf16.xpose.msrb.mxu3 %v7661_v31 }
  0x9a   : >> { %773 = vmatmul.bf16.gmra.mxu0 %v7695_v15 }
  0x9b   : >> { %878 = vmatpush.bf16.xpose.msrb.mxu0 %v7686_v63  ;;  %802 = vmatmul.bf16.gmra.mxu1 %v7702_v28  ;;  %v5383_v63 = vld [vmem:[%s7631_s10 + $0x38] sm:$0xf0] }
  0x9c   : >> { %936 = vmatpush.bf16.xpose.msrb.mxu2 %v7682_v53  ;;  %907 = vmatpush.bf16.xpose.msrb.mxu1 %v7690_v4  ;;  %v5519_v53 = vld [vmem:[%s7432_s18 + $0x108] sm:$0xf0] }
  0x9d   : >> { %965 = vmatpush.bf16.xpose.msrb.mxu3 %v7684_v54  ;;  %831 = vmatmul.bf16.gmra.mxu2 %v7695_v15 }
  0x9e   : >> { %860 = vmatmul.bf16.gmra.mxu3 %v7702_v28 }
  0xa3   : >> { %879 = vmatpush.bf16.xpose.msrb.mxu0 %v7715_v49  ;;  %v6344_v49 = vld [vmem:[%s7631_s10 + $0x24] sm:$0xf0] }
  0xa4   : >> { %937 = vmatpush.bf16.xpose.msrb.mxu2 %v7710_v42  ;;  %908 = vmatpush.bf16.xpose.msrb.mxu1 %v7719_v50  ;;  %v7742_v50 = vor.u32 %v6312_v19, %v5543_v29  ;;  %v5375_v42 = vld [vmem:[%s7631_s10 + $0x28] sm:$0xf0]  ;;  %v7747_v4 = vor.u32 %v6344_v49, %v5373_v41  ;;  %v6311_v19 = vld [vmem:[%s7432_s18 + $0x124] sm:$0xf0]  ;;  %v6310_v29 = vld [vmem:[%s7432_s18 + $0x124] sm:$0xf]  ;;  %v7762_v41 = vor.u32 %v6327_v2, %v5597_v0 }
  0xa5   : >> { %966 = vmatpush.bf16.xpose.msrb.mxu3 %v7713_v48  ;;  %v6343_v48 = vld [vmem:[%s7631_s10 + $0x24] sm:$0xf]  ;;  %v5535_v49 = vld [vmem:[%s7432_s18 + $0x128] sm:$0xf0]  ;;  %v5589_v0 = vld [vmem:[%s7432_s18 + $0x190] sm:$0xf] }
  0xa6   : >> { %9765 = vst [vmem:[#allocation37_spill] sm:$0xff] %v7742_v50  ;;  %v7754_v14 = vor.u32 %v6343_v48, %v5375_v42  ;;  %v7767_v42 = vor.u32 %v6311_v19, %v5533_v18  ;;  %v7771_v48 = vor.u32 %v6310_v29, %v5535_v49  ;;  %v6325_v2 = vld [vmem:[%s7432_s18 + $0x194] sm:$0xf0]  ;;  %v5525_v18 = vld [vmem:[%s7432_s18 + $0x110] sm:$0xf] }
  0xa7   : >> { %9766 = vst [vmem:[#allocation38_spill] sm:$0xff] %v7762_v41  ;;  %v6309_v19 = vld [vmem:[%s7432_s18 + $0x114] sm:$0xf0]  ;;  %v6308_v29 = vld [vmem:[%s7432_s18 + $0x114] sm:$0xf] }
  0xa8   : >> { %9768 = vst [vmem:[#allocation40_spill] sm:$0xff] %v7767_v42  ;;  %v5527_v49 = vld [vmem:[%s7432_s18 + $0x118] sm:$0xf0] }
  0xa9   : >> { %9769 = vst [vmem:[#allocation41_spill] sm:$0xff] %v7771_v48 }
  0xaa   : >> { %778 = vmatmul.bf16.gmra.mxu0 %v7747_v4 }
  0xab   : >> { %880 = vmatpush.bf16.xpose.msrb.mxu0 %v7738_v40  ;;  %v7765_v40 = vor.u32 %v6326_v13, %v5599_v17  ;;  %807 = vmatmul.bf16.gmra.mxu1 %v7754_v14  ;;  %v6324_v13 = vld [vmem:[%s7432_s18 + $0x194] sm:$0xf]  ;;  %v5591_v17 = vld [vmem:[%s7432_s18 + $0x198] sm:$0xf0] }
  0xac   : >> { %938 = vmatpush.bf16.xpose.msrb.mxu2 %v7734_v38  ;;  %909 = vmatpush.bf16.xpose.msrb.mxu1 %v7742_v50  ;;  %v5381_v50 = vld [vmem:[%s7631_s10 + $0x30] sm:$0xf]  ;;  %v6345_v38 = vld [vmem:[%s7631_s10 + $0x34] sm:$0xf] }
  0xad   : >> { %967 = vmatpush.bf16.xpose.msrb.mxu3 %v7736_v39  ;;  %9767 = vst [vmem:[#allocation39_spill] sm:$0xff] %v7765_v40  ;;  %836 = vmatmul.bf16.gmra.mxu2 %v7747_v4  ;;  %v6346_v39 = vld [vmem:[%s7631_s10 + $0x34] sm:$0xf0] }
  0xae   : >> { %865 = vmatmul.bf16.gmra.mxu3 %v7754_v14  ;;  %v7799_v54 = vor.u32 %v6346_v39, %v5381_v50 }
  0xb3   : >> { %881 = vmatpush.bf16.xpose.msrb.mxu0 %v7767_v42  ;;  %v7790_v42 = vor.u32 %v6309_v19, %v5525_v18  ;;  %v5583_v18 = vld [vmem:[%s7432_s18 + $0x188] sm:$0xf0]  ;;  %v5517_v19 = vld [vmem:[%s7432_s18 + $0x100] sm:$0xf] }
  0xb4   : >> { %939 = vmatpush.bf16.xpose.msrb.mxu2 %v7762_v41  ;;  %910 = vmatpush.bf16.xpose.msrb.mxu1 %v7771_v48  ;;  %v7786_v41 = vor.u32 %v6325_v2, %v5589_v0  ;;  %v7794_v48 = vor.u32 %v6308_v29, %v5527_v49  ;;  %v5581_v0 = vld [vmem:[%s7432_s18 + $0x180] sm:$0xf]  ;;  %v6323_v2 = vld [vmem:[%s7432_s18 + $0x184] sm:$0xf0]  ;;  %v6306_v49 = vld [vmem:[%s7432_s18 + $0x104] sm:$0xf] }
  0xb5   : >> { %968 = vmatpush.bf16.xpose.msrb.mxu3 %v7765_v40  ;;  %v7788_v40 = vor.u32 %v6324_v13, %v5591_v17  ;;  %v6322_v13 = vld [vmem:[%s7432_s18 + $0x184] sm:$0xf]  ;;  %v7806_v17 = vor.u32 %v6345_v38, %v5383_v63  ;;  %v6307_v29 = vld [vmem:[%s7432_s18 + $0x104] sm:$0xf0]  ;;  %v7814_v37 = vor.u32 %v6323_v2, %v5581_v0  ;;  %v7823_v63 = vor.u32 %v6306_v49, %v5519_v53  ;;  %v9784_v2 = vld [vmem:[#allocation39_spill] sm:$0xff] }
  0xb6   : >> { %v7817_v50 = vor.u32 %v6322_v13, %v5583_v18  ;;  %v7819_v39 = vor.u32 %v6307_v29, %v5517_v19  ;;  %v5665_v13 = vld [vmem:[%s7886_s16 + $0x20] sm:$0xf]  ;;  %v6353_v18 = vld [vmem:[%s7886_s16 + $0x24] sm:$0xf]  ;;  %v5667_v19 = vld [vmem:[%s7886_s16 + $0x28] sm:$0xf0] }
  0xb7   : >> { %v9785_v29 = vld [vmem:[#allocation40_spill] sm:$0xff]  ;;  %v9786_v49 = vld [vmem:[#allocation41_spill] sm:$0xff] }
  0xba   : >> { %783 = vmatmul.bf16.gmra.mxu0 %v7799_v54 }
  0xbb   : >> { %882 = vmatpush.bf16.xpose.msrb.mxu0 %v7790_v42  ;;  %812 = vmatmul.bf16.gmra.mxu1 %v7806_v17 }
  0xbc   : >> { %940 = vmatpush.bf16.xpose.msrb.mxu2 %v7786_v41  ;;  %911 = vmatpush.bf16.xpose.msrb.mxu1 %v7794_v48 }
  0xbd   : >> { %969 = vmatpush.bf16.xpose.msrb.mxu3 %v7788_v40  ;;  %841 = vmatmul.bf16.gmra.mxu2 %v7799_v54 }
  0xbe   : >> { %870 = vmatmul.bf16.gmra.mxu3 %v7806_v17 }
  0xc3   : >> { %883 = vmatpush.bf16.xpose.msrb.mxu0 %v7819_v39 }
  0xc4   : >> { %941 = vmatpush.bf16.xpose.msrb.mxu2 %v7814_v37  ;;  %912 = vmatpush.bf16.xpose.msrb.mxu1 %v7823_v63 }
  0xc5   : >> { %970 = vmatpush.bf16.xpose.msrb.mxu3 %v7817_v50 }
  0xca   : >> { %884 = vmatmul.bf16.vlgmr.msrb.gmra.mxu0 %v7643_v12 }
  0xcb   : >> { %1080 = vmatpush.bf16.xpose.msra.mxu0 %v7460_v3  ;;  %913 = vmatmul.bf16.vlgmr.msrb.gmra.mxu1 %v7650_v16  ;;  %v5649_v3 = vld [vmem:[%s7886_s16] sm:$0xf] }
  0xcc   : >> { %1138 = vmatpush.bf16.xpose.msra.mxu2 %v7467_v8  ;;  %1109 = vmatpush.bf16.xpose.msra.mxu1 %v7465_v7  ;;  %v6350_v7 = vld [vmem:[%s7886_s16 + $0x4] sm:$0xf0]  ;;  %v6349_v8 = vld [vmem:[%s7886_s16 + $0x4] sm:$0xf] }
  0xcd   : >> { %1167 = vmatpush.bf16.xpose.msra.mxu3 %v7472_v11  ;;  %942 = vmatmul.bf16.vlgmr.msrb.gmra.mxu2 %v7643_v12  ;;  %v5651_v11 = vld [vmem:[%s7886_s16 + $0x8] sm:$0xf0] }
  0xce   : >> { %971 = vmatmul.bf16.vlgmr.msrb.gmra.mxu3 %v7650_v16  ;;  %v9779_v12 = vld [vmem:[#allocation34_spill] sm:$0xff] }
  0xd3   : >> { %1081 = vmatpush.bf16.xpose.msra.mxu0 %v7485_v20  ;;  %v9770_v20 = vld [vmem:[#allocation25_spill] sm:$0xff] }
  0xd4   : >> { %1139 = vmatpush.bf16.xpose.msra.mxu2 %v7489_v22  ;;  %1110 = vmatpush.bf16.xpose.msra.mxu1 %v7487_v21  ;;  %v7894_v21 = vor.u32 %v6350_v7, %v5649_v3 }
  0xd5   : >> { %1168 = vmatpush.bf16.xpose.msra.mxu3 %v7491_v23  ;;  %v7896_v23 = vor.u32 %v6349_v8, %v5651_v11 }
  0xda   : >> { %889 = vmatmul.bf16.gmra.mxu0 %v7695_v15 }
  0xdb   : >> { %1082 = vmatpush.bf16.xpose.msra.mxu0 %v7505_v32  ;;  %918 = vmatmul.bf16.gmra.mxu1 %v7702_v28 }
  0xdc   : >> { %1140 = vmatpush.bf16.xpose.msra.mxu2 %v7509_v34  ;;  %1111 = vmatpush.bf16.xpose.msra.mxu1 %v7507_v33  ;;  %v9771_v33 = vld [vmem:[#allocation26_spill] sm:$0xff]  ;;  %v9772_v34 = vld [vmem:[#allocation27_spill] sm:$0xff] }
  0xdd   : >> { %1169 = vmatpush.bf16.xpose.msra.mxu3 %v7511_v35  ;;  %947 = vmatmul.bf16.gmra.mxu2 %v7695_v15  ;;  %v9773_v35 = vld [vmem:[#allocation28_spill] sm:$0xff] }
  0xde   : >> { %976 = vmatmul.bf16.gmra.mxu3 %v7702_v28 }
  0xe3   : >> { %1083 = vmatpush.bf16.xpose.msra.mxu0 %v7525_v44  ;;  %v9774_v44 = vld [vmem:[#allocation29_spill] sm:$0xff] }
  0xe4   : >> { %1141 = vmatpush.bf16.xpose.msra.mxu2 %v7529_v46  ;;  %1112 = vmatpush.bf16.xpose.msra.mxu1 %v7527_v45 }
  0xe5   : >> { %1170 = vmatpush.bf16.xpose.msra.mxu3 %v7531_v47 }
  0xea   : >> { %894 = vmatmul.bf16.gmra.mxu0 %v7747_v4 }
  0xeb   : >> { %1084 = vmatpush.bf16.xpose.msra.mxu0 %v7545_v56  ;;  %923 = vmatmul.bf16.gmra.mxu1 %v7754_v14 }
  0xec   : >> { %1142 = vmatpush.bf16.xpose.msra.mxu2 %v7549_v58  ;;  %1113 = vmatpush.bf16.xpose.msra.mxu1 %v7547_v57 }
  0xed   : >> { %1171 = vmatpush.bf16.xpose.msra.mxu3 %v7551_v59  ;;  %952 = vmatmul.bf16.gmra.mxu2 %v7747_v4  ;;  %v9775_v59 = vld [vmem:[#allocation30_spill] sm:$0xff] }
  0xee   : >> { %981 = vmatmul.bf16.gmra.mxu3 %v7754_v14  ;;  %v9783_v14 = vld [vmem:[#allocation38_spill] sm:$0xff] }
  0xf3   : >> { %1085 = vmatpush.bf16.xpose.msra.mxu0 %v7565_v5 }
  0xf4   : >> { %1143 = vmatpush.bf16.xpose.msra.mxu2 %v7569_v9  ;;  %1114 = vmatpush.bf16.xpose.msra.mxu1 %v7567_v6  ;;  %v9776_v6 = vld [vmem:[#allocation31_spill] sm:$0xff] }
  0xf5   : >> { %1172 = vmatpush.bf16.xpose.msra.mxu3 %v7571_v10  ;;  %v5657_v9 = vld [vmem:[%s7886_s16 + $0x10] sm:$0xf]  ;;  %v6352_v10 = vld [vmem:[%s7886_s16 + $0x14] sm:$0xf0] }
  0xfa   : >> { %899 = vmatmul.bf16.gmra.mxu0 %v7799_v54 }
  0xfb   : >> { %1086 = vmatpush.bf16.xpose.msra.mxu0 %v7585_v24  ;;  %928 = vmatmul.bf16.gmra.mxu1 %v7806_v17  ;;  %v6351_v24 = vld [vmem:[%s7886_s16 + $0x14] sm:$0xf] }
  0xfc   : >> { %1144 = vmatpush.bf16.xpose.msra.mxu2 %v7589_v26  ;;  %1115 = vmatpush.bf16.xpose.msra.mxu1 %v7587_v25  ;;  %v5659_v25 = vld [vmem:[%s7886_s16 + $0x18] sm:$0xf0] }
  0xfd   : >> { %1173 = vmatpush.bf16.xpose.msra.mxu3 %v7591_v27  ;;  %957 = vmatmul.bf16.gmra.mxu2 %v7799_v54  ;;  %v9777_v26 = vld [vmem:[#allocation32_spill] sm:$0xff]  ;;  %v9778_v27 = vld [vmem:[#allocation33_spill] sm:$0xff] }
  0xfe   : >> { %986 = vmatmul.bf16.gmra.mxu3 %v7806_v17  ;;  %v6354_v17 = vld [vmem:[%s7886_s16 + $0x24] sm:$0xf0] }
  0xff   : >> { %v7942_v7 = vor.u32 %v6354_v17, %v5665_v13 }
 0x103   : >> { %1087 = vmatpush.bf16.xpose.msra.mxu0 %v7609_v43 }
 0x104   : >> { %1145 = vmatpush.bf16.xpose.msra.mxu2 %v7616_v52  ;;  %1116 = vmatpush.bf16.xpose.msra.mxu1 %v7614_v51  ;;  %v7920_v51 = vor.u32 %v6352_v10, %v5657_v9 }
 0x105   : >> { %1174 = vmatpush.bf16.xpose.msra.mxu3 %v7620_v55 }
 0x107   : >> { %v769_v22 = vpop.f32.mrf.mxu0 }
 0x108   : >> { %v798_v32 = vpop.f32.mrf.mxu1 }
 0x109   : >> { %v799_v45 = vadd.f32 %v798_v32, %v769_v22 }
 0x10a   : >> { %1088 = vmatmul.bf16.vlgmr.msra.gmra.mxu0 %v7894_v21 }
 0x10b   : >> { %1196 = vmatpush.bf16.xpose.msrb.mxu0 %v7626_v62  ;;  %1117 = vmatmul.bf16.vlgmr.msra.gmra.mxu1 %v7896_v23 }
 0x10c   : >> { %1254 = vmatpush.bf16.xpose.msrb.mxu2 %v7622_v60  ;;  %1225 = vmatpush.bf16.xpose.msrb.mxu1 %v7635_v1  ;;  %v7922_v60 = vor.u32 %v6351_v24, %v5659_v25 }
 0x10d   : >> { %1283 = vmatpush.bf16.xpose.msrb.mxu3 %v7624_v61  ;;  %1146 = vmatmul.bf16.vlgmr.msra.gmra.mxu2 %v7894_v21 }
 0x10e   : >> { %1175 = vmatmul.bf16.vlgmr.msra.gmra.mxu3 %v7896_v23 }
 0x10f   : >> { %v771_v56 = vpop.f32.mrf.mxu0 }
 0x110   : >> { %v827_v46 = vpop.f32.mrf.mxu2  ;;  %v800_v58 = vpop.f32.mrf.mxu1 }
 0x111   : >> { %v856_v47 = vpop.f32.mrf.mxu3  ;;  %v801_v61 = vadd.f32 %v800_v58, %v771_v56  ;;  %v5673_v56 = vld [vmem:[%s7886_s16 + $0x30] sm:$0xf]  ;;  %v6355_v58 = vld [vmem:[%s7886_s16 + $0x34] sm:$0xf] }
 0x112   : >> { %v857_v57 = vadd.f32 %v856_v47, %v827_v46 }
 0x113   : >> { %1197 = vmatpush.bf16.xpose.msrb.mxu0 %v7663_v36  ;;  %v9782_v36 = vld [vmem:[#allocation37_spill] sm:$0xff] }
 0x114   : >> { %1255 = vmatpush.bf16.xpose.msrb.mxu2 %v7658_v30  ;;  %1226 = vmatpush.bf16.xpose.msrb.mxu1 %v9770_v20  ;;  %v992_v5 = vpack.c.bf16 %v857_v57, %v799_v45  ;;  %v9780_v30 = vld [vmem:[#allocation35_spill] sm:$0xff]  ;;  %v7944_v20 = vor.u32 %v6353_v18, %v5667_v19  ;;  %v6356_v57 = vld [vmem:[%s7886_s16 + $0x34] sm:$0xf0] }
 0x115   : >> { %1284 = vmatpush.bf16.xpose.msrb.mxu3 %v7661_v31  ;;  %v9781_v31 = vld [vmem:[#allocation36_spill] sm:$0xff] }
 0x116   : >> { %1011 = vst [vmem:[%s7913_s17] sm:$0xff] %v992_v5 }
 0x117   : >> { %v774_v55 = vpop.f32.mrf.mxu0 }
 0x118   : >> { %v829_v43 = vpop.f32.mrf.mxu2  ;;  %v803_v1 = vpop.f32.mrf.mxu1 }
 0x119   : >> { %v858_v52 = vpop.f32.mrf.mxu3  ;;  %v804_v53 = vadd.f32 %v803_v1, %v774_v55 }
 0x11a   : >> { %v859_v62 = vadd.f32 %v858_v52, %v829_v43  ;;  %1093 = vmatmul.bf16.gmra.mxu0 %v7920_v51 }
 0x11b   : >> { %1198 = vmatpush.bf16.xpose.msrb.mxu0 %v9773_v35  ;;  %1122 = vmatmul.bf16.gmra.mxu1 %v7922_v60 }
 0x11c   : >> { %1256 = vmatpush.bf16.xpose.msrb.mxu2 %v9771_v33  ;;  %1227 = vmatpush.bf16.xpose.msrb.mxu1 %v9774_v44  ;;  %v994_v16 = vpack.c.bf16 %v859_v62, %v801_v61 }
 0x11d   : >> { %1285 = vmatpush.bf16.xpose.msrb.mxu3 %v9772_v34  ;;  %1151 = vmatmul.bf16.gmra.mxu2 %v7920_v51 }
 0x11e   : >> { %1013 = vst [vmem:[%s7913_s17 + $0x10] sm:$0xff] %v994_v16  ;;  %1180 = vmatmul.bf16.gmra.mxu3 %v7922_v60 }
 0x11f   : >> { %v776_v15 = vpop.f32.mrf.mxu0 }
 0x120   : >> { %v832_v54 = vpop.f32.mrf.mxu2  ;;  %v805_v38 = vpop.f32.mrf.mxu1 }
 0x121   : >> { %v861_v4 = vpop.f32.mrf.mxu3  ;;  %v806_v22 = vadd.f32 %v805_v38, %v776_v15 }
 0x122   : >> { %v862_v28 = vadd.f32 %v861_v4, %v832_v54 }
 0x123   : >> { %1199 = vmatpush.bf16.xpose.msrb.mxu0 %v9777_v26 }
 0x124   : >> { %1257 = vmatpush.bf16.xpose.msrb.mxu2 %v9775_v59  ;;  %1228 = vmatpush.bf16.xpose.msrb.mxu1 %v9778_v27  ;;  %v996_v0 = vpack.c.bf16 %v862_v28, %v804_v53  ;;  %v5675_v59 = vld [vmem:[%s7886_s16 + $0x38] sm:$0xf0] }
 0x125   : >> { %1286 = vmatpush.bf16.xpose.msrb.mxu3 %v9776_v6  ;;  %v7966_v9 = vor.u32 %v6355_v58, %v5675_v59 }
 0x126   : >> { %1015 = vst [vmem:[%s7913_s17 + $0x20] sm:$0xff] %v996_v0 }
 0x127   : >> { %v779_v11 = vpop.f32.mrf.mxu0 }
 0x128   : >> { %v834_v3 = vpop.f32.mrf.mxu2  ;;  %v808_v33 = vpop.f32.mrf.mxu1 }
 0x129   : >> { %v863_v8 = vpop.f32.mrf.mxu3 }
 0x12a   : >> { %v864_v32 = vadd.f32 %v863_v8, %v834_v3  ;;  %1098 = vmatmul.bf16.gmra.mxu0 %v7942_v7 }
 0x12b   : >> { %1200 = vmatpush.bf16.xpose.msrb.mxu0 %v9781_v31  ;;  %1127 = vmatmul.bf16.gmra.mxu1 %v7944_v20 }
 0x12c   : >> { %1258 = vmatpush.bf16.xpose.msrb.mxu2 %v9779_v12  ;;  %1229 = vmatpush.bf16.xpose.msrb.mxu1 %v9782_v36  ;;  %v998_v34 = vpack.c.bf16 %v864_v32, %v806_v22 }
 0x12d   : >> { %1287 = vmatpush.bf16.xpose.msrb.mxu3 %v9780_v30  ;;  %1156 = vmatmul.bf16.gmra.mxu2 %v7942_v7 }
 0x12e   : >> { %1017 = vst [vmem:[%s7913_s17 + $0x30] sm:$0xff] %v998_v34  ;;  %1185 = vmatmul.bf16.gmra.mxu3 %v7944_v20 }
 0x130   : >> { %v837_v35 = vpop.f32.mrf.mxu2  ;;  %v810_v46 = vpop.f32.mrf.mxu1 }
 0x131   : >> { %v866_v44 = vpop.f32.mrf.mxu3 }
 0x132   : >> { %v867_v45 = vadd.f32 %v866_v44, %v837_v35 }
 0x133   : >> { %1201 = vmatpush.bf16.xpose.msrb.mxu0 %v9785_v29 }
 0x134   : >> { %1259 = vmatpush.bf16.xpose.msrb.mxu2 %v9783_v14  ;;  %1230 = vmatpush.bf16.xpose.msrb.mxu1 %v9786_v49 }
 0x135   : >> { %1288 = vmatpush.bf16.xpose.msrb.mxu3 %v9784_v2 }
 0x138   : >> { %v813_v10 = vpop.f32.mrf.mxu1 }
 0x139   : >> { %v868_v5 = vpop.f32.mrf.mxu3 }
 0x13b   : >> { %1202 = vmatpush.bf16.xpose.msrb.mxu0 %v7790_v42  ;;  %v839_v42 = vpop.f32.mrf.mxu2  ;;  %1132 = vmatmul.bf16.gmra.mxu1 %v7966_v9 }
 0x13c   : >> { %1260 = vmatpush.bf16.xpose.msrb.mxu2 %v7786_v41  ;;  %1231 = vmatpush.bf16.xpose.msrb.mxu1 %v7794_v48  ;;  %v809_v41 = vadd.f32 %v808_v33, %v779_v11  ;;  %v7964_v48 = vor.u32 %v6356_v57, %v5673_v56 }
 0x13d   : >> { %1289 = vmatpush.bf16.xpose.msrb.mxu3 %v7788_v40  ;;  %v781_v40 = vpop.f32.mrf.mxu0 }
 0x13e   : >> { %v1000_v47 = vpack.c.bf16 %v867_v45, %v809_v41  ;;  %1103 = vmatmul.bf16.gmra.mxu0 %v7964_v48  ;;  %1161 = vmatmul.bf16.gmra.mxu2 %v7964_v48 }
 0x13f   : >> { %1190 = vmatmul.bf16.gmra.mxu3 %v7966_v9 }
 0x140   : >> { %1019 = vst [vmem:[%s7913_s17 + $0x40] sm:$0xff] %v1000_v47  ;;  %v815_v43 = vpop.f32.mrf.mxu1 }
 0x141   : >> { %v871_v25 = vpop.f32.mrf.mxu3 }
 0x143   : >> { %1203 = vmatpush.bf16.xpose.msrb.mxu0 %v7819_v39 }
 0x144   : >> { %1261 = vmatpush.bf16.xpose.msrb.mxu2 %v7814_v37  ;;  %1232 = vmatpush.bf16.xpose.msrb.mxu1 %v7823_v63  ;;  %v811_v37 = vadd.f32 %v810_v46, %v781_v40  ;;  %v842_v63 = vpop.f32.mrf.mxu2 }
 0x145   : >> { %1290 = vmatpush.bf16.xpose.msrb.mxu3 %v7817_v50  ;;  %v784_v6 = vpop.f32.mrf.mxu0  ;;  %v869_v50 = vadd.f32 %v868_v5, %v839_v42  ;;  %v872_v27 = vadd.f32 %v871_v25, %v842_v63 }
 0x146   : >> { %v814_v39 = vadd.f32 %v813_v10, %v784_v6 }
 0x147   : >> { %v1002_v24 = vpack.c.bf16 %v869_v50, %v811_v37 }
 0x148   : >> { %v1004_v52 = vpack.c.bf16 %v872_v27, %v814_v39  ;;  %v914_v16 = vpop.f32.mrf.mxu1 }
 0x149   : >> { %1021 = vst [vmem:[%s7913_s17 + $0x50] sm:$0xff] %v1002_v24  ;;  %v873_v61 = vpop.f32.mrf.mxu3 }
 0x14a   : >> { %1023 = vst [vmem:[%s7913_s17 + $0x60] sm:$0xff] %v1004_v52 }
 0x14b   : >> { %1233 = vmatmul.bf16.vlgmr.msrb.gmra.mxu1 %v7896_v23 }
 0x14c   : >> { %v844_v55 = vpop.f32.mrf.mxu2 }
 0x14d   : >> { %v786_v26 = vpop.f32.mrf.mxu0  ;;  %v874_v12 = vadd.f32 %v873_v61, %v844_v55 }
 0x14e   : >> { %v816_v1 = vadd.f32 %v815_v43, %v786_v26  ;;  %1204 = vmatmul.bf16.vlgmr.msrb.gmra.mxu0 %v7894_v21  ;;  %1262 = vmatmul.bf16.vlgmr.msrb.gmra.mxu2 %v7894_v21 }
 0x14f   : >> { %1291 = vmatmul.bf16.vlgmr.msrb.gmra.mxu3 %v7896_v23 }
 0x150   : >> { %v1006_v30 = vpack.c.bf16 %v874_v12, %v816_v1  ;;  %v916_v15 = vpop.f32.mrf.mxu1 }
 0x151   : >> { %v972_v53 = vpop.f32.mrf.mxu3 }
 0x152   : >> { %1025 = vst [vmem:[%s7913_s17 + $0x70] sm:$0xff] %v1006_v30 }
 0x154   : >> { %v943_v36 = vpop.f32.mrf.mxu2 }
 0x155   : >> { %v885_v62 = vpop.f32.mrf.mxu0  ;;  %v973_v4 = vadd.f32 %v972_v53, %v943_v36 }
 0x156   : >> { %v915_v31 = vadd.f32 %v914_v16, %v885_v62 }
 0x158   : >> { %v993_v28 = vpack.c.bf16 %v973_v4, %v915_v31  ;;  %v919_v17 = vpop.f32.mrf.mxu1 }
 0x159   : >> { %v974_v14 = vpop.f32.mrf.mxu3 }
 0x15a   : >> { %1012 = vst [vmem:[%s7913_s17 + $0x8] sm:$0xff] %v993_v28 }
 0x15b   : >> { %1238 = vmatmul.bf16.gmra.mxu1 %v7922_v60 }
 0x15c   : >> { %v945_v38 = vpop.f32.mrf.mxu2 }
 0x15d   : >> { %v887_v54 = vpop.f32.mrf.mxu0  ;;  %v975_v13 = vadd.f32 %v974_v14, %v945_v38 }
 0x15e   : >> { %v917_v2 = vadd.f32 %v916_v15, %v887_v54  ;;  %1209 = vmatmul.bf16.gmra.mxu0 %v7920_v51  ;;  %1267 = vmatmul.bf16.gmra.mxu2 %v7920_v51 }
 0x15f   : >> { %1296 = vmatmul.bf16.gmra.mxu3 %v7922_v60 }
 0x160   : >> { %v995_v21 = vpack.c.bf16 %v975_v13, %v917_v2  ;;  %v921_v3 = vpop.f32.mrf.mxu1 }
 0x161   : >> { %v977_v19 = vpop.f32.mrf.mxu3 }
 0x162   : >> { %1014 = vst [vmem:[%s7913_s17 + $0x18] sm:$0xff] %v995_v21 }
 0x164   : >> { %v948_v18 = vpop.f32.mrf.mxu2 }
 0x165   : >> { %v890_v0 = vpop.f32.mrf.mxu0  ;;  %v978_v49 = vadd.f32 %v977_v19, %v948_v18 }
 0x166   : >> { %v920_v23 = vadd.f32 %v919_v17, %v890_v0 }
 0x168   : >> { %v997_v8 = vpack.c.bf16 %v978_v49, %v920_v23  ;;  %v924_v41 = vpop.f32.mrf.mxu1 }
 0x169   : >> { %v979_v22 = vpop.f32.mrf.mxu3 }
 0x16a   : >> { %1016 = vst [vmem:[%s7913_s17 + $0x28] sm:$0xff] %v997_v8 }
 0x16b   : >> { %1243 = vmatmul.bf16.gmra.mxu1 %v7944_v20 }
 0x16c   : >> { %v950_v11 = vpop.f32.mrf.mxu2 }
 0x16d   : >> { %v892_v29 = vpop.f32.mrf.mxu0  ;;  %v980_v34 = vadd.f32 %v979_v22, %v950_v11 }
 0x16e   : >> { %v922_v33 = vadd.f32 %v921_v3, %v892_v29  ;;  %1214 = vmatmul.bf16.gmra.mxu0 %v7942_v7  ;;  %1272 = vmatmul.bf16.gmra.mxu2 %v7942_v7 }
 0x16f   : >> { %1301 = vmatmul.bf16.gmra.mxu3 %v7944_v20 }
 0x170   : >> { %v999_v51 = vpack.c.bf16 %v980_v34, %v922_v33  ;;  %v926_v46 = vpop.f32.mrf.mxu1 }
 0x171   : >> { %v982_v44 = vpop.f32.mrf.mxu3 }
 0x172   : >> { %1018 = vst [vmem:[%s7913_s17 + $0x38] sm:$0xff] %v999_v51 }
 0x174   : >> { %v953_v35 = vpop.f32.mrf.mxu2 }
 0x175   : >> { %v895_v32 = vpop.f32.mrf.mxu0  ;;  %v983_v45 = vadd.f32 %v982_v44, %v953_v35 }
 0x176   : >> { %v925_v60 = vadd.f32 %v924_v41, %v895_v32 }
 0x178   : >> { %v1001_v47 = vpack.c.bf16 %v983_v45, %v925_v60  ;;  %v929_v5 = vpop.f32.mrf.mxu1 }
 0x179   : >> { %v984_v57 = vpop.f32.mrf.mxu3 }
 0x17a   : >> { %1020 = vst [vmem:[%s7913_s17 + $0x48] sm:$0xff] %v1001_v47 }
 0x17b   : >> { %1248 = vmatmul.bf16.gmra.mxu1 %v7966_v9 }
 0x17c   : >> { %v955_v56 = vpop.f32.mrf.mxu2 }
 0x17d   : >> { %v897_v40 = vpop.f32.mrf.mxu0  ;;  %v985_v42 = vadd.f32 %v984_v57, %v955_v56 }
 0x17e   : >> { %v927_v59 = vadd.f32 %v926_v46, %v897_v40  ;;  %1219 = vmatmul.bf16.gmra.mxu0 %v7964_v48  ;;  %1277 = vmatmul.bf16.gmra.mxu2 %v7964_v48 }
 0x17f   : >> { %1306 = vmatmul.bf16.gmra.mxu3 %v7966_v9 }
 0x180   : >> { %v1003_v7 = vpack.c.bf16 %v985_v42, %v927_v59  ;;  %v931_v24 = vpop.f32.mrf.mxu1 }
 0x181   : >> { %v987_v37 = vpop.f32.mrf.mxu3 }
 0x182   : >> { %1022 = vst [vmem:[%s7913_s17 + $0x58] sm:$0xff] %v1003_v7 }
 0x184   : >> { %v958_v6 = vpop.f32.mrf.mxu2 }
 0x185   : >> { %v900_v58 = vpop.f32.mrf.mxu0  ;;  %v988_v10 = vadd.f32 %v987_v37, %v958_v6 }
 0x186   : >> { %v930_v20 = vadd.f32 %v929_v5, %v900_v58 }
 0x188   : >> { %v1005_v39 = vpack.c.bf16 %v988_v10, %v930_v20  ;;  %v1118_v52 = vpop.f32.mrf.mxu1 }
 0x189   : >> { %v989_v25 = vpop.f32.mrf.mxu3 }
 0x18a   : >> { %1024 = vst [vmem:[%s7913_s17 + $0x68] sm:$0xff] %v1005_v39 }
 0x18c   : >> { %v960_v63 = vpop.f32.mrf.mxu2 }
 0x18d   : >> { %v902_v50 = vpop.f32.mrf.mxu0  ;;  %v990_v43 = vadd.f32 %v989_v25, %v960_v63 }
 0x18e   : >> { %v932_v27 = vadd.f32 %v931_v24, %v902_v50 }
 0x190   : >> { %v1007_v48 = vpack.c.bf16 %v990_v43, %v932_v27  ;;  %v1120_v12 = vpop.f32.mrf.mxu1 }
 0x191   : >> { %v1176_v61 = vpop.f32.mrf.mxu3 }
 0x192   : >> { %1026 = vst [vmem:[%s7913_s17 + $0x78] sm:$0xff] %v1007_v48 }
 0x194   : >> { %v1147_v9 = vpop.f32.mrf.mxu2 }
 0x195   : >> { %v1089_v26 = vpop.f32.mrf.mxu0  ;;  %v1177_v1 = vadd.f32 %v1176_v61, %v1147_v9 }
 0x196   : >> { %v1119_v55 = vadd.f32 %v1118_v52, %v1089_v26 }
 0x198   : >> { %v1312_v16 = vpack.c.bf16 %v1177_v1, %v1119_v55  ;;  %v1123_v4 = vpop.f32.mrf.mxu1 }
 0x199   : >> { %v1178_v31 = vpop.f32.mrf.mxu3 }
 0x19a   : >> { %1330 = vst [vmem:[%s8001_s13] sm:$0xff] %v1312_v16 }
 0x19c   : >> { %v1149_v30 = vpop.f32.mrf.mxu2 }
 0x19d   : >> { %v1091_v62 = vpop.f32.mrf.mxu0  ;;  %v1179_v54 = vadd.f32 %v1178_v31, %v1149_v30 }
 0x19e   : >> { %v1121_v53 = vadd.f32 %v1120_v12, %v1091_v62 }
 0x1a0   : >> { %v1314_v15 = vpack.c.bf16 %v1179_v54, %v1121_v53  ;;  %v1125_v13 = vpop.f32.mrf.mxu1 }
 0x1a1   : >> { %v1181_v14 = vpop.f32.mrf.mxu3 }
 0x1a2   : >> { %1332 = vst [vmem:[%s8001_s13 + $0x10] sm:$0xff] %v1314_v15 }
 0x1a4   : >> { %v1152_v38 = vpop.f32.mrf.mxu2 }
 0x1a5   : >> { %v1094_v36 = vpop.f32.mrf.mxu0  ;;  %v1182_v2 = vadd.f32 %v1181_v14, %v1152_v38 }
 0x1a6   : >> { %v1124_v28 = vadd.f32 %v1123_v4, %v1094_v36 }
 0x1a8   : >> { %v1316_v17 = vpack.c.bf16 %v1182_v2, %v1124_v28  ;;  %v1128_v49 = vpop.f32.mrf.mxu1 }
 0x1a9   : >> { %v1183_v23 = vpop.f32.mrf.mxu3 }
 0x1aa   : >> { %1334 = vst [vmem:[%s8001_s13 + $0x20] sm:$0xff] %v1316_v17 }
 0x1ac   : >> { %v1154_v21 = vpop.f32.mrf.mxu2 }
 0x1ad   : >> { %v1096_v0 = vpop.f32.mrf.mxu0  ;;  %v1184_v29 = vadd.f32 %v1183_v23, %v1154_v21 }
 0x1ae   : >> { %v1126_v19 = vadd.f32 %v1125_v13, %v1096_v0 }
 0x1b0   : >> { %v1318_v3 = vpack.c.bf16 %v1184_v29, %v1126_v19  ;;  %v1130_v34 = vpop.f32.mrf.mxu1 }
 0x1b1   : >> { %v1186_v22 = vpop.f32.mrf.mxu3 }
 0x1b2   : >> { %1336 = vst [vmem:[%s8001_s13 + $0x30] sm:$0xff] %v1318_v3 }
 0x1b4   : >> { %v1157_v11 = vpop.f32.mrf.mxu2 }
 0x1b5   : >> { %v1099_v18 = vpop.f32.mrf.mxu0  ;;  %v1187_v33 = vadd.f32 %v1186_v22, %v1157_v11 }
 0x1b6   : >> { %v1129_v8 = vadd.f32 %v1128_v49, %v1099_v18 }
 0x1b8   : >> { %v1320_v41 = vpack.c.bf16 %v1187_v33, %v1129_v8  ;;  %v1133_v45 = vpop.f32.mrf.mxu1 }
 0x1b9   : >> { %v1188_v60 = vpop.f32.mrf.mxu3 }
 0x1ba   : >> { %1338 = vst [vmem:[%s8001_s13 + $0x40] sm:$0xff] %v1320_v41 }
 0x1bc   : >> { %v1159_v51 = vpop.f32.mrf.mxu2 }
 0x1bd   : >> { %v1101_v32 = vpop.f32.mrf.mxu0  ;;  %v1189_v40 = vadd.f32 %v1188_v60, %v1159_v51 }
 0x1be   : >> { %v1131_v44 = vadd.f32 %v1130_v34, %v1101_v32 }
 0x1c0   : >> { %v1322_v46 = vpack.c.bf16 %v1189_v40, %v1131_v44  ;;  %v1135_v42 = vpop.f32.mrf.mxu1 }
 0x1c2   : >> { %1340 = vst [vmem:[%s8001_s13 + $0x50] sm:$0xff] %v1322_v46  ;;  %v1191_v57 = vpop.f32.mrf.mxu3 }
 0x1c4   : >> { %v1162_v56 = vpop.f32.mrf.mxu2 }
 0x1c5   : >> { %v1104_v35 = vpop.f32.mrf.mxu0  ;;  %v1192_v59 = vadd.f32 %v1191_v57, %v1162_v56 }
 0x1c6   : >> { %v1134_v47 = vadd.f32 %v1133_v45, %v1104_v35 }
 0x1c8   : >> { %v1324_v5 = vpack.c.bf16 %v1192_v59, %v1134_v47  ;;  %v1234_v10 = vpop.f32.mrf.mxu1 }
 0x1ca   : >> { %1342 = vst [vmem:[%s8001_s13 + $0x60] sm:$0xff] %v1324_v5  ;;  %v1193_v20 = vpop.f32.mrf.mxu3 }
 0x1cc   : >> { %v1164_v7 = vpop.f32.mrf.mxu2 }
 0x1cd   : >> { %v1106_v58 = vpop.f32.mrf.mxu0  ;;  %v1194_v50 = vadd.f32 %v1193_v20, %v1164_v7 }
 0x1ce   : >> { %v1136_v37 = vadd.f32 %v1135_v42, %v1106_v58 }
 0x1d0   : >> { %v1326_v24 = vpack.c.bf16 %v1194_v50, %v1136_v37  ;;  %v1236_v43 = vpop.f32.mrf.mxu1 }
 0x1d2   : >> { %1344 = vst [vmem:[%s8001_s13 + $0x70] sm:$0xff] %v1326_v24  ;;  %v1292_v25 = vpop.f32.mrf.mxu3 }
 0x1d4   : >> { %v1263_v63 = vpop.f32.mrf.mxu2 }
 0x1d5   : >> { %v1205_v6 = vpop.f32.mrf.mxu0  ;;  %v1293_v27 = vadd.f32 %v1292_v25, %v1263_v63 }
 0x1d6   : >> { %v1235_v39 = vadd.f32 %v1234_v10, %v1205_v6 }
 0x1d8   : >> { %v1313_v52 = vpack.c.bf16 %v1293_v27, %v1235_v39  ;;  %v1239_v1 = vpop.f32.mrf.mxu1 }
 0x1da   : >> { %1331 = vst [vmem:[%s8001_s13 + $0x8] sm:$0xff] %v1313_v52  ;;  %v1294_v55 = vpop.f32.mrf.mxu3 }
 0x1dc   : >> { %v1265_v48 = vpop.f32.mrf.mxu2 }
 0x1dd   : >> { %v1207_v26 = vpop.f32.mrf.mxu0  ;;  %v1295_v62 = vadd.f32 %v1294_v55, %v1265_v48 }
 0x1de   : >> { %v1237_v61 = vadd.f32 %v1236_v43, %v1207_v26 }
 0x1e0   : >> { %v1315_v12 = vpack.c.bf16 %v1295_v62, %v1237_v61  ;;  %v1241_v54 = vpop.f32.mrf.mxu1 }
 0x1e2   : >> { %1333 = vst [vmem:[%s8001_s13 + $0x18] sm:$0xff] %v1315_v12  ;;  %v1297_v31 = vpop.f32.mrf.mxu3 }
 0x1e4   : >> { %v1268_v30 = vpop.f32.mrf.mxu2 }
 0x1e5   : >> { %v1210_v9 = vpop.f32.mrf.mxu0  ;;  %v1298_v53 = vadd.f32 %v1297_v31, %v1268_v30 }
 0x1e6   : >> { %v1240_v16 = vadd.f32 %v1239_v1, %v1210_v9 }
 0x1e8   : >> { %v1317_v4 = vpack.c.bf16 %v1298_v53, %v1240_v16  ;;  %v1244_v2 = vpop.f32.mrf.mxu1 }
 0x1ea   : >> { %1335 = vst [vmem:[%s8001_s13 + $0x28] sm:$0xff] %v1317_v4  ;;  %v1299_v28 = vpop.f32.mrf.mxu3 }
 0x1ec   : >> { %v1270_v15 = vpop.f32.mrf.mxu2 }
 0x1ed   : >> { %v1212_v36 = vpop.f32.mrf.mxu0  ;;  %v1300_v0 = vadd.f32 %v1299_v28, %v1270_v15 }
 0x1ee   : >> { %v1242_v14 = vadd.f32 %v1241_v54, %v1212_v36 }
 0x1f0   : >> { %v1319_v13 = vpack.c.bf16 %v1300_v0, %v1242_v14  ;;  %v1246_v29 = vpop.f32.mrf.mxu1 }
 0x1f2   : >> { %1337 = vst [vmem:[%s8001_s13 + $0x38] sm:$0xff] %v1319_v13  ;;  %v1302_v23 = vpop.f32.mrf.mxu3 }
 0x1f4   : >> { %v1273_v21 = vpop.f32.mrf.mxu2 }
 0x1f5   : >> { %v1215_v38 = vpop.f32.mrf.mxu0  ;;  %v1303_v18 = vadd.f32 %v1302_v23, %v1273_v21 }
 0x1f6   : >> { %v1245_v17 = vadd.f32 %v1244_v2, %v1215_v38 }
 0x1f8   : >> { %v1321_v49 = vpack.c.bf16 %v1303_v18, %v1245_v17  ;;  %v1249_v34 = vpop.f32.mrf.mxu1 }
 0x1fa   : >> { %1339 = vst [vmem:[%s8001_s13 + $0x48] sm:$0xff] %v1321_v49  ;;  %v1304_v8 = vpop.f32.mrf.mxu3 }
 0x1fc   : >> { %v1275_v3 = vpop.f32.mrf.mxu2 }
 0x1fd   : >> { %v1217_v19 = vpop.f32.mrf.mxu0  ;;  %v1305_v22 = vadd.f32 %v1304_v8, %v1275_v3 }
 0x1fe   : >> { %v1247_v11 = vadd.f32 %v1246_v29, %v1217_v19 }
 0x200   : >> { %v1323_v32 = vpack.c.bf16 %v1305_v22, %v1247_v11  ;;  %v1251_v45 = vpop.f32.mrf.mxu1 }
 0x202   : >> { %1341 = vst [vmem:[%s8001_s13 + $0x58] sm:$0xff] %v1323_v32  ;;  %v1307_v60 = vpop.f32.mrf.mxu3 }
 0x204   : >> { %v1278_v51 = vpop.f32.mrf.mxu2 }
 0x205   : >> { %v1220_v33 = vpop.f32.mrf.mxu0  ;;  %v1308_v35 = vadd.f32 %v1307_v60, %v1278_v51 }
 0x206   : >> { %v1250_v41 = vadd.f32 %v1249_v34, %v1220_v33 }
 0x208   : >> { %v1325_v44 = vpack.c.bf16 %v1308_v35, %v1250_v41 }
 0x20a   : >> { %1343 = vst [vmem:[%s8001_s13 + $0x68] sm:$0xff] %v1325_v44  ;;  %v1309_v47 = vpop.f32.mrf.mxu3 }
 0x20c   : >> { %v1280_v46 = vpop.f32.mrf.mxu2 }
 0x20d   : >> { %v1222_v40 = vpop.f32.mrf.mxu0  ;;  %v1310_v57 = vadd.f32 %v1309_v47, %v1280_v46 }
 0x20e   : >> { %v1252_v56 = vadd.f32 %v1251_v45, %v1222_v40  ;;  %319 = sbr.rel (!%p317_p1) target bundleno = 72 (0x48), region = 127 }
 0x210   : >> { %v1327_v58 = vpack.c.bf16 %v1310_v57, %v1252_v56 }
 0x212   : >> { %1345 = vst [vmem:[%s8001_s13 + $0x78] sm:$0xff] %v1327_v58 }
 0x213 PF: > { %v5869_v59 = vld [vmem:[#allocation9 + $0x70] sm:$0xf]  ;;  %v6406_v42 = vld [vmem:[#allocation9 + $0x74] sm:$0xf0]  ;;  %v6405_v6 = vld [vmem:[#allocation9 + $0x74] sm:$0xf] }
 0x214   : > { %v5933_v5 = vld [vmem:[#allocation9 + $0xf0] sm:$0xf]  ;;  %v5870_v7 = vor.u32 %v6406_v42, %v5869_v59  ;;  %v6422_v20 = vld [vmem:[#allocation9 + $0xf4] sm:$0xf0]  ;;  %v5871_v37 = vld [vmem:[#allocation9 + $0x78] sm:$0xf0] }
 0x215   : > { %v5934_v50 = vor.u32 %v6422_v20, %v5933_v5  ;;  %v5874_v10 = vor.u32 %v6405_v6, %v5871_v37  ;;  %v6421_v24 = vld [vmem:[#allocation9 + $0xf4] sm:$0xf]  ;;  %v5935_v39 = vld [vmem:[#allocation9 + $0xf8] sm:$0xf0]  ;;  %v5861_v63 = vld [vmem:[#allocation9 + $0x60] sm:$0xf] }
 0x216   : > { %1736 = vmatpush.bf16.msra.mxu0 %v5870_v7  ;;  %v5938_v25 = vor.u32 %v6421_v24, %v5935_v39  ;;  %v6404_v26 = vld [vmem:[#allocation9 + $0x64] sm:$0xf0]  ;;  %v5925_v27 = vld [vmem:[#allocation9 + $0xe0] sm:$0xf]  ;;  %v6403_v55 = vld [vmem:[#allocation9 + $0x64] sm:$0xf] }
 0x217   : > { %v6420_v43 = vld [vmem:[#allocation9 + $0xe4] sm:$0xf0]  ;;  %1825 = vmatpush.bf16.msra.mxu1 %v5934_v50  ;;  %1914 = vmatpush.bf16.msra.mxu2 %v5874_v10  ;;  %v5862_v52 = vor.u32 %v6404_v26, %v5861_v63  ;;  %v5863_v9 = vld [vmem:[#allocation9 + $0x68] sm:$0xf0]  ;;  %v6419_v61 = vld [vmem:[#allocation9 + $0xe4] sm:$0xf] }
 0x218   : > { %v5926_v48 = vor.u32 %v6420_v43, %v5925_v27  ;;  %2003 = vmatpush.bf16.msra.mxu3 %v5938_v25  ;;  %v5866_v62 = vor.u32 %v6403_v55, %v5863_v9  ;;  %v5927_v1 = vld [vmem:[#allocation9 + $0xe8] sm:$0xf0]  ;;  %v5853_v12 = vld [vmem:[#allocation9 + $0x50] sm:$0xf]  ;;  %v6402_v16 = vld [vmem:[#allocation9 + $0x54] sm:$0xf0] }
 0x219   : > { %v5930_v30 = vor.u32 %v6419_v61, %v5927_v1  ;;  %v5917_v31 = vld [vmem:[#allocation9 + $0xd0] sm:$0xf]  ;;  %v6418_v36 = vld [vmem:[#allocation9 + $0xd4] sm:$0xf0]  ;;  %v6401_v53 = vld [vmem:[#allocation9 + $0x54] sm:$0xf]  ;;  %v5854_v54 = vor.u32 %v6402_v16, %v5853_v12 }
 0x21a   : > { %1737 = vmatpush.bf16.msra.mxu0 %v5862_v52  ;;  %v5855_v4 = vld [vmem:[#allocation9 + $0x58] sm:$0xf0]  ;;  %v6417_v15 = vld [vmem:[#allocation9 + $0xd4] sm:$0xf]  ;;  %v5918_v38 = vor.u32 %v6418_v36, %v5917_v31  ;;  %v5845_v0 = vld [vmem:[#allocation9 + $0x40] sm:$0xf] }
 0x21b   : > { %v5919_v28 = vld [vmem:[#allocation9 + $0xd8] sm:$0xf0]  ;;  %1826 = vmatpush.bf16.msra.mxu1 %v5926_v48  ;;  %1915 = vmatpush.bf16.msra.mxu2 %v5866_v62  ;;  %v5858_v14 = vor.u32 %v6401_v53, %v5855_v4  ;;  %v6400_v2 = vld [vmem:[#allocation9 + $0x44] sm:$0xf0]  ;;  %v5909_v13 = vld [vmem:[#allocation9 + $0xc0] sm:$0xf] }
 0x21c   : > { %2004 = vmatpush.bf16.msra.mxu3 %v5930_v30  ;;  %v5922_v17 = vor.u32 %v6417_v15, %v5919_v28  ;;  %v6416_v21 = vld [vmem:[#allocation9 + $0xc4] sm:$0xf0]  ;;  %v6399_v23 = vld [vmem:[#allocation9 + $0x44] sm:$0xf]  ;;  %v5847_v18 = vld [vmem:[#allocation9 + $0x48] sm:$0xf0]  ;;  %v5846_v49 = vor.u32 %v6400_v2, %v5845_v0 }
 0x21d   : > { %v6415_v19 = vld [vmem:[#allocation9 + $0xc4] sm:$0xf]  ;;  %v5911_v29 = vld [vmem:[#allocation9 + $0xc8] sm:$0xf0]  ;;  %v5910_v3 = vor.u32 %v6416_v21, %v5909_v13  ;;  %v5850_v8 = vor.u32 %v6399_v23, %v5847_v18  ;;  %v5837_v11 = vld [vmem:[#allocation9 + $0x30] sm:$0xf] }
 0x21e   : > { %1738 = vmatpush.bf16.msra.mxu0 %v5854_v54  ;;  %v6398_v22 = vld [vmem:[#allocation9 + $0x34] sm:$0xf0]  ;;  %v5901_v32 = vld [vmem:[#allocation9 + $0xb0] sm:$0xf]  ;;  %v5914_v33 = vor.u32 %v6415_v19, %v5911_v29  ;;  %v6397_v41 = vld [vmem:[#allocation9 + $0x34] sm:$0xf] }
 0x21f   : > { %1827 = vmatpush.bf16.msra.mxu1 %v5918_v38  ;;  %1916 = vmatpush.bf16.msra.mxu2 %v5858_v14  ;;  %v6414_v34 = vld [vmem:[#allocation9 + $0xb4] sm:$0xf0]  ;;  %v5839_v51 = vld [vmem:[#allocation9 + $0x38] sm:$0xf0]  ;;  %v6413_v60 = vld [vmem:[#allocation9 + $0xb4] sm:$0xf]  ;;  %v5838_v44 = vor.u32 %v6398_v22, %v5837_v11 }
 0x220   : > { %2005 = vmatpush.bf16.msra.mxu3 %v5922_v17  ;;  %v5903_v35 = vld [vmem:[#allocation9 + $0xb8] sm:$0xf0]  ;;  %v5902_v40 = vor.u32 %v6414_v34, %v5901_v32  ;;  %v5842_v45 = vor.u32 %v6397_v41, %v5839_v51  ;;  %v5829_v46 = vld [vmem:[#allocation9 + $0x20] sm:$0xf]  ;;  %v6396_v47 = vld [vmem:[#allocation9 + $0x24] sm:$0xf0] }
 0x221   : > { %v5893_v56 = vld [vmem:[#allocation9 + $0xa0] sm:$0xf]  ;;  %v5906_v57 = vor.u32 %v6413_v60, %v5903_v35  ;;  %v6412_v58 = vld [vmem:[#allocation9 + $0xa4] sm:$0xf0]  ;;  %v6395_v59 = vld [vmem:[#allocation9 + $0x24] sm:$0xf]  ;;  %v5830_v20 = vor.u32 %v6396_v47, %v5829_v46 }
 0x222   : > { %1739 = vmatpush.bf16.msra.mxu0 %v5846_v49  ;;  %v5831_v42 = vld [vmem:[#allocation9 + $0x28] sm:$0xf0]  ;;  %v6411_v5 = vld [vmem:[#allocation9 + $0xa4] sm:$0xf]  ;;  %v5821_v6 = vld [vmem:[#allocation9 + $0x10] sm:$0xf]  ;;  %v5894_v37 = vor.u32 %v6412_v58, %v5893_v56 }
 0x223   : > { %1828 = vmatpush.bf16.msra.mxu1 %v5910_v3  ;;  %1917 = vmatpush.bf16.msra.mxu2 %v5850_v8  ;;  %v5895_v7 = vld [vmem:[#allocation9 + $0xa8] sm:$0xf0]  ;;  %v5834_v50 = vor.u32 %v6395_v59, %v5831_v42  ;;  %v6394_v10 = vld [vmem:[#allocation9 + $0x14] sm:$0xf0]  ;;  %v5885_v24 = vld [vmem:[#allocation9 + $0x90] sm:$0xf] }
 0x224   : > { %2006 = vmatpush.bf16.msra.mxu3 %v5914_v33  ;;  %v6410_v39 = vld [vmem:[#allocation9 + $0x94] sm:$0xf0]  ;;  %v5898_v63 = vor.u32 %v6411_v5, %v5895_v7  ;;  %v6393_v25 = vld [vmem:[#allocation9 + $0x14] sm:$0xf]  ;;  %v5823_v26 = vld [vmem:[#allocation9 + $0x18] sm:$0xf0]  ;;  %v5822_v52 = vor.u32 %v6394_v10, %v5821_v6 }
 0x225   : > { %s5680_s2 = sshll.u32 %s7209_s24, 8  ;;  %v6409_v27 = vld [vmem:[#allocation9 + $0x94] sm:$0xf]  ;;  %v5887_v43 = vld [vmem:[#allocation9 + $0x98] sm:$0xf0]  ;;  %v5886_v48 = vor.u32 %v6410_v39, %v5885_v24  ;;  %v5826_v55 = vor.u32 %v6393_v25, %v5823_v26  ;;  %vm2124_vm0 = vcmask 519168  }
 0x226   : > { %1740 = vmatpush.bf16.msra.mxu0 %v5838_v44  ;;  %v5813_v9 = vld [vmem:[#allocation9] sm:$0xf]  ;;  %v6392_v61 = vld [vmem:[#allocation9 + $0x4] sm:$0xf0]  ;;  %s8024_s21 = scalar_lea.vmem %s7432_s18, %s5680_s2 [#allocation6]  ;;  %v5890_v1 = vor.u32 %v6409_v27, %v5887_v43  ;;  %v6391_v16 = vld [vmem:[#allocation9 + $0x4] sm:$0xf] }
 0x227   : > { %1829 = vmatpush.bf16.msra.mxu1 %v5902_v40  ;;  %1918 = vmatpush.bf16.msra.mxu2 %v5842_v45  ;;  %v5877_v62 = vld [vmem:[#allocation9 + $0x80] sm:$0xf]  ;;  %v6408_v12 = vld [vmem:[#allocation9 + $0x84] sm:$0xf0]  ;;  %v5815_v30 = vld [vmem:[#allocation9 + $0x8] sm:$0xf0]  ;;  %v5814_v53 = vor.u32 %v6392_v61, %v5813_v9 }
 0x228   : > { %2007 = vmatpush.bf16.msra.mxu3 %v5906_v57  ;;  %v6407_v31 = vld [vmem:[#allocation9 + $0x84] sm:$0xf]  ;;  %v5879_v36 = vld [vmem:[#allocation9 + $0x88] sm:$0xf0]  ;;  %v5685_v54 = vld [vmem:[%s8024_s21] sm:$0xf]  ;;  %v5878_v15 = vor.u32 %v6408_v12, %v5877_v62  ;;  %v5818_v28 = vor.u32 %v6391_v16, %v5815_v30 }
 0x229   : > { %v6360_v4 = vld [vmem:[%s8024_s21 + $0x4] sm:$0xf0]  ;;  %v6359_v38 = vld [vmem:[%s8024_s21 + $0x4] sm:$0xf]  ;;  %v5687_v14 = vld [vmem:[%s8024_s21 + $0x8] sm:$0xf0]  ;;  %v5882_v0 = vor.u32 %v6407_v31, %v5879_v36 }
 0x22a   : > { %1741 = vmatpush.bf16.msra.mxu0 %v5830_v20  ;;  %v5686_v2 = vor.u32 %v6360_v4, %v5685_v54  ;;  %v5690_v13 = vor.u32 %v6359_v38, %v5687_v14  ;;  %v5693_v17 = vld [vmem:[%s8024_s21 + $0x10] sm:$0xf]  ;;  %v6362_v21 = vld [vmem:[%s8024_s21 + $0x14] sm:$0xf0]  ;;  %v6361_v23 = vld [vmem:[%s8024_s21 + $0x14] sm:$0xf] }
 0x22b   : > { %1830 = vmatpush.bf16.msra.mxu1 %v5894_v37  ;;  %1919 = vmatpush.bf16.msra.mxu2 %v5834_v50  ;;  %v5695_v18 = vld [vmem:[%s8024_s21 + $0x18] sm:$0xf0]  ;;  %v5694_v19 = vor.u32 %v6362_v21, %v5693_v17  ;;  %v5701_v49 = vld [vmem:[%s8024_s21 + $0x20] sm:$0xf]  ;;  %v6364_v3 = vld [vmem:[%s8024_s21 + $0x24] sm:$0xf0] }
 0x22c   : > { %2008 = vmatpush.bf16.msra.mxu3 %v5898_v63  ;;  %v5698_v29 = vor.u32 %v6361_v23, %v5695_v18  ;;  %v6363_v8 = vld [vmem:[%s8024_s21 + $0x24] sm:$0xf]  ;;  %v5703_v11 = vld [vmem:[%s8024_s21 + $0x28] sm:$0xf0]  ;;  %v5702_v22 = vor.u32 %v6364_v3, %v5701_v49  ;;  %v5709_v33 = vld [vmem:[%s8024_s21 + $0x30] sm:$0xf] }
 0x22d   : > { %v5706_v32 = vor.u32 %v6363_v8, %v5703_v11  ;;  %v6366_v34 = vld [vmem:[%s8024_s21 + $0x34] sm:$0xf0]  ;;  %v6365_v41 = vld [vmem:[%s8024_s21 + $0x34] sm:$0xf]  ;;  %v5711_v51 = vld [vmem:[%s8024_s21 + $0x38] sm:$0xf0] }
 0x22e   : > { %1742 = vmatpush.bf16.msra.mxu0 %v5822_v52  ;;  %v5710_v60 = vor.u32 %v6366_v34, %v5709_v33  ;;  %v5714_v35 = vor.u32 %v6365_v41, %v5711_v51  ;;  %v5717_v44 = vld [vmem:[%s8024_s21 + $0x40] sm:$0xf]  ;;  %v6368_v40 = vld [vmem:[%s8024_s21 + $0x44] sm:$0xf0]  ;;  %v6367_v45 = vld [vmem:[%s8024_s21 + $0x44] sm:$0xf] }
 0x22f   : > { %1831 = vmatpush.bf16.msra.mxu1 %v5886_v48  ;;  %1920 = vmatpush.bf16.msra.mxu2 %v5826_v55  ;;  %v5719_v46 = vld [vmem:[%s8024_s21 + $0x48] sm:$0xf0]  ;;  %v5718_v47 = vor.u32 %v6368_v40, %v5717_v44  ;;  %v5725_v57 = vld [vmem:[%s8024_s21 + $0x50] sm:$0xf]  ;;  %v6370_v58 = vld [vmem:[%s8024_s21 + $0x54] sm:$0xf0] }
 0x230   : > { %2009 = vmatpush.bf16.msra.mxu3 %v5890_v1  ;;  %v5722_v56 = vor.u32 %v6367_v45, %v5719_v46  ;;  %v6369_v59 = vld [vmem:[%s8024_s21 + $0x54] sm:$0xf]  ;;  %v5727_v42 = vld [vmem:[%s8024_s21 + $0x58] sm:$0xf0]  ;;  %v5726_v5 = vor.u32 %v6370_v58, %v5725_v57  ;;  %v5733_v20 = vld [vmem:[%s8024_s21 + $0x60] sm:$0xf] }
 0x231   : > { %v5730_v7 = vor.u32 %v6369_v59, %v5727_v42  ;;  %v6372_v6 = vld [vmem:[%s8024_s21 + $0x64] sm:$0xf0]  ;;  %v6371_v37 = vld [vmem:[%s8024_s21 + $0x64] sm:$0xf]  ;;  %v5735_v50 = vld [vmem:[%s8024_s21 + $0x68] sm:$0xf0] }
 0x232   : > { %1743 = vmatpush.bf16.msra.mxu0 %v5814_v53  ;;  %v5734_v10 = vor.u32 %v6372_v6, %v5733_v20  ;;  %v5738_v24 = vor.u32 %v6371_v37, %v5735_v50  ;;  %v5741_v39 = vld [vmem:[%s8024_s21 + $0x70] sm:$0xf]  ;;  %v6374_v63 = vld [vmem:[%s8024_s21 + $0x74] sm:$0xf0]  ;;  %v6373_v25 = vld [vmem:[%s8024_s21 + $0x74] sm:$0xf] }
 0x233   : > { %1832 = vmatpush.bf16.msra.mxu1 %v5878_v15  ;;  %1921 = vmatpush.bf16.msra.mxu2 %v5818_v28  ;;  %v5743_v26 = vld [vmem:[%s8024_s21 + $0x78] sm:$0xf0]  ;;  %v5742_v27 = vor.u32 %v6374_v63, %v5741_v39  ;;  %v5749_v52 = vld [vmem:[%s8024_s21 + $0x80] sm:$0xf]  ;;  %v6376_v48 = vld [vmem:[%s8024_s21 + $0x84] sm:$0xf0] }
 0x234   : > { %2010 = vmatpush.bf16.msra.mxu3 %v5882_v0  ;;  %v5746_v43 = vor.u32 %v6373_v25, %v5743_v26  ;;  %v6375_v55 = vld [vmem:[%s8024_s21 + $0x84] sm:$0xf]  ;;  %v5751_v9 = vld [vmem:[%s8024_s21 + $0x88] sm:$0xf0]  ;;  %v5750_v61 = vor.u32 %v6376_v48, %v5749_v52  ;;  %v5757_v15 = vld [vmem:[%s8024_s21 + $0x90] sm:$0xf] }
 0x235   : > { %1744 = vmatmul.bf16.vlgmr.msra.gmra.mxu0 %v5686_v2  ;;  %v5754_v1 = vor.u32 %v6375_v55, %v5751_v9  ;;  %v6378_v28 = vld [vmem:[%s8024_s21 + $0x94] sm:$0xf0]  ;;  %v6377_v38 = vld [vmem:[%s8024_s21 + $0x94] sm:$0xf]  ;;  %s7240_s26 = smov 64   ;;  %s8314_s30 = smov 0  }
 0x236   : > { %1833 = vmatmul.bf16.vlgmr.msra.gmra.mxu1 %v5690_v13  ;;  %1922 = vmatmul.bf16.vlgmr.msra.gmra.mxu2 %v5686_v2  ;;  %v5759_v0 = vld [vmem:[%s8024_s21 + $0x98] sm:$0xf0]  ;;  %v5765_v51 = vld [vmem:[%s8024_s21 + $0xa0] sm:$0xf]  ;;  %v5767_v40 = vld [vmem:[%s8024_s21 + $0xa8] sm:$0xf0] }
 0x237   : > { %2011 = vmatmul.bf16.vlgmr.msra.gmra.mxu3 %v5690_v13  ;;  %v5758_v13 = vor.u32 %v6378_v28, %v5757_v15  ;;  %v5762_v23 = vor.u32 %v6377_v38, %v5759_v0  ;;  %v5773_v63 = vld [vmem:[%s8024_s21 + $0xb0] sm:$0xf]  ;;  %v6382_v25 = vld [vmem:[%s8024_s21 + $0xb4] sm:$0xf0]  ;;  %v6381_v26 = vld [vmem:[%s8024_s21 + $0xb4] sm:$0xf] }
 0x238   : > { %v5774_v48 = vor.u32 %v6382_v25, %v5773_v63  ;;  %v5781_v38 = vld [vmem:[%s8024_s21 + $0xc0] sm:$0xf]  ;;  %v6383_v0 = vld [vmem:[%s8024_s21 + $0xc4] sm:$0xf] }
 0x245   : > { %1749 = vmatmul.bf16.gmra.mxu0 %v5694_v19 }
 0x246   : > { %1838 = vmatmul.bf16.gmra.mxu1 %v5698_v29  ;;  %1927 = vmatmul.bf16.gmra.mxu2 %v5694_v19 }
 0x247   : > { %2016 = vmatmul.bf16.gmra.mxu3 %v5698_v29 }
 0x255   : > { %1754 = vmatmul.bf16.gmra.mxu0 %v5702_v22 }
 0x256   : > { %1843 = vmatmul.bf16.gmra.mxu1 %v5706_v32  ;;  %1932 = vmatmul.bf16.gmra.mxu2 %v5702_v22 }
 0x257   : > { %2021 = vmatmul.bf16.gmra.mxu3 %v5706_v32 }
 0x265   : > { %1759 = vmatmul.bf16.gmra.mxu0 %v5710_v60 }
 0x266   : > { %1848 = vmatmul.bf16.gmra.mxu1 %v5714_v35  ;;  %1937 = vmatmul.bf16.gmra.mxu2 %v5710_v60  ;;  %v6380_v60 = vld [vmem:[%s8024_s21 + $0xa4] sm:$0xf0] }
 0x267   : > { %2026 = vmatmul.bf16.gmra.mxu3 %v5714_v35  ;;  %v6379_v35 = vld [vmem:[%s8024_s21 + $0xa4] sm:$0xf]  ;;  %v5766_v46 = vor.u32 %v6380_v60, %v5765_v51 }
 0x268   : > { %v5770_v57 = vor.u32 %v6379_v35, %v5767_v40  ;;  %v5789_v35 = vld [vmem:[%s8024_s21 + $0xd0] sm:$0xf]  ;;  %v6385_v40 = vld [vmem:[%s8024_s21 + $0xd4] sm:$0xf] }
 0x275   : > { %1764 = vmatmul.bf16.gmra.mxu0 %v5718_v47 }
 0x276   : > { %1853 = vmatmul.bf16.gmra.mxu1 %v5722_v56  ;;  %1942 = vmatmul.bf16.gmra.mxu2 %v5718_v47 }
 0x277   : > { %2031 = vmatmul.bf16.gmra.mxu3 %v5722_v56 }
 0x285   : > { %1769 = vmatmul.bf16.gmra.mxu0 %v5726_v5 }
 0x286   : > { %1858 = vmatmul.bf16.gmra.mxu1 %v5730_v7  ;;  %1947 = vmatmul.bf16.gmra.mxu2 %v5726_v5 }
 0x287   : > { %2036 = vmatmul.bf16.gmra.mxu3 %v5730_v7 }
 0x295   : > { %1774 = vmatmul.bf16.gmra.mxu0 %v5734_v10 }
 0x296   : > { %1863 = vmatmul.bf16.gmra.mxu1 %v5738_v24  ;;  %1952 = vmatmul.bf16.gmra.mxu2 %v5734_v10 }
 0x297   : > { %2041 = vmatmul.bf16.gmra.mxu3 %v5738_v24 }
 0x2a5   : > { %1779 = vmatmul.bf16.gmra.mxu0 %v5742_v27 }
 0x2a6   : > { %1868 = vmatmul.bf16.gmra.mxu1 %v5746_v43  ;;  %1957 = vmatmul.bf16.gmra.mxu2 %v5742_v27 }
 0x2a7   : > { %2046 = vmatmul.bf16.gmra.mxu3 %v5746_v43  ;;  %v5775_v43 = vld [vmem:[%s8024_s21 + $0xb8] sm:$0xf0] }
 0x2b2   : > { %v1745_v62 = vpop.f32.mrf.mxu0 }
 0x2b3   : > { %v1834_v12 = vpop.f32.mrf.mxu1 }
 0x2b4   : > { %v1835_v16 = vadd.f32 %v1834_v12, %v1745_v62 }
 0x2b5   : > { %1784 = vmatmul.bf16.gmra.mxu0 %v5750_v61 }
 0x2b6   : > { %1873 = vmatmul.bf16.gmra.mxu1 %v5754_v1  ;;  %1962 = vmatmul.bf16.gmra.mxu2 %v5750_v61  ;;  %v5778_v61 = vor.u32 %v6381_v26, %v5775_v43  ;;  %v5797_v26 = vld [vmem:[%s8024_s21 + $0xe0] sm:$0xf]  ;;  %v6387_v43 = vld [vmem:[%s8024_s21 + $0xe4] sm:$0xf] }
 0x2b7   : > { %2051 = vmatmul.bf16.gmra.mxu3 %v5754_v1 }
 0x2b9   : > { %v1923_v30 = vpop.f32.mrf.mxu2 }
 0x2ba   : > { %v2012_v31 = vpop.f32.mrf.mxu3  ;;  %v1747_v36 = vpop.f32.mrf.mxu0 }
 0x2bb   : > { %v2013_v53 = vadd.f32 %v2012_v31, %v1923_v30  ;;  %v1836_v54 = vpop.f32.mrf.mxu1 }
 0x2bc   : > { %v1837_v18 = vadd.f32 %v1836_v54, %v1747_v36 }
 0x2bd   : > { %v2092_v4 = vpack.c.bf16 %v2013_v53, %v1835_v16 }
 0x2bf   : > { %2125 = vst.msk [vmem:[#allocation4] sm:$0xf] %vm2124_vm0, %v2092_v4  ;;  %v2318_v14 = vrot.slane %v2092_v4, 4  ;;  %2189 = vrot.lane.b32.xlu0 %v2092_v4, %s7240_s26 }
 0x2c1   : > { %2383 = vst.msk [vmem:[#allocation4 + $0x100] sm:$0xf] %vm2124_vm0, %v2318_v14  ;;  %v1925_v2 = vpop.f32.mrf.mxu2  ;;  %v6384_v14 = vld [vmem:[%s8024_s21 + $0xc4] sm:$0xf0] }
 0x2c2   : > { %v2014_v17 = vpop.f32.mrf.mxu3  ;;  %v1750_v21 = vpop.f32.mrf.mxu0 }
 0x2c3   : > { %v2015_v19 = vadd.f32 %v2014_v17, %v1925_v2  ;;  %v1839_v29 = vpop.f32.mrf.mxu1 }
 0x2c4   : > { %v1840_v8 = vadd.f32 %v1839_v29, %v1750_v21  ;;  %v5782_v21 = vor.u32 %v6384_v14, %v5781_v38 }
 0x2c5   : > { %v2093_v49 = vpack.c.bf16 %v2015_v19, %v1837_v18  ;;  %1789 = vmatmul.bf16.gmra.mxu0 %v5758_v13 }
 0x2c6   : > { %1878 = vmatmul.bf16.gmra.mxu1 %v5762_v23  ;;  %1967 = vmatmul.bf16.gmra.mxu2 %v5758_v13  ;;  %v5783_v13 = vld [vmem:[%s8024_s21 + $0xc8] sm:$0xf0] }
 0x2c7   : > { %2126 = vst.msk [vmem:[#allocation4 + $0x4] sm:$0xf] %vm2124_vm0, %v2093_v49  ;;  %v2319_v3 = vrot.slane %v2093_v49, 4  ;;  %2056 = vmatmul.bf16.gmra.mxu3 %v5762_v23  ;;  %2191 = vrot.lane.b32.xlu0 %v2093_v49, %s7240_s26  ;;  %v5786_v19 = vor.u32 %v6383_v0, %v5783_v13  ;;  %v5805_v0 = vld [vmem:[%s8024_s21 + $0xf0] sm:$0xf] }
 0x2c8   : > { %v6389_v13 = vld [vmem:[%s8024_s21 + $0xf4] sm:$0xf] }
 0x2c9   : > { %2384 = vst.msk [vmem:[#allocation4 + $0x104] sm:$0xf] %vm2124_vm0, %v2319_v3  ;;  %v1928_v11 = vpop.f32.mrf.mxu2 }
 0x2ca   : > { %v2017_v22 = vpop.f32.mrf.mxu3  ;;  %v1752_v32 = vpop.f32.mrf.mxu0 }
 0x2cb   : > { %v2018_v33 = vadd.f32 %v2017_v22, %v1928_v11  ;;  %v1841_v34 = vpop.f32.mrf.mxu1 }
 0x2cc   : > { %v1842_v58 = vadd.f32 %v1841_v34, %v1752_v32 }
 0x2cd   : > { %v2094_v41 = vpack.c.bf16 %v2018_v33, %v1840_v8 }
 0x2cf   : > { %2127 = vst.msk [vmem:[#allocation4 + $0x8] sm:$0xf] %vm2124_vm0, %v2094_v41  ;;  %v2320_v44 = vrot.slane %v2094_v41, 4  ;;  %2193 = vrot.lane.b32.xlu1 %v2094_v41, %s7240_s26 }
 0x2d1   : > { %2385 = vst.msk [vmem:[#allocation4 + $0x108] sm:$0xf] %vm2124_vm0, %v2320_v44  ;;  %v1930_v45 = vpop.f32.mrf.mxu2  ;;  %v6386_v44 = vld [vmem:[%s8024_s21 + $0xd4] sm:$0xf0] }
 0x2d2   : > { %v2019_v47 = vpop.f32.mrf.mxu3  ;;  %v1755_v56 = vpop.f32.mrf.mxu0 }
 0x2d3   : > { %v2020_v59 = vadd.f32 %v2019_v47, %v1930_v45  ;;  %v1844_v42 = vpop.f32.mrf.mxu1 }
 0x2d4   : > { %v1845_v20 = vadd.f32 %v1844_v42, %v1755_v56  ;;  %v5790_v56 = vor.u32 %v6386_v44, %v5789_v35 }
 0x2d5   : > { %v2095_v5 = vpack.c.bf16 %v2020_v59, %v1842_v58  ;;  %1794 = vmatmul.bf16.gmra.mxu0 %v5766_v46 }
 0x2d6   : > { %1883 = vmatmul.bf16.gmra.mxu1 %v5770_v57  ;;  %1972 = vmatmul.bf16.gmra.mxu2 %v5766_v46  ;;  %v5791_v46 = vld [vmem:[%s8024_s21 + $0xd8] sm:$0xf0] }
 0x2d7   : > { %2128 = vst.msk [vmem:[#allocation4 + $0xc] sm:$0xf] %vm2124_vm0, %v2095_v5  ;;  %v2321_v7 = vrot.slane %v2095_v5, 4  ;;  %2061 = vmatmul.bf16.gmra.mxu3 %v5770_v57  ;;  %2195 = vrot.lane.b32.xlu1 %v2095_v5, %s7240_s26  ;;  %v5794_v59 = vor.u32 %v6385_v40, %v5791_v46 }
 0x2d9   : > { %2386 = vst.msk [vmem:[#allocation4 + $0x10c] sm:$0xf] %vm2124_vm0, %v2321_v7  ;;  %v1933_v6 = vpop.f32.mrf.mxu2 }
 0x2da   : > { %v2022_v37 = vpop.f32.mrf.mxu3  ;;  %v1757_v50 = vpop.f32.mrf.mxu0 }
 0x2db   : > { %v2023_v10 = vadd.f32 %v2022_v37, %v1933_v6  ;;  %v1846_v24 = vpop.f32.mrf.mxu1 }
 0x2dc   : > { %v1847_v62 = vadd.f32 %v1846_v24, %v1757_v50 }
 0x2dd   : > { %v2096_v39 = vpack.c.bf16 %v2023_v10, %v1845_v20 }
 0x2df   : > { %2129 = vst.msk [vmem:[#allocation4 + $0x10] sm:$0xf] %vm2124_vm0, %v2096_v39  ;;  %v2322_v27 = vrot.slane %v2096_v39, 4  ;;  %2197 = vrot.lane.b32.xlu2 %v2096_v39, %s7240_s26 }
 0x2e1   : > { %2387 = vst.msk [vmem:[#allocation4 + $0x110] sm:$0xf] %vm2124_vm0, %v2322_v27  ;;  %v1935_v52 = vpop.f32.mrf.mxu2  ;;  %v6388_v27 = vld [vmem:[%s8024_s21 + $0xe4] sm:$0xf0] }
 0x2e2   : > { %v2024_v55 = vpop.f32.mrf.mxu3  ;;  %v1760_v9 = vpop.f32.mrf.mxu0 }
 0x2e3   : > { %v2025_v1 = vadd.f32 %v2024_v55, %v1935_v52  ;;  %v1849_v12 = vpop.f32.mrf.mxu1 }
 0x2e4   : > { %v1850_v31 = vadd.f32 %v1849_v12, %v1760_v9  ;;  %v5798_v9 = vor.u32 %v6388_v27, %v5797_v26 }
 0x2e5   : > { %v2097_v16 = vpack.c.bf16 %v2025_v1, %v1847_v62  ;;  %1799 = vmatmul.bf16.gmra.mxu0 %v5774_v48 }
 0x2e6   : > { %1888 = vmatmul.bf16.gmra.mxu1 %v5778_v61  ;;  %1977 = vmatmul.bf16.gmra.mxu2 %v5774_v48  ;;  %v5799_v48 = vld [vmem:[%s8024_s21 + $0xe8] sm:$0xf0] }
 0x2e7   : > { %2130 = vst.msk [vmem:[#allocation4 + $0x14] sm:$0xf] %vm2124_vm0, %v2097_v16  ;;  %v2323_v30 = vrot.slane %v2097_v16, 4  ;;  %2066 = vmatmul.bf16.gmra.mxu3 %v5778_v61  ;;  %2199 = vrot.lane.b32.xlu2 %v2097_v16, %s7240_s26  ;;  %v5802_v1 = vor.u32 %v6387_v43, %v5799_v48 }
 0x2e9   : > { %2388 = vst.msk [vmem:[#allocation4 + $0x114] sm:$0xf] %vm2124_vm0, %v2323_v30  ;;  %v1938_v36 = vpop.f32.mrf.mxu2 }
 0x2ea   : > { %v2027_v53 = vpop.f32.mrf.mxu3  ;;  %v1762_v54 = vpop.f32.mrf.mxu0 }
 0x2eb   : > { %v2028_v4 = vadd.f32 %v2027_v53, %v1938_v36  ;;  %v1851_v15 = vpop.f32.mrf.mxu1 }
 0x2ec   : > { %v1852_v29 = vadd.f32 %v1851_v15, %v1762_v54 }
 0x2ed   : > { %v2098_v28 = vpack.c.bf16 %v2028_v4, %v1850_v31 }
 0x2ef   : > { %2131 = vst.msk [vmem:[#allocation4 + $0x18] sm:$0xf] %vm2124_vm0, %v2098_v28  ;;  %v2324_v2 = vrot.slane %v2098_v28, 4  ;;  %2201 = vrot.lane.b32.xlu0 %v2098_v28, %s7240_s26 }
 0x2f1   : > { %2389 = vst.msk [vmem:[#allocation4 + $0x118] sm:$0xf] %vm2124_vm0, %v2324_v2  ;;  %v1940_v17 = vpop.f32.mrf.mxu2  ;;  %v6390_v2 = vld [vmem:[%s8024_s21 + $0xf4] sm:$0xf0] }
 0x2f2   : > { %v2029_v23 = vpop.f32.mrf.mxu3  ;;  %v1765_v18 = vpop.f32.mrf.mxu0 }
 0x2f3   : > { %v2030_v49 = vadd.f32 %v2029_v23, %v1940_v17  ;;  %v1854_v3 = vpop.f32.mrf.mxu1 }
 0x2f4   : > { %v1855_v22 = vadd.f32 %v1854_v3, %v1765_v18  ;;  %v5806_v18 = vor.u32 %v6390_v2, %v5805_v0 }
 0x2f5   : > { %v2099_v8 = vpack.c.bf16 %v2030_v49, %v1852_v29  ;;  %1804 = vmatmul.bf16.gmra.mxu0 %v5782_v21 }
 0x2f6   : > { %1893 = vmatmul.bf16.gmra.mxu1 %v5786_v19  ;;  %1982 = vmatmul.bf16.gmra.mxu2 %v5782_v21  ;;  %v5807_v21 = vld [vmem:[%s8024_s21 + $0xf8] sm:$0xf0] }
 0x2f7   : > { %2132 = vst.msk [vmem:[#allocation4 + $0x1c] sm:$0xf] %vm2124_vm0, %v2099_v8  ;;  %v2325_v11 = vrot.slane %v2099_v8, 4  ;;  %2071 = vmatmul.bf16.gmra.mxu3 %v5786_v19  ;;  %2203 = vrot.lane.b32.xlu1 %v2099_v8, %s7240_s26  ;;  %v5810_v49 = vor.u32 %v6389_v13, %v5807_v21 }
 0x2f9   : > { %2390 = vst.msk [vmem:[#allocation4 + $0x11c] sm:$0xf] %vm2124_vm0, %v2325_v11  ;;  %v1943_v32 = vpop.f32.mrf.mxu2 }
 0x2fa   : > { %v2032_v33 = vpop.f32.mrf.mxu3  ;;  %v1767_v34 = vpop.f32.mrf.mxu0 }
 0x2fb   : > { %v2033_v41 = vadd.f32 %v2032_v33, %v1943_v32  ;;  %v1856_v51 = vpop.f32.mrf.mxu1 }
 0x2fc   : > { %v1857_v42 = vadd.f32 %v1856_v51, %v1767_v34 }
 0x2fd   : > { %v2100_v60 = vpack.c.bf16 %v2033_v41, %v1855_v22 }
 0x2ff   : > { %2133 = vst.msk [vmem:[#allocation4 + $0x20] sm:$0xf] %vm2124_vm0, %v2100_v60  ;;  %v2326_v45 = vrot.slane %v2100_v60, 4  ;;  %2205 = vrot.lane.b32.xlu2 %v2100_v60, %s7240_s26 }
 0x301   : > { %2391 = vst.msk [vmem:[#allocation4 + $0x120] sm:$0xf] %vm2124_vm0, %v2326_v45  ;;  %v1945_v47 = vpop.f32.mrf.mxu2 }
 0x302   : > { %v2034_v57 = vpop.f32.mrf.mxu3  ;;  %v1770_v58 = vpop.f32.mrf.mxu0 }
 0x303   : > { %v2035_v5 = vadd.f32 %v2034_v57, %v1945_v47  ;;  %v1859_v7 = vpop.f32.mrf.mxu1 }
 0x304   : > { %v1860_v37 = vadd.f32 %v1859_v7, %v1770_v58 }
 0x305   : > { %v2101_v20 = vpack.c.bf16 %v2035_v5, %v1857_v42  ;;  %1809 = vmatmul.bf16.gmra.mxu0 %v5790_v56 }
 0x306   : > { %1898 = vmatmul.bf16.gmra.mxu1 %v5794_v59  ;;  %1987 = vmatmul.bf16.gmra.mxu2 %v5790_v56 }
 0x307   : > { %2134 = vst.msk [vmem:[#allocation4 + $0x24] sm:$0xf] %vm2124_vm0, %v2101_v20  ;;  %v2327_v6 = vrot.slane %v2101_v20, 4  ;;  %2076 = vmatmul.bf16.gmra.mxu3 %v5794_v59  ;;  %2207 = vrot.lane.b32.xlu0 %v2101_v20, %s7240_s26 }
 0x309   : > { %2392 = vst.msk [vmem:[#allocation4 + $0x124] sm:$0xf] %vm2124_vm0, %v2327_v6  ;;  %v1948_v50 = vpop.f32.mrf.mxu2 }
 0x30a   : > { %v2037_v10 = vpop.f32.mrf.mxu3  ;;  %v1772_v24 = vpop.f32.mrf.mxu0 }
 0x30b   : > { %v2038_v39 = vadd.f32 %v2037_v10, %v1948_v50  ;;  %v1861_v63 = vpop.f32.mrf.mxu1 }
 0x30c   : > { %v1862_v12 = vadd.f32 %v1861_v63, %v1772_v24 }
 0x30d   : > { %v2102_v25 = vpack.c.bf16 %v2038_v39, %v1860_v37 }
 0x30f   : > { %2135 = vst.msk [vmem:[#allocation4 + $0x28] sm:$0xf] %vm2124_vm0, %v2102_v25  ;;  %v2328_v52 = vrot.slane %v2102_v25, 4  ;;  %2209 = vrot.lane.b32.xlu1 %v2102_v25, %s7240_s26 }
 0x311   : > { %2393 = vst.msk [vmem:[#allocation4 + $0x128] sm:$0xf] %vm2124_vm0, %v2328_v52  ;;  %v1950_v55 = vpop.f32.mrf.mxu2 }
 0x312   : > { %v2039_v61 = vpop.f32.mrf.mxu3  ;;  %v1775_v62 = vpop.f32.mrf.mxu0 }
 0x313   : > { %v2040_v16 = vadd.f32 %v2039_v61, %v1950_v55  ;;  %v1864_v30 = vpop.f32.mrf.mxu1 }
 0x314   : > { %v1865_v53 = vadd.f32 %v1864_v30, %v1775_v62 }
 0x315   : > { %v2103_v31 = vpack.c.bf16 %v2040_v16, %v1862_v12  ;;  %1814 = vmatmul.bf16.gmra.mxu0 %v5798_v9 }
 0x316   : > { %1903 = vmatmul.bf16.gmra.mxu1 %v5802_v1  ;;  %1992 = vmatmul.bf16.gmra.mxu2 %v5798_v9 }
 0x317   : > { %2136 = vst.msk [vmem:[#allocation4 + $0x2c] sm:$0xf] %vm2124_vm0, %v2103_v31  ;;  %v2329_v36 = vrot.slane %v2103_v31, 4  ;;  %2081 = vmatmul.bf16.gmra.mxu3 %v5802_v1  ;;  %2211 = vrot.lane.b32.xlu2 %v2103_v31, %s7240_s26 }
 0x319   : > { %2394 = vst.msk [vmem:[#allocation4 + $0x12c] sm:$0xf] %vm2124_vm0, %v2329_v36  ;;  %v1953_v54 = vpop.f32.mrf.mxu2 }
 0x31a   : > { %v2042_v4 = vpop.f32.mrf.mxu3  ;;  %v1777_v15 = vpop.f32.mrf.mxu0 }
 0x31b   : > { %v2043_v28 = vadd.f32 %v2042_v4, %v1953_v54  ;;  %v1866_v38 = vpop.f32.mrf.mxu1 }
 0x31c   : > { %v1867_v3 = vadd.f32 %v1866_v38, %v1777_v15 }
 0x31d   : > { %v2104_v14 = vpack.c.bf16 %v2043_v28, %v1865_v53 }
 0x31f   : > { %2137 = vst.msk [vmem:[#allocation4 + $0x30] sm:$0xf] %vm2124_vm0, %v2104_v14  ;;  %v2330_v17 = vrot.slane %v2104_v14, 4  ;;  %2213 = vrot.lane.b32.xlu0 %v2104_v14, %s7240_s26 }
 0x321   : > { %2395 = vst.msk [vmem:[#allocation4 + $0x130] sm:$0xf] %vm2124_vm0, %v2330_v17  ;;  %v1955_v23 = vpop.f32.mrf.mxu2 }
 0x322   : > { %v2044_v19 = vpop.f32.mrf.mxu3  ;;  %v1780_v29 = vpop.f32.mrf.mxu0 }
 0x323   : > { %v2045_v8 = vadd.f32 %v2044_v19, %v1955_v23  ;;  %v1869_v11 = vpop.f32.mrf.mxu1 }
 0x324   : > { %v1870_v33 = vadd.f32 %v1869_v11, %v1780_v29 }
 0x325   : > { %v2105_v22 = vpack.c.bf16 %v2045_v8, %v1867_v3  ;;  %1819 = vmatmul.bf16.gmra.mxu0 %v5806_v18 }
 0x326   : > { %1908 = vmatmul.bf16.gmra.mxu1 %v5810_v49  ;;  %1997 = vmatmul.bf16.gmra.mxu2 %v5806_v18 }
 0x327   : > { %2138 = vst.msk [vmem:[#allocation4 + $0x34] sm:$0xf] %vm2124_vm0, %v2105_v22  ;;  %v2331_v32 = vrot.slane %v2105_v22, 4  ;;  %2086 = vmatmul.bf16.gmra.mxu3 %v5810_v49  ;;  %2215 = vrot.lane.b32.xlu1 %v2105_v22, %s7240_s26 }
 0x329   : > { %2396 = vst.msk [vmem:[#allocation4 + $0x134] sm:$0xf] %vm2124_vm0, %v2331_v32  ;;  %v1958_v34 = vpop.f32.mrf.mxu2 }
 0x32a   : > { %v2047_v41 = vpop.f32.mrf.mxu3  ;;  %v1782_v51 = vpop.f32.mrf.mxu0 }
 0x32b   : > { %v2048_v60 = vadd.f32 %v2047_v41, %v1958_v34  ;;  %v1871_v35 = vpop.f32.mrf.mxu1 }
 0x32c   : > { %v1872_v58 = vadd.f32 %v1871_v35, %v1782_v51 }
 0x32d   : > { %v2106_v44 = vpack.c.bf16 %v2048_v60, %v1870_v33 }
 0x32f   : > { %2139 = vst.msk [vmem:[#allocation4 + $0x38] sm:$0xf] %vm2124_vm0, %v2106_v44  ;;  %v2332_v40 = vrot.slane %v2106_v44, 4  ;;  %2217 = vrot.lane.b32.xlu2 %v2106_v44, %s7240_s26 }
 0x331   : > { %2397 = vst.msk [vmem:[#allocation4 + $0x138] sm:$0xf] %vm2124_vm0, %v2332_v40  ;;  %v2190_v45 = vpop.permute.xlu0 %2189  ;;  %v1960_v46 = vpop.f32.mrf.mxu2 }
 0x332   : > { %2286 = vst.msk [vmem:[#allocation4 + $0x80] sm:$0xf] %vm2124_vm0, %v2190_v45  ;;  %v2415_v47 = vrot.slane %v2190_v45, 4  ;;  %v2049_v56 = vpop.f32.mrf.mxu3  ;;  %v1785_v57 = vpop.f32.mrf.mxu0 }
 0x333   : > { %v2050_v59 = vadd.f32 %v2049_v56, %v1960_v46  ;;  %v1874_v42 = vpop.f32.mrf.mxu1 }
 0x334   : > { %2480 = vst.msk [vmem:[#allocation4 + $0x180] sm:$0xf] %vm2124_vm0, %v2415_v47  ;;  %v1875_v20 = vadd.f32 %v1874_v42, %v1785_v57 }
 0x335   : > { %v2107_v5 = vpack.c.bf16 %v2050_v59, %v1872_v58 }
 0x337   : > { %2140 = vst.msk [vmem:[#allocation4 + $0x3c] sm:$0xf] %vm2124_vm0, %v2107_v5  ;;  %v2333_v7 = vrot.slane %v2107_v5, 4  ;;  %2219 = vrot.lane.b32.xlu0 %v2107_v5, %s7240_s26 }
 0x339   : > { %2398 = vst.msk [vmem:[#allocation4 + $0x13c] sm:$0xf] %vm2124_vm0, %v2333_v7  ;;  %v2198_v6 = vpop.permute.xlu2 %2197  ;;  %v2192_v37 = vpop.permute.xlu0 %2191 }
 0x33a   : > { %2290 = vst.msk [vmem:[#allocation4 + $0x90] sm:$0xf] %vm2124_vm0, %v2198_v6  ;;  %v2419_v50 = vrot.slane %v2198_v6, 4  ;;  %v2416_v10 = vrot.slane %v2192_v37, 4  ;;  %v1963_v24 = vpop.f32.mrf.mxu2  ;;  %v2052_v39 = vpop.f32.mrf.mxu3 }
 0x33b   : > { %2287 = vst.msk [vmem:[#allocation4 + $0x84] sm:$0xf] %vm2124_vm0, %v2192_v37  ;;  %v2053_v63 = vadd.f32 %v2052_v39, %v1963_v24  ;;  %v1787_v25 = vpop.f32.mrf.mxu0  ;;  %v1876_v26 = vpop.f32.mrf.mxu1 }
 0x33c   : > { %2484 = vst.msk [vmem:[#allocation4 + $0x190] sm:$0xf] %vm2124_vm0, %v2419_v50  ;;  %v1877_v1 = vadd.f32 %v1876_v26, %v1787_v25 }
 0x33d   : > { %2481 = vst.msk [vmem:[#allocation4 + $0x184] sm:$0xf] %vm2124_vm0, %v2416_v10  ;;  %v2108_v27 = vpack.c.bf16 %v2053_v63, %v1875_v20 }
 0x33f   : > { %2141 = vst.msk [vmem:[#allocation4 + $0x40] sm:$0xf] %vm2124_vm0, %v2108_v27  ;;  %v2334_v43 = vrot.slane %v2108_v27, 4  ;;  %2221 = vrot.lane.b32.xlu1 %v2108_v27, %s7240_s26 }
 0x341   : > { %2399 = vst.msk [vmem:[#allocation4 + $0x140] sm:$0xf] %vm2124_vm0, %v2334_v43  ;;  %v2200_v52 = vpop.permute.xlu2 %2199  ;;  %v2194_v48 = vpop.permute.xlu1 %2193 }
 0x342   : > { %2291 = vst.msk [vmem:[#allocation4 + $0x94] sm:$0xf] %vm2124_vm0, %v2200_v52  ;;  %v2420_v55 = vrot.slane %v2200_v52, 4  ;;  %v2417_v9 = vrot.slane %v2194_v48, 4  ;;  %v1965_v61 = vpop.f32.mrf.mxu2  ;;  %v2054_v62 = vpop.f32.mrf.mxu3 }
 0x343   : > { %2288 = vst.msk [vmem:[#allocation4 + $0x88] sm:$0xf] %vm2124_vm0, %v2194_v48  ;;  %v2055_v12 = vadd.f32 %v2054_v62, %v1965_v61  ;;  %v1790_v16 = vpop.f32.mrf.mxu0  ;;  %v1879_v30 = vpop.f32.mrf.mxu1 }
 0x344   : > { %2485 = vst.msk [vmem:[#allocation4 + $0x194] sm:$0xf] %vm2124_vm0, %v2420_v55  ;;  %v1880_v53 = vadd.f32 %v1879_v30, %v1790_v16 }
 0x345   : > { %2482 = vst.msk [vmem:[#allocation4 + $0x188] sm:$0xf] %vm2124_vm0, %v2417_v9  ;;  %v2109_v31 = vpack.c.bf16 %v2055_v12, %v1877_v1 }
 0x347   : > { %2142 = vst.msk [vmem:[#allocation4 + $0x44] sm:$0xf] %vm2124_vm0, %v2109_v31  ;;  %v2335_v36 = vrot.slane %v2109_v31, 4  ;;  %2223 = vrot.lane.b32.xlu2 %v2109_v31, %s7240_s26 }
 0x349   : > { %2400 = vst.msk [vmem:[#allocation4 + $0x144] sm:$0xf] %vm2124_vm0, %v2335_v36  ;;  %v2196_v54 = vpop.permute.xlu1 %2195 }
 0x34a   : > { %2289 = vst.msk [vmem:[#allocation4 + $0x8c] sm:$0xf] %vm2124_vm0, %v2196_v54  ;;  %v2418_v4 = vrot.slane %v2196_v54, 4  ;;  %v1968_v15 = vpop.f32.mrf.mxu2  ;;  %v2057_v28 = vpop.f32.mrf.mxu3 }
 0x34b   : > { %v2058_v38 = vadd.f32 %v2057_v28, %v1968_v15  ;;  %v1792_v14 = vpop.f32.mrf.mxu0  ;;  %v1881_v0 = vpop.f32.mrf.mxu1 }
 0x34c   : > { %2483 = vst.msk [vmem:[#allocation4 + $0x18c] sm:$0xf] %vm2124_vm0, %v2418_v4  ;;  %v1882_v23 = vadd.f32 %v1881_v0, %v1792_v14 }
 0x34d   : > { %v2110_v2 = vpack.c.bf16 %v2058_v38, %v1880_v53 }
 0x34f   : > { %2143 = vst.msk [vmem:[#allocation4 + $0x48] sm:$0xf] %vm2124_vm0, %v2110_v2  ;;  %v2336_v13 = vrot.slane %v2110_v2, 4  ;;  %2225 = vrot.lane.b32.xlu0 %v2110_v2, %s7240_s26 }
 0x351   : > { %2401 = vst.msk [vmem:[#allocation4 + $0x148] sm:$0xf] %vm2124_vm0, %v2336_v13 }
 0x352   : > { %v1970_v17 = vpop.f32.mrf.mxu2  ;;  %v2059_v21 = vpop.f32.mrf.mxu3 }
 0x353   : > { %v2060_v18 = vadd.f32 %v2059_v21, %v1970_v17  ;;  %v1795_v19 = vpop.f32.mrf.mxu0  ;;  %v1884_v29 = vpop.f32.mrf.mxu1 }
 0x354   : > { %v1885_v8 = vadd.f32 %v1884_v29, %v1795_v19 }
 0x355   : > { %v2111_v49 = vpack.c.bf16 %v2060_v18, %v1882_v23 }
 0x357   : > { %2144 = vst.msk [vmem:[#allocation4 + $0x4c] sm:$0xf] %vm2124_vm0, %v2111_v49  ;;  %v2337_v3 = vrot.slane %v2111_v49, 4  ;;  %2227 = vrot.lane.b32.xlu1 %v2111_v49, %s7240_s26 }
 0x359   : > { %2402 = vst.msk [vmem:[#allocation4 + $0x14c] sm:$0xf] %vm2124_vm0, %v2337_v3  ;;  %v2206_v11 = vpop.permute.xlu2 %2205 }
 0x35a   : > { %2294 = vst.msk [vmem:[#allocation4 + $0xa0] sm:$0xf] %vm2124_vm0, %v2206_v11  ;;  %v2423_v22 = vrot.slane %v2206_v11, 4  ;;  %v1973_v32 = vpop.f32.mrf.mxu2  ;;  %v2062_v33 = vpop.f32.mrf.mxu3 }
 0x35b   : > { %v2063_v34 = vadd.f32 %v2062_v33, %v1973_v32  ;;  %v1797_v41 = vpop.f32.mrf.mxu0  ;;  %v1886_v51 = vpop.f32.mrf.mxu1 }
 0x35c   : > { %2488 = vst.msk [vmem:[#allocation4 + $0x1a0] sm:$0xf] %vm2124_vm0, %v2423_v22  ;;  %v1887_v47 = vadd.f32 %v1886_v51, %v1797_v41 }
 0x35d   : > { %v2112_v60 = vpack.c.bf16 %v2063_v34, %v1885_v8 }
 0x35f   : > { %2145 = vst.msk [vmem:[#allocation4 + $0x50] sm:$0xf] %vm2124_vm0, %v2112_v60  ;;  %v2338_v35 = vrot.slane %v2112_v60, 4  ;;  %2229 = vrot.lane.b32.xlu2 %v2112_v60, %s7240_s26 }
 0x361   : > { %2403 = vst.msk [vmem:[#allocation4 + $0x150] sm:$0xf] %vm2124_vm0, %v2338_v35  ;;  %v2202_v44 = vpop.permute.xlu0 %2201 }
 0x362   : > { %2292 = vst.msk [vmem:[#allocation4 + $0x98] sm:$0xf] %vm2124_vm0, %v2202_v44  ;;  %v2421_v40 = vrot.slane %v2202_v44, 4  ;;  %v1975_v45 = vpop.f32.mrf.mxu2  ;;  %v2064_v46 = vpop.f32.mrf.mxu3 }
 0x363   : > { %v2065_v56 = vadd.f32 %v2064_v46, %v1975_v45  ;;  %v1800_v57 = vpop.f32.mrf.mxu0  ;;  %v1889_v58 = vpop.f32.mrf.mxu1 }
 0x364   : > { %2486 = vst.msk [vmem:[#allocation4 + $0x198] sm:$0xf] %vm2124_vm0, %v2421_v40  ;;  %v1890_v5 = vadd.f32 %v1889_v58, %v1800_v57 }
 0x365   : > { %v2113_v59 = vpack.c.bf16 %v2065_v56, %v1887_v47 }
 0x367   : > { %2146 = vst.msk [vmem:[#allocation4 + $0x54] sm:$0xf] %vm2124_vm0, %v2113_v59  ;;  %v2339_v42 = vrot.slane %v2113_v59, 4  ;;  %2231 = vrot.lane.b32.xlu0 %v2113_v59, %s7240_s26 }
 0x369   : > { %2404 = vst.msk [vmem:[#allocation4 + $0x154] sm:$0xf] %vm2124_vm0, %v2339_v42  ;;  %v2204_v7 = vpop.permute.xlu1 %2203 }
 0x36a   : > { %2293 = vst.msk [vmem:[#allocation4 + $0x9c] sm:$0xf] %vm2124_vm0, %v2204_v7  ;;  %v2422_v20 = vrot.slane %v2204_v7, 4  ;;  %v1978_v6 = vpop.f32.mrf.mxu2  ;;  %v2067_v37 = vpop.f32.mrf.mxu3 }
 0x36b   : > { %v2068_v50 = vadd.f32 %v2067_v37, %v1978_v6  ;;  %v1802_v10 = vpop.f32.mrf.mxu0  ;;  %v1891_v24 = vpop.f32.mrf.mxu1 }
 0x36c   : > { %2487 = vst.msk [vmem:[#allocation4 + $0x19c] sm:$0xf] %vm2124_vm0, %v2422_v20  ;;  %v1892_v52 = vadd.f32 %v1891_v24, %v1802_v10 }
 0x36d   : > { %v2114_v39 = vpack.c.bf16 %v2068_v50, %v1890_v5 }
 0x36f   : > { %2147 = vst.msk [vmem:[#allocation4 + $0x58] sm:$0xf] %vm2124_vm0, %v2114_v39  ;;  %v2340_v63 = vrot.slane %v2114_v39, 4  ;;  %2233 = vrot.lane.b32.xlu1 %v2114_v39, %s7240_s26 }
 0x371   : > { %2405 = vst.msk [vmem:[#allocation4 + $0x158] sm:$0xf] %vm2124_vm0, %v2340_v63  ;;  %v2212_v25 = vpop.permute.xlu2 %2211 }
 0x372   : > { %2297 = vst.msk [vmem:[#allocation4 + $0xac] sm:$0xf] %vm2124_vm0, %v2212_v25  ;;  %v2426_v26 = vrot.slane %v2212_v25, 4  ;;  %v1980_v27 = vpop.f32.mrf.mxu2  ;;  %v2069_v43 = vpop.f32.mrf.mxu3 }
 0x373   : > { %v2070_v48 = vadd.f32 %v2069_v43, %v1980_v27  ;;  %v1805_v55 = vpop.f32.mrf.mxu0  ;;  %v1894_v9 = vpop.f32.mrf.mxu1 }
 0x374   : > { %2491 = vst.msk [vmem:[#allocation4 + $0x1ac] sm:$0xf] %vm2124_vm0, %v2426_v26  ;;  %v1895_v1 = vadd.f32 %v1894_v9, %v1805_v55 }
 0x375   : > { %v2115_v61 = vpack.c.bf16 %v2070_v48, %v1892_v52 }
 0x377   : > { %2148 = vst.msk [vmem:[#allocation4 + $0x5c] sm:$0xf] %vm2124_vm0, %v2115_v61  ;;  %v2341_v62 = vrot.slane %v2115_v61, 4  ;;  %2235 = vrot.lane.b32.xlu2 %v2115_v61, %s7240_s26 }
 0x379   : > { %2406 = vst.msk [vmem:[#allocation4 + $0x15c] sm:$0xf] %vm2124_vm0, %v2341_v62  ;;  %v2208_v12 = vpop.permute.xlu0 %2207 }
 0x37a   : > { %2295 = vst.msk [vmem:[#allocation4 + $0xa4] sm:$0xf] %vm2124_vm0, %v2208_v12  ;;  %v2424_v16 = vrot.slane %v2208_v12, 4  ;;  %v1983_v30 = vpop.f32.mrf.mxu2  ;;  %v2072_v31 = vpop.f32.mrf.mxu3 }
 0x37b   : > { %v2073_v36 = vadd.f32 %v2072_v31, %v1983_v30  ;;  %v1807_v53 = vpop.f32.mrf.mxu0  ;;  %v1896_v54 = vpop.f32.mrf.mxu1 }
 0x37c   : > { %2489 = vst.msk [vmem:[#allocation4 + $0x1a4] sm:$0xf] %vm2124_vm0, %v2424_v16  ;;  %v1897_v2 = vadd.f32 %v1896_v54, %v1807_v53 }
 0x37d   : > { %v2116_v4 = vpack.c.bf16 %v2073_v36, %v1895_v1 }
 0x37f   : > { %2149 = vst.msk [vmem:[#allocation4 + $0x60] sm:$0xf] %vm2124_vm0, %v2116_v4  ;;  %v2342_v15 = vrot.slane %v2116_v4, 4  ;;  %2237 = vrot.lane.b32.xlu0 %v2116_v4, %s7240_s26 }
 0x381   : > { %2407 = vst.msk [vmem:[#allocation4 + $0x160] sm:$0xf] %vm2124_vm0, %v2342_v15  ;;  %v2210_v28 = vpop.permute.xlu1 %2209 }
 0x382   : > { %2296 = vst.msk [vmem:[#allocation4 + $0xa8] sm:$0xf] %vm2124_vm0, %v2210_v28  ;;  %v2425_v38 = vrot.slane %v2210_v28, 4  ;;  %v1985_v14 = vpop.f32.mrf.mxu2  ;;  %v2074_v0 = vpop.f32.mrf.mxu3 }
 0x383   : > { %v2075_v13 = vadd.f32 %v2074_v0, %v1985_v14  ;;  %v1810_v17 = vpop.f32.mrf.mxu0  ;;  %v1899_v21 = vpop.f32.mrf.mxu1 }
 0x384   : > { %2490 = vst.msk [vmem:[#allocation4 + $0x1a8] sm:$0xf] %vm2124_vm0, %v2425_v38  ;;  %v1900_v19 = vadd.f32 %v1899_v21, %v1810_v17 }
 0x385   : > { %v2117_v23 = vpack.c.bf16 %v2075_v13, %v1897_v2 }
 0x387   : > { %2150 = vst.msk [vmem:[#allocation4 + $0x64] sm:$0xf] %vm2124_vm0, %v2117_v23  ;;  %v2343_v18 = vrot.slane %v2117_v23, 4  ;;  %2239 = vrot.lane.b32.xlu1 %v2117_v23, %s7240_s26 }
 0x389   : > { %2408 = vst.msk [vmem:[#allocation4 + $0x164] sm:$0xf] %vm2124_vm0, %v2343_v18  ;;  %v2218_v29 = vpop.permute.xlu2 %2217 }
 0x38a   : > { %2300 = vst.msk [vmem:[#allocation4 + $0xb8] sm:$0xf] %vm2124_vm0, %v2218_v29  ;;  %v2429_v49 = vrot.slane %v2218_v29, 4  ;;  %v1988_v3 = vpop.f32.mrf.mxu2  ;;  %v2077_v8 = vpop.f32.mrf.mxu3 }
 0x38b   : > { %v2078_v11 = vadd.f32 %v2077_v8, %v1988_v3  ;;  %v1812_v22 = vpop.f32.mrf.mxu0  ;;  %v1901_v32 = vpop.f32.mrf.mxu1 }
 0x38c   : > { %2494 = vst.msk [vmem:[#allocation4 + $0x1b8] sm:$0xf] %vm2124_vm0, %v2429_v49  ;;  %v1902_v44 = vadd.f32 %v1901_v32, %v1812_v22 }
 0x38d   : > { %v2118_v33 = vpack.c.bf16 %v2078_v11, %v1900_v19 }
 0x38f   : > { %2151 = vst.msk [vmem:[#allocation4 + $0x68] sm:$0xf] %vm2124_vm0, %v2118_v33  ;;  %v2344_v34 = vrot.slane %v2118_v33, 4  ;;  %2241 = vrot.lane.b32.xlu2 %v2118_v33, %s7240_s26 }
 0x391   : > { %2409 = vst.msk [vmem:[#allocation4 + $0x168] sm:$0xf] %vm2124_vm0, %v2344_v34  ;;  %v2214_v41 = vpop.permute.xlu0 %2213 }
 0x392   : > { %2298 = vst.msk [vmem:[#allocation4 + $0xb0] sm:$0xf] %vm2124_vm0, %v2214_v41  ;;  %v2427_v51 = vrot.slane %v2214_v41, 4  ;;  %v1990_v60 = vpop.f32.mrf.mxu2  ;;  %v2079_v35 = vpop.f32.mrf.mxu3 }
 0x393   : > { %v2080_v40 = vadd.f32 %v2079_v35, %v1990_v60  ;;  %v1815_v45 = vpop.f32.mrf.mxu0  ;;  %v1904_v46 = vpop.f32.mrf.mxu1 }
 0x394   : > { %2492 = vst.msk [vmem:[#allocation4 + $0x1b0] sm:$0xf] %vm2124_vm0, %v2427_v51  ;;  %v1905_v57 = vadd.f32 %v1904_v46, %v1815_v45  ;;  %v7241_v45 = vmov 0.0  }
 0x395   : > { %v2119_v47 = vpack.c.bf16 %v2080_v40, %v1902_v44  ;;  %2512 = vst [vmem:[#allocation5 + $0xb0] sm:$0xff] %v7241_v45 }
 0x396   : > { %2513 = vst [vmem:[#allocation5 + $0x1b0] sm:$0xff] %v7241_v45 }
 0x397   : > { %2152 = vst.msk [vmem:[#allocation4 + $0x6c] sm:$0xf] %vm2124_vm0, %v2119_v47  ;;  %v2345_v56 = vrot.slane %v2119_v47, 4  ;;  %2243 = vrot.lane.b32.xlu0 %v2119_v47, %s7240_s26 }
 0x398   : > { %2514 = vst [vmem:[#allocation5 + $0xd8] sm:$0xff] %v7241_v45 }
 0x399   : > { %2410 = vst.msk [vmem:[#allocation4 + $0x16c] sm:$0xf] %vm2124_vm0, %v2345_v56  ;;  %v2216_v58 = vpop.permute.xlu1 %2215 }
 0x39a   : > { %2299 = vst.msk [vmem:[#allocation4 + $0xb4] sm:$0xf] %vm2124_vm0, %v2216_v58  ;;  %v2428_v59 = vrot.slane %v2216_v58, 4  ;;  %v1993_v42 = vpop.f32.mrf.mxu2  ;;  %v2082_v5 = vpop.f32.mrf.mxu3 }
 0x39b   : > { %v2083_v7 = vadd.f32 %v2082_v5, %v1993_v42  ;;  %v1817_v20 = vpop.f32.mrf.mxu0  ;;  %v1906_v6 = vpop.f32.mrf.mxu1  ;;  %2515 = vst [vmem:[#allocation5 + $0x18] sm:$0xff] %v7241_v45 }
 0x39c   : > { %2493 = vst.msk [vmem:[#allocation4 + $0x1b4] sm:$0xf] %vm2124_vm0, %v2428_v59  ;;  %v1907_v25 = vadd.f32 %v1906_v6, %v1817_v20 }
 0x39d   : > { %v2120_v37 = vpack.c.bf16 %v2083_v7, %v1905_v57  ;;  %2516 = vst [vmem:[#allocation5 + $0x50] sm:$0xff] %v7241_v45 }
 0x39e   : > { %2517 = vst [vmem:[#allocation5 + $0x168] sm:$0xff] %v7241_v45 }
 0x39f   : > { %2153 = vst.msk [vmem:[#allocation4 + $0x70] sm:$0xf] %vm2124_vm0, %v2120_v37  ;;  %v2346_v50 = vrot.slane %v2120_v37, 4  ;;  %2245 = vrot.lane.b32.xlu1 %v2120_v37, %s7240_s26 }
 0x3a0   : > { %2518 = vst [vmem:[#allocation5 + $0x130] sm:$0xff] %v7241_v45 }
 0x3a1   : > { %2411 = vst.msk [vmem:[#allocation4 + $0x170] sm:$0xf] %vm2124_vm0, %v2346_v50  ;;  %v2224_v10 = vpop.permute.xlu2 %2223 }
 0x3a2   : > { %2303 = vst.msk [vmem:[#allocation4 + $0xc4] sm:$0xf] %vm2124_vm0, %v2224_v10  ;;  %v2432_v24 = vrot.slane %v2224_v10, 4  ;;  %v1995_v39 = vpop.f32.mrf.mxu2  ;;  %v2084_v63 = vpop.f32.mrf.mxu3 }
 0x3a3   : > { %v2085_v26 = vadd.f32 %v2084_v63, %v1995_v39  ;;  %v1820_v43 = vpop.f32.mrf.mxu0  ;;  %v1909_v52 = vpop.f32.mrf.mxu1  ;;  %2519 = vst [vmem:[#allocation5 + $0x48] sm:$0xff] %v7241_v45 }
 0x3a4   : > { %2497 = vst.msk [vmem:[#allocation4 + $0x1c4] sm:$0xf] %vm2124_vm0, %v2432_v24  ;;  %v1910_v55 = vadd.f32 %v1909_v52, %v1820_v43 }
 0x3a5   : > { %v2121_v27 = vpack.c.bf16 %v2085_v26, %v1907_v25  ;;  %2520 = vst [vmem:[#allocation5 + $0x180] sm:$0xff] %v7241_v45 }
 0x3a6   : > { %2521 = vst [vmem:[#allocation5 + $0x110] sm:$0xff] %v7241_v45 }
 0x3a7   : > { %2154 = vst.msk [vmem:[#allocation4 + $0x74] sm:$0xf] %vm2124_vm0, %v2121_v27  ;;  %v2347_v48 = vrot.slane %v2121_v27, 4  ;;  %2247 = vrot.lane.b32.xlu2 %v2121_v27, %s7240_s26 }
 0x3a8   : > { %2522 = vst [vmem:[#allocation5 + $0x118] sm:$0xff] %v7241_v45 }
 0x3a9   : > { %2412 = vst.msk [vmem:[#allocation4 + $0x174] sm:$0xf] %vm2124_vm0, %v2347_v48  ;;  %v2220_v9 = vpop.permute.xlu0 %2219 }
 0x3aa   : > { %2301 = vst.msk [vmem:[#allocation4 + $0xbc] sm:$0xf] %vm2124_vm0, %v2220_v9  ;;  %v2430_v61 = vrot.slane %v2220_v9, 4  ;;  %v1998_v62 = vpop.f32.mrf.mxu2  ;;  %v2087_v1 = vpop.f32.mrf.mxu3 }
 0x3ab   : > { %v2088_v12 = vadd.f32 %v2087_v1, %v1998_v62  ;;  %v1822_v31 = vpop.f32.mrf.mxu0  ;;  %v1911_v36 = vpop.f32.mrf.mxu1  ;;  %2523 = vst [vmem:[#allocation5 + $0x98] sm:$0xff] %v7241_v45 }
 0x3ac   : > { %2495 = vst.msk [vmem:[#allocation4 + $0x1bc] sm:$0xf] %vm2124_vm0, %v2430_v61  ;;  %v1912_v28 = vadd.f32 %v1911_v36, %v1822_v31 }
 0x3ad   : > { %v2122_v16 = vpack.c.bf16 %v2088_v12, %v1910_v55  ;;  %2524 = vst [vmem:[#allocation5 + $0x120] sm:$0xff] %v7241_v45 }
 0x3ae   : > { %2525 = vst [vmem:[#allocation5 + $0x150] sm:$0xff] %v7241_v45 }
 0x3af   : > { %2155 = vst.msk [vmem:[#allocation4 + $0x78] sm:$0xf] %vm2124_vm0, %v2122_v16  ;;  %v2348_v30 = vrot.slane %v2122_v16, 4  ;;  %2249 = vrot.lane.b32.xlu0 %v2122_v16, %s7240_s26 }
 0x3b0   : > { %2526 = vst [vmem:[#allocation5 + $0x108] sm:$0xff] %v7241_v45 }
 0x3b1   : > { %2413 = vst.msk [vmem:[#allocation4 + $0x178] sm:$0xf] %vm2124_vm0, %v2348_v30  ;;  %v2222_v53 = vpop.permute.xlu1 %2221 }
 0x3b2   : > { %2302 = vst.msk [vmem:[#allocation4 + $0xc0] sm:$0xf] %vm2124_vm0, %v2222_v53  ;;  %v2431_v54 = vrot.slane %v2222_v53, 4  ;;  %v2000_v4 = vpop.f32.mrf.mxu2  ;;  %v2089_v15 = vpop.f32.mrf.mxu3 }
 0x3b3   : > { %v2090_v38 = vadd.f32 %v2089_v15, %v2000_v4  ;;  %2527 = vst [vmem:[#allocation5 + $0x60] sm:$0xff] %v7241_v45 }
 0x3b4   : > { %2496 = vst.msk [vmem:[#allocation4 + $0x1c0] sm:$0xf] %vm2124_vm0, %v2431_v54 }
 0x3b5   : > { %v2123_v14 = vpack.c.bf16 %v2090_v38, %v1912_v28  ;;  %2528 = vst [vmem:[#allocation5 + $0xe0] sm:$0xff] %v7241_v45 }
 0x3b6   : > { %2529 = vst [vmem:[#allocation5 + $0x188] sm:$0xff] %v7241_v45 }
 0x3b7   : > { %2156 = vst.msk [vmem:[#allocation4 + $0x7c] sm:$0xf] %vm2124_vm0, %v2123_v14  ;;  %v2349_v0 = vrot.slane %v2123_v14, 4  ;;  %2251 = vrot.lane.b32.xlu1 %v2123_v14, %s7240_s26 }
 0x3b8   : > { %2530 = vst [vmem:[#allocation5 + $0x138] sm:$0xff] %v7241_v45 }
 0x3b9   : > { %2414 = vst.msk [vmem:[#allocation4 + $0x17c] sm:$0xf] %vm2124_vm0, %v2349_v0  ;;  %v2230_v2 = vpop.permute.xlu2 %2229 }
 0x3ba   : > { %2306 = vst.msk [vmem:[#allocation4 + $0xd0] sm:$0xf] %vm2124_vm0, %v2230_v2  ;;  %v2435_v13 = vrot.slane %v2230_v2, 4 }
 0x3bb   : > { %2531 = vst [vmem:[#allocation5 + $0x140] sm:$0xff] %v7241_v45 }
 0x3bc   : > { %2500 = vst.msk [vmem:[#allocation4 + $0x1d0] sm:$0xf] %vm2124_vm0, %v2435_v13 }
 0x3bd   : > { %2532 = vst [vmem:[#allocation5 + $0x80] sm:$0xff] %v7241_v45 }
 0x3be   : > { %2533 = vst [vmem:[#allocation5 + $0x1a8] sm:$0xff] %v7241_v45 }
 0x3bf   : > { %2534 = vst [vmem:[#allocation5 + $0x1b8] sm:$0xff] %v7241_v45 }
 0x3c0   : > { %2535 = vst [vmem:[#allocation5 + $0x28] sm:$0xff] %v7241_v45 }
 0x3c1   : > { %v2226_v17 = vpop.permute.xlu0 %2225  ;;  %2536 = vst [vmem:[#allocation5 + $0x1e8] sm:$0xff] %v7241_v45 }
 0x3c2   : > { %2304 = vst.msk [vmem:[#allocation4 + $0xc8] sm:$0xf] %vm2124_vm0, %v2226_v17  ;;  %v2433_v21 = vrot.slane %v2226_v17, 4 }
 0x3c3   : > { %2537 = vst [vmem:[#allocation5 + $0xf8] sm:$0xff] %v7241_v45 }
 0x3c4   : > { %2498 = vst.msk [vmem:[#allocation4 + $0x1c8] sm:$0xf] %vm2124_vm0, %v2433_v21 }
 0x3c5   : > { %2538 = vst [vmem:[#allocation5 + $0x160] sm:$0xff] %v7241_v45 }
 0x3c6   : > { %2539 = vst [vmem:[#allocation5 + $0x30] sm:$0xff] %v7241_v45 }
 0x3c7   : > { %2540 = vst [vmem:[#allocation5 + $0x1e0] sm:$0xff] %v7241_v45 }
 0x3c8   : > { %2541 = vst [vmem:[#allocation5] sm:$0xff] %v7241_v45 }
 0x3c9   : > { %v2228_v23 = vpop.permute.xlu1 %2227  ;;  %2542 = vst [vmem:[#allocation5 + $0xf0] sm:$0xff] %v7241_v45 }
 0x3ca   : > { %2305 = vst.msk [vmem:[#allocation4 + $0xcc] sm:$0xf] %vm2124_vm0, %v2228_v23  ;;  %v2434_v18 = vrot.slane %v2228_v23, 4 }
 0x3cb   : > { %2543 = vst [vmem:[#allocation5 + $0x8] sm:$0xff] %v7241_v45 }
 0x3cc   : > { %2499 = vst.msk [vmem:[#allocation4 + $0x1cc] sm:$0xf] %vm2124_vm0, %v2434_v18 }
 0x3cd   : > { %2544 = vst [vmem:[#allocation5 + $0x148] sm:$0xff] %v7241_v45 }
 0x3ce   : > { %2545 = vst [vmem:[#allocation5 + $0x1d0] sm:$0xff] %v7241_v45 }
 0x3cf   : > { %2546 = vst [vmem:[#allocation5 + $0x100] sm:$0xff] %v7241_v45 }
 0x3d0   : > { %2547 = vst [vmem:[#allocation5 + $0xc8] sm:$0xff] %v7241_v45 }
 0x3d1   : > { %v2236_v19 = vpop.permute.xlu2 %2235  ;;  %2548 = vst [vmem:[#allocation5 + $0x40] sm:$0xff] %v7241_v45 }
 0x3d2   : > { %2309 = vst.msk [vmem:[#allocation4 + $0xdc] sm:$0xf] %vm2124_vm0, %v2236_v19  ;;  %v2438_v29 = vrot.slane %v2236_v19, 4 }
 0x3d3   : > { %2549 = vst [vmem:[#allocation5 + $0x1f8] sm:$0xff] %v7241_v45 }
 0x3d4   : > { %2503 = vst.msk [vmem:[#allocation4 + $0x1dc] sm:$0xf] %vm2124_vm0, %v2438_v29 }
 0x3d5   : > { %2550 = vst [vmem:[#allocation5 + $0x20] sm:$0xff] %v7241_v45 }
 0x3d6   : > { %2551 = vst [vmem:[#allocation5 + $0x128] sm:$0xff] %v7241_v45 }
 0x3d7   : > { %2552 = vst [vmem:[#allocation5 + $0x1a0] sm:$0xff] %v7241_v45 }
 0x3d8   : > { %2553 = vst [vmem:[#allocation5 + $0x1f0] sm:$0xff] %v7241_v45 }
 0x3d9   : > { %v2232_v49 = vpop.permute.xlu0 %2231  ;;  %2554 = vst [vmem:[#allocation5 + $0xe8] sm:$0xff] %v7241_v45 }
 0x3da   : > { %2307 = vst.msk [vmem:[#allocation4 + $0xd4] sm:$0xf] %vm2124_vm0, %v2232_v49  ;;  %v2436_v3 = vrot.slane %v2232_v49, 4 }
 0x3db   : > { %2555 = vst [vmem:[#allocation5 + $0x78] sm:$0xff] %v7241_v45 }
 0x3dc   : > { %2501 = vst.msk [vmem:[#allocation4 + $0x1d4] sm:$0xf] %vm2124_vm0, %v2436_v3 }
 0x3dd   : > { %2556 = vst [vmem:[#allocation5 + $0x70] sm:$0xff] %v7241_v45 }
 0x3de   : > { %2557 = vst [vmem:[#allocation5 + $0x90] sm:$0xff] %v7241_v45 }
 0x3df   : > { %2558 = vst [vmem:[#allocation5 + $0x1d8] sm:$0xff] %v7241_v45 }
 0x3e0   : > { %2559 = vst [vmem:[#allocation5 + $0xd0] sm:$0xff] %v7241_v45 }
 0x3e1   : > { %v2234_v8 = vpop.permute.xlu1 %2233  ;;  %2560 = vst [vmem:[#allocation5 + $0xb8] sm:$0xff] %v7241_v45 }
 0x3e2   : > { %2308 = vst.msk [vmem:[#allocation4 + $0xd8] sm:$0xf] %vm2124_vm0, %v2234_v8  ;;  %v2437_v11 = vrot.slane %v2234_v8, 4 }
 0x3e3   : > { %2561 = vst [vmem:[#allocation5 + $0x88] sm:$0xff] %v7241_v45 }
 0x3e4   : > { %2502 = vst.msk [vmem:[#allocation4 + $0x1d8] sm:$0xf] %vm2124_vm0, %v2437_v11 }
 0x3e5   : > { %2562 = vst [vmem:[#allocation5 + $0xa8] sm:$0xff] %v7241_v45 }
 0x3e6   : > { %2563 = vst [vmem:[#allocation5 + $0x1c8] sm:$0xff] %v7241_v45 }
 0x3e7   : > { %2564 = vst [vmem:[#allocation5 + $0x170] sm:$0xff] %v7241_v45 }
 0x3e8   : > { %2565 = vst [vmem:[#allocation5 + $0x178] sm:$0xff] %v7241_v45 }
 0x3e9   : > { %v2242_v22 = vpop.permute.xlu2 %2241  ;;  %2566 = vst [vmem:[#allocation5 + $0x68] sm:$0xff] %v7241_v45 }
 0x3ea   : > { %2312 = vst.msk [vmem:[#allocation4 + $0xe8] sm:$0xf] %vm2124_vm0, %v2242_v22  ;;  %v2441_v32 = vrot.slane %v2242_v22, 4 }
 0x3eb   : > { %2567 = vst [vmem:[#allocation5 + $0x190] sm:$0xff] %v7241_v45 }
 0x3ec   : > { %2506 = vst.msk [vmem:[#allocation4 + $0x1e8] sm:$0xf] %vm2124_vm0, %v2441_v32 }
 0x3ed   : > { %2568 = vst [vmem:[#allocation5 + $0x198] sm:$0xff] %v7241_v45 }
 0x3ee   : > { %2569 = vst [vmem:[#allocation5 + $0x38] sm:$0xff] %v7241_v45 }
 0x3ef   : > { %2570 = vst [vmem:[#allocation5 + $0xc0] sm:$0xff] %v7241_v45 }
 0x3f0   : > { %2571 = vst [vmem:[#allocation5 + $0x1c0] sm:$0xff] %v7241_v45 }
 0x3f1   : > { %v2238_v33 = vpop.permute.xlu0 %2237  ;;  %2572 = vst [vmem:[#allocation5 + $0x158] sm:$0xff] %v7241_v45 }
 0x3f2   : > { %2310 = vst.msk [vmem:[#allocation4 + $0xe0] sm:$0xf] %vm2124_vm0, %v2238_v33  ;;  %v2439_v34 = vrot.slane %v2238_v33, 4 }
 0x3f3   : > { %2573 = vst [vmem:[#allocation5 + $0x10] sm:$0xff] %v7241_v45 }
 0x3f4   : > { %2504 = vst.msk [vmem:[#allocation4 + $0x1e0] sm:$0xf] %vm2124_vm0, %v2439_v34 }
 0x3f5   : > { %2574 = vst [vmem:[#allocation5 + $0x58] sm:$0xff] %v7241_v45 }
 0x3f6   : > { %2575 = vst [vmem:[#allocation5 + $0xa0] sm:$0xff] %v7241_v45 }
 0x3f9   : > { %v2240_v41 = vpop.permute.xlu1 %2239 }
 0x3fa   : > { %2311 = vst.msk [vmem:[#allocation4 + $0xe4] sm:$0xf] %vm2124_vm0, %v2240_v41  ;;  %v2440_v51 = vrot.slane %v2240_v41, 4 }
 0x3fc   : > { %2505 = vst.msk [vmem:[#allocation4 + $0x1e4] sm:$0xf] %vm2124_vm0, %v2440_v51 }
 0x401   : > { %v2248_v60 = vpop.permute.xlu2 %2247 }
 0x402   : > { %2315 = vst.msk [vmem:[#allocation4 + $0xf4] sm:$0xf] %vm2124_vm0, %v2248_v60  ;;  %v2444_v35 = vrot.slane %v2248_v60, 4 }
 0x404   : > { %2509 = vst.msk [vmem:[#allocation4 + $0x1f4] sm:$0xf] %vm2124_vm0, %v2444_v35 }
 0x409   : > { %v2244_v44 = vpop.permute.xlu0 %2243 }
 0x40a   : > { %2313 = vst.msk [vmem:[#allocation4 + $0xec] sm:$0xf] %vm2124_vm0, %v2244_v44  ;;  %v2442_v40 = vrot.slane %v2244_v44, 4 }
 0x40c   : > { %2507 = vst.msk [vmem:[#allocation4 + $0x1ec] sm:$0xf] %vm2124_vm0, %v2442_v40 }
 0x411   : > { %v2246_v46 = vpop.permute.xlu1 %2245 }
 0x412   : > { %2314 = vst.msk [vmem:[#allocation4 + $0xf0] sm:$0xf] %vm2124_vm0, %v2246_v46  ;;  %v2443_v47 = vrot.slane %v2246_v46, 4 }
 0x414   : > { %2508 = vst.msk [vmem:[#allocation4 + $0x1f0] sm:$0xf] %vm2124_vm0, %v2443_v47 }
 0x421   : > { %v2250_v56 = vpop.permute.xlu0 %2249 }
 0x422   : > { %2316 = vst.msk [vmem:[#allocation4 + $0xf8] sm:$0xf] %vm2124_vm0, %v2250_v56  ;;  %v2445_v57 = vrot.slane %v2250_v56, 4 }
 0x424   : > { %2510 = vst.msk [vmem:[#allocation4 + $0x1f8] sm:$0xf] %vm2124_vm0, %v2445_v57 }
 0x429   : > { %v2252_v58 = vpop.permute.xlu1 %2251 }
 0x42a   : > { %2317 = vst.msk [vmem:[#allocation4 + $0xfc] sm:$0xf] %vm2124_vm0, %v2252_v58  ;;  %v2446_v59 = vrot.slane %v2252_v58, 4 }
 0x42c   : > { %2511 = vst.msk [vmem:[#allocation4 + $0x1fc] sm:$0xf] %vm2124_vm0, %v2446_v59 }
 0x42d LB: >> { %s8320_s15 = sshll.u32 %s7233_s30, 7  ;;  %vm2795_vm1 = vcmask 523264   ;;  %s6199_s6 = sshll.u32 %s7233_s30, 6  ;;  %s7233_s30 = sphi %s8314_s30, %s2581_s30  }
 0x42e   : >> { %s8323_s18 = scalar_lea.vmem [#allocation2], %s8320_s15  ;;  %s8346_s8 = scalar_lea.vmem [#allocation4], %s8320_s15 }
 0x42f   : >> { %v6056_v42 = vld [vmem:[%s8323_s18 + $0x60] sm:$0xf]  ;;  %v6455_v5 = vld [vmem:[%s8323_s18 + $0x6c] sm:$0xf0]  ;;  %v6453_v20 = vld [vmem:[%s8323_s18 + $0x64] sm:$0xf] }
 0x430   : >> { %v6057_v7 = vor.u32 %v6455_v5, %v6056_v42  ;;  %v6058_v6 = vld [vmem:[%s8323_s18 + $0x70] sm:$0xf0]  ;;  %v6040_v37 = vld [vmem:[%s8323_s18 + $0x40] sm:$0xf]  ;;  %v6451_v10 = vld [vmem:[%s8323_s18 + $0x4c] sm:$0xf0] }
 0x431   : >> { %v6061_v50 = vor.u32 %v6453_v20, %v6058_v6  ;;  %v6449_v24 = vld [vmem:[%s8323_s18 + $0x44] sm:$0xf]  ;;  %v6042_v39 = vld [vmem:[%s8323_s18 + $0x50] sm:$0xf0]  ;;  %v6041_v63 = vor.u32 %v6451_v10, %v6040_v37  ;;  %v6024_v26 = vld [vmem:[%s8323_s18 + $0x20] sm:$0xf] }
 0x432   : >> { %6484 = vmatpush.bf16.msra.mxu2 %v6057_v7  ;;  %2848 = vmatpush.bf16.msra.mxu0 %v6057_v7  ;;  %v6045_v25 = vor.u32 %v6449_v24, %v6042_v39  ;;  %v6447_v27 = vld [vmem:[%s8323_s18 + $0x2c] sm:$0xf0]  ;;  %v6445_v43 = vld [vmem:[%s8323_s18 + $0x24] sm:$0xf]  ;;  %v6026_v52 = vld [vmem:[%s8323_s18 + $0x30] sm:$0xf0] }
 0x433   : >> { %6488 = vmatpush.bf16.msra.mxu3 %v6061_v50  ;;  %2937 = vmatpush.bf16.msra.mxu1 %v6061_v50  ;;  %v6025_v48 = vor.u32 %v6447_v27, %v6024_v26  ;;  %v6029_v55 = vor.u32 %v6445_v43, %v6026_v52  ;;  %v6008_v9 = vld [vmem:[%s8323_s18] sm:$0xf]  ;;  %v6443_v61 = vld [vmem:[%s8323_s18 + $0xc] sm:$0xf0]  ;;  %v6441_v62 = vld [vmem:[%s8323_s18 + $0x4] sm:$0xf] }
 0x434   : >> { %v6010_v1 = vld [vmem:[%s8323_s18 + $0x10] sm:$0xf0]  ;;  %v6064_v12 = vld [vmem:[%s8323_s18 + $0x68] sm:$0xf]  ;;  %v6456_v16 = vld [vmem:[%s8323_s18 + $0x74] sm:$0xf0]  ;;  %v6009_v36 = vor.u32 %v6443_v61, %v6008_v9 }
 0x435   : >> { %v6454_v30 = vld [vmem:[%s8323_s18 + $0x6c] sm:$0xf]  ;;  %v6066_v31 = vld [vmem:[%s8323_s18 + $0x78] sm:$0xf0]  ;;  %v6013_v53 = vor.u32 %v6441_v62, %v6010_v1  ;;  %v6065_v54 = vor.u32 %v6456_v16, %v6064_v12  ;;  %v8349_v15 = vld [vmem:[%s8346_s8 + $0x40] sm:$0xff]  ;;  %s8501_s7 = scalar_lea.vmem [#allocation3], %s8320_s15 }
 0x436   : >> { %6485 = vmatpush.bf16.msra.mxu2 %v6041_v63  ;;  %2849 = vmatpush.bf16.msra.mxu0 %v6041_v63  ;;  %v6069_v4 = vor.u32 %v6454_v30, %v6066_v31  ;;  %v6048_v28 = vld [vmem:[%s8323_s18 + $0x48] sm:$0xf]  ;;  %v6452_v38 = vld [vmem:[%s8323_s18 + $0x54] sm:$0xf0]  ;;  %v6450_v14 = vld [vmem:[%s8323_s18 + $0x4c] sm:$0xf] }
 0x437   : >> { %6489 = vmatpush.bf16.msra.mxu3 %v6045_v25  ;;  %2938 = vmatpush.bf16.msra.mxu1 %v6045_v25  ;;  %v6049_v0 = vor.u32 %v6452_v38, %v6048_v28  ;;  %v6050_v2 = vld [vmem:[%s8323_s18 + $0x58] sm:$0xf0]  ;;  %v8360_v17 = vld [vmem:[%s8346_s8 + $0x48] sm:$0xff]  ;;  %v8367_v21 = vld [vmem:[%s8346_s8 + $0x50] sm:$0xff]  ;;  %s8767_s10 = scalar_lea.vmem [#allocation12], %s6199_s6  ;;  %s2581_s30 = sadd.s32 1, %s7233_s30  }
 0x438   : >> { %v6053_v13 = vor.u32 %v6450_v14, %v6050_v2  ;;  %v6032_v23 = vld [vmem:[%s8323_s18 + $0x28] sm:$0xf]  ;;  %v6448_v18 = vld [vmem:[%s8323_s18 + $0x34] sm:$0xf0]  ;;  %v6446_v19 = vld [vmem:[%s8323_s18 + $0x2c] sm:$0xf] }
 0x439   : >> { %v6033_v29 = vor.u32 %v6448_v18, %v6032_v23  ;;  %v6034_v49 = vld [vmem:[%s8323_s18 + $0x38] sm:$0xf0]  ;;  %v8385_v11 = vld [vmem:[%s8346_s8 + $0x60] sm:$0xff]  ;;  %v6016_v22 = vld [vmem:[%s8323_s18 + $0x8] sm:$0xf]  ;;  %p2578_p11 = scmp.ge.s32.totalorder %s2581_s30, 4  }
 0x43a   : >> { %6486 = vmatpush.bf16.msra.mxu2 %v6025_v48  ;;  %2850 = vmatpush.bf16.msra.mxu0 %v6025_v48  ;;  %v6037_v3 = vor.u32 %v6446_v19, %v6034_v49  ;;  %v8378_v8 = vld [vmem:[%s8346_s8 + $0x58] sm:$0xff]  ;;  %v6442_v33 = vld [vmem:[%s8323_s18 + $0xc] sm:$0xf]  ;;  %v6424_v35 = vld [vmem:[%s8346_s8] sm:$0xff]  ;;  %s6483_s1 = sshll.u32 (%p2578_p11), %s7209_s24, 6  ;;  %s6269_s16 = sshll.u32 (%p2578_p11), %s7213_s25, 7 }
 0x43b   : >> { %6490 = vmatpush.bf16.msra.mxu3 %v6029_v55  ;;  %2939 = vmatpush.bf16.msra.mxu1 %v6029_v55  ;;  %v6444_v32 = vld [vmem:[%s8323_s18 + $0x14] sm:$0xf0]  ;;  %v6018_v41 = vld [vmem:[%s8323_s18 + $0x18] sm:$0xf0]  ;;  %v8396_v60 = vld [vmem:[%s8346_s8 + $0x68] sm:$0xff]  ;;  %s5185_s29 = sadd.s32 (%p2578_p11), %s6483_s1, %s6269_s16  ;;  %s9949_s13 = sld [smem:[#allocation100_spill]] (%p2578_p11) }
 0x43c   : >> { %v6017_v34 = vor.u32 %v6444_v32, %v6016_v22  ;;  %v6021_v51 = vor.u32 %v6442_v33, %v6018_v41  ;;  %v8406_v44 = vld [vmem:[%s8346_s8 + $0x70] sm:$0xff]  ;;  %v6425_v40 = vld [vmem:[%s8346_s8 + $0x8] sm:$0xff]  ;;  %v8414_v45 = vld [vmem:[%s8346_s8 + $0x78] sm:$0xff]  ;;  %s6270_s24 = sshll.u32 (%p2578_p11), %s5185_s29, 3  ;;  %s5188_s21 = sshll.u32 (%p2578_p11), %s7449_s9, 4  ;;  %s5189_s21 = int_to_ptr.vmem [resolvable:$true] %s5188_s21 }
 0x43d   : >> { %v6426_v46 = vld [vmem:[%s8346_s8 + $0x10] sm:$0xff]  ;;  %v6427_v58 = vld [vmem:[%s8346_s8 + $0x18] sm:$0xff]  ;;  %v6428_v20 = vld [vmem:[%s8346_s8 + $0x20] sm:$0xff]  ;;  %s5173_s15 = scalar_lea.sflag (%p2578_p11), [#allocation8], %s306_s5 }
 0x43e   : >> { %6487 = vmatpush.bf16.msra.mxu2 %v6009_v36  ;;  %2851 = vmatpush.bf16.msra.mxu0 %v6009_v36  ;;  %v6429_v24 = vld [vmem:[%s8346_s8 + $0x28] sm:$0xff]  ;;  %v6430_v27 = vld [vmem:[%s8346_s8 + $0x30] sm:$0xff]  ;;  %v6431_v9 = vld [vmem:[%s8346_s8 + $0x38] sm:$0xff] }
 0x43f   : >> { %6491 = vmatpush.bf16.msra.mxu3 %v6013_v53  ;;  %2940 = vmatpush.bf16.msra.mxu1 %v6013_v53  ;;  %v6193_v30 = vld [vmem:[%s8501_s7 + $0x68] sm:$0xf]  ;;  %v6473_v31 = vld [vmem:[%s8501_s7 + $0x74] sm:$0xf0]  ;;  %v6471_v36 = vld [vmem:[%s8501_s7 + $0x6c] sm:$0xf] }
 0x440   : >> { %v6194_v53 = vor.u32 %v6473_v31, %v6193_v30  ;;  %v6185_v19 = vld [vmem:[%s8501_s7 + $0x60] sm:$0xf]  ;;  %v6470_v49 = vld [vmem:[%s8501_s7 + $0x64] sm:$0xf]  ;;  %v6187_v22 = vld [vmem:[%s8501_s7 + $0x70] sm:$0xf0] }
 0x441   : >> { %6078 = vmatmul.msk.bf16.vlgmr.msra.gmra.mxu2 %vm2795_vm1, %v8349_v15  ;;  %6070 = vmatmul.msk.bf16.vlgmr.msra.gmra.mxu0 %vm2795_vm1, %v6424_v35  ;;  %v6190_v33 = vor.u32 %v6470_v49, %v6187_v22  ;;  %v6169_v49 = vld [vmem:[%s8501_s7 + $0x40] sm:$0xf]  ;;  %v6466_v22 = vld [vmem:[%s8501_s7 + $0x44] sm:$0xf]  ;;  %s5187_s2 = scalar_lea.hbm (%p2578_p11), %s9949_s13, %s6270_s24 }
 0x442   : >> { %3026 = vmatpush.bf16.msrb.mxu2 %v6065_v54  ;;  %6094 = vmatmul.msk.bf16.vlgmr.msra.gmra.mxu3 %vm2795_vm1, %v8349_v15  ;;  %v6195_v54 = vld [vmem:[%s8501_s7 + $0x78] sm:$0xf0]  ;;  %s5190_s30 = sshll.u32 (%p2578_p11), %s5187_s2, 4  ;;  %s5191_s30 = int_to_ptr.hbm [resolvable:$true] %s5190_s30 }
 0x443   : >> { %3115 = vmatpush.bf16.msrb.mxu3 %v6069_v4  ;;  %6086 = vmatmul.msk.bf16.vlgmr.msra.gmra.mxu1 %vm2795_vm1, %v6424_v35  ;;  %v6198_v4 = vor.u32 %v6471_v36, %v6195_v54  ;;  %s7101_s18 = sshra.s32 (%p2578_p11), %s5191_s30, 4  ;;  %s7102_s18 = int_to_ptr.hbm [resolvable:$true] %s7101_s18 }
 0x444   : >> { %4159 = vmatpush.bf16.xpose.msrb.mxu1 %v6190_v33  ;;  %s7103_s8 = scalar_lea.hbm (%p2578_p11), %s7102_s18, 512  ;;  %p7108_p5 = scmp.lt.s32.totalorder (%p2578_p11), %s7102_s18, %s9949_s13 }
 0x445   : > { %p7104_p0 = scmp.ne.s32.totalorder (%p2578_p11), %s7102_s18, %s7103_s8 }
 0x446   : >> { %3027 = vmatpush.bf16.msrb.mxu2 %v6049_v0 }
 0x447   : >> { %3116 = vmatpush.bf16.msrb.mxu3 %v6053_v13  ;;  %p7105_p2 = pnand (%p2578_p11), %p7104_p0, %p7344_p6 }
 0x449   : > { %p7106_p3 = pneg (%p2578_p11), %p7105_p2 }
 0x44a   : >> { %3028 = vmatpush.bf16.msrb.mxu2 %v6033_v29  ;;  %v6472_v29 = vld [vmem:[%s8501_s7 + $0x6c] sm:$0xf0] }
 0x44b   : >> { %3117 = vmatpush.bf16.msrb.mxu3 %v6037_v3  ;;  %v6186_v3 = vor.u32 %v6472_v29, %v6185_v19 }
 0x44d   : >> { %4070 = vmatpush.bf16.xpose.msrb.mxu0 %v6186_v3  ;;  %v6468_v3 = vld [vmem:[%s8501_s7 + $0x4c] sm:$0xf0] }
 0x44e   : >> { %3029 = vmatpush.bf16.msrb.mxu2 %v6017_v34  ;;  %v6170_v33 = vor.u32 %v6468_v3, %v6169_v49 }
 0x44f   : >> { %3118 = vmatpush.bf16.msrb.mxu3 %v6021_v51 }
 0x451   : >> { %6079 = vmatmul.msk.bf16.gmra.mxu2 %vm2795_vm1, %v8360_v17  ;;  %6071 = vmatmul.msk.bf16.gmra.mxu0 %vm2795_vm1, %v6425_v40 }
 0x452   : >> { %6095 = vmatmul.msk.bf16.gmra.mxu3 %vm2795_vm1, %v8360_v17  ;;  %4248 = vmatpush.bf16.xpose.msra.mxu2 %v6194_v53 }
 0x453   : >> { %6087 = vmatmul.msk.bf16.gmra.mxu1 %vm2795_vm1, %v6425_v40  ;;  %4337 = vmatpush.bf16.xpose.msra.mxu3 %v6198_v4 }
 0x455   : >> { %4071 = vmatpush.bf16.xpose.msrb.mxu0 %v6170_v33  ;;  %v6179_v33 = vld [vmem:[%s8501_s7 + $0x58] sm:$0xf0] }
 0x461   : >> { %6080 = vmatmul.msk.bf16.gmra.mxu2 %vm2795_vm1, %v8367_v21  ;;  %6072 = vmatmul.msk.bf16.gmra.mxu0 %vm2795_vm1, %v6426_v46 }
 0x462   : >> { %6096 = vmatmul.msk.bf16.gmra.mxu3 %vm2795_vm1, %v8367_v21 }
 0x463   : >> { %6088 = vmatmul.msk.bf16.gmra.mxu1 %vm2795_vm1, %v6426_v46 }
 0x471   : >> { %6081 = vmatmul.msk.bf16.gmra.mxu2 %vm2795_vm1, %v8378_v8  ;;  %6073 = vmatmul.msk.bf16.gmra.mxu0 %vm2795_vm1, %v6427_v58 }
 0x472   : >> { %6097 = vmatmul.msk.bf16.gmra.mxu3 %vm2795_vm1, %v8378_v8 }
 0x473   : >> { %6089 = vmatmul.msk.bf16.gmra.mxu1 %vm2795_vm1, %v6427_v58 }
 0x481   : >> { %6082 = vmatmul.msk.bf16.gmra.mxu2 %vm2795_vm1, %v8385_v11  ;;  %6074 = vmatmul.msk.bf16.gmra.mxu0 %vm2795_vm1, %v6428_v20 }
 0x482   : >> { %6098 = vmatmul.msk.bf16.gmra.mxu3 %vm2795_vm1, %v8385_v11 }
 0x483   : >> { %6090 = vmatmul.msk.bf16.gmra.mxu1 %vm2795_vm1, %v6428_v20 }
 0x491   : >> { %6083 = vmatmul.msk.bf16.gmra.mxu2 %vm2795_vm1, %v8396_v60  ;;  %6075 = vmatmul.msk.bf16.gmra.mxu0 %vm2795_vm1, %v6429_v24 }
 0x492   : >> { %6099 = vmatmul.msk.bf16.gmra.mxu3 %vm2795_vm1, %v8396_v60 }
 0x493   : >> { %6091 = vmatmul.msk.bf16.gmra.mxu1 %vm2795_vm1, %v6429_v24 }
 0x4a1   : >> { %6084 = vmatmul.msk.bf16.gmra.mxu2 %vm2795_vm1, %v8406_v44  ;;  %6076 = vmatmul.msk.bf16.gmra.mxu0 %vm2795_vm1, %v6430_v27 }
 0x4a2   : >> { %6100 = vmatmul.msk.bf16.gmra.mxu3 %vm2795_vm1, %v8406_v44 }
 0x4a3   : >> { %6092 = vmatmul.msk.bf16.gmra.mxu1 %vm2795_vm1, %v6430_v27 }
 0x4b1   : >> { %6085 = vmatmul.msk.bf16.gmra.mxu2 %vm2795_vm1, %v8414_v45  ;;  %6077 = vmatmul.msk.bf16.gmra.mxu0 %vm2795_vm1, %v6431_v9 }
 0x4b2   : >> { %6101 = vmatmul.msk.bf16.gmra.mxu3 %vm2795_vm1, %v8414_v45 }
 0x4b3   : >> { %6093 = vmatmul.msk.bf16.gmra.mxu1 %vm2795_vm1, %v6431_v9 }
 0x4be   : >> { %v8509_v28 = vpop.f32.mrf.mxu0 }
 0x4c0   : >> { %v8511_v38 = vpop.f32.mrf.mxu1 }
 0x4c1   : >> { %6102 = vmatmul.msk.bf16.vlgmr.msrb.gmra.mxu2 %vm2795_vm1, %v6424_v35 }
 0x4c2   : >> { %6118 = vmatmul.msk.bf16.vlgmr.msrb.gmra.mxu3 %vm2795_vm1, %v6424_v35 }
 0x4c4   : >> { %v8427_v47 = vpop.f32.mrf.mxu2 }
 0x4c5   : >> { %9787 = vst [vmem:[#allocation42_spill] sm:$0xff] %v8427_v47  ;;  %v8429_v56 = vpop.f32.mrf.mxu3 }
 0x4c6   : >> { %9788 = vst [vmem:[#allocation43_spill] sm:$0xff] %v8429_v56  ;;  %v8519_v13 = vpop.f32.mrf.mxu0 }
 0x4c8   : >> { %v8523_v18 = vpop.f32.mrf.mxu1 }
 0x4c9   : >> { %v3205_v36 = vmax.f32 %v8519_v13, %v8523_v18 }
 0x4cc   : >> { %v8431_v57 = vpop.f32.mrf.mxu2 }
 0x4cd   : >> { %9789 = vst [vmem:[#allocation44_spill] sm:$0xff] %v8431_v57  ;;  %v8434_v59 = vpop.f32.mrf.mxu3 }
 0x4ce   : >> { %9790 = vst [vmem:[#allocation45_spill] sm:$0xff] %v8434_v59  ;;  %v8535_v41 = vpop.f32.mrf.mxu0 }
 0x4d0   : >> { %v8537_v51 = vpop.f32.mrf.mxu1 }
 0x4d1   : >> { %6103 = vmatmul.msk.bf16.gmra.mxu2 %vm2795_vm1, %v6425_v40  ;;  %v3210_v29 = vmax.f32 %v8535_v41, %v8537_v51 }
 0x4d2   : >> { %6119 = vmatmul.msk.bf16.gmra.mxu3 %vm2795_vm1, %v6425_v40 }
 0x4d4   : >> { %v8440_v42 = vpop.f32.mrf.mxu2 }
 0x4d5   : >> { %v8442_v5 = vpop.f32.mrf.mxu3 }
 0x4dc   : >> { %v8444_v7 = vpop.f32.mrf.mxu2 }
 0x4dd   : >> { %v8447_v6 = vpop.f32.mrf.mxu3 }
 0x4e1   : >> { %6104 = vmatmul.msk.bf16.gmra.mxu2 %vm2795_vm1, %v6426_v46 }
 0x4e2   : >> { %6120 = vmatmul.msk.bf16.gmra.mxu3 %vm2795_vm1, %v6426_v46  ;;  %v8543_v46 = vpop.f32.mrf.mxu0 }
 0x4e4   : >> { %v8453_v37 = vpop.f32.mrf.mxu2 }
 0x4e5   : >> { %v8455_v50 = vpop.f32.mrf.mxu3 }
 0x4ea   : >> { %v8559_v31 = vpop.f32.mrf.mxu0 }
 0x4ec   : >> { %v8457_v10 = vpop.f32.mrf.mxu2 }
 0x4ed   : >> { %v8460_v39 = vpop.f32.mrf.mxu3 }
 0x4f1   : >> { %6105 = vmatmul.msk.bf16.gmra.mxu2 %vm2795_vm1, %v6427_v58 }
 0x4f2   : >> { %6121 = vmatmul.msk.bf16.gmra.mxu3 %vm2795_vm1, %v6427_v58  ;;  %v3200_v58 = vmax.f32 %v8509_v28, %v8511_v38 }
 0x4f4   : >> { %v8466_v63 = vpop.f32.mrf.mxu2 }
 0x4f5   : >> { %9791 = vst [vmem:[#allocation46_spill] sm:$0xff] %v8466_v63  ;;  %v8468_v25 = vpop.f32.mrf.mxu3 }
 0x4f6   : >> { %9792 = vst [vmem:[#allocation47_spill] sm:$0xff] %v8468_v25 }
 0x4fc   : >> { %v8470_v26 = vpop.f32.mrf.mxu2 }
 0x4fd   : >> { %9793 = vst [vmem:[#allocation48_spill] sm:$0xff] %v8470_v26  ;;  %v8473_v43 = vpop.f32.mrf.mxu3 }
 0x4fe   : >> { %9794 = vst [vmem:[#allocation49_spill] sm:$0xff] %v8473_v43 }
 0x501   : >> { %6106 = vmatmul.msk.bf16.gmra.mxu2 %vm2795_vm1, %v6428_v20 }
 0x502   : >> { %6122 = vmatmul.msk.bf16.gmra.mxu3 %vm2795_vm1, %v6428_v20  ;;  %v8549_v20 = vpop.f32.mrf.mxu1 }
 0x503   : >> { %v3215_v49 = vmax.f32 %v8543_v46, %v8549_v20 }
 0x504   : >> { %v8479_v52 = vpop.f32.mrf.mxu2 }
 0x505   : >> { %9795 = vst [vmem:[#allocation50_spill] sm:$0xff] %v8479_v52  ;;  %v8481_v48 = vpop.f32.mrf.mxu3 }
 0x506   : >> { %9796 = vst [vmem:[#allocation51_spill] sm:$0xff] %v8481_v48 }
 0x50a   : >> { %v8563_v53 = vpop.f32.mrf.mxu1 }
 0x50c   : >> { %v8483_v55 = vpop.f32.mrf.mxu2 }
 0x50d   : >> { %9797 = vst [vmem:[#allocation52_spill] sm:$0xff] %v8483_v55  ;;  %v8486_v61 = vpop.f32.mrf.mxu3 }
 0x50e   : >> { %9798 = vst [vmem:[#allocation53_spill] sm:$0xff] %v8486_v61 }
 0x511   : >> { %6107 = vmatmul.msk.bf16.gmra.mxu2 %vm2795_vm1, %v6429_v24 }
 0x512   : >> { %6123 = vmatmul.msk.bf16.gmra.mxu3 %vm2795_vm1, %v6429_v24 }
 0x514   : >> { %v8492_v62 = vpop.f32.mrf.mxu2 }
 0x515   : >> { %9799 = vst [vmem:[#allocation54_spill] sm:$0xff] %v8492_v62  ;;  %v8494_v1 = vpop.f32.mrf.mxu3  ;;  %v6155_v62 = vld [vmem:[%s8501_s7 + $0x30] sm:$0xf0] }
 0x516   : >> { %9800 = vst [vmem:[#allocation55_spill] sm:$0xff] %v8494_v1 }
 0x51c   : >> { %v8496_v12 = vpop.f32.mrf.mxu2 }
 0x51d   : >> { %9801 = vst [vmem:[#allocation56_spill] sm:$0xff] %v8496_v12  ;;  %v8498_v16 = vpop.f32.mrf.mxu3  ;;  %v6462_v12 = vld [vmem:[%s8501_s7 + $0x24] sm:$0xf] }
 0x51e   : >> { %9802 = vst [vmem:[#allocation57_spill] sm:$0xff] %v8498_v16  ;;  %v6158_v1 = vor.u32 %v6462_v12, %v6155_v62 }
 0x521   : >> { %6108 = vmatmul.msk.bf16.gmra.mxu2 %vm2795_vm1, %v6430_v27 }
 0x522   : >> { %6124 = vmatmul.msk.bf16.gmra.mxu3 %vm2795_vm1, %v6430_v27 }
 0x524   : >> { %v8513_v14 = vpop.f32.mrf.mxu2 }
 0x525   : >> { %9803 = vst [vmem:[#allocation58_spill] sm:$0xff] %v8513_v14  ;;  %v8515_v0 = vpop.f32.mrf.mxu3  ;;  %v6153_v14 = vld [vmem:[%s8501_s7 + $0x20] sm:$0xf] }
 0x526   : >> { %9804 = vst [vmem:[#allocation59_spill] sm:$0xff] %v8515_v0  ;;  %v6464_v0 = vld [vmem:[%s8501_s7 + $0x2c] sm:$0xf0] }
 0x52c   : >> { %v8517_v2 = vpop.f32.mrf.mxu2 }
 0x52d   : >> { %9805 = vst [vmem:[#allocation60_spill] sm:$0xff] %v8517_v2  ;;  %v8521_v23 = vpop.f32.mrf.mxu3 }
 0x52e   : >> { %9806 = vst [vmem:[#allocation61_spill] sm:$0xff] %v8521_v23  ;;  %v3220_v23 = vmax.f32 %v8559_v31, %v8563_v53 }
 0x531   : >> { %6109 = vmatmul.msk.bf16.gmra.mxu2 %vm2795_vm1, %v6431_v9 }
 0x532   : >> { %6125 = vmatmul.msk.bf16.gmra.mxu3 %vm2795_vm1, %v6431_v9 }
 0x534   : >> { %v8531_v32 = vpop.f32.mrf.mxu2 }
 0x535   : >> { %9807 = vst [vmem:[#allocation62_spill] sm:$0xff] %v8531_v32  ;;  %v8533_v34 = vpop.f32.mrf.mxu3  ;;  %v6467_v32 = vld [vmem:[%s8501_s7 + $0x4c] sm:$0xf] }
 0x536   : >> { %9808 = vst [vmem:[#allocation63_spill] sm:$0xff] %v8533_v34 }
 0x53c   : >> { %v8539_v35 = vpop.f32.mrf.mxu2 }
 0x53d   : >> { %9809 = vst [vmem:[#allocation64_spill] sm:$0xff] %v8539_v35  ;;  %v8541_v40 = vpop.f32.mrf.mxu3  ;;  %v8588_v35 = vpop.f32.mrf.mxu1 }
 0x53e   : >> { %9810 = vst [vmem:[#allocation65_spill] sm:$0xff] %v8541_v40 }
 0x541   : >> { %6110 = vmatmul.msk.bf16.gmra.mxu2 %vm2795_vm1, %v8349_v15 }
 0x542   : >> { %6126 = vmatmul.msk.bf16.gmra.mxu3 %vm2795_vm1, %v8349_v15 }
 0x544   : >> { %v8553_v24 = vpop.f32.mrf.mxu2 }
 0x545   : >> { %v3201_v27 = vmax.f32 %v3200_v58, %v8553_v24  ;;  %v8556_v9 = vpop.f32.mrf.mxu3  ;;  %v6171_v58 = vld [vmem:[%s8501_s7 + $0x50] sm:$0xf0] }
 0x547   : >> { %v3202_v30 = vmax.f32 %v3201_v27, %v8556_v9 }
 0x549   : >> { %3203 = vmax.xlane.f32.xlu0 %v3202_v30  ;;  %v8583_v30 = vpop.f32.mrf.mxu0 }
 0x54c   : >> { %v8565_v15 = vpop.f32.mrf.mxu2 }
 0x54d   : >> { %v8567_v54 = vpop.f32.mrf.mxu3  ;;  %v3206_v4 = vmax.f32 %v3205_v36, %v8565_v15  ;;  %v6174_v36 = vor.u32 %v6466_v22, %v6171_v58  ;;  %v6469_v58 = vld [vmem:[%s8501_s7 + $0x54] sm:$0xf0] }
 0x54f   : >> { %v3207_v19 = vmax.f32 %v3206_v4, %v8567_v54  ;;  %4160 = vmatpush.bf16.xpose.msrb.mxu1 %v6174_v36 }
 0x551   : >> { %6111 = vmatmul.msk.bf16.gmra.mxu2 %vm2795_vm1, %v8360_v17  ;;  %3208 = vmax.xlane.f32.xlu0 %v3207_v19  ;;  %v8601_v34 = vpop.f32.mrf.mxu0 }
 0x552   : >> { %6127 = vmatmul.msk.bf16.gmra.mxu3 %vm2795_vm1, %v8360_v17 }
 0x554   : >> { %v8581_v27 = vpop.f32.mrf.mxu2 }
 0x555   : >> { %v3211_v4 = vmax.f32 %v3210_v29, %v8581_v27  ;;  %v8586_v19 = vpop.f32.mrf.mxu3  ;;  %v6177_v29 = vld [vmem:[%s8501_s7 + $0x48] sm:$0xf] }
 0x556   : >> { %v6178_v2 = vor.u32 %v6469_v58, %v6177_v29 }
 0x557   : >> { %v3212_v17 = vmax.f32 %v3211_v4, %v8586_v19  ;;  %v8605_v4 = vpop.f32.mrf.mxu1  ;;  %4161 = vmatpush.bf16.xpose.msrb.mxu1 %v6158_v1 }
 0x558   : >> { %4249 = vmatpush.bf16.xpose.msra.mxu2 %v6178_v2 }
 0x559   : >> { %3213 = vmax.xlane.f32.xlu1 %v3212_v17  ;;  %v6182_v17 = vor.u32 %v6467_v32, %v6179_v33  ;;  %v8619_v32 = vpop.f32.mrf.mxu0 }
 0x55b   : >> { %4338 = vmatpush.bf16.xpose.msra.mxu3 %v6182_v17 }
 0x55c   : >> { %v8593_v3 = vpop.f32.mrf.mxu2 }
 0x55d   : >> { %v8595_v40 = vpop.f32.mrf.mxu3  ;;  %v3216_v22 = vmax.f32 %v3215_v49, %v8593_v3 }
 0x55f   : >> { %v3217_v36 = vmax.f32 %v3216_v22, %v8595_v40  ;;  %v8621_v58 = vpop.f32.mrf.mxu1 }
 0x561   : >> { %6112 = vmatmul.msk.bf16.gmra.mxu2 %vm2795_vm1, %v8367_v21  ;;  %3218 = vmax.xlane.f32.xlu1 %v3217_v36 }
 0x562   : >> { %6128 = vmatmul.msk.bf16.gmra.mxu3 %vm2795_vm1, %v8367_v21  ;;  %v3225_v21 = vmax.f32 %v8583_v30, %v8588_v35 }
 0x564   : >> { %v8613_v49 = vpop.f32.mrf.mxu2 }
 0x565   : >> { %v3221_v29 = vmax.f32 %v3220_v23, %v8613_v49  ;;  %v8616_v22 = vpop.f32.mrf.mxu3 }
 0x567   : >> { %v3222_v2 = vmax.f32 %v3221_v29, %v8616_v22  ;;  %v3230_v29 = vmax.f32 %v8601_v34, %v8605_v4  ;;  %v8642_v16 = vpop.f32.mrf.mxu1 }
 0x568   : >> { %9812 = vst [vmem:[#allocation67_spill] sm:$0xff] %v8642_v16 }
 0x569   : >> { %3223 = vmax.xlane.f32.xlu2 %v3222_v2  ;;  %v8637_v2 = vpop.f32.mrf.mxu0 }
 0x56a   : >> { %9811 = vst [vmem:[#allocation66_spill] sm:$0xff] %v8637_v2  ;;  %v3240_v1 = vmax.f32 %v8637_v2, %v8642_v16 }
 0x56c   : >> { %v8625_v33 = vpop.f32.mrf.mxu2 }
 0x56d   : >> { %v8627_v36 = vpop.f32.mrf.mxu3  ;;  %v3226_v23 = vmax.f32 %v3225_v21, %v8625_v33  ;;  %v6154_v21 = vor.u32 %v6464_v0, %v6153_v14 }
 0x56f   : >> { %v3227_v17 = vmax.f32 %v3226_v23, %v8627_v36  ;;  %4072 = vmatpush.bf16.xpose.msrb.mxu0 %v6154_v21  ;;  %v8660_v12 = vpop.f32.mrf.mxu1 }
 0x570   : >> { %9815 = vst [vmem:[#allocation70_spill] sm:$0xff] %v8660_v12 }
 0x571   : >> { %6113 = vmatmul.msk.bf16.gmra.mxu2 %vm2795_vm1, %v8378_v8  ;;  %3228 = vmax.xlane.f32.xlu2 %v3227_v17  ;;  %v3235_v17 = vmax.f32 %v8619_v32, %v8621_v58  ;;  %v8655_v48 = vpop.f32.mrf.mxu0 }
 0x572   : >> { %6129 = vmatmul.msk.bf16.gmra.mxu3 %vm2795_vm1, %v8378_v8  ;;  %9813 = vst [vmem:[#allocation68_spill] sm:$0xff] %v8655_v48 }
 0x574   : >> { %v8645_v23 = vpop.f32.mrf.mxu2 }
 0x575   : >> { %v3231_v55 = vmax.f32 %v3230_v29, %v8645_v23  ;;  %v8648_v61 = vpop.f32.mrf.mxu3 }
 0x577   : >> { %v3232_v8 = vmax.f32 %v3231_v55, %v8648_v61 }
 0x579   : >> { %3233 = vmax.xlane.f32.xlu0 %v3232_v8  ;;  %v8674_v8 = vpop.f32.mrf.mxu0 }
 0x57a   : >> { %9818 = vst [vmem:[#allocation73_spill] sm:$0xff] %v8674_v8 }
 0x57c   : >> { %v8653_v52 = vpop.f32.mrf.mxu2 }
 0x57d   : >> { %v8657_v14 = vpop.f32.mrf.mxu3  ;;  %v3236_v62 = vmax.f32 %v3235_v17, %v8653_v52 }
 0x57e   : >> { %9814 = vst [vmem:[#allocation69_spill] sm:$0xff] %v8657_v14 }
 0x57f   : >> { %v3237_v0 = vmax.f32 %v3236_v62, %v8657_v14  ;;  %v8677_v62 = vpop.f32.mrf.mxu1  ;;  %v6147_v14 = vld [vmem:[%s8501_s7 + $0x18] sm:$0xf0] }
 0x580   : >> { %9819 = vst [vmem:[#allocation74_spill] sm:$0xff] %v8677_v62 }
 0x581   : >> { %6114 = vmatmul.msk.bf16.gmra.mxu2 %vm2795_vm1, %v8385_v11  ;;  %3238 = vmax.xlane.f32.xlu1 %v3237_v0  ;;  %v8687_v2 = vpop.f32.mrf.mxu0 }
 0x582   : >> { %6130 = vmatmul.msk.bf16.gmra.mxu3 %vm2795_vm1, %v8385_v11  ;;  %v3245_v11 = vmax.f32 %v8655_v48, %v8660_v12  ;;  %9822 = vst [vmem:[#allocation77_spill] sm:$0xff] %v8687_v2  ;;  %v6137_v12 = vld [vmem:[%s8501_s7] sm:$0xf]  ;;  %v6460_v48 = vld [vmem:[%s8501_s7 + $0xc] sm:$0xf0] }
 0x584   : >> { %v8669_v55 = vpop.f32.mrf.mxu2 }
 0x585   : >> { %9816 = vst [vmem:[#allocation71_spill] sm:$0xff] %v8669_v55  ;;  %v3241_v29 = vmax.f32 %v3240_v1, %v8669_v55  ;;  %v8672_v21 = vpop.f32.mrf.mxu3 }
 0x586   : >> { %9817 = vst [vmem:[#allocation72_spill] sm:$0xff] %v8672_v21 }
 0x587   : >> { %v3242_v17 = vmax.f32 %v3241_v29, %v8672_v21  ;;  %v3250_v29 = vmax.f32 %v8674_v8, %v8677_v62  ;;  %v6458_v21 = vld [vmem:[%s8501_s7 + $0x4] sm:$0xf] }
 0x589   : >> { %3243 = vmax.xlane.f32.xlu2 %v3242_v17  ;;  %v8693_v17 = vpop.f32.mrf.mxu1 }
 0x58a   : >> { %9823 = vst [vmem:[#allocation78_spill] sm:$0xff] %v8693_v17 }
 0x58c   : >> { %v8681_v0 = vpop.f32.mrf.mxu2 }
 0x58d   : >> { %9820 = vst [vmem:[#allocation75_spill] sm:$0xff] %v8681_v0  ;;  %v8683_v16 = vpop.f32.mrf.mxu3  ;;  %v3246_v1 = vmax.f32 %v3245_v11, %v8681_v0  ;;  %v6138_v11 = vor.u32 %v6460_v48, %v6137_v12  ;;  %v6139_v0 = vld [vmem:[%s8501_s7 + $0x10] sm:$0xf0]  ;;  %v3255_v48 = vmax.f32 %v8687_v2, %v8693_v17  ;;  %v6463_v17 = vld [vmem:[%s8501_s7 + $0x2c] sm:$0xf] }
 0x58e   : >> { %9821 = vst [vmem:[#allocation76_spill] sm:$0xff] %v8683_v16 }
 0x58f   : >> { %v3247_v55 = vmax.f32 %v3246_v1, %v8683_v16  ;;  %v6142_v16 = vor.u32 %v6458_v21, %v6139_v0  ;;  %4073 = vmatpush.bf16.xpose.msrb.mxu0 %v6138_v11  ;;  %v6161_v11 = vld [vmem:[%s8501_s7 + $0x28] sm:$0xf] }
 0x591   : >> { %6115 = vmatmul.msk.bf16.gmra.mxu2 %vm2795_vm1, %v8396_v60  ;;  %3248 = vmax.xlane.f32.xlu0 %v3247_v55  ;;  %v8711_v12 = vpop.f32.mrf.mxu1 }
 0x592   : >> { %6131 = vmatmul.msk.bf16.gmra.mxu3 %vm2795_vm1, %v8396_v60  ;;  %4162 = vmatpush.bf16.xpose.msrb.mxu1 %v6142_v16  ;;  %v8707_v60 = vpop.f32.mrf.mxu0  ;;  %9827 = vst [vmem:[#allocation82_spill] sm:$0xff] %v8711_v12 }
 0x593   : >> { %9826 = vst [vmem:[#allocation81_spill] sm:$0xff] %v8707_v60 }
 0x594   : >> { %v8701_v1 = vpop.f32.mrf.mxu2 }
 0x595   : >> { %9824 = vst [vmem:[#allocation79_spill] sm:$0xff] %v8701_v1  ;;  %v3251_v26 = vmax.f32 %v3250_v29, %v8701_v1  ;;  %v8704_v62 = vpop.f32.mrf.mxu3  ;;  %v6145_v1 = vld [vmem:[%s8501_s7 + $0x8] sm:$0xf] }
 0x596   : >> { %9825 = vst [vmem:[#allocation80_spill] sm:$0xff] %v8704_v62 }
 0x597   : >> { %v3252_v55 = vmax.f32 %v3251_v26, %v8704_v62  ;;  %v3260_v26 = vmax.f32 %v8707_v60, %v8711_v12  ;;  %v6163_v12 = vld [vmem:[%s8501_s7 + $0x38] sm:$0xf0] }
 0x599   : >> { %3253 = vmax.xlane.f32.xlu1 %v3252_v55  ;;  %v6465_v55 = vld [vmem:[%s8501_s7 + $0x34] sm:$0xf0]  ;;  %v8733_v60 = vpop.f32.mrf.mxu1 }
 0x59a   : >> { %v8728_v2 = vpop.f32.mrf.mxu0 }
 0x59b   : >> { %v3265_v62 = vmax.f32 %v8728_v2, %v8733_v60 }
 0x59c   : >> { %v8713_v21 = vpop.f32.mrf.mxu2 }
 0x59d   : >> { %9828 = vst [vmem:[#allocation83_spill] sm:$0xff] %v8713_v21  ;;  %v8715_v0 = vpop.f32.mrf.mxu3  ;;  %v3256_v29 = vmax.f32 %v3255_v48, %v8713_v21 }
 0x59e   : >> { %9829 = vst [vmem:[#allocation84_spill] sm:$0xff] %v8715_v0 }
 0x59f   : >> { %v3257_v16 = vmax.f32 %v3256_v29, %v8715_v0  ;;  %v6162_v29 = vor.u32 %v6465_v55, %v6161_v11  ;;  %v6461_v11 = vld [vmem:[%s8501_s7 + $0x14] sm:$0xf0]  ;;  %v6459_v55 = vld [vmem:[%s8501_s7 + $0xc] sm:$0xf] }
 0x5a0   : >> { %v6146_v43 = vor.u32 %v6461_v11, %v6145_v1  ;;  %v6228_v1 = vld [vmem:[%s8767_s10 + $0x30] sm:$0xf]  ;;  %v6482_v11 = vld [vmem:[%s8767_s10 + $0x34] sm:$0xf0] }
 0x5a1   : >> { %6116 = vmatmul.msk.bf16.gmra.mxu2 %vm2795_vm1, %v8406_v44  ;;  %3258 = vmax.xlane.f32.xlu2 %v3257_v16 }
 0x5a2   : >> { %6132 = vmatmul.msk.bf16.gmra.mxu3 %vm2795_vm1, %v8406_v44  ;;  %v6166_v44 = vor.u32 %v6463_v17, %v6163_v12  ;;  %4250 = vmatpush.bf16.xpose.msra.mxu2 %v6162_v29  ;;  %v6150_v12 = vor.u32 %v6459_v55, %v6147_v14  ;;  %v8750_v29 = vpop.f32.mrf.mxu0  ;;  %v6481_v55 = vld [vmem:[%s8767_s10 + $0x34] sm:$0xf] }
 0x5a3   : >> { %9832 = vst [vmem:[#allocation87_spill] sm:$0xff] %v8750_v29 }
 0x5a4   : >> { %v8730_v48 = vpop.f32.mrf.mxu2  ;;  %4339 = vmatpush.bf16.xpose.msra.mxu3 %v6166_v44 }
 0x5a5   : >> { %v3261_v16 = vmax.f32 %v3260_v26, %v8730_v48  ;;  %v8736_v0 = vpop.f32.mrf.mxu3 }
 0x5a7   : >> { %v3262_v21 = vmax.f32 %v3261_v16, %v8736_v0 }
 0x5a9   : >> { %3263 = vmax.xlane.f32.xlu0 %v3262_v21  ;;  %v8752_v21 = vpop.f32.mrf.mxu1 }
 0x5aa   : >> { %4251 = vmatpush.bf16.xpose.msra.mxu2 %v6146_v43  ;;  %9833 = vst [vmem:[#allocation88_spill] sm:$0xff] %v8752_v21  ;;  %v3270_v44 = vmax.f32 %v8750_v29, %v8752_v21  ;;  %v8774_v21 = vpop.f32.mrf.mxu0 }
 0x5ab   : >> { %9835 = vst [vmem:[#allocation90_spill] sm:$0xff] %v8774_v21 }
 0x5ac   : >> { %v8744_v8 = vpop.f32.mrf.mxu2  ;;  %4340 = vmatpush.bf16.xpose.msra.mxu3 %v6150_v12  ;;  %v6230_v12 = vld [vmem:[%s8767_s10 + $0x38] sm:$0xf0] }
 0x5ad   : >> { %9830 = vst [vmem:[#allocation85_spill] sm:$0xff] %v8744_v8  ;;  %v8747_v26 = vpop.f32.mrf.mxu3  ;;  %v3266_v17 = vmax.f32 %v3265_v62, %v8744_v8 }
 0x5ae   : >> { %9831 = vst [vmem:[#allocation86_spill] sm:$0xff] %v8747_v26 }
 0x5af   : >> { %v3267_v16 = vmax.f32 %v3266_v17, %v8747_v26  ;;  %v6229_v17 = vor.u32 %v6482_v11, %v6228_v1 }
 0x5b1   : >> { %6117 = vmatmul.msk.bf16.gmra.mxu2 %vm2795_vm1, %v8414_v45  ;;  %3268 = vmax.xlane.f32.xlu1 %v3267_v16 }
 0x5b2   : >> { %6133 = vmatmul.msk.bf16.gmra.mxu3 %vm2795_vm1, %v8414_v45  ;;  %v6233_v45 = vor.u32 %v6481_v55, %v6230_v12  ;;  %4672 = vmatpush.bf16.msra.mxu0 %v6229_v17 }
 0x5b4   : >> { %v8762_v14 = vpop.f32.mrf.mxu2  ;;  %4761 = vmatpush.bf16.msra.mxu1 %v6233_v45 }
 0x5b5   : >> { %9834 = vst [vmem:[#allocation89_spill] sm:$0xff] %v8762_v14  ;;  %v3271_v43 = vmax.f32 %v3270_v44, %v8762_v14  ;;  %v8765_v62 = vpop.f32.mrf.mxu3  ;;  %v8776_v44 = vpop.f32.mrf.mxu1 }
 0x5b6   : >> { %9836 = vst [vmem:[#allocation91_spill] sm:$0xff] %v8776_v44  ;;  %v3275_v14 = vmax.f32 %v8774_v21, %v8776_v44 }
 0x5b7   : >> { %v3272_v16 = vmax.f32 %v3271_v43, %v8765_v62 }
 0x5b9   : >> { %3273 = vmax.xlane.f32.xlu2 %v3272_v16 }
 0x5bc   : >> { %v8780_v29 = vpop.f32.mrf.mxu2  ;;  %v3204_v26 = vpop.xlane.xlu0 %3203 }
 0x5bd   : >> { %v8782_v8 = vpop.f32.mrf.mxu3  ;;  %v3360_v1 = vsub.f32 %v8509_v28, %v3204_v26  ;;  %v3361_v43 = vsub.f32 %v8511_v38, %v3204_v26  ;;  %v3362_v11 = vsub.f32 %v8553_v24, %v3204_v26  ;;  %v3363_v55 = vsub.f32 %v8556_v9, %v3204_v26 }
 0x5be   : >> { %v3276_v17 = vmax.f32 %v3275_v14, %v8780_v29  ;;  %v3280_v28 = vmax.f32 %v8427_v47, %v8429_v56 }
 0x5bf   : >> { %v3488_v12 = vmul.f32 1.442695, %v3360_v1  ;;  %v3490_v16 = vmul.f32 1.442695, %v3361_v43  ;;  %v3492_v45 = vmul.f32 1.442695, %v3362_v11 }
 0x5c0   : >> { %v3277_v44 = vmax.f32 %v3276_v17, %v8782_v8  ;;  %v3494_v21 = vmul.f32 1.442695, %v3363_v55 }
 0x5c1   : >> { %6647 = vpow2.f32 %v3488_v12 }
 0x5c2   : >> { %6649 = vpow2.f32 %v3490_v16  ;;  %3278 = vmax.xlane.f32.xlu0 %v3277_v44 }
 0x5c3   : >> { %6651 = vpow2.f32 %v3492_v45 }
 0x5c4   : >> { %v8792_v38 = vpop.f32.mrf.mxu2  ;;  %v3209_v24 = vpop.xlane.xlu0 %3208  ;;  %6653 = vpow2.f32 %v3494_v21 }
 0x5c5   : >> { %9837 = vst [vmem:[#allocation92_spill] sm:$0xff] %v8792_v38  ;;  %v3281_v9 = vmax.f32 %v3280_v28, %v8792_v38  ;;  %v8795_v26 = vpop.f32.mrf.mxu3  ;;  %v3364_v14 = vsub.f32 %v8519_v13, %v3209_v24  ;;  %v3365_v1 = vsub.f32 %v8523_v18, %v3209_v24  ;;  %v3366_v43 = vsub.f32 %v8565_v15, %v3209_v24 }
 0x5c6   : >> { %9838 = vst [vmem:[#allocation93_spill] sm:$0xff] %v8795_v26  ;;  %v3367_v44 = vsub.f32 %v8567_v54, %v3209_v24  ;;  %v3285_v15 = vmax.f32 %v8431_v57, %v8434_v59 }
 0x5c7   : >> { %v6648_v11 = vpop.eup %6647  ;;  %v3496_v55 = vmul.f32 1.442695, %v3364_v14  ;;  %v3498_v17 = vmul.f32 1.442695, %v3365_v1  ;;  %v3500_v12 = vmul.f32 1.442695, %v3366_v43  ;;  %v3282_v16 = vmax.f32 %v3281_v9, %v8795_v26 }
 0x5c8   : >> { %v6650_v45 = vpop.eup %6649  ;;  %v3502_v56 = vmul.f32 1.442695, %v3367_v44 }
 0x5c9   : >> { %6655 = vpow2.f32 %v3496_v55  ;;  %3283 = vmax.xlane.f32.xlu1 %v3282_v16  ;;  %v3744_v28 = vadd.f32 %v6650_v45, %v6648_v11  ;;  %v6652_v38 = vpop.eup %6651 }
 0x5ca   : >> { %6657 = vpow2.f32 %v3498_v17  ;;  %v6654_v18 = vpop.eup %6653 }
 0x5cb   : >> { %6659 = vpow2.f32 %v3500_v12  ;;  %v3745_v13 = vadd.f32 %v6652_v38, %v3744_v28 }
 0x5cc   : >> { %6661 = vpow2.f32 %v3502_v56  ;;  %v8804_v54 = vpop.f32.mrf.mxu2  ;;  %v3214_v21 = vpop.xlane.xlu1 %3213 }
 0x5cd   : >> { %v8806_v24 = vpop.f32.mrf.mxu3  ;;  %v3368_v9 = vsub.f32 %v8535_v41, %v3214_v21  ;;  %v3369_v14 = vsub.f32 %v8537_v51, %v3214_v21  ;;  %v3370_v1 = vsub.f32 %v8581_v27, %v3214_v21  ;;  %v3371_v43 = vsub.f32 %v8586_v19, %v3214_v21 }
 0x5ce   : >> { %v3286_v44 = vmax.f32 %v3285_v15, %v8804_v54  ;;  %v8813_v55 = vadd.f32 %v6654_v18, %v3745_v13  ;;  %v3290_v13 = vmax.f32 %v8440_v42, %v8442_v5 }
 0x5cf   : >> { %v6656_v17 = vpop.eup %6655  ;;  %v3504_v12 = vmul.f32 1.442695, %v3368_v9  ;;  %v3506_v56 = vmul.f32 1.442695, %v3369_v14  ;;  %v3508_v28 = vmul.f32 1.442695, %v3370_v1 }
 0x5d0   : >> { %v6658_v16 = vpop.eup %6657  ;;  %v3287_v59 = vmax.f32 %v3286_v44, %v8806_v24  ;;  %v3904_v57 = vpack.c.bf16 %v6656_v17, %v6648_v11  ;;  %v3510_v27 = vmul.f32 1.442695, %v3371_v43 }
 0x5d1   : >> { %v6660_v26 = vpop.eup %6659  ;;  %6663 = vpow2.f32 %v3504_v12  ;;  %v3905_v41 = vpack.c.bf16 %v6658_v16, %v6650_v45  ;;  %v3749_v51 = vadd.f32 %v6658_v16, %v6656_v17 }
 0x5d2   : >> { %v6662_v47 = vpop.eup %6661  ;;  %6665 = vpow2.f32 %v3506_v56  ;;  %3288 = vmax.xlane.f32.xlu2 %v3287_v59  ;;  %4074 = vmatmul.bf16.vlgmr.msrb.gmra.mxu0 %v3904_v57  ;;  %v3906_v19 = vpack.c.bf16 %v6660_v26, %v6652_v38 }
 0x5d3   : >> { %4163 = vmatmul.bf16.vlgmr.msrb.gmra.mxu1 %v3905_v41  ;;  %v3907_v15 = vpack.c.bf16 %v6662_v47, %v6654_v18  ;;  %v3750_v21 = vadd.f32 %v6660_v26, %v3749_v51  ;;  %6667 = vpow2.f32 %v3508_v28 }
 0x5d4   : >> { %4252 = vmatmul.bf16.vlgmr.msra.gmra.mxu2 %v3906_v19  ;;  %v8818_v9 = vpop.f32.mrf.mxu2  ;;  %v3219_v11 = vpop.xlane.xlu1 %3218  ;;  %6669 = vpow2.f32 %v3510_v27 }
 0x5d5   : >> { %4341 = vmatmul.bf16.vlgmr.msra.gmra.mxu3 %v3907_v15  ;;  %v3291_v45 = vmax.f32 %v3290_v13, %v8818_v9  ;;  %v8821_v14 = vpop.f32.mrf.mxu3  ;;  %v3372_v59 = vsub.f32 %v8543_v46, %v3219_v11  ;;  %v3373_v57 = vsub.f32 %v8549_v20, %v3219_v11  ;;  %v3374_v38 = vsub.f32 %v8593_v3, %v3219_v11 }
 0x5d6   : >> { %v3375_v18 = vsub.f32 %v8595_v40, %v3219_v11  ;;  %v8827_v26 = vadd.f32 %v6662_v47, %v3750_v21  ;;  %v3295_v47 = vmax.f32 %v8444_v7, %v8447_v6 }
 0x5d7   : >> { %v6664_v1 = vpop.eup %6663  ;;  %v3512_v43 = vmul.f32 1.442695, %v3372_v59  ;;  %v3514_v44 = vmul.f32 1.442695, %v3373_v57  ;;  %v3516_v17 = vmul.f32 1.442695, %v3374_v38  ;;  %v3292_v12 = vmax.f32 %v3291_v45, %v8821_v14 }
 0x5d8   : >> { %v6666_v56 = vpop.eup %6665  ;;  %v3518_v16 = vmul.f32 1.442695, %v3375_v18 }
 0x5d9   : >> { %6671 = vpow2.f32 %v3512_v43  ;;  %3293 = vmax.xlane.f32.xlu0 %v3292_v12  ;;  %v3754_v46 = vadd.f32 %v6666_v56, %v6664_v1  ;;  %v6668_v28 = vpop.eup %6667 }
 0x5da   : >> { %6673 = vpow2.f32 %v3514_v44  ;;  %v6670_v3 = vpop.eup %6669 }
 0x5db   : >> { %6675 = vpow2.f32 %v3516_v17  ;;  %v3755_v20 = vadd.f32 %v6668_v28, %v3754_v46 }
 0x5dc   : >> { %6677 = vpow2.f32 %v3518_v16  ;;  %v8832_v40 = vpop.f32.mrf.mxu2  ;;  %v3224_v41 = vpop.xlane.xlu2 %3223  ;;  %v3300_v16 = vmax.f32 %v8453_v37, %v8455_v50 }
 0x5dd   : >> { %v8834_v51 = vpop.f32.mrf.mxu3  ;;  %v3376_v27 = vsub.f32 %v8559_v31, %v3224_v41  ;;  %v3377_v19 = vsub.f32 %v8563_v53, %v3224_v41  ;;  %v3378_v13 = vsub.f32 %v8613_v49, %v3224_v41  ;;  %v3379_v15 = vsub.f32 %v8616_v22, %v3224_v41 }
 0x5de   : >> { %v3296_v21 = vmax.f32 %v3295_v47, %v8832_v40  ;;  %v8841_v11 = vadd.f32 %v6670_v3, %v3755_v20 }
 0x5df   : >> { %v6672_v45 = vpop.eup %6671  ;;  %v3520_v59 = vmul.f32 1.442695, %v3376_v27  ;;  %v3522_v57 = vmul.f32 1.442695, %v3377_v19  ;;  %v3524_v18 = vmul.f32 1.442695, %v3378_v13 }
 0x5e0   : >> { %v6674_v38 = vpop.eup %6673  ;;  %v3297_v43 = vmax.f32 %v3296_v21, %v8834_v51  ;;  %v3908_v44 = vpack.c.bf16 %v6672_v45, %v6664_v1  ;;  %v3526_v49 = vmul.f32 1.442695, %v3379_v15 }
 0x5e1   : >> { %v6676_v17 = vpop.eup %6675  ;;  %6679 = vpow2.f32 %v3520_v59  ;;  %v3909_v31 = vpack.c.bf16 %v6674_v38, %v6666_v56  ;;  %v3759_v53 = vadd.f32 %v6674_v38, %v6672_v45 }
 0x5e2   : >> { %v6678_v12 = vpop.eup %6677  ;;  %6681 = vpow2.f32 %v3522_v57  ;;  %3298 = vmax.xlane.f32.xlu1 %v3297_v43  ;;  %4079 = vmatmul.bf16.gmra.mxu0 %v3908_v44  ;;  %v3910_v22 = vpack.c.bf16 %v6676_v17, %v6668_v28 }
 0x5e3   : >> { %4168 = vmatmul.bf16.gmra.mxu1 %v3909_v31  ;;  %v3911_v46 = vpack.c.bf16 %v6678_v12, %v6670_v3  ;;  %v3760_v20 = vadd.f32 %v6676_v17, %v3759_v53  ;;  %6683 = vpow2.f32 %v3524_v18 }
 0x5e4   : >> { %4257 = vmatmul.bf16.gmra.mxu2 %v3910_v22  ;;  %v8846_v47 = vpop.f32.mrf.mxu2  ;;  %v3229_v1 = vpop.xlane.xlu2 %3228  ;;  %6685 = vpow2.f32 %v3526_v49 }
 0x5e5   : >> { %4346 = vmatmul.bf16.gmra.mxu3 %v3911_v46  ;;  %v3301_v56 = vmax.f32 %v3300_v16, %v8846_v47  ;;  %v8849_v41 = vpop.f32.mrf.mxu3  ;;  %v3380_v27 = vsub.f32 %v8583_v30, %v3229_v1  ;;  %v3381_v28 = vsub.f32 %v8588_v35, %v3229_v1  ;;  %v3382_v19 = vsub.f32 %v8625_v33, %v3229_v1 }
 0x5e6   : >> { %v3383_v3 = vsub.f32 %v8627_v36, %v3229_v1  ;;  %v8855_v13 = vadd.f32 %v6678_v12, %v3760_v20  ;;  %v3305_v36 = vmax.f32 %v8457_v10, %v8460_v39 }
 0x5e7   : >> { %v6680_v15 = vpop.eup %6679  ;;  %v3528_v21 = vmul.f32 1.442695, %v3380_v27  ;;  %v3530_v45 = vmul.f32 1.442695, %v3381_v28  ;;  %v3532_v59 = vmul.f32 1.442695, %v3382_v19  ;;  %v3302_v57 = vmax.f32 %v3301_v56, %v8849_v41 }
 0x5e8   : >> { %v6682_v38 = vpop.eup %6681  ;;  %v3534_v18 = vmul.f32 1.442695, %v3383_v3 }
 0x5e9   : >> { %6687 = vpow2.f32 %v3528_v21  ;;  %3303 = vmax.xlane.f32.xlu2 %v3302_v57  ;;  %v3764_v30 = vadd.f32 %v6682_v38, %v6680_v15  ;;  %v6684_v43 = vpop.eup %6683 }
 0x5ea   : >> { %6689 = vpow2.f32 %v3530_v45  ;;  %v6686_v33 = vpop.eup %6685 }
 0x5eb   : >> { %6691 = vpow2.f32 %v3532_v59  ;;  %v3765_v35 = vadd.f32 %v6684_v43, %v3764_v30  ;;  %v3310_v59 = vmax.f32 %v8466_v63, %v8468_v25 }
 0x5ec   : >> { %6693 = vpow2.f32 %v3534_v18  ;;  %v8860_v44 = vpop.f32.mrf.mxu2  ;;  %v3234_v17 = vpop.xlane.xlu0 %3233 }
 0x5ed   : >> { %v8862_v31 = vpop.f32.mrf.mxu3  ;;  %v3384_v53 = vsub.f32 %v8601_v34, %v3234_v17  ;;  %v3385_v12 = vsub.f32 %v8605_v4, %v3234_v17  ;;  %v3386_v49 = vsub.f32 %v8645_v23, %v3234_v17  ;;  %v3387_v22 = vsub.f32 %v8648_v61, %v3234_v17 }
 0x5ee   : >> { %v3306_v16 = vmax.f32 %v3305_v36, %v8860_v44  ;;  %v8869_v46 = vadd.f32 %v6686_v33, %v3765_v35 }
 0x5ef   : >> { %v6688_v20 = vpop.eup %6687  ;;  %v3536_v1 = vmul.f32 1.442695, %v3384_v53  ;;  %v3538_v56 = vmul.f32 1.442695, %v3385_v12  ;;  %v3540_v28 = vmul.f32 1.442695, %v3386_v49 }
 0x5f0   : >> { %v6690_v27 = vpop.eup %6689  ;;  %v3307_v19 = vmax.f32 %v3306_v16, %v8862_v31  ;;  %v3912_v3 = vpack.c.bf16 %v6688_v20, %v6680_v15  ;;  %v3542_v23 = vmul.f32 1.442695, %v3387_v22  ;;  %v6220_v53 = vld [vmem:[%s8767_s10 + $0x20] sm:$0xf]  ;;  %v6479_v12 = vld [vmem:[%s8767_s10 + $0x24] sm:$0xf] }
 0x5f1   : >> { %v6692_v21 = vpop.eup %6691  ;;  %6695 = vpow2.f32 %v3536_v1  ;;  %v3913_v34 = vpack.c.bf16 %v6690_v27, %v6682_v38  ;;  %v3769_v4 = vadd.f32 %v6690_v27, %v6688_v20  ;;  %v9841_v49 = vld [vmem:[#allocation69_spill] sm:$0xff]  ;;  %v6222_v20 = vld [vmem:[%s8767_s10 + $0x28] sm:$0xf0] }
 0x5f2   : >> { %v6694_v45 = vpop.eup %6693  ;;  %6697 = vpow2.f32 %v3538_v56  ;;  %3308 = vmax.xlane.f32.xlu0 %v3307_v19  ;;  %4084 = vmatmul.bf16.gmra.mxu0 %v3912_v3  ;;  %v3914_v61 = vpack.c.bf16 %v6692_v21, %v6684_v43 }
 0x5f3   : >> { %4173 = vmatmul.bf16.gmra.mxu1 %v3913_v34  ;;  %v3915_v57 = vpack.c.bf16 %v6694_v45, %v6686_v33  ;;  %v3770_v18 = vadd.f32 %v6692_v21, %v3769_v4  ;;  %6699 = vpow2.f32 %v3540_v28  ;;  %v6480_v33 = vld [vmem:[%s8767_s10 + $0x24] sm:$0xf0] }
 0x5f4   : >> { %4262 = vmatmul.bf16.gmra.mxu2 %v3914_v61  ;;  %v8874_v15 = vpop.f32.mrf.mxu2  ;;  %v3239_v38 = vpop.xlane.xlu1 %3238  ;;  %6701 = vpow2.f32 %v3542_v23  ;;  %v6221_v16 = vor.u32 %v6480_v33, %v6220_v53  ;;  %v9842_v23 = vld [vmem:[#allocation49_spill] sm:$0xff]  ;;  %v9843_v61 = vld [vmem:[#allocation48_spill] sm:$0xff]  ;;  %v9848_v53 = vld [vmem:[#allocation71_spill] sm:$0xff] }
 0x5f5   : >> { %9839 = vst [vmem:[#allocation94_spill] sm:$0xff] %v8874_v15  ;;  %4351 = vmatmul.bf16.gmra.mxu3 %v3915_v57  ;;  %v3311_v30 = vmax.f32 %v3310_v59, %v8874_v15  ;;  %v8877_v35 = vpop.f32.mrf.mxu3  ;;  %v3388_v43 = vsub.f32 %v8619_v32, %v3239_v38  ;;  %v3389_v36 = vsub.f32 %v8621_v58, %v3239_v38 }
 0x5f6   : >> { %9840 = vst [vmem:[#allocation95_spill] sm:$0xff] %v8877_v35  ;;  %v3390_v17 = vsub.f32 %v8653_v52, %v3239_v38  ;;  %v3391_v22 = vsub.f32 %v9841_v49, %v3239_v38  ;;  %v8887_v1 = vadd.f32 %v6694_v45, %v3770_v18  ;;  %4673 = vmatpush.bf16.msra.mxu0 %v6221_v16 }
 0x5f7   : >> { %v6696_v56 = vpop.eup %6695  ;;  %v3544_v27 = vmul.f32 1.442695, %v3388_v43  ;;  %v3546_v28 = vmul.f32 1.442695, %v3389_v36  ;;  %v3312_v32 = vmax.f32 %v3311_v30, %v8877_v35  ;;  %v6225_v52 = vor.u32 %v6479_v12, %v6222_v20  ;;  %v9846_v30 = vld [vmem:[#allocation66_spill] sm:$0xff]  ;;  %v9847_v36 = vld [vmem:[#allocation67_spill] sm:$0xff] }
 0x5f8   : >> { %v3548_v19 = vmul.f32 1.442695, %v3390_v17  ;;  %v6698_v3 = vpop.eup %6697  ;;  %v3550_v58 = vmul.f32 1.442695, %v3391_v22  ;;  %v3315_v59 = vmax.f32 %v9843_v61, %v9842_v23  ;;  %v9849_v12 = vld [vmem:[#allocation72_spill] sm:$0xff] }
 0x5f9   : >> { %6703 = vpow2.f32 %v3544_v27  ;;  %3313 = vmax.xlane.f32.xlu1 %v3312_v32  ;;  %v3774_v21 = vadd.f32 %v6698_v3, %v6696_v56  ;;  %v6700_v34 = vpop.eup %6699  ;;  %4762 = vmatpush.bf16.msra.mxu1 %v6225_v52 }
 0x5fa   : >> { %6705 = vpow2.f32 %v3546_v28  ;;  %v6702_v45 = vpop.eup %6701 }
 0x5fb   : >> { %6707 = vpow2.f32 %v3548_v19  ;;  %v3775_v4 = vadd.f32 %v6700_v34, %v3774_v21 }
 0x5fc   : >> { %6709 = vpow2.f32 %v3550_v58  ;;  %v8892_v57 = vpop.f32.mrf.mxu2  ;;  %v3244_v18 = vpop.xlane.xlu2 %3243 }
 0x5fd   : >> { %9844 = vst [vmem:[#allocation69_spill] sm:$0xff] %v8892_v57  ;;  %v8894_v38 = vpop.f32.mrf.mxu3  ;;  %v3392_v43 = vsub.f32 %v9846_v30, %v3244_v18  ;;  %v3393_v17 = vsub.f32 %v9847_v36, %v3244_v18  ;;  %v3394_v33 = vsub.f32 %v9848_v53, %v3244_v18  ;;  %v3395_v49 = vsub.f32 %v9849_v12, %v3244_v18  ;;  %v9851_v18 = vld [vmem:[#allocation50_spill] sm:$0xff] }
 0x5fe   : >> { %9845 = vst [vmem:[#allocation96_spill] sm:$0xff] %v8894_v38  ;;  %v3316_v22 = vmax.f32 %v3315_v59, %v8892_v57  ;;  %v8901_v16 = vadd.f32 %v6702_v45, %v3775_v4  ;;  %v9850_v4 = vld [vmem:[#allocation51_spill] sm:$0xff] }
 0x5ff   : >> { %v6704_v20 = vpop.eup %6703  ;;  %v3552_v27 = vmul.f32 1.442695, %v3392_v43  ;;  %v3554_v28 = vmul.f32 1.442695, %v3393_v17  ;;  %v3556_v32 = vmul.f32 1.442695, %v3394_v33  ;;  %v3320_v12 = vmax.f32 %v9851_v18, %v9850_v4 }
 0x600   : >> { %v6706_v19 = vpop.eup %6705  ;;  %v3317_v58 = vmax.f32 %v3316_v22, %v8894_v38  ;;  %v3916_v52 = vpack.c.bf16 %v6704_v20, %v6696_v56  ;;  %v3558_v53 = vmul.f32 1.442695, %v3395_v49  ;;  %v9854_v49 = vld [vmem:[#allocation68_spill] sm:$0xff] }
 0x601   : >> { %v6708_v21 = vpop.eup %6707  ;;  %6711 = vpow2.f32 %v3552_v27  ;;  %v3917_v30 = vpack.c.bf16 %v6706_v19, %v6698_v3  ;;  %v3779_v36 = vadd.f32 %v6706_v19, %v6704_v20  ;;  %v9855_v27 = vld [vmem:[#allocation70_spill] sm:$0xff] }
 0x602   : >> { %v6710_v23 = vpop.eup %6709  ;;  %6713 = vpow2.f32 %v3554_v28  ;;  %3318 = vmax.xlane.f32.xlu2 %v3317_v58  ;;  %4089 = vmatmul.bf16.gmra.mxu0 %v3916_v52  ;;  %v3918_v59 = vpack.c.bf16 %v6708_v21, %v6700_v34  ;;  %v9856_v28 = vld [vmem:[#allocation75_spill] sm:$0xff]  ;;  %v9857_v58 = vld [vmem:[#allocation76_spill] sm:$0xff] }
 0x603   : >> { %4178 = vmatmul.bf16.gmra.mxu1 %v3917_v30  ;;  %v3919_v43 = vpack.c.bf16 %v6710_v23, %v6702_v45  ;;  %v3780_v17 = vadd.f32 %v6708_v21, %v3779_v36  ;;  %6715 = vpow2.f32 %v3556_v32 }
 0x604   : >> { %4267 = vmatmul.bf16.gmra.mxu2 %v3918_v59  ;;  %v8906_v33 = vpop.f32.mrf.mxu2  ;;  %v3249_v56 = vpop.xlane.xlu0 %3248  ;;  %6717 = vpow2.f32 %v3558_v53 }
 0x605   : >> { %9852 = vst [vmem:[#allocation66_spill] sm:$0xff] %v8906_v33  ;;  %4356 = vmatmul.bf16.gmra.mxu3 %v3919_v43  ;;  %v3321_v3 = vmax.f32 %v3320_v12, %v8906_v33  ;;  %v8909_v22 = vpop.f32.mrf.mxu3  ;;  %v3396_v20 = vsub.f32 %v9854_v49, %v3249_v56  ;;  %v3397_v34 = vsub.f32 %v9855_v27, %v3249_v56 }
 0x606   : >> { %9853 = vst [vmem:[#allocation67_spill] sm:$0xff] %v8909_v22  ;;  %v3398_v19 = vsub.f32 %v9856_v28, %v3249_v56  ;;  %v3399_v45 = vsub.f32 %v9857_v58, %v3249_v56  ;;  %v8915_v52 = vadd.f32 %v6710_v23, %v3780_v17  ;;  %v9858_v28 = vld [vmem:[#allocation53_spill] sm:$0xff]  ;;  %v9859_v56 = vld [vmem:[#allocation52_spill] sm:$0xff]  ;;  %v9863_v58 = vld [vmem:[#allocation74_spill] sm:$0xff] }
 0x607   : >> { %v6712_v32 = vpop.eup %6711  ;;  %v3560_v21 = vmul.f32 1.442695, %v3396_v20  ;;  %v3562_v30 = vmul.f32 1.442695, %v3397_v34  ;;  %v3322_v59 = vmax.f32 %v3321_v3, %v8909_v22  ;;  %v3325_v23 = vmax.f32 %v9859_v56, %v9858_v28  ;;  %v9862_v3 = vld [vmem:[#allocation73_spill] sm:$0xff]  ;;  %v9865_v28 = vld [vmem:[#allocation80_spill] sm:$0xff] }
 0x608   : >> { %v3564_v36 = vmul.f32 1.442695, %v3398_v19  ;;  %v6714_v12 = vpop.eup %6713  ;;  %v3566_v43 = vmul.f32 1.442695, %v3399_v45 }
 0x609   : >> { %6719 = vpow2.f32 %v3560_v21  ;;  %3323 = vmax.xlane.f32.xlu0 %v3322_v59  ;;  %v3784_v49 = vadd.f32 %v6714_v12, %v6712_v32  ;;  %v6716_v33 = vpop.eup %6715  ;;  %v9864_v21 = vld [vmem:[#allocation79_spill] sm:$0xff] }
 0x60a   : >> { %6721 = vpow2.f32 %v3562_v30  ;;  %v6718_v53 = vpop.eup %6717 }
 0x60b   : >> { %6723 = vpow2.f32 %v3564_v36  ;;  %v3785_v27 = vadd.f32 %v6716_v33, %v3784_v49 }
 0x60c   : >> { %6725 = vpow2.f32 %v3566_v43  ;;  %v8920_v17 = vpop.f32.mrf.mxu2  ;;  %v3254_v20 = vpop.xlane.xlu1 %3253 }
 0x60d   : >> { %9860 = vst [vmem:[#allocation71_spill] sm:$0xff] %v8920_v17  ;;  %v8922_v34 = vpop.f32.mrf.mxu3  ;;  %v3400_v19 = vsub.f32 %v9862_v3, %v3254_v20  ;;  %v3401_v45 = vsub.f32 %v9863_v58, %v3254_v20  ;;  %v3402_v59 = vsub.f32 %v9864_v21, %v3254_v20  ;;  %v3326_v30 = vmax.f32 %v3325_v23, %v8920_v17  ;;  %v9866_v23 = vld [vmem:[#allocation55_spill] sm:$0xff] }
 0x60e   : >> { %9861 = vst [vmem:[#allocation72_spill] sm:$0xff] %v8922_v34  ;;  %v8928_v36 = vadd.f32 %v6718_v53, %v3785_v27  ;;  %v3403_v43 = vsub.f32 %v9865_v28, %v3254_v20  ;;  %v9867_v27 = vld [vmem:[#allocation54_spill] sm:$0xff] }
 0x60f   : >> { %v6720_v49 = vpop.eup %6719  ;;  %v3568_v22 = vmul.f32 1.442695, %v3400_v19  ;;  %v3570_v56 = vmul.f32 1.442695, %v3401_v45  ;;  %v3327_v18 = vmax.f32 %v3326_v30, %v8922_v34  ;;  %v3572_v58 = vmul.f32 1.442695, %v3402_v59 }
 0x610   : >> { %v6722_v4 = vpop.eup %6721  ;;  %v3920_v38 = vpack.c.bf16 %v6720_v49, %v6712_v32  ;;  %v3330_v17 = vmax.f32 %v9867_v27, %v9866_v23  ;;  %v3574_v28 = vmul.f32 1.442695, %v3403_v43  ;;  %v9872_v59 = vld [vmem:[#allocation83_spill] sm:$0xff]  ;;  %v6478_v27 = vld [vmem:[%s8767_s10 + $0x14] sm:$0xf0] }
 0x611   : >> { %v6724_v57 = vpop.eup %6723  ;;  %v3921_v61 = vpack.c.bf16 %v6722_v4, %v6714_v12  ;;  %v3789_v3 = vadd.f32 %v6722_v4, %v6720_v49  ;;  %3328 = vmax.xlane.f32.xlu1 %v3327_v18  ;;  %6727 = vpow2.f32 %v3568_v22  ;;  %v6477_v34 = vld [vmem:[%s8767_s10 + $0x14] sm:$0xf] }
 0x612   : >> { %v6726_v35 = vpop.eup %6725  ;;  %4094 = vmatmul.bf16.gmra.mxu0 %v3920_v38  ;;  %v3922_v21 = vpack.c.bf16 %v6724_v57, %v6716_v33  ;;  %6729 = vpow2.f32 %v3570_v56  ;;  %v9870_v38 = vld [vmem:[#allocation77_spill] sm:$0xff]  ;;  %v9871_v33 = vld [vmem:[#allocation78_spill] sm:$0xff] }
 0x613   : >> { %4183 = vmatmul.bf16.gmra.mxu1 %v3921_v61  ;;  %v3923_v19 = vpack.c.bf16 %v6726_v35, %v6718_v53  ;;  %v3790_v15 = vadd.f32 %v6724_v57, %v3789_v3  ;;  %6731 = vpow2.f32 %v3572_v58  ;;  %v9873_v61 = vld [vmem:[#allocation84_spill] sm:$0xff] }
 0x614   : >> { %4272 = vmatmul.bf16.gmra.mxu2 %v3922_v21  ;;  %v8934_v20 = vpop.f32.mrf.mxu2  ;;  %v3259_v32 = vpop.xlane.xlu2 %3258  ;;  %6733 = vpow2.f32 %v3574_v28  ;;  %v9878_v28 = vld [vmem:[#allocation81_spill] sm:$0xff] }
 0x615   : >> { %9868 = vst [vmem:[#allocation68_spill] sm:$0xff] %v8934_v20  ;;  %4361 = vmatmul.bf16.gmra.mxu3 %v3923_v19  ;;  %v3331_v4 = vmax.f32 %v3330_v17, %v8934_v20  ;;  %v8937_v12 = vpop.f32.mrf.mxu3  ;;  %v3404_v18 = vsub.f32 %v9870_v38, %v3259_v32  ;;  %v3405_v45 = vsub.f32 %v9871_v33, %v3259_v32  ;;  %v9874_v19 = vld [vmem:[#allocation57_spill] sm:$0xff]  ;;  %v9879_v33 = vld [vmem:[#allocation82_spill] sm:$0xff] }
 0x616   : >> { %9869 = vst [vmem:[#allocation70_spill] sm:$0xff] %v8937_v12  ;;  %v3406_v22 = vsub.f32 %v9872_v59, %v3259_v32  ;;  %v3407_v57 = vsub.f32 %v9873_v61, %v3259_v32  ;;  %v8943_v53 = vadd.f32 %v6726_v35, %v3790_v15  ;;  %v9875_v15 = vld [vmem:[#allocation56_spill] sm:$0xff] }
 0x617   : >> { %v3576_v56 = vmul.f32 1.442695, %v3404_v18  ;;  %v3578_v30 = vmul.f32 1.442695, %v3405_v45  ;;  %v3332_v43 = vmax.f32 %v3331_v4, %v8937_v12  ;;  %v8946_v3 = vpop.eup %6727  ;;  %v3335_v35 = vmax.f32 %v9875_v15, %v9874_v19 }
 0x618   : >> { %v3580_v49 = vmul.f32 1.442695, %v3406_v22  ;;  %v3582_v17 = vmul.f32 1.442695, %v3407_v57  ;;  %v8948_v21 = vpop.eup %6729 }
 0x619   : >> { %6735 = vpow2.f32 %v3576_v56  ;;  %3333 = vmax.xlane.f32.xlu2 %v3332_v43  ;;  %v8950_v58 = vpop.eup %6731 }
 0x61a   : >> { %6737 = vpow2.f32 %v3578_v30  ;;  %v8960_v59 = vpop.eup %6733 }
 0x61b   : >> { %6739 = vpow2.f32 %v3580_v49 }
 0x61c   : >> { %6741 = vpow2.f32 %v3582_v17  ;;  %v8954_v32 = vpop.f32.mrf.mxu2  ;;  %v3264_v38 = vpop.xlane.xlu0 %3263 }
 0x61d   : >> { %9876 = vst [vmem:[#allocation75_spill] sm:$0xff] %v8954_v32  ;;  %v8956_v4 = vpop.f32.mrf.mxu3  ;;  %v3408_v18 = vsub.f32 %v9878_v28, %v3264_v38  ;;  %v3409_v45 = vsub.f32 %v9879_v33, %v3264_v38  ;;  %v3410_v22 = vsub.f32 %v8730_v48, %v3264_v38  ;;  %v3336_v61 = vmax.f32 %v3335_v35, %v8954_v32  ;;  %v9880_v35 = vld [vmem:[#allocation59_spill] sm:$0xff] }
 0x61e   : >> { %9877 = vst [vmem:[#allocation76_spill] sm:$0xff] %v8956_v4  ;;  %v3411_v49 = vsub.f32 %v8736_v0, %v3264_v38 }
 0x61f   : >> { %v6736_v57 = vpop.eup %6735  ;;  %v3584_v56 = vmul.f32 1.442695, %v3408_v18  ;;  %v3586_v43 = vmul.f32 1.442695, %v3409_v45  ;;  %v3337_v17 = vmax.f32 %v3336_v61, %v8956_v4  ;;  %v3588_v20 = vmul.f32 1.442695, %v3410_v22 }
 0x620   : >> { %v6738_v30 = vpop.eup %6737  ;;  %v3924_v19 = vpack.c.bf16 %v6736_v57, %v8946_v3  ;;  %v9881_v18 = vld [vmem:[#allocation58_spill] sm:$0xff]  ;;  %v3590_v45 = vmul.f32 1.442695, %v3411_v49 }
 0x621   : >> { %v6740_v15 = vpop.eup %6739  ;;  %v3925_v28 = vpack.c.bf16 %v6738_v30, %v8948_v21  ;;  %v3799_v33 = vadd.f32 %v6738_v30, %v6736_v57  ;;  %3338 = vmax.xlane.f32.xlu0 %v3337_v17  ;;  %v3340_v32 = vmax.f32 %v9881_v18, %v9880_v35  ;;  %6743 = vpow2.f32 %v3584_v56  ;;  %v9884_v56 = vld [vmem:[#allocation85_spill] sm:$0xff]  ;;  %v9885_v35 = vld [vmem:[#allocation86_spill] sm:$0xff] }
 0x622   : >> { %v6742_v12 = vpop.eup %6741  ;;  %4099 = vmatmul.bf16.gmra.mxu0 %v3924_v19  ;;  %v3926_v48 = vpack.c.bf16 %v6740_v15, %v8950_v58  ;;  %6745 = vpow2.f32 %v3586_v43 }
 0x623   : >> { %4188 = vmatmul.bf16.gmra.mxu1 %v3925_v28  ;;  %v3927_v0 = vpack.c.bf16 %v6742_v12, %v8960_v59  ;;  %v3800_v38 = vadd.f32 %v6740_v15, %v3799_v33  ;;  %6747 = vpow2.f32 %v3588_v20  ;;  %v9886_v20 = vld [vmem:[#allocation61_spill] sm:$0xff] }
 0x624   : >> { %4277 = vmatmul.bf16.gmra.mxu2 %v3926_v48  ;;  %v8972_v61 = vpop.f32.mrf.mxu2  ;;  %v3269_v57 = vpop.xlane.xlu1 %3268  ;;  %6749 = vpow2.f32 %v3590_v45  ;;  %v9890_v45 = vld [vmem:[#allocation87_spill] sm:$0xff] }
 0x625   : >> { %9882 = vst [vmem:[#allocation73_spill] sm:$0xff] %v8972_v61  ;;  %4366 = vmatmul.bf16.gmra.mxu3 %v3927_v0  ;;  %v3341_v22 = vmax.f32 %v3340_v32, %v8972_v61  ;;  %v8975_v19 = vpop.f32.mrf.mxu3  ;;  %v3412_v30 = vsub.f32 %v8728_v2, %v3269_v57  ;;  %v3413_v17 = vsub.f32 %v8733_v60, %v3269_v57 }
 0x626   : >> { %9883 = vst [vmem:[#allocation74_spill] sm:$0xff] %v8975_v19  ;;  %v3414_v28 = vsub.f32 %v9884_v56, %v3269_v57  ;;  %v3415_v15 = vsub.f32 %v9885_v35, %v3269_v57  ;;  %v8981_v43 = vadd.f32 %v6742_v12, %v3800_v38  ;;  %v9887_v12 = vld [vmem:[#allocation60_spill] sm:$0xff] }
 0x627   : >> { %v3592_v49 = vmul.f32 1.442695, %v3412_v30  ;;  %v3594_v33 = vmul.f32 1.442695, %v3413_v17  ;;  %v3342_v0 = vmax.f32 %v3341_v22, %v8975_v19  ;;  %v8984_v61 = vpop.eup %6743  ;;  %v3345_v35 = vmax.f32 %v9887_v12, %v9886_v20  ;;  %v9891_v17 = vld [vmem:[#allocation88_spill] sm:$0xff] }
 0x628   : >> { %v3596_v48 = vmul.f32 1.442695, %v3414_v28  ;;  %v3598_v32 = vmul.f32 1.442695, %v3415_v15  ;;  %v8986_v2 = vpop.eup %6745 }
 0x629   : >> { %6751 = vpow2.f32 %v3592_v49  ;;  %3343 = vmax.xlane.f32.xlu1 %v3342_v0  ;;  %v8988_v60 = vpop.eup %6747 }
 0x62a   : >> { %6753 = vpow2.f32 %v3594_v33  ;;  %v8998_v28 = vpop.eup %6749  ;;  %v9892_v33 = vld [vmem:[#allocation89_spill] sm:$0xff] }
 0x62b   : >> { %6755 = vpow2.f32 %v3596_v48 }
 0x62c   : >> { %6757 = vpow2.f32 %v3598_v32  ;;  %v8992_v38 = vpop.f32.mrf.mxu2  ;;  %v3274_v57 = vpop.xlane.xlu2 %3273 }
 0x62d   : >> { %9888 = vst [vmem:[#allocation79_spill] sm:$0xff] %v8992_v38  ;;  %v8994_v22 = vpop.f32.mrf.mxu3  ;;  %v3416_v30 = vsub.f32 %v9890_v45, %v3274_v57  ;;  %v3417_v56 = vsub.f32 %v9891_v17, %v3274_v57  ;;  %v3346_v15 = vmax.f32 %v3345_v35, %v8992_v38  ;;  %v3418_v48 = vsub.f32 %v9892_v33, %v3274_v57  ;;  %v9893_v33 = vld [vmem:[#allocation63_spill] sm:$0xff] }
 0x62e   : >> { %9889 = vst [vmem:[#allocation80_spill] sm:$0xff] %v8994_v22  ;;  %v3419_v45 = vsub.f32 %v8765_v62, %v3274_v57 }
 0x62f   : >> { %v9001_v49 = vpop.eup %6751  ;;  %v3600_v32 = vmul.f32 1.442695, %v3416_v30  ;;  %v3347_v20 = vmax.f32 %v3346_v15, %v8994_v22  ;;  %v3602_v17 = vmul.f32 1.442695, %v3417_v56  ;;  %v9894_v15 = vld [vmem:[#allocation62_spill] sm:$0xff] }
 0x630   : >> { %v9004_v0 = vpop.eup %6753  ;;  %v3928_v12 = vpack.c.bf16 %v9001_v49, %v8984_v61  ;;  %v3350_v22 = vmax.f32 %v9894_v15, %v9893_v33  ;;  %v3604_v18 = vmul.f32 1.442695, %v3418_v48  ;;  %v9897_v33 = vld [vmem:[#allocation90_spill] sm:$0xff]  ;;  %v9898_v15 = vld [vmem:[#allocation91_spill] sm:$0xff] }
 0x631   : >> { %v9009_v19 = vpop.eup %6755  ;;  %v3929_v35 = vpack.c.bf16 %v9004_v0, %v8986_v2  ;;  %3348 = vmax.xlane.f32.xlu2 %v3347_v20  ;;  %6759 = vpow2.f32 %v3600_v32  ;;  %v3606_v20 = vmul.f32 1.442695, %v3419_v45 }
 0x632   : >> { %v9014_v38 = vpop.eup %6757  ;;  %4104 = vmatmul.bf16.gmra.mxu0 %v3928_v12  ;;  %v3930_v30 = vpack.c.bf16 %v9009_v19, %v8988_v60  ;;  %6761 = vpow2.f32 %v3602_v17 }
 0x633   : >> { %4193 = vmatmul.bf16.gmra.mxu1 %v3929_v35  ;;  %v3931_v62 = vpack.c.bf16 %v9014_v38, %v8998_v28  ;;  %6763 = vpow2.f32 %v3604_v18 }
 0x634   : >> { %4282 = vmatmul.bf16.gmra.mxu2 %v3930_v30  ;;  %v9022_v57 = vpop.f32.mrf.mxu2  ;;  %v6212_v30 = vld [vmem:[%s8767_s10 + $0x10] sm:$0xf]  ;;  %6765 = vpow2.f32 %v3606_v20  ;;  %v9902_v20 = vld [vmem:[#allocation42_spill] sm:$0xff] }
 0x635   : >> { %9895 = vst [vmem:[#allocation77_spill] sm:$0xff] %v9022_v57  ;;  %4371 = vmatmul.bf16.gmra.mxu3 %v3931_v62  ;;  %v3351_v12 = vmax.f32 %v3350_v22, %v9022_v57  ;;  %v9025_v56 = vpop.f32.mrf.mxu3  ;;  %v3279_v48 = vpop.xlane.xlu0 %3278  ;;  %v6213_v17 = vor.u32 %v6478_v27, %v6212_v30  ;;  %v6214_v62 = vld [vmem:[%s8767_s10 + $0x18] sm:$0xf0]  ;;  %v9900_v27 = vld [vmem:[#allocation64_spill] sm:$0xff] }
 0x636   : >> { %9896 = vst [vmem:[#allocation78_spill] sm:$0xff] %v9025_v56  ;;  %v3420_v35 = vsub.f32 %v9897_v33, %v3279_v48  ;;  %v3421_v4 = vsub.f32 %v9898_v15, %v3279_v48  ;;  %v3422_v23 = vsub.f32 %v8780_v29, %v3279_v48  ;;  %v3423_v32 = vsub.f32 %v8782_v8, %v3279_v48  ;;  %v9899_v29 = vld [vmem:[#allocation65_spill] sm:$0xff]  ;;  %v9905_v30 = vld [vmem:[#allocation92_spill] sm:$0xff] }
 0x637   : >> { %v3352_v45 = vmax.f32 %v3351_v12, %v9025_v56  ;;  %v6217_v63 = vor.u32 %v6477_v34, %v6214_v62  ;;  %4674 = vmatpush.bf16.msra.mxu0 %v6213_v17  ;;  %v9036_v15 = vpop.eup %6759  ;;  %v3355_v18 = vmax.f32 %v9900_v27, %v9899_v29  ;;  %v9906_v62 = vld [vmem:[#allocation93_spill] sm:$0xff] }
 0x638   : >> { %v3608_v22 = vmul.f32 1.442695, %v3420_v35  ;;  %v3610_v57 = vmul.f32 1.442695, %v3421_v4  ;;  %v3612_v25 = vmul.f32 1.442695, %v3422_v23  ;;  %v9039_v8 = vpop.eup %6761 }
 0x639   : >> { %v3614_v33 = vmul.f32 1.442695, %v3423_v32  ;;  %3353 = vmax.xlane.f32.xlu0 %v3352_v45  ;;  %3747 = vadd.xlane.f32.xlu2 %v8813_v55  ;;  %v9045_v23 = vpop.eup %6763  ;;  %v9904_v55 = vld [vmem:[#allocation43_spill] sm:$0xff] }
 0x63a   : >> { %6767 = vpow2.f32 %v3608_v22  ;;  %4763 = vmatpush.bf16.msra.mxu1 %v6217_v63  ;;  %v9049_v35 = vpop.eup %6765 }
 0x63b   : >> { %6769 = vpow2.f32 %v3610_v57 }
 0x63c   : >> { %6771 = vpow2.f32 %v3612_v25  ;;  %v9043_v4 = vpop.f32.mrf.mxu2  ;;  %v3284_v34 = vpop.xlane.xlu1 %3283 }
 0x63d   : >> { %9901 = vst [vmem:[#allocation83_spill] sm:$0xff] %v9043_v4  ;;  %6773 = vpow2.f32 %v3614_v33  ;;  %v3424_v12 = vsub.f32 %v9902_v20, %v3284_v34  ;;  %v3356_v48 = vmax.f32 %v3355_v18, %v9043_v4  ;;  %v9051_v63 = vpop.f32.mrf.mxu3  ;;  %v3425_v57 = vsub.f32 %v9904_v55, %v3284_v34  ;;  %v9908_v4 = vld [vmem:[#allocation45_spill] sm:$0xff] }
 0x63e   : >> { %9903 = vst [vmem:[#allocation84_spill] sm:$0xff] %v9051_v63  ;;  %v3426_v25 = vsub.f32 %v9905_v30, %v3284_v34  ;;  %v3427_v22 = vsub.f32 %v9906_v62, %v3284_v34 }
 0x63f   : >> { %v3357_v45 = vmax.f32 %v3356_v48, %v9051_v63  ;;  %v3616_v33 = vmul.f32 1.442695, %v3424_v12  ;;  %v3618_v48 = vmul.f32 1.442695, %v3425_v57 }
 0x640   : >> { %v9054_v32 = vpop.eup %6767  ;;  %v3620_v12 = vmul.f32 1.442695, %v3426_v25  ;;  %v3622_v62 = vmul.f32 1.442695, %v3427_v22 }
 0x641   : >> { %v9058_v17 = vpop.eup %6769  ;;  %3752 = vadd.xlane.f32.xlu0 %v8827_v26  ;;  %v3932_v18 = vpack.c.bf16 %v9054_v32, %v9036_v15  ;;  %3358 = vmax.xlane.f32.xlu1 %v3357_v45  ;;  %6775 = vpow2.f32 %v3616_v33 }
 0x642   : >> { %v9064_v20 = vpop.eup %6771  ;;  %3762 = vadd.xlane.f32.xlu2 %v8855_v13  ;;  %v3933_v55 = vpack.c.bf16 %v9058_v17, %v9039_v8  ;;  %v9907_v13 = vld [vmem:[#allocation44_spill] sm:$0xff]  ;;  %6777 = vpow2.f32 %v3618_v48 }
 0x643   : >> { %v9069_v30 = vpop.eup %6773  ;;  %4109 = vmatmul.bf16.gmra.mxu0 %v3932_v18  ;;  %v3934_v34 = vpack.c.bf16 %v9064_v20, %v9045_v23  ;;  %6779 = vpow2.f32 %v3620_v12 }
 0x644   : >> { %4198 = vmatmul.bf16.gmra.mxu1 %v3933_v55  ;;  %v3935_v26 = vpack.c.bf16 %v9069_v30, %v9049_v35  ;;  %6781 = vpow2.f32 %v3622_v62 }
 0x645   : >> { %4287 = vmatmul.bf16.gmra.mxu2 %v3934_v34  ;;  %v3289_v45 = vpop.xlane.xlu2 %3288 }
 0x646   : >> { %4376 = vmatmul.bf16.gmra.mxu3 %v3935_v26  ;;  %v3428_v63 = vsub.f32 %v9907_v13, %v3289_v45  ;;  %v3429_v29 = vsub.f32 %v9908_v4, %v3289_v45  ;;  %v3430_v57 = vsub.f32 %v8804_v54, %v3289_v45  ;;  %v3431_v18 = vsub.f32 %v8806_v24, %v3289_v45 }
 0x647   : >> { %v9082_v22 = vpop.eup %6775 }
 0x648   : >> { %v3624_v25 = vmul.f32 1.442695, %v3428_v63  ;;  %v3626_v55 = vmul.f32 1.442695, %v3429_v29  ;;  %v3628_v27 = vmul.f32 1.442695, %v3430_v57  ;;  %v9084_v24 = vpop.eup %6777 }
 0x649   : >> { %v3630_v56 = vmul.f32 1.442695, %v3431_v18  ;;  %3767 = vadd.xlane.f32.xlu0 %v8869_v46  ;;  %3757 = vadd.xlane.f32.xlu1 %v8841_v11  ;;  %v9088_v63 = vpop.eup %6779  ;;  %v3804_v11 = vadd.f32 %v8986_v2, %v8984_v61 }
 0x64a   : >> { %6783 = vpow2.f32 %v3624_v25  ;;  %3777 = vadd.xlane.f32.xlu2 %v8901_v16  ;;  %v9090_v46 = vpop.eup %6781  ;;  %v3794_v16 = vadd.f32 %v8948_v21, %v8946_v3 }
 0x64b   : >> { %6785 = vpow2.f32 %v3626_v55 }
 0x64c   : >> { %6787 = vpow2.f32 %v3628_v27  ;;  %v3294_v54 = vpop.xlane.xlu0 %3293  ;;  %v3795_v21 = vadd.f32 %v8950_v58, %v3794_v16 }
 0x64d   : >> { %6789 = vpow2.f32 %v3630_v56  ;;  %v3432_v29 = vsub.f32 %v8440_v42, %v3294_v54  ;;  %v3433_v4 = vsub.f32 %v8442_v5, %v3294_v54  ;;  %v3434_v48 = vsub.f32 %v8818_v9, %v3294_v54 }
 0x64e   : >> { %v3435_v5 = vsub.f32 %v8821_v14, %v3294_v54  ;;  %v3796_v54 = vadd.f32 %v8960_v59, %v3795_v21 }
 0x64f   : >> { %v4075_v33 = vpop.f32.mrf.mxu0  ;;  %v3632_v56 = vmul.f32 1.442695, %v3432_v29  ;;  %v3634_v12 = vmul.f32 1.442695, %v3433_v4  ;;  %v3636_v62 = vmul.f32 1.442695, %v3434_v48  ;;  %v3809_v29 = vadd.f32 %v9004_v0, %v9001_v49 }
 0x650   : >> { %v9096_v27 = vpop.eup %6783  ;;  %v4164_v34 = vpop.f32.mrf.mxu1  ;;  %v3819_v4 = vadd.f32 %v9058_v17, %v9054_v32  ;;  %v3814_v17 = vadd.f32 %v9039_v8, %v9036_v15  ;;  %v3824_v48 = vadd.f32 %v9084_v24, %v9082_v22 }
 0x651   : >> { %v9099_v42 = vpop.eup %6785  ;;  %v9102_v26 = vadd.f32 %v4164_v34, %v4075_v33  ;;  %3782 = vadd.xlane.f32.xlu0 %v8915_v52  ;;  %v3936_v61 = vpack.c.bf16 %v9096_v27, %v9082_v22  ;;  %3772 = vadd.xlane.f32.xlu1 %v8887_v1  ;;  %v3805_v52 = vadd.f32 %v8988_v60, %v3804_v11  ;;  %6791 = vpow2.f32 %v3632_v56 }
 0x652   : >> { %v9107_v2 = vpop.eup %6787  ;;  %3792 = vadd.xlane.f32.xlu2 %v8943_v53  ;;  %v3937_v9 = vpack.c.bf16 %v9099_v42, %v9084_v24  ;;  %6793 = vpow2.f32 %v3634_v12  ;;  %v3638_v53 = vmul.f32 1.442695, %v3435_v5  ;;  %v3810_v49 = vadd.f32 %v9009_v19, %v3809_v29 }
 0x653   : >> { %v9113_v3 = vpop.eup %6789  ;;  %4114 = vmatmul.bf16.gmra.mxu0 %v3936_v61  ;;  %v3938_v14 = vpack.c.bf16 %v9107_v2, %v9088_v63  ;;  %v3806_v55 = vadd.f32 %v8998_v28, %v3805_v52  ;;  %6795 = vpow2.f32 %v3636_v62  ;;  %v3820_v32 = vadd.f32 %v9064_v20, %v3819_v4 }
 0x654   : >> { %4203 = vmatmul.bf16.gmra.mxu1 %v3937_v9  ;;  %v3939_v1 = vpack.c.bf16 %v9113_v3, %v9090_v46  ;;  %6797 = vpow2.f32 %v3638_v53  ;;  %v3811_v61 = vadd.f32 %v9014_v38, %v3810_v49  ;;  %v3825_v24 = vadd.f32 %v9088_v63, %v3824_v48  ;;  %v9909_v49 = vld [vmem:[#allocation46_spill] sm:$0xff] }
 0x655   : >> { %4292 = vmatmul.bf16.gmra.mxu2 %v3938_v14  ;;  %v3299_v45 = vpop.xlane.xlu1 %3298  ;;  %v3821_v22 = vadd.f32 %v9069_v30, %v3820_v32  ;;  %v9910_v32 = vld [vmem:[#allocation47_spill] sm:$0xff]  ;;  %v9911_v48 = vld [vmem:[#allocation94_spill] sm:$0xff] }
 0x656   : >> { %4381 = vmatmul.bf16.gmra.mxu3 %v3939_v1  ;;  %v3436_v13 = vsub.f32 %v8444_v7, %v3299_v45  ;;  %v3437_v57 = vsub.f32 %v8447_v6, %v3299_v45  ;;  %v3438_v18 = vsub.f32 %v8832_v40, %v3299_v45  ;;  %v3439_v60 = vsub.f32 %v8834_v51, %v3299_v45 }
 0x657   : >> { %v9125_v58 = vpop.f32.mrf.mxu2  ;;  %v4077_v25 = vpop.f32.mrf.mxu0 }
 0x658   : >> { %v3640_v7 = vmul.f32 1.442695, %v3436_v13  ;;  %v3642_v6 = vmul.f32 1.442695, %v3437_v57  ;;  %v3644_v33 = vmul.f32 1.442695, %v3438_v18  ;;  %v9133_v40 = vpop.f32.mrf.mxu3  ;;  %v4166_v51 = vpop.f32.mrf.mxu1 }
 0x659   : >> { %v3646_v11 = vmul.f32 1.442695, %v3439_v60  ;;  %v9135_v16 = vadd.f32 %v4166_v51, %v4077_v25  ;;  %3797 = vadd.xlane.f32.xlu0 %v3796_v54  ;;  %v6792_v28 = vpop.eup %6791  ;;  %3787 = vadd.xlane.f32.xlu1 %v8928_v36  ;;  %v3826_v60 = vadd.f32 %v9090_v46, %v3825_v24 }
 0x65a   : >> { %6799 = vpow2.f32 %v3640_v7  ;;  %3807 = vadd.xlane.f32.xlu2 %v3806_v55  ;;  %v6794_v59 = vpop.eup %6793 }
 0x65b   : >> { %6801 = vpow2.f32 %v3642_v6  ;;  %v6796_v34 = vpop.eup %6795  ;;  %v3834_v9 = vadd.f32 %v6794_v59, %v6792_v28  ;;  %v3829_v6 = vadd.f32 %v9099_v42, %v9096_v27 }
 0x65c   : >> { %6803 = vpow2.f32 %v3644_v33  ;;  %v3304_v0 = vpop.xlane.xlu2 %3303  ;;  %v6798_v36 = vpop.eup %6797 }
 0x65d   : >> { %6805 = vpow2.f32 %v3646_v11  ;;  %v3440_v56 = vsub.f32 %v8453_v37, %v3304_v0  ;;  %v3441_v5 = vsub.f32 %v8455_v50, %v3304_v0  ;;  %v3442_v14 = vsub.f32 %v8846_v47, %v3304_v0 }
 0x65e   : >> { %v3815_v37 = vadd.f32 %v9045_v23, %v3814_v17  ;;  %v3443_v50 = vsub.f32 %v8849_v41, %v3304_v0  ;;  %v3835_v23 = vadd.f32 %v6796_v34, %v3834_v9  ;;  %v3830_v42 = vadd.f32 %v9107_v2, %v3829_v6  ;;  %v6204_v6 = vld [vmem:[%s8767_s10] sm:$0xf] }
 0x65f   : >> { %v9146_v12 = vpop.f32.mrf.mxu2  ;;  %v4080_v19 = vpop.f32.mrf.mxu0  ;;  %v3648_v21 = vmul.f32 1.442695, %v3440_v56  ;;  %v3650_v45 = vmul.f32 1.442695, %v3441_v5  ;;  %v3652_v13 = vmul.f32 1.442695, %v3442_v14 }
 0x660   : >> { %v6800_v20 = vpop.eup %6799  ;;  %v9150_v15 = vpop.f32.mrf.mxu3  ;;  %v3654_v41 = vmul.f32 1.442695, %v3443_v50  ;;  %v3816_v18 = vadd.f32 %v9049_v35, %v3815_v37  ;;  %v3836_v7 = vadd.f32 %v6798_v36, %v3835_v23  ;;  %v9912_v5 = vld [vmem:[#allocation95_spill] sm:$0xff] }
 0x661   : >> { %v4169_v8 = vpop.f32.mrf.mxu1  ;;  %v6802_v52 = vpop.eup %6801  ;;  %3812 = vadd.xlane.f32.xlu0 %v3811_v61  ;;  %v3940_v38 = vpack.c.bf16 %v6800_v20, %v6792_v28  ;;  %3802 = vadd.xlane.f32.xlu1 %v8981_v43  ;;  %6807 = vpow2.f32 %v3648_v21 }
 0x662   : >> { %v9156_v62 = vadd.f32 %v4169_v8, %v4080_v19  ;;  %v6804_v1 = vpop.eup %6803  ;;  %3822 = vadd.xlane.f32.xlu2 %v3821_v22  ;;  %v3941_v47 = vpack.c.bf16 %v6802_v52, %v6794_v59  ;;  %6809 = vpow2.f32 %v3650_v45  ;;  %v3839_v35 = vadd.f32 %v6802_v52, %v6800_v20 }
 0x663   : >> { %v6806_v53 = vpop.eup %6805  ;;  %4119 = vmatmul.bf16.gmra.mxu0 %v3940_v38  ;;  %v3942_v30 = vpack.c.bf16 %v6804_v1, %v6796_v34  ;;  %6811 = vpow2.f32 %v3652_v13  ;;  %v3831_v52 = vadd.f32 %v9113_v3, %v3830_v42 }
 0x664   : >> { %4208 = vmatmul.bf16.gmra.mxu1 %v3941_v47  ;;  %v3943_v63 = vpack.c.bf16 %v6806_v53, %v6798_v36  ;;  %6813 = vpow2.f32 %v3654_v41  ;;  %v3840_v28 = vadd.f32 %v6804_v1, %v3839_v35  ;;  %v6476_v35 = vld [vmem:[%s8767_s10 + $0x4] sm:$0xf0] }
 0x665   : >> { %4297 = vmatmul.bf16.gmra.mxu2 %v3942_v30  ;;  %v3309_v57 = vpop.xlane.xlu0 %3308 }
 0x666   : >> { %4386 = vmatmul.bf16.gmra.mxu3 %v3943_v63  ;;  %v3444_v43 = vsub.f32 %v8457_v10, %v3309_v57  ;;  %v3445_v25 = vsub.f32 %v8460_v39, %v3309_v57  ;;  %v3446_v55 = vsub.f32 %v8860_v44, %v3309_v57  ;;  %v3447_v54 = vsub.f32 %v8862_v31, %v3309_v57 }
 0x667   : >> { %v9165_v29 = vpop.f32.mrf.mxu2  ;;  %v4082_v4 = vpop.f32.mrf.mxu0  ;;  %v3841_v8 = vadd.f32 %v6806_v53, %v3840_v28  ;;  %v6206_v28 = vld [vmem:[%s8767_s10 + $0x8] sm:$0xf0] }
 0x668   : >> { %v3656_v46 = vmul.f32 1.442695, %v3444_v43  ;;  %v3658_v33 = vmul.f32 1.442695, %v3445_v25  ;;  %v3660_v51 = vmul.f32 1.442695, %v3446_v55  ;;  %v9169_v10 = vpop.f32.mrf.mxu3  ;;  %v6808_v31 = vpop.eup %6807 }
 0x669   : >> { %v4171_v39 = vpop.f32.mrf.mxu1  ;;  %v3662_v44 = vmul.f32 1.442695, %v3447_v54  ;;  %3827 = vadd.xlane.f32.xlu0 %v3826_v60  ;;  %3817 = vadd.xlane.f32.xlu1 %v3816_v18  ;;  %v6810_v59 = vpop.eup %6809  ;;  %v9913_v18 = vld [vmem:[#allocation48_spill] sm:$0xff]  ;;  %v9914_v43 = vld [vmem:[#allocation49_spill] sm:$0xff] }
 0x66a   : >> { %v9171_v11 = vadd.f32 %v4171_v39, %v4082_v4  ;;  %6815 = vpow2.f32 %v3656_v46  ;;  %3837 = vadd.xlane.f32.xlu2 %v3836_v7  ;;  %v6812_v34 = vpop.eup %6811  ;;  %v3844_v50 = vadd.f32 %v6810_v59, %v6808_v31  ;;  %v9915_v55 = vld [vmem:[#allocation69_spill] sm:$0xff]  ;;  %v9916_v4 = vld [vmem:[#allocation96_spill] sm:$0xff]  ;;  %v6475_v46 = vld [vmem:[%s8767_s10 + $0x4] sm:$0xf]  ;;  %s7107_s10 = scalar_lea.hbm (%p2578_p11), %s9949_s13, 2048 }
 0x66b   : >> { %6817 = vpow2.f32 %v3658_v33  ;;  %v6814_v36 = vpop.eup %6813  ;;  %p7109_p7 = scmp.lt.s32.totalorder (%p2578_p11), %s7107_s10, %s7103_s8 }
 0x66c   : >> { %6819 = vpow2.f32 %v3660_v51  ;;  %v3314_v27 = vpop.xlane.xlu1 %3313  ;;  %v3845_v41 = vadd.f32 %v6812_v34, %v3844_v50 }
 0x66d   : >> { %6821 = vpow2.f32 %v3662_v44  ;;  %v3448_v0 = vsub.f32 %v9909_v49, %v3314_v27  ;;  %v3449_v17 = vsub.f32 %v9910_v32, %v3314_v27  ;;  %v3450_v56 = vsub.f32 %v9911_v48, %v3314_v27  ;;  %p7110_p8 = por (%p2578_p11), %p7109_p7, %p7108_p5 }
 0x66e   : >> { %v3451_v19 = vsub.f32 %v9912_v5, %v3314_v27  ;;  %v6209_v5 = vor.u32 %v6475_v46, %v6206_v28  ;;  %v9921_v46 = vld [vmem:[#allocation52_spill] sm:$0xff] }
 0x66f   : >> { %v3664_v61 = vmul.f32 1.442695, %v3448_v0  ;;  %v3666_v9 = vmul.f32 1.442695, %v3449_v17  ;;  %v9178_v20 = vpop.f32.mrf.mxu2  ;;  %v4085_v14 = vpop.f32.mrf.mxu0  ;;  %v3668_v2 = vmul.f32 1.442695, %v3450_v56  ;;  %v3846_v17 = vadd.f32 %v6814_v36, %v3845_v41  ;;  %p7111_p9 = pnand (%p2578_p11), %p7110_p8, %p7106_p3 }
 0x670   : >> { %v6816_v22 = vpop.eup %6815  ;;  %v9180_v37 = vpop.f32.mrf.mxu3  ;;  %v3670_v23 = vmul.f32 1.442695, %v3451_v19  ;;  %4764 = vmatpush.bf16.msra.mxu1 %v6209_v5 }
 0x671   : >> { %v4174_v24 = vpop.f32.mrf.mxu1  ;;  %v6818_v21 = vpop.eup %6817  ;;  %6823 = vpow2.f32 %v3664_v61  ;;  %3842 = vadd.xlane.f32.xlu0 %v3841_v8  ;;  %v3944_v1 = vpack.c.bf16 %v6816_v22, %v6808_v31  ;;  %3832 = vadd.xlane.f32.xlu1 %v3831_v52  ;;  %v6205_v31 = vor.u32 %v6476_v35, %v6204_v6  ;;  %v9917_v8 = vld [vmem:[#allocation50_spill] sm:$0xff] }
 0x672   : >> { %v9183_v38 = vadd.f32 %v4174_v24, %v4085_v14  ;;  %v6820_v47 = vpop.eup %6819  ;;  %6825 = vpow2.f32 %v3666_v9  ;;  %v3945_v45 = vpack.c.bf16 %v6818_v21, %v6810_v59  ;;  %v3849_v30 = vadd.f32 %v6818_v21, %v6816_v22  ;;  %v9919_v24 = vld [vmem:[#allocation66_spill] sm:$0xff]  ;;  %v9920_v21 = vld [vmem:[#allocation67_spill] sm:$0xff] }
 0x673   : >> { %v6822_v53 = vpop.eup %6821  ;;  %4124 = vmatmul.bf16.gmra.mxu0 %v3944_v1  ;;  %v3946_v13 = vpack.c.bf16 %v6820_v47, %v6812_v34  ;;  %6827 = vpow2.f32 %v3668_v2 }
 0x674   : >> { %4213 = vmatmul.bf16.gmra.mxu1 %v3945_v45  ;;  %v3947_v3 = vpack.c.bf16 %v6822_v53, %v6814_v36  ;;  %v3850_v63 = vadd.f32 %v6820_v47, %v3849_v30  ;;  %6829 = vpow2.f32 %v3670_v23  ;;  %4675 = vmatpush.bf16.msra.mxu0 %v6205_v31  ;;  %v9918_v36 = vld [vmem:[#allocation51_spill] sm:$0xff] }
 0x675   : >> { %4302 = vmatmul.bf16.gmra.mxu2 %v3946_v13  ;;  %v3319_v57 = vpop.xlane.xlu2 %3318 }
 0x676   : >> { %4391 = vmatmul.bf16.gmra.mxu3 %v3947_v3  ;;  %v3452_v60 = vsub.f32 %v9913_v18, %v3319_v57  ;;  %v3453_v25 = vsub.f32 %v9914_v43, %v3319_v57  ;;  %v3454_v54 = vsub.f32 %v9915_v55, %v3319_v57  ;;  %v3455_v7 = vsub.f32 %v9916_v4, %v3319_v57 }
 0x677   : >> { %v6824_v33 = vpop.eup %6823  ;;  %v9192_v51 = vpop.f32.mrf.mxu2  ;;  %v3851_v39 = vadd.f32 %v6822_v53, %v3850_v63 }
 0x678   : >> { %v4087_v44 = vpop.f32.mrf.mxu0  ;;  %v6826_v27 = vpop.eup %6825  ;;  %v3672_v42 = vmul.f32 1.442695, %v3452_v60  ;;  %v3674_v59 = vmul.f32 1.442695, %v3453_v25  ;;  %v3676_v49 = vmul.f32 1.442695, %v3454_v54 }
 0x679   : >> { %v9195_v0 = vpop.f32.mrf.mxu3  ;;  %v4176_v32 = vpop.f32.mrf.mxu1  ;;  %v3678_v48 = vmul.f32 1.442695, %v3455_v7  ;;  %3852 = vadd.xlane.f32.xlu2 %v3851_v39  ;;  %v3854_v34 = vadd.f32 %v6826_v27, %v6824_v33  ;;  %3847 = vadd.xlane.f32.xlu1 %v3846_v17 }
 0x67a   : >> { %v9197_v56 = vadd.f32 %v4176_v32, %v4087_v44  ;;  %v6828_v19 = vpop.eup %6827  ;;  %6831 = vpow2.f32 %v3672_v42  ;;  %v9922_v44 = vld [vmem:[#allocation53_spill] sm:$0xff]  ;;  %v9924_v42 = vld [vmem:[#allocation72_spill] sm:$0xff] }
 0x67b   : >> { %6833 = vpow2.f32 %v3674_v59  ;;  %v3855_v61 = vadd.f32 %v6828_v19, %v3854_v34  ;;  %v6830_v14 = vpop.eup %6829 }
 0x67c   : >> { %6835 = vpow2.f32 %v3676_v49  ;;  %v3324_v9 = vpop.xlane.xlu0 %3323 }
 0x67d   : >> { %6837 = vpow2.f32 %v3678_v48  ;;  %v3456_v22 = vsub.f32 %v9917_v8, %v3324_v9  ;;  %v3457_v2 = vsub.f32 %v9918_v36, %v3324_v9  ;;  %v3458_v52 = vsub.f32 %v9919_v24, %v3324_v9 }
 0x67e   : >> { %v3856_v50 = vadd.f32 %v6830_v14, %v3855_v61  ;;  %v3459_v1 = vsub.f32 %v9920_v21, %v3324_v9 }
 0x67f   : >> { %v3680_v47 = vmul.f32 1.442695, %v3456_v22  ;;  %v3682_v45 = vmul.f32 1.442695, %v3457_v2  ;;  %v9203_v30 = vpop.f32.mrf.mxu2  ;;  %v3684_v13 = vmul.f32 1.442695, %v3458_v52 }
 0x680   : >> { %v4090_v53 = vpop.f32.mrf.mxu0  ;;  %v6832_v23 = vpop.eup %6831  ;;  %3857 = vadd.xlane.f32.xlu0 %v3856_v50  ;;  %v3686_v54 = vmul.f32 1.442695, %v3459_v1  ;;  %v9925_v50 = vld [vmem:[#allocation54_spill] sm:$0xff]  ;;  %v9926_v1 = vld [vmem:[#allocation55_spill] sm:$0xff] }
 0x681   : >> { %v9205_v3 = vpop.f32.mrf.mxu3  ;;  %v4179_v63 = vpop.f32.mrf.mxu1  ;;  %6839 = vpow2.f32 %v3680_v47  ;;  %v3948_v18 = vpack.c.bf16 %v6832_v23, %v6824_v33  ;;  %v9923_v33 = vld [vmem:[#allocation71_spill] sm:$0xff] }
 0x682   : >> { %v6834_v41 = vpop.eup %6833  ;;  %v9207_v57 = vadd.f32 %v4179_v63, %v4090_v53  ;;  %6841 = vpow2.f32 %v3682_v45  ;;  %v9927_v45 = vld [vmem:[#allocation68_spill] sm:$0xff] }
 0x683   : >> { %v6836_v60 = vpop.eup %6835  ;;  %v3949_v43 = vpack.c.bf16 %v6834_v41, %v6826_v27  ;;  %v3859_v25 = vadd.f32 %v6834_v41, %v6832_v23  ;;  %4129 = vmatmul.bf16.gmra.mxu0 %v3948_v18  ;;  %6843 = vpow2.f32 %v3684_v13  ;;  %v9928_v13 = vld [vmem:[#allocation70_spill] sm:$0xff] }
 0x684   : >> { %v6838_v55 = vpop.eup %6837  ;;  %v3950_v4 = vpack.c.bf16 %v6836_v60, %v6828_v19  ;;  %v3329_v35 = vpop.xlane.xlu1 %3328  ;;  %6845 = vpow2.f32 %v3686_v54 }
 0x685   : >> { %4218 = vmatmul.bf16.gmra.mxu1 %v3949_v43  ;;  %v3951_v7 = vpack.c.bf16 %v6838_v55, %v6830_v14  ;;  %v3860_v6 = vadd.f32 %v6836_v60, %v3859_v25  ;;  %v3460_v39 = vsub.f32 %v9921_v46, %v3329_v35  ;;  %v3461_v31 = vsub.f32 %v9922_v44, %v3329_v35 }
 0x686   : >> { %4307 = vmatmul.bf16.gmra.mxu2 %v3950_v4  ;;  %v3462_v28 = vsub.f32 %v9923_v33, %v3329_v35  ;;  %v3463_v27 = vsub.f32 %v9924_v42, %v3329_v35 }
 0x687   : >> { %4396 = vmatmul.bf16.gmra.mxu3 %v3951_v7  ;;  %v6840_v59 = vpop.eup %6839  ;;  %v9213_v49 = vpop.f32.mrf.mxu2  ;;  %v3861_v32 = vadd.f32 %v6838_v55, %v3860_v6  ;;  %v3688_v34 = vmul.f32 1.442695, %v3460_v39  ;;  %v3690_v5 = vmul.f32 1.442695, %v3461_v31 }
 0x688   : >> { %v4092_v17 = vpop.f32.mrf.mxu0  ;;  %v6842_v48 = vpop.eup %6841  ;;  %v3692_v19 = vmul.f32 1.442695, %v3462_v28  ;;  %v3694_v14 = vmul.f32 1.442695, %v3463_v27 }
 0x689   : >> { %v9215_v61 = vpop.f32.mrf.mxu3  ;;  %v4181_v9 = vpop.f32.mrf.mxu1  ;;  %3862 = vadd.xlane.f32.xlu1 %v3861_v32  ;;  %v3864_v22 = vadd.f32 %v6842_v48, %v6840_v59  ;;  %6847 = vpow2.f32 %v3688_v34 }
 0x68a   : >> { %v9217_v8 = vadd.f32 %v4181_v9, %v4092_v17  ;;  %v6844_v36 = vpop.eup %6843  ;;  %6849 = vpow2.f32 %v3690_v5  ;;  %v9929_v17 = vld [vmem:[#allocation56_spill] sm:$0xff]  ;;  %v9930_v5 = vld [vmem:[#allocation57_spill] sm:$0xff] }
 0x68b   : >> { %v3865_v2 = vadd.f32 %v6844_v36, %v3864_v22  ;;  %6851 = vpow2.f32 %v3692_v19  ;;  %v6846_v52 = vpop.eup %6845 }
 0x68c   : >> { %v3334_v24 = vpop.xlane.xlu2 %3333  ;;  %6853 = vpow2.f32 %v3694_v14  ;;  %v9932_v14 = vld [vmem:[#allocation76_spill] sm:$0xff] }
 0x68d   : >> { %v3464_v21 = vsub.f32 %v9925_v50, %v3334_v24  ;;  %v3465_v47 = vsub.f32 %v9926_v1, %v3334_v24  ;;  %v3466_v53 = vsub.f32 %v9927_v45, %v3334_v24  ;;  %v3866_v23 = vadd.f32 %v6846_v52, %v3865_v2 }
 0x68e   : >> { %v3467_v63 = vsub.f32 %v9928_v13, %v3334_v24 }
 0x68f   : >> { %v3696_v41 = vmul.f32 1.442695, %v3464_v21  ;;  %v3698_v18 = vmul.f32 1.442695, %v3465_v47  ;;  %v9223_v60 = vpop.f32.mrf.mxu2  ;;  %v6848_v25 = vpop.eup %6847  ;;  %v3700_v55 = vmul.f32 1.442695, %v3466_v53  ;;  %3867 = vadd.xlane.f32.xlu2 %v3866_v23 }
 0x690   : >> { %v4095_v43 = vpop.f32.mrf.mxu0  ;;  %v6850_v7 = vpop.eup %6849  ;;  %v3952_v35 = vpack.c.bf16 %v6848_v25, %v6840_v59  ;;  %v3702_v33 = vmul.f32 1.442695, %v3467_v63  ;;  %v9931_v59 = vld [vmem:[#allocation75_spill] sm:$0xff] }
 0x691   : >> { %v9225_v54 = vpop.f32.mrf.mxu3  ;;  %v4184_v4 = vpop.f32.mrf.mxu1  ;;  %6855 = vpow2.f32 %v3696_v41  ;;  %v3953_v39 = vpack.c.bf16 %v6850_v7, %v6842_v48  ;;  %v3869_v44 = vadd.f32 %v6850_v7, %v6848_v25  ;;  %v9933_v25 = vld [vmem:[#allocation58_spill] sm:$0xff] }
 0x692   : >> { %v9227_v6 = vadd.f32 %v4184_v4, %v4095_v43  ;;  %v6852_v46 = vpop.eup %6851  ;;  %6857 = vpow2.f32 %v3698_v18  ;;  %v9934_v4 = vld [vmem:[#allocation59_spill] sm:$0xff] }
 0x693   : >> { %v6854_v31 = vpop.eup %6853  ;;  %4134 = vmatmul.bf16.gmra.mxu0 %v3952_v35  ;;  %v3954_v28 = vpack.c.bf16 %v6852_v46, %v6844_v36  ;;  %6859 = vpow2.f32 %v3700_v55  ;;  %v3870_v27 = vadd.f32 %v6852_v46, %v3869_v44  ;;  %v9935_v35 = vld [vmem:[#allocation73_spill] sm:$0xff]  ;;  %v9936_v44 = vld [vmem:[#allocation74_spill] sm:$0xff] }
 0x694   : >> { %v3955_v42 = vpack.c.bf16 %v6854_v31, %v6846_v52  ;;  %v3339_v32 = vpop.xlane.xlu0 %3338  ;;  %6861 = vpow2.f32 %v3702_v33 }
 0x695   : >> { %4223 = vmatmul.bf16.gmra.mxu1 %v3953_v39  ;;  %v3468_v34 = vsub.f32 %v9929_v17, %v3339_v32  ;;  %v3469_v19 = vsub.f32 %v9930_v5, %v3339_v32  ;;  %v3470_v9 = vsub.f32 %v9931_v59, %v3339_v32  ;;  %v3471_v48 = vsub.f32 %v9932_v14, %v3339_v32 }
 0x696   : >> { %4312 = vmatmul.bf16.gmra.mxu2 %v3954_v28  ;;  %v3871_v36 = vadd.f32 %v6854_v31, %v3870_v27 }
 0x697   : >> { %4401 = vmatmul.bf16.gmra.mxu3 %v3955_v42  ;;  %v6856_v22 = vpop.eup %6855  ;;  %v9233_v2 = vpop.f32.mrf.mxu2  ;;  %v3704_v52 = vmul.f32 1.442695, %v3468_v34  ;;  %v3706_v21 = vmul.f32 1.442695, %v3469_v19  ;;  %v3708_v1 = vmul.f32 1.442695, %v3470_v9 }
 0x698   : >> { %v4097_v24 = vpop.f32.mrf.mxu0  ;;  %v6858_v50 = vpop.eup %6857  ;;  %v3710_v53 = vmul.f32 1.442695, %v3471_v48  ;;  %3872 = vadd.xlane.f32.xlu0 %v3871_v36 }
 0x699   : >> { %v9235_v47 = vpop.f32.mrf.mxu3  ;;  %v4186_v45 = vpop.f32.mrf.mxu1  ;;  %v3874_v13 = vadd.f32 %v6858_v50, %v6856_v22  ;;  %6863 = vpow2.f32 %v3704_v52 }
 0x69a   : >> { %v9237_v23 = vadd.f32 %v4186_v45, %v4097_v24  ;;  %v6860_v63 = vpop.eup %6859  ;;  %6865 = vpow2.f32 %v3706_v21 }
 0x69b   : >> { %v3875_v41 = vadd.f32 %v6860_v63, %v3874_v13  ;;  %6867 = vpow2.f32 %v3708_v1  ;;  %v6862_v43 = vpop.eup %6861  ;;  %v9937_v13 = vld [vmem:[#allocation60_spill] sm:$0xff] }
 0x69c   : >> { %v3344_v18 = vpop.xlane.xlu1 %3343  ;;  %6869 = vpow2.f32 %v3710_v53 }
 0x69d   : >> { %v3472_v55 = vsub.f32 %v9933_v25, %v3344_v18  ;;  %v3473_v7 = vsub.f32 %v9934_v4, %v3344_v18  ;;  %v3474_v46 = vsub.f32 %v9935_v35, %v3344_v18  ;;  %v3876_v39 = vadd.f32 %v6862_v43, %v3875_v41  ;;  %v9940_v4 = vld [vmem:[#allocation80_spill] sm:$0xff] }
 0x69e   : >> { %v3475_v31 = vsub.f32 %v9936_v44, %v3344_v18  ;;  %v9938_v18 = vld [vmem:[#allocation61_spill] sm:$0xff] }
 0x69f   : >> { %v3712_v33 = vmul.f32 1.442695, %v3472_v55  ;;  %v3714_v28 = vmul.f32 1.442695, %v3473_v7  ;;  %v9243_v42 = vpop.f32.mrf.mxu2  ;;  %v6864_v32 = vpop.eup %6863  ;;  %v3716_v17 = vmul.f32 1.442695, %v3474_v46  ;;  %3877 = vadd.xlane.f32.xlu1 %v3876_v39 }
 0x6a0   : >> { %v4100_v27 = vpop.f32.mrf.mxu0  ;;  %v6866_v19 = vpop.eup %6865  ;;  %v3956_v9 = vpack.c.bf16 %v6864_v32, %v6856_v22  ;;  %v3718_v52 = vmul.f32 1.442695, %v3475_v31  ;;  %v9939_v22 = vld [vmem:[#allocation79_spill] sm:$0xff] }
 0x6a1   : >> { %v9245_v34 = vpop.f32.mrf.mxu3  ;;  %v4189_v5 = vpop.f32.mrf.mxu1  ;;  %6871 = vpow2.f32 %v3712_v33  ;;  %v3957_v48 = vpack.c.bf16 %v6866_v19, %v6858_v50  ;;  %v3879_v36 = vadd.f32 %v6866_v19, %v6864_v32 }
 0x6a2   : >> { %v9247_v59 = vadd.f32 %v4189_v5, %v4100_v27  ;;  %v6868_v14 = vpop.eup %6867  ;;  %6873 = vpow2.f32 %v3714_v28 }
 0x6a3   : >> { %v6870_v24 = vpop.eup %6869  ;;  %4139 = vmatmul.bf16.gmra.mxu0 %v3956_v9  ;;  %v3958_v21 = vpack.c.bf16 %v6868_v14, %v6860_v63  ;;  %6875 = vpow2.f32 %v3716_v17  ;;  %v3880_v45 = vadd.f32 %v6868_v14, %v3879_v36  ;;  %v9941_v36 = vld [vmem:[#allocation62_spill] sm:$0xff] }
 0x6a4   : >> { %v3959_v1 = vpack.c.bf16 %v6870_v24, %v6862_v43  ;;  %v3349_v53 = vpop.xlane.xlu2 %3348  ;;  %6877 = vpow2.f32 %v3718_v52  ;;  %v9942_v52 = vld [vmem:[#allocation63_spill] sm:$0xff] }
 0x6a5   : >> { %4228 = vmatmul.bf16.gmra.mxu1 %v3957_v48  ;;  %v3476_v41 = vsub.f32 %v9937_v13, %v3349_v53  ;;  %v3477_v25 = vsub.f32 %v9938_v18, %v3349_v53  ;;  %v3478_v55 = vsub.f32 %v9939_v22, %v3349_v53  ;;  %v3479_v50 = vsub.f32 %v9940_v4, %v3349_v53  ;;  %v9944_v53 = vld [vmem:[#allocation78_spill] sm:$0xff] }
 0x6a6   : >> { %4317 = vmatmul.bf16.gmra.mxu2 %v3958_v21  ;;  %v3881_v63 = vadd.f32 %v6870_v24, %v3880_v45 }
 0x6a7   : >> { %4406 = vmatmul.bf16.gmra.mxu3 %v3959_v1  ;;  %v6872_v7 = vpop.eup %6871  ;;  %v9253_v35 = vpop.f32.mrf.mxu2  ;;  %v3720_v43 = vmul.f32 1.442695, %v3476_v41  ;;  %v3722_v44 = vmul.f32 1.442695, %v3477_v25  ;;  %v3724_v31 = vmul.f32 1.442695, %v3478_v55 }
 0x6a8   : >> { %v4102_v46 = vpop.f32.mrf.mxu0  ;;  %v6874_v39 = vpop.eup %6873  ;;  %v3726_v27 = vmul.f32 1.442695, %v3479_v50  ;;  %3882 = vadd.xlane.f32.xlu2 %v3881_v63  ;;  %v9943_v1 = vld [vmem:[#allocation77_spill] sm:$0xff] }
 0x6a9   : >> { %v9255_v33 = vpop.f32.mrf.mxu3  ;;  %v4191_v28 = vpop.f32.mrf.mxu1  ;;  %v3884_v17 = vadd.f32 %v6874_v39, %v6872_v7  ;;  %6879 = vpow2.f32 %v3720_v43 }
 0x6aa   : >> { %v9257_v32 = vadd.f32 %v4191_v28, %v4102_v46  ;;  %v6876_v5 = vpop.eup %6875  ;;  %6881 = vpow2.f32 %v3722_v44 }
 0x6ab   : >> { %v3885_v19 = vadd.f32 %v6876_v5, %v3884_v17  ;;  %6883 = vpow2.f32 %v3724_v31  ;;  %v6878_v14 = vpop.eup %6877 }
 0x6ac   : >> { %v3354_v9 = vpop.xlane.xlu0 %3353  ;;  %6885 = vpow2.f32 %v3726_v27  ;;  %v3748_v48 = vpop.xlane.xlu2 %3747 }
 0x6ad   : >> { %v3480_v24 = vsub.f32 %v9941_v36, %v3354_v9  ;;  %v3481_v21 = vsub.f32 %v9942_v52, %v3354_v9  ;;  %v3482_v45 = vsub.f32 %v9943_v1, %v3354_v9  ;;  %v3483_v13 = vsub.f32 %v9944_v53, %v3354_v9  ;;  %v9945_v53 = vld [vmem:[#allocation64_spill] sm:$0xff] }
 0x6ae   : >> { %v3886_v41 = vadd.f32 %v6878_v14, %v3885_v19  ;;  %6887 = vrcp.f32 %v3748_v48  ;;  %v4256_v1 = vadd.f32 %v9146_v12, %v9135_v16 }
 0x6af   : >> { %v3728_v18 = vmul.f32 1.442695, %v3480_v24  ;;  %v3730_v25 = vmul.f32 1.442695, %v3481_v21  ;;  %v3732_v22 = vmul.f32 1.442695, %v3482_v45  ;;  %v9263_v55 = vpop.f32.mrf.mxu2  ;;  %v6880_v50 = vpop.eup %6879  ;;  %v4254_v21 = vadd.f32 %v9125_v58, %v9102_v26 }
 0x6b0   : >> { %v4105_v4 = vpop.f32.mrf.mxu0  ;;  %v3734_v63 = vmul.f32 1.442695, %v3483_v13  ;;  %3887 = vadd.xlane.f32.xlu0 %v3886_v41  ;;  %v6882_v44 = vpop.eup %6881  ;;  %v3960_v28 = vpack.c.bf16 %v6880_v50, %v6872_v7 }
 0x6b1   : >> { %v9265_v46 = vpop.f32.mrf.mxu3  ;;  %v4194_v43 = vpop.f32.mrf.mxu1  ;;  %6889 = vpow2.f32 %v3728_v18  ;;  %v3961_v17 = vpack.c.bf16 %v6882_v44, %v6874_v39  ;;  %v3889_v19 = vadd.f32 %v6882_v44, %v6880_v50  ;;  %v9947_v18 = vld [vmem:[#allocation83_spill] sm:$0xff] }
 0x6b2   : >> { %v9267_v31 = vadd.f32 %v4194_v43, %v4105_v4  ;;  %v6884_v27 = vpop.eup %6883  ;;  %6891 = vpow2.f32 %v3730_v25  ;;  %v9948_v25 = vld [vmem:[#allocation84_spill] sm:$0xff] }
 0x6b3   : >> { %v6886_v9 = vpop.eup %6885  ;;  %6893 = vpow2.f32 %v3732_v22  ;;  %4144 = vmatmul.bf16.gmra.mxu0 %v3960_v28  ;;  %v3962_v36 = vpack.c.bf16 %v6884_v27, %v6876_v5  ;;  %v3890_v52 = vadd.f32 %v6884_v27, %v3889_v19  ;;  %v9946_v5 = vld [vmem:[#allocation65_spill] sm:$0xff] }
 0x6b4   : >> { %6895 = vpow2.f32 %v3734_v63  ;;  %v3963_v48 = vpack.c.bf16 %v6886_v9, %v6878_v14  ;;  %v3753_v24 = vpop.xlane.xlu0 %3752  ;;  %v3359_v7 = vpop.xlane.xlu1 %3358 }
 0x6b5   : >> { %4233 = vmatmul.bf16.gmra.mxu1 %v3961_v17  ;;  %v3763_v45 = vpop.xlane.xlu2 %3762  ;;  %6897 = vrcp.f32 %v3753_v24  ;;  %v6888_v39 = vpop.eup %6887  ;;  %v3484_v13 = vsub.f32 %v9945_v53, %v3359_v7  ;;  %v3485_v41 = vsub.f32 %v9946_v5, %v3359_v7  ;;  %v3486_v14 = vsub.f32 %v9947_v18, %v3359_v7 }
 0x6b6   : >> { %4322 = vmatmul.bf16.gmra.mxu2 %v3962_v36  ;;  %v3487_v22 = vsub.f32 %v9948_v25, %v3359_v7  ;;  %v3891_v26 = vadd.f32 %v6886_v9, %v3890_v52  ;;  %6899 = vrcp.f32 %v3763_v45  ;;  %v4343_v24 = vadd.f32 %v9133_v40, %v4254_v21 }
 0x6b7   : >> { %4411 = vmatmul.bf16.gmra.mxu3 %v3963_v48  ;;  %v6890_v4 = vpop.eup %6889  ;;  %v9277_v50 = vpop.f32.mrf.mxu2  ;;  %v3736_v12 = vmul.f32 1.442695, %v3484_v13  ;;  %v3738_v63 = vmul.f32 1.442695, %v3485_v41  ;;  %v3740_v43 = vmul.f32 1.442695, %v3486_v14  ;;  %v4345_v9 = vadd.f32 %v9150_v15, %v4256_v1 }
 0x6b8   : >> { %v4107_v58 = vpop.f32.mrf.mxu0  ;;  %v6892_v16 = vpop.eup %6891  ;;  %v3742_v17 = vmul.f32 1.442695, %v3487_v22  ;;  %3892 = vadd.xlane.f32.xlu1 %v3891_v26  ;;  %v4454_v53 = vmul.f32 %v6888_v39, %v4343_v24  ;;  %v4259_v40 = vadd.f32 %v9165_v29, %v9156_v62  ;;  %v4261_v15 = vadd.f32 %v9178_v20, %v9171_v11 }
 0x6b9   : >> { %v9279_v44 = vpop.f32.mrf.mxu3  ;;  %v4196_v28 = vpop.f32.mrf.mxu1  ;;  %v3894_v36 = vadd.f32 %v6892_v16, %v6890_v4  ;;  %6901 = vpow2.f32 %v3736_v12 }
 0x6ba   : >> { %v6894_v27 = vpop.eup %6893  ;;  %v9281_v19 = vadd.f32 %v4196_v28, %v4107_v58  ;;  %6903 = vpow2.f32 %v3738_v63  ;;  %v4348_v62 = vadd.f32 %v9169_v10, %v4259_v40  ;;  %v4350_v29 = vadd.f32 %v9180_v37, %v4261_v15 }
 0x6bb   : >> { %v6896_v48 = vpop.eup %6895  ;;  %v3895_v7 = vadd.f32 %v6894_v27, %v3894_v36  ;;  %6905 = vpow2.f32 %v3740_v43  ;;  %v4269_v10 = vadd.f32 %v9213_v49, %v9207_v57  ;;  %v4271_v37 = vadd.f32 %v9223_v60, %v9217_v8 }
 0x6bc   : >> { %v6898_v52 = vpop.eup %6897  ;;  %v3768_v5 = vpop.xlane.xlu0 %3767  ;;  %6907 = vpow2.f32 %v3742_v17 }
 0x6bd   : >> { %v4455_v13 = vmul.f32 %v6898_v52, %v4345_v9  ;;  %v3758_v41 = vpop.xlane.xlu1 %3757  ;;  %v3778_v45 = vpop.xlane.xlu2 %3777  ;;  %v3896_v18 = vadd.f32 %v6896_v48, %v3895_v7  ;;  %v4358_v60 = vadd.f32 %v9215_v61, %v4269_v10 }
 0x6be   : >> { %6909 = vrcp.f32 %v3758_v41  ;;  %v6900_v25 = vpop.eup %6899 }
 0x6bf   : >> { %v9285_v14 = vpack.c.bf16 %v4455_v13, %v4454_v53  ;;  %v9291_v21 = vpop.f32.mrf.mxu2  ;;  %3897 = vadd.xlane.f32.xlu2 %v3896_v18  ;;  %v6902_v1 = vpop.eup %6901  ;;  %6911 = vrcp.f32 %v3778_v45  ;;  %v4266_v13 = vadd.f32 %v9203_v30, %v9197_v56 }
 0x6c0   : >> { %v4110_v22 = vpop.f32.mrf.mxu0  ;;  %v6904_v26 = vpop.eup %6903  ;;  %v3964_v12 = vpack.c.bf16 %v6902_v1, %v6890_v4  ;;  %6913 = vrcp.f32 %v3768_v5  ;;  %v4457_v4 = vmul.f32 %v6900_v25, %v4350_v29  ;;  %v4360_v25 = vadd.f32 %v9225_v54, %v4271_v37 }
 0x6c1   : >> { %v9293_v39 = vpop.f32.mrf.mxu3  ;;  %v4199_v58 = vpop.f32.mrf.mxu1  ;;  %v3965_v28 = vpack.c.bf16 %v6904_v26, %v6892_v16  ;;  %v3899_v17 = vadd.f32 %v6904_v26, %v6902_v1  ;;  %v4355_v56 = vadd.f32 %v9205_v3, %v4266_v13  ;;  %v4274_v54 = vadd.f32 %v9233_v2, %v9227_v6 }
 0x6c2   : >> { %v6906_v63 = vpop.eup %6905  ;;  %v9295_v43 = vadd.f32 %v4199_v58, %v4110_v22 }
 0x6c3   : >> { %v6908_v36 = vpop.eup %6907  ;;  %4149 = vmatmul.bf16.gmra.mxu0 %v3964_v12  ;;  %v3966_v11 = vpack.c.bf16 %v6906_v63, %v6894_v27  ;;  %v3900_v52 = vadd.f32 %v6906_v63, %v3899_v17 }
 0x6c4   : >> { %v6910_v20 = vpop.eup %6909  ;;  %v3967_v24 = vpack.c.bf16 %v6908_v36, %v6896_v48  ;;  %v3783_v9 = vpop.xlane.xlu0 %3782  ;;  %v4264_v48 = vadd.f32 %v9192_v51, %v9183_v38 }
 0x6c5   : >> { %4238 = vmatmul.bf16.gmra.mxu1 %v3965_v28  ;;  %v4456_v7 = vmul.f32 %v6910_v20, %v4348_v62  ;;  %v3773_v53 = vpop.xlane.xlu1 %3772  ;;  %v3793_v16 = vpop.xlane.xlu2 %3792  ;;  %6915 = vrcp.f32 %v3783_v9  ;;  %v3901_v27 = vadd.f32 %v6908_v36, %v3900_v52  ;;  %v4363_v20 = vadd.f32 %v9235_v47, %v4274_v54 }
 0x6c6   : >> { %4327 = vmatmul.bf16.gmra.mxu2 %v3966_v11  ;;  %6917 = vrcp.f32 %v3773_v53  ;;  %v6912_v18 = vpop.eup %6911  ;;  %v4353_v51 = vadd.f32 %v9195_v0, %v4264_v48  ;;  %v4276_v0 = vadd.f32 %v9243_v42, %v9237_v23  ;;  %v4284_v52 = vadd.f32 %v9277_v50, %v9267_v31 }
 0x6c7   : >> { %4416 = vmatmul.bf16.gmra.mxu3 %v3967_v24  ;;  %v9307_v5 = vpack.c.bf16 %v4457_v4, %v4456_v7  ;;  %3902 = vadd.xlane.f32.xlu0 %v3901_v27  ;;  %v6914_v8 = vpop.eup %6913  ;;  %v4460_v15 = vmul.f32 %v6912_v18, %v4358_v60  ;;  %6919 = vrcp.f32 %v3793_v16  ;;  %v4286_v47 = vadd.f32 %v9291_v21, %v9281_v19 }
 0x6c8   : >> { %v9309_v41 = vpop.f32.mrf.mxu2  ;;  %v4112_v45 = vpop.f32.mrf.mxu0  ;;  %v4458_v26 = vmul.f32 %v6914_v8, %v4353_v51  ;;  %v4365_v24 = vadd.f32 %v9245_v34, %v4276_v0  ;;  %v4279_v34 = vadd.f32 %v9253_v35, %v9247_v59  ;;  %v4281_v4 = vadd.f32 %v9263_v55, %v9257_v32 }
 0x6c9   : >> { %v9311_v57 = vpop.f32.mrf.mxu3  ;;  %v4201_v49 = vpop.f32.mrf.mxu1  ;;  %v4373_v31 = vadd.f32 %v9279_v44, %v4284_v52  ;;  %v4375_v50 = vadd.f32 %v9293_v39, %v4286_v47  ;;  %v4289_v44 = vadd.f32 %v9309_v41, %v9295_v43 }
 0x6ca   : >> { %v9315_v40 = vadd.f32 %v4201_v49, %v4112_v45  ;;  %v4368_v59 = vadd.f32 %v9255_v33, %v4279_v34  ;;  %v4370_v35 = vadd.f32 %v9265_v46, %v4281_v4 }
 0x6cb   : >> { %v6916_v38 = vpop.eup %6915 }
 0x6cc   : >> { %v6918_v30 = vpop.eup %6917  ;;  %v4461_v1 = vmul.f32 %v6916_v38, %v4360_v25  ;;  %v3798_v22 = vpop.xlane.xlu0 %3797 }
 0x6cd   : >> { %v4459_v58 = vmul.f32 %v6918_v30, %v4355_v56  ;;  %v3788_v12 = vpop.xlane.xlu1 %3787  ;;  %v3808_v63 = vpop.xlane.xlu2 %3807 }
 0x6ce   : >> { %6921 = vrcp.f32 %v3788_v12  ;;  %v9319_v61 = vpack.c.bf16 %v4461_v1, %v4460_v15  ;;  %v6920_v29 = vpop.eup %6919  ;;  %v4378_v15 = vadd.f32 %v9311_v57, %v4289_v44 }
 0x6cf   : >> { %v9325_v28 = vpack.c.bf16 %v4459_v58, %v4458_v26  ;;  %6923 = vrcp.f32 %v3808_v63  ;;  %v4463_v23 = vmul.f32 %v6920_v29, %v4365_v24 }
 0x6d0   : >> { %v4290_v3 = vpop.f32.mrf.mxu2  ;;  %v4115_v17 = vpop.f32.mrf.mxu0  ;;  %6925 = vrcp.f32 %v3798_v22 }
 0x6d1   : >> { %v4379_v36 = vpop.f32.mrf.mxu3  ;;  %v4204_v62 = vpop.f32.mrf.mxu1  ;;  %v4291_v39 = vadd.f32 %v4290_v3, %v9315_v40 }
 0x6d2   : >> { %v4205_v11 = vadd.f32 %v4204_v62, %v4115_v17 }
 0x6d3   : >> { %6234 = vmatmul.msk.bf16.vlgmr.msra.gmra.mxu0 %vm2795_vm1, %v9285_v14  ;;  %v4380_v1 = vadd.f32 %v4379_v36, %v4291_v39 }
 0x6d4   : >> { %v6922_v6 = vpop.eup %6921  ;;  %v3813_v2 = vpop.xlane.xlu0 %3812 }
 0x6d5   : >> { %6250 = vmatmul.msk.bf16.vlgmr.msra.gmra.mxu1 %vm2795_vm1, %v9285_v14  ;;  %v4462_v42 = vmul.f32 %v6922_v6, %v4363_v20  ;;  %v3803_v9 = vpop.xlane.xlu1 %3802  ;;  %6927 = vrcp.f32 %v3813_v2  ;;  %v3823_v7 = vpop.xlane.xlu2 %3822 }
 0x6d6   : >> { %6929 = vrcp.f32 %v3803_v9  ;;  %v6924_v10 = vpop.eup %6923 }
 0x6d7   : >> { %v9341_v14 = vpack.c.bf16 %v4463_v23, %v4462_v42  ;;  %v6926_v48 = vpop.eup %6925  ;;  %v4466_v55 = vmul.f32 %v6924_v10, %v4373_v31  ;;  %6931 = vrcp.f32 %v3823_v7 }
 0x6d8   : >> { %v4293_v53 = vpop.f32.mrf.mxu2  ;;  %v4117_v16 = vpop.f32.mrf.mxu0  ;;  %v4464_v45 = vmul.f32 %v6926_v48, %v4368_v59 }
 0x6d9   : >> { %v4382_v37 = vpop.f32.mrf.mxu3  ;;  %v4206_v27 = vpop.f32.mrf.mxu1  ;;  %v4294_v26 = vadd.f32 %v4293_v53, %v4205_v11 }
 0x6da   : >> { %v4207_v19 = vadd.f32 %v4206_v27, %v4117_v16 }
 0x6db   : >> { %v6928_v21 = vpop.eup %6927  ;;  %v4383_v62 = vadd.f32 %v4382_v37, %v4294_v26 }
 0x6dc   : >> { %v6930_v32 = vpop.eup %6929  ;;  %v4467_v13 = vmul.f32 %v6928_v21, %v4375_v50  ;;  %v3828_v60 = vpop.xlane.xlu0 %3827 }
 0x6dd   : >> { %v4465_v18 = vmul.f32 %v6930_v32, %v4370_v35  ;;  %v3818_v49 = vpop.xlane.xlu1 %3817  ;;  %v6932_v56 = vpop.eup %6931 }
 0x6de   : >> { %6933 = vrcp.f32 %v3818_v49  ;;  %v9347_v8 = vpack.c.bf16 %v4467_v13, %v4466_v55  ;;  %v4469_v43 = vmul.f32 %v6932_v56, %v4380_v1  ;;  %v3838_v17 = vpop.xlane.xlu2 %3837 }
 0x6df   : >> { %v9352_v25 = vpack.c.bf16 %v4465_v18, %v4464_v45  ;;  %6935 = vrcp.f32 %v3828_v60 }
 0x6e0   : >> { %v4295_v33 = vpop.f32.mrf.mxu2  ;;  %v4120_v46 = vpop.f32.mrf.mxu0 }
 0x6e1   : >> { %v4384_v38 = vpop.f32.mrf.mxu3  ;;  %v4209_v51 = vpop.f32.mrf.mxu1  ;;  %v4296_v58 = vadd.f32 %v4295_v33, %v4207_v19 }
 0x6e2   : >> { %v4210_v30 = vadd.f32 %v4209_v51, %v4120_v46 }
 0x6e3   : >> { %6235 = vmatmul.msk.bf16.gmra.mxu0 %vm2795_vm1, %v9307_v5  ;;  %v4385_v29 = vadd.f32 %v4384_v38, %v4296_v58 }
 0x6e4   : >> { %v6934_v22 = vpop.eup %6933  ;;  %v3843_v20 = vpop.xlane.xlu0 %3842 }
 0x6e5   : >> { %6251 = vmatmul.msk.bf16.gmra.mxu1 %vm2795_vm1, %v9307_v5  ;;  %v4468_v41 = vmul.f32 %v6934_v22, %v4378_v15  ;;  %v3833_v40 = vpop.xlane.xlu1 %3832  ;;  %v6936_v3 = vpop.eup %6935 }
 0x6e6   : >> { %6937 = vrcp.f32 %v3833_v40  ;;  %v4470_v5 = vmul.f32 %v6936_v3, %v4383_v62 }
 0x6e7   : >> { %v9359_v12 = vpack.c.bf16 %v4469_v43, %v4468_v41  ;;  %6939 = vrcp.f32 %v3838_v17 }
 0x6e8   : >> { %v4298_v63 = vpop.f32.mrf.mxu2  ;;  %v4122_v54 = vpop.f32.mrf.mxu0  ;;  %6941 = vrcp.f32 %v3843_v20 }
 0x6e9   : >> { %v4387_v57 = vpop.f32.mrf.mxu3  ;;  %v4211_v0 = vpop.f32.mrf.mxu1  ;;  %v4299_v2 = vadd.f32 %v4298_v63, %v4210_v30 }
 0x6ea   : >> { %v4212_v36 = vadd.f32 %v4211_v0, %v4122_v54 }
 0x6eb   : >> { %v4388_v9 = vadd.f32 %v4387_v57, %v4299_v2 }
 0x6ec   : >> { %v6938_v24 = vpop.eup %6937  ;;  %v3853_v21 = vpop.xlane.xlu2 %3852 }
 0x6ed   : >> { %v4471_v6 = vmul.f32 %v6938_v24, %v4385_v29  ;;  %v6940_v7 = vpop.eup %6939  ;;  %v3848_v35 = vpop.xlane.xlu1 %3847  ;;  %6943 = vrcp.f32 %v3853_v21 }
 0x6ee   : >> { %v6942_v16 = vpop.eup %6941  ;;  %v4472_v10 = vmul.f32 %v6940_v7, %v4388_v9  ;;  %6945 = vrcp.f32 %v3848_v35 }
 0x6ef   : >> { %v9361_v11 = vpack.c.bf16 %v4471_v6, %v4470_v5 }
 0x6f0   : >> { %v4300_v23 = vpop.f32.mrf.mxu2  ;;  %v4125_v42 = vpop.f32.mrf.mxu0 }
 0x6f1   : >> { %v4301_v52 = vadd.f32 %v4300_v23, %v4212_v36  ;;  %v4389_v47 = vpop.f32.mrf.mxu3  ;;  %v4214_v34 = vpop.f32.mrf.mxu1 }
 0x6f2   : >> { %v4215_v4 = vadd.f32 %v4214_v34, %v4125_v42 }
 0x6f3   : >> { %v4390_v53 = vadd.f32 %v4389_v47, %v4301_v52  ;;  %6236 = vmatmul.msk.bf16.gmra.mxu0 %vm2795_vm1, %v9325_v28  ;;  %v6944_v39 = vpop.eup %6943  ;;  %v3858_v22 = vpop.xlane.xlu0 %3857 }
 0x6f4   : >> { %v6946_v33 = vpop.eup %6945  ;;  %6947 = vrcp.f32 %v3858_v22 }
 0x6f5   : >> { %6252 = vmatmul.msk.bf16.gmra.mxu1 %vm2795_vm1, %v9325_v28  ;;  %v4473_v37 = vmul.f32 %v6942_v16, %v4390_v53 }
 0x6f7   : >> { %v9367_v27 = vpack.c.bf16 %v4473_v37, %v4472_v10 }
 0x6f8   : >> { %v4303_v48 = vpop.f32.mrf.mxu2  ;;  %v4127_v31 = vpop.f32.mrf.mxu0 }
 0x6f9   : >> { %v4392_v50 = vpop.f32.mrf.mxu3  ;;  %v4216_v19 = vpop.f32.mrf.mxu1  ;;  %v4304_v32 = vadd.f32 %v4303_v48, %v4215_v4 }
 0x6fa   : >> { %v4217_v59 = vadd.f32 %v4216_v19, %v4127_v31  ;;  %v6948_v3 = vpop.eup %6947 }
 0x6fb   : >> { %v4393_v45 = vadd.f32 %v4392_v50, %v4304_v32 }
 0x6fc   : >> { %v3863_v41 = vpop.xlane.xlu1 %3862 }
 0x6fd   : >> { %v4474_v46 = vmul.f32 %v6946_v33, %v4393_v45  ;;  %6949 = vrcp.f32 %v3863_v41 }
 0x700   : >> { %v4305_v55 = vpop.f32.mrf.mxu2  ;;  %v4130_v13 = vpop.f32.mrf.mxu0 }
 0x701   : >> { %v4306_v18 = vadd.f32 %v4305_v55, %v4217_v59  ;;  %v4394_v49 = vpop.f32.mrf.mxu3 }
 0x702   : >> { %v4219_v28 = vpop.f32.mrf.mxu1  ;;  %v3868_v23 = vpop.xlane.xlu2 %3867 }
 0x703   : >> { %v4220_v44 = vadd.f32 %v4219_v28, %v4130_v13  ;;  %v4395_v60 = vadd.f32 %v4394_v49, %v4306_v18  ;;  %6237 = vmatmul.msk.bf16.gmra.mxu0 %vm2795_vm1, %v9319_v61  ;;  %v6950_v36 = vpop.eup %6949  ;;  %6951 = vrcp.f32 %v3868_v23 }
 0x705   : >> { %6253 = vmatmul.msk.bf16.gmra.mxu1 %vm2795_vm1, %v9319_v61  ;;  %v4475_v38 = vmul.f32 %v6944_v39, %v4395_v60 }
 0x707   : >> { %v9373_v51 = vpack.c.bf16 %v4475_v38, %v4474_v46 }
 0x708   : >> { %v4132_v30 = vpop.f32.mrf.mxu0 }
 0x709   : >> { %v4308_v56 = vpop.f32.mrf.mxu2  ;;  %v6952_v10 = vpop.eup %6951 }
 0x70a   : >> { %v4397_v15 = vpop.f32.mrf.mxu3  ;;  %v4221_v1 = vpop.f32.mrf.mxu1  ;;  %v4309_v40 = vadd.f32 %v4308_v56, %v4220_v44 }
 0x70b   : >> { %v4222_v43 = vadd.f32 %v4221_v1, %v4132_v30  ;;  %v3873_v9 = vpop.xlane.xlu0 %3872 }
 0x70c   : >> { %v4398_v63 = vadd.f32 %v4397_v15, %v4309_v40  ;;  %6953 = vrcp.f32 %v3873_v9 }
 0x70e   : >> { %v4476_v62 = vmul.f32 %v6948_v3, %v4398_v63 }
 0x710   : >> { %v4135_v58 = vpop.f32.mrf.mxu0 }
 0x711   : >> { %v4310_v26 = vpop.f32.mrf.mxu2 }
 0x712   : >> { %v4311_v54 = vadd.f32 %v4310_v26, %v4222_v43  ;;  %v4399_v57 = vpop.f32.mrf.mxu3  ;;  %v4224_v61 = vpop.f32.mrf.mxu1 }
 0x713   : >> { %v4225_v0 = vadd.f32 %v4224_v61, %v4135_v58  ;;  %6238 = vmatmul.msk.bf16.gmra.mxu0 %vm2795_vm1, %v9341_v14  ;;  %v6954_v48 = vpop.eup %6953  ;;  %v3878_v55 = vpop.xlane.xlu1 %3877 }
 0x714   : >> { %v4400_v17 = vadd.f32 %v4399_v57, %v4311_v54  ;;  %6955 = vrcp.f32 %v3878_v55 }
 0x715   : >> { %6254 = vmatmul.msk.bf16.gmra.mxu1 %vm2795_vm1, %v9341_v14 }
 0x716   : >> { %v4477_v29 = vmul.f32 %v6950_v36, %v4400_v17 }
 0x718   : >> { %v9379_v20 = vpack.c.bf16 %v4477_v29, %v4476_v62  ;;  %v4137_v5 = vpop.f32.mrf.mxu0 }
 0x719   : >> { %v4313_v24 = vpop.f32.mrf.mxu2 }
 0x71a   : >> { %v4402_v6 = vpop.f32.mrf.mxu3  ;;  %v4226_v2 = vpop.f32.mrf.mxu1  ;;  %v4314_v52 = vadd.f32 %v4313_v24, %v4225_v0 }
 0x71b   : >> { %v4227_v42 = vadd.f32 %v4226_v2, %v4137_v5  ;;  %v3883_v45 = vpop.xlane.xlu2 %3882  ;;  %v6956_v46 = vpop.eup %6955 }
 0x71c   : >> { %v4403_v4 = vadd.f32 %v4402_v6, %v4314_v52  ;;  %6957 = vrcp.f32 %v3883_v45  ;;  %v4489_v45 = vld [vmem:[#allocation5 + $0xd8] sm:$0xff] }
 0x71e   : >> { %v4478_v31 = vmul.f32 %v6952_v10, %v4403_v4 }
 0x720   : >> { %v4140_v34 = vpop.f32.mrf.mxu0 }
 0x721   : >> { %v4315_v47 = vpop.f32.mrf.mxu2 }
 0x722   : >> { %v4316_v7 = vadd.f32 %v4315_v47, %v4227_v42  ;;  %v4404_v53 = vpop.f32.mrf.mxu3  ;;  %v4229_v14 = vpop.f32.mrf.mxu1 }
 0x723   : >> { %v4230_v16 = vadd.f32 %v4229_v14, %v4140_v34  ;;  %6239 = vmatmul.msk.bf16.gmra.mxu0 %vm2795_vm1, %v9352_v25  ;;  %v6958_v56 = vpop.eup %6957  ;;  %v3888_v26 = vpop.xlane.xlu0 %3887  ;;  %v4488_v14 = vld [vmem:[#allocation5 + $0x1b0] sm:$0xff] }
 0x724   : >> { %v4405_v37 = vadd.f32 %v4404_v53, %v4316_v7  ;;  %6959 = vrcp.f32 %v3888_v26  ;;  %v4487_v53 = vld [vmem:[#allocation5 + $0xb0] sm:$0xff]  ;;  %v4495_v26 = vld [vmem:[#allocation5 + $0x180] sm:$0xff] }
 0x725   : >> { %6255 = vmatmul.msk.bf16.gmra.mxu1 %vm2795_vm1, %v9352_v25 }
 0x726   : >> { %v4479_v50 = vmul.f32 %v6954_v48, %v4405_v37 }
 0x728   : >> { %v9385_v19 = vpack.c.bf16 %v4479_v50, %v4478_v31  ;;  %v4142_v59 = vpop.f32.mrf.mxu0 }
 0x729   : >> { %v4318_v21 = vpop.f32.mrf.mxu2 }
 0x72a   : >> { %v4407_v35 = vpop.f32.mrf.mxu3  ;;  %v4231_v32 = vpop.f32.mrf.mxu1  ;;  %v4319_v18 = vadd.f32 %v4318_v21, %v4230_v16 }
 0x72b   : >> { %v4232_v13 = vadd.f32 %v4231_v32, %v4142_v59  ;;  %v3893_v63 = vpop.xlane.xlu1 %3892  ;;  %v6960_v62 = vpop.eup %6959 }
 0x72c   : >> { %v4408_v44 = vadd.f32 %v4407_v35, %v4319_v18  ;;  %6961 = vrcp.f32 %v3893_v63 }
 0x72e   : >> { %v4480_v30 = vmul.f32 %v6956_v46, %v4408_v44 }
 0x730   : >> { %v4145_v28 = vpop.f32.mrf.mxu0 }
 0x731   : >> { %v4320_v49 = vpop.f32.mrf.mxu2 }
 0x732   : >> { %v4321_v39 = vadd.f32 %v4320_v49, %v4232_v13  ;;  %v4409_v60 = vpop.f32.mrf.mxu3  ;;  %v4234_v25 = vpop.f32.mrf.mxu1  ;;  %v4490_v49 = vld [vmem:[#allocation5 + $0x18] sm:$0xff] }
 0x733   : >> { %v4235_v33 = vadd.f32 %v4234_v25, %v4145_v28  ;;  %6240 = vmatmul.msk.bf16.gmra.mxu0 %vm2795_vm1, %v9347_v8  ;;  %v6962_v24 = vpop.eup %6961  ;;  %v3898_v47 = vpop.xlane.xlu2 %3897  ;;  %v4491_v25 = vld [vmem:[#allocation5 + $0x50] sm:$0xff] }
 0x734   : >> { %v4410_v38 = vadd.f32 %v4409_v60, %v4321_v39  ;;  %6963 = vrcp.f32 %v3898_v47 }
 0x735   : >> { %6256 = vmatmul.msk.bf16.gmra.mxu1 %vm2795_vm1, %v9347_v8 }
 0x736   : >> { %v4481_v15 = vmul.f32 %v6958_v56, %v4410_v38 }
 0x738   : >> { %v9391_v1 = vpack.c.bf16 %v4481_v15, %v4480_v30  ;;  %v4147_v43 = vpop.f32.mrf.mxu0  ;;  %v4494_v15 = vld [vmem:[#allocation5 + $0x48] sm:$0xff] }
 0x739   : >> { %v4323_v22 = vpop.f32.mrf.mxu2 }
 0x73a   : >> { %v4412_v41 = vpop.f32.mrf.mxu3  ;;  %v4236_v40 = vpop.f32.mrf.mxu1  ;;  %v4324_v54 = vadd.f32 %v4323_v22, %v4235_v33  ;;  %v4492_v33 = vld [vmem:[#allocation5 + $0x168] sm:$0xff] }
 0x73b   : >> { %v4237_v58 = vadd.f32 %v4236_v40, %v4147_v43  ;;  %v3903_v4 = vpop.xlane.xlu0 %3902  ;;  %v6964_v59 = vpop.eup %6963 }
 0x73c   : >> { %v4413_v0 = vadd.f32 %v4412_v41, %v4324_v54  ;;  %6965 = vrcp.f32 %v3903_v4  ;;  %v4503_v4 = vld [vmem:[#allocation5 + $0xe0] sm:$0xff] }
 0x73e   : >> { %v4482_v5 = vmul.f32 %v6960_v62, %v4413_v0  ;;  %v4498_v0 = vld [vmem:[#allocation5 + $0x98] sm:$0xff]  ;;  %v4499_v62 = vld [vmem:[#allocation5 + $0x120] sm:$0xff] }
 0x740   : >> { %v4150_v61 = vpop.f32.mrf.mxu0 }
 0x741   : >> { %v4325_v57 = vpop.f32.mrf.mxu2 }
 0x742   : >> { %v4326_v3 = vadd.f32 %v4325_v57, %v4237_v58  ;;  %v4414_v17 = vpop.f32.mrf.mxu3  ;;  %v4239_v8 = vpop.f32.mrf.mxu1  ;;  %v4496_v58 = vld [vmem:[#allocation5 + $0x110] sm:$0xff] }
 0x743   : >> { %v4240_v36 = vadd.f32 %v4239_v8, %v4150_v61  ;;  %6241 = vmatmul.msk.bf16.gmra.mxu0 %vm2795_vm1, %v9359_v12  ;;  %v6966_v32 = vpop.eup %6965 }
 0x744   : >> { %v4415_v29 = vadd.f32 %v4414_v17, %v4326_v3 }
 0x745   : >> { %6257 = vmatmul.msk.bf16.gmra.mxu1 %vm2795_vm1, %v9359_v12 }
 0x746   : >> { %v4483_v6 = vmul.f32 %v6962_v24, %v4415_v29  ;;  %v4500_v29 = vld [vmem:[#allocation5 + $0x150] sm:$0xff] }
 0x748   : >> { %v9397_v2 = vpack.c.bf16 %v4483_v6, %v4482_v5  ;;  %v4152_v42 = vpop.f32.mrf.mxu0 }
 0x749   : >> { %v4328_v23 = vpop.f32.mrf.mxu2 }
 0x74a   : >> { %v4417_v9 = vpop.f32.mrf.mxu3  ;;  %v4241_v52 = vpop.f32.mrf.mxu1  ;;  %v4329_v7 = vadd.f32 %v4328_v23, %v4240_v36 }
 0x74b   : >> { %v4242_v34 = vadd.f32 %v4241_v52, %v4152_v42  ;;  %v4502_v42 = vld [vmem:[#allocation5 + $0x60] sm:$0xff] }
 0x74c   : >> { %v4418_v37 = vadd.f32 %v4417_v9, %v4329_v7  ;;  %v4504_v7 = vld [vmem:[#allocation5 + $0x188] sm:$0xff] }
 0x74e   : >> { %v4484_v55 = vmul.f32 %v6964_v59, %v4418_v37  ;;  %v4506_v37 = vld [vmem:[#allocation5 + $0x140] sm:$0xff]  ;;  %v4508_v59 = vld [vmem:[#allocation5 + $0x1a8] sm:$0xff] }
 0x750   : >> { %v4677_v10 = vpop.f32.mrf.mxu0 }
 0x751   : >> { %v4330_v16 = vpop.f32.mrf.mxu2  ;;  %v4846_v48 = vadd.f32 %v4677_v10, %v4487_v53 }
 0x752   : >> { %v4331_v12 = vadd.f32 %v4330_v16, %v4242_v34  ;;  %v4766_v31 = vpop.f32.mrf.mxu1  ;;  %v4419_v50 = vpop.f32.mrf.mxu3 }
 0x753   : >> { %v4847_v21 = vadd.f32 %v4766_v31, %v4488_v14  ;;  %4910 = vst [vmem:[#allocation5 + $0xb0] sm:$0xff] %v4846_v48  ;;  %6242 = vmatmul.msk.bf16.gmra.mxu0 %vm2795_vm1, %v9361_v11 }
 0x754   : >> { %v4420_v35 = vadd.f32 %v4419_v50, %v4331_v12 }
 0x755   : >> { %4911 = vst [vmem:[#allocation5 + $0x1b0] sm:$0xff] %v4847_v21  ;;  %6258 = vmatmul.msk.bf16.gmra.mxu1 %vm2795_vm1, %v9361_v11  ;;  %v4493_v11 = vld [vmem:[#allocation5 + $0x130] sm:$0xff]  ;;  %v4507_v21 = vld [vmem:[#allocation5 + $0x80] sm:$0xff] }
 0x756   : >> { %v4485_v13 = vmul.f32 %v6966_v32, %v4420_v35 }
 0x758   : >> { %v9403_v18 = vpack.c.bf16 %v4485_v13, %v4484_v55  ;;  %v4679_v28 = vpop.f32.mrf.mxu0 }
 0x759   : >> { %v4848_v44 = vadd.f32 %v4679_v28, %v4489_v45  ;;  %v4510_v45 = vld [vmem:[#allocation5 + $0x28] sm:$0xff] }
 0x75a   : >> { %v4768_v39 = vpop.f32.mrf.mxu1 }
 0x75b   : >> { %v4849_v60 = vadd.f32 %v4768_v39, %v4490_v49  ;;  %4912 = vst [vmem:[#allocation5 + $0xd8] sm:$0xff] %v4848_v44 }
 0x75d   : >> { %4913 = vst [vmem:[#allocation5 + $0x18] sm:$0xff] %v4849_v60  ;;  %v4511_v60 = vld [vmem:[#allocation5 + $0x1e8] sm:$0xff] }
 0x760   : >> { %v4682_v46 = vpop.f32.mrf.mxu0 }
 0x761   : >> { %v4850_v38 = vadd.f32 %v4682_v46, %v4491_v25  ;;  %v4512_v25 = vld [vmem:[#allocation5 + $0xf8] sm:$0xff] }
 0x762   : >> { %v4771_v56 = vpop.f32.mrf.mxu1 }
 0x763   : >> { %v4851_v30 = vadd.f32 %v4771_v56, %v4492_v33  ;;  %4914 = vst [vmem:[#allocation5 + $0x50] sm:$0xff] %v4850_v38  ;;  %6243 = vmatmul.msk.bf16.gmra.mxu0 %vm2795_vm1, %v9367_v27 }
 0x765   : >> { %4915 = vst [vmem:[#allocation5 + $0x168] sm:$0xff] %v4851_v30  ;;  %6259 = vmatmul.msk.bf16.gmra.mxu1 %vm2795_vm1, %v9367_v27  ;;  %v4497_v27 = vld [vmem:[#allocation5 + $0x118] sm:$0xff]  ;;  %v4514_v30 = vld [vmem:[#allocation5 + $0x30] sm:$0xff] }
 0x768   : >> { %v4684_v22 = vpop.f32.mrf.mxu0 }
 0x769   : >> { %v4852_v43 = vadd.f32 %v4684_v22, %v4493_v11 }
 0x76a   : >> { %v4773_v41 = vpop.f32.mrf.mxu1 }
 0x76b   : >> { %v4853_v40 = vadd.f32 %v4773_v41, %v4494_v15  ;;  %4916 = vst [vmem:[#allocation5 + $0x130] sm:$0xff] %v4852_v43  ;;  %v4515_v41 = vld [vmem:[#allocation5 + $0x1e0] sm:$0xff] }
 0x76d   : >> { %4917 = vst [vmem:[#allocation5 + $0x48] sm:$0xff] %v4853_v40  ;;  %v4516_v40 = vld [vmem:[#allocation5] sm:$0xff] }
 0x770   : >> { %v4687_v63 = vpop.f32.mrf.mxu0 }
 0x771   : >> { %v4854_v54 = vadd.f32 %v4687_v63, %v4495_v26 }
 0x772   : >> { %v4776_v57 = vpop.f32.mrf.mxu1 }
 0x773   : >> { %v4855_v61 = vadd.f32 %v4776_v57, %v4496_v58  ;;  %4918 = vst [vmem:[#allocation5 + $0x180] sm:$0xff] %v4854_v54  ;;  %6244 = vmatmul.msk.bf16.gmra.mxu0 %vm2795_vm1, %v9373_v51  ;;  %v4518_v57 = vld [vmem:[#allocation5 + $0x8] sm:$0xff] }
 0x775   : >> { %4919 = vst [vmem:[#allocation5 + $0x110] sm:$0xff] %v4855_v61  ;;  %6260 = vmatmul.msk.bf16.gmra.mxu1 %vm2795_vm1, %v9373_v51  ;;  %v4501_v51 = vld [vmem:[#allocation5 + $0x108] sm:$0xff] }
 0x778   : >> { %v4689_v3 = vpop.f32.mrf.mxu0 }
 0x779   : >> { %v4856_v17 = vadd.f32 %v4689_v3, %v4497_v27 }
 0x77a   : >> { %v4778_v8 = vpop.f32.mrf.mxu1 }
 0x77b   : >> { %v4857_v36 = vadd.f32 %v4778_v8, %v4498_v0  ;;  %4920 = vst [vmem:[#allocation5 + $0x118] sm:$0xff] %v4856_v17  ;;  %v4519_v17 = vld [vmem:[#allocation5 + $0x148] sm:$0xff]  ;;  %v4520_v8 = vld [vmem:[#allocation5 + $0x1d0] sm:$0xff] }
 0x77d   : >> { %4921 = vst [vmem:[#allocation5 + $0x98] sm:$0xff] %v4857_v36 }
 0x780   : >> { %v4692_v24 = vpop.f32.mrf.mxu0 }
 0x781   : >> { %v4858_v5 = vadd.f32 %v4692_v24, %v4499_v62 }
 0x782   : >> { %v4781_v6 = vpop.f32.mrf.mxu1 }
 0x783   : >> { %v4859_v23 = vadd.f32 %v4781_v6, %v4500_v29  ;;  %4922 = vst [vmem:[#allocation5 + $0x120] sm:$0xff] %v4858_v5  ;;  %6245 = vmatmul.msk.bf16.gmra.mxu0 %vm2795_vm1, %v9379_v20  ;;  %v4521_v5 = vld [vmem:[#allocation5 + $0x100] sm:$0xff]  ;;  %v4522_v6 = vld [vmem:[#allocation5 + $0xc8] sm:$0xff] }
 0x785   : >> { %4923 = vst [vmem:[#allocation5 + $0x150] sm:$0xff] %v4859_v23  ;;  %6261 = vmatmul.msk.bf16.gmra.mxu1 %vm2795_vm1, %v9379_v20  ;;  %v4505_v20 = vld [vmem:[#allocation5 + $0x138] sm:$0xff] }
 0x788   : >> { %v4694_v9 = vpop.f32.mrf.mxu0 }
 0x789   : >> { %v4860_v52 = vadd.f32 %v4694_v9, %v4501_v51  ;;  %v4523_v9 = vld [vmem:[#allocation5 + $0x40] sm:$0xff] }
 0x78a   : >> { %v4783_v47 = vpop.f32.mrf.mxu1 }
 0x78b   : >> { %v4861_v34 = vadd.f32 %v4783_v47, %v4502_v42  ;;  %4924 = vst [vmem:[#allocation5 + $0x108] sm:$0xff] %v4860_v52  ;;  %v4524_v52 = vld [vmem:[#allocation5 + $0x1f8] sm:$0xff] }
 0x78d   : >> { %4925 = vst [vmem:[#allocation5 + $0x60] sm:$0xff] %v4861_v34 }
 0x790   : >> { %v4697_v53 = vpop.f32.mrf.mxu0 }
 0x791   : >> { %v4862_v14 = vadd.f32 %v4697_v53, %v4503_v4  ;;  %v4525_v53 = vld [vmem:[#allocation5 + $0x20] sm:$0xff] }
 0x792   : >> { %v4786_v16 = vpop.f32.mrf.mxu1 }
 0x793   : >> { %v4863_v10 = vadd.f32 %v4786_v16, %v4504_v7  ;;  %4926 = vst [vmem:[#allocation5 + $0xe0] sm:$0xff] %v4862_v14  ;;  %6246 = vmatmul.msk.bf16.gmra.mxu0 %vm2795_vm1, %v9385_v19  ;;  %v4526_v14 = vld [vmem:[#allocation5 + $0x128] sm:$0xff] }
 0x795   : >> { %4927 = vst [vmem:[#allocation5 + $0x188] sm:$0xff] %v4863_v10  ;;  %6262 = vmatmul.msk.bf16.gmra.mxu1 %vm2795_vm1, %v9385_v19  ;;  %v4509_v19 = vld [vmem:[#allocation5 + $0x1b8] sm:$0xff] }
 0x798   : >> { %v4699_v12 = vpop.f32.mrf.mxu0 }
 0x799   : >> { %v4864_v48 = vadd.f32 %v4699_v12, %v4505_v20  ;;  %v4527_v12 = vld [vmem:[#allocation5 + $0x1a0] sm:$0xff] }
 0x79a   : >> { %v4788_v31 = vpop.f32.mrf.mxu1 }
 0x79b   : >> { %v4865_v50 = vadd.f32 %v4788_v31, %v4506_v37  ;;  %4928 = vst [vmem:[#allocation5 + $0x138] sm:$0xff] %v4864_v48  ;;  %v4528_v48 = vld [vmem:[#allocation5 + $0x1f0] sm:$0xff] }
 0x79d   : >> { %4929 = vst [vmem:[#allocation5 + $0x140] sm:$0xff] %v4865_v50 }
 0x7a0   : >> { %v4702_v35 = vpop.f32.mrf.mxu0 }
 0x7a1   : >> { %v4866_v32 = vadd.f32 %v4702_v35, %v4507_v21  ;;  %v4529_v35 = vld [vmem:[#allocation5 + $0xe8] sm:$0xff] }
 0x7a2   : >> { %v4791_v55 = vpop.f32.mrf.mxu1 }
 0x7a3   : >> { %v4867_v13 = vadd.f32 %v4791_v55, %v4508_v59  ;;  %4930 = vst [vmem:[#allocation5 + $0x80] sm:$0xff] %v4866_v32  ;;  %6247 = vmatmul.msk.bf16.gmra.mxu0 %vm2795_vm1, %v9391_v1  ;;  %v4530_v32 = vld [vmem:[#allocation5 + $0x78] sm:$0xff] }
 0x7a5   : >> { %4931 = vst [vmem:[#allocation5 + $0x1a8] sm:$0xff] %v4867_v13  ;;  %6263 = vmatmul.msk.bf16.gmra.mxu1 %vm2795_vm1, %v9391_v1  ;;  %v4513_v1 = vld [vmem:[#allocation5 + $0x160] sm:$0xff] }
 0x7a8   : >> { %v4704_v49 = vpop.f32.mrf.mxu0 }
 0x7a9   : >> { %v4868_v28 = vadd.f32 %v4704_v49, %v4509_v19  ;;  %v4531_v49 = vld [vmem:[#allocation5 + $0x70] sm:$0xff] }
 0x7aa   : >> { %v4793_v44 = vpop.f32.mrf.mxu1 }
 0x7ab   : >> { %v4869_v39 = vadd.f32 %v4793_v44, %v4510_v45  ;;  %4932 = vst [vmem:[#allocation5 + $0x1b8] sm:$0xff] %v4868_v28  ;;  %v4532_v28 = vld [vmem:[#allocation5 + $0x90] sm:$0xff] }
 0x7ad   : >> { %4933 = vst [vmem:[#allocation5 + $0x28] sm:$0xff] %v4869_v39 }
 0x7b0   : >> { %v4707_v33 = vpop.f32.mrf.mxu0 }
 0x7b1   : >> { %v4870_v46 = vadd.f32 %v4707_v33, %v4511_v60  ;;  %v4533_v33 = vld [vmem:[#allocation5 + $0x1d8] sm:$0xff] }
 0x7b2   : >> { %v4796_v38 = vpop.f32.mrf.mxu1 }
 0x7b3   : >> { %v4871_v56 = vadd.f32 %v4796_v38, %v4512_v25  ;;  %4934 = vst [vmem:[#allocation5 + $0x1e8] sm:$0xff] %v4870_v46  ;;  %6248 = vmatmul.msk.bf16.gmra.mxu0 %vm2795_vm1, %v9397_v2  ;;  %v4534_v46 = vld [vmem:[#allocation5 + $0xd0] sm:$0xff] }
 0x7b5   : >> { %4935 = vst [vmem:[#allocation5 + $0xf8] sm:$0xff] %v4871_v56  ;;  %6264 = vmatmul.msk.bf16.gmra.mxu1 %vm2795_vm1, %v9397_v2  ;;  %v4517_v2 = vld [vmem:[#allocation5 + $0xf0] sm:$0xff] }
 0x7b8   : >> { %v4709_v11 = vpop.f32.mrf.mxu0 }
 0x7b9   : >> { %v4872_v15 = vadd.f32 %v4709_v11, %v4513_v1  ;;  %v4535_v11 = vld [vmem:[#allocation5 + $0xb8] sm:$0xff] }
 0x7ba   : >> { %v4798_v22 = vpop.f32.mrf.mxu1 }
 0x7bb   : >> { %v4873_v43 = vadd.f32 %v4798_v22, %v4514_v30  ;;  %4936 = vst [vmem:[#allocation5 + $0x160] sm:$0xff] %v4872_v15  ;;  %v4536_v15 = vld [vmem:[#allocation5 + $0x88] sm:$0xff] }
 0x7bd   : >> { %4937 = vst [vmem:[#allocation5 + $0x30] sm:$0xff] %v4873_v43 }
 0x7c0   : >> { %v4712_v26 = vpop.f32.mrf.mxu0 }
 0x7c1   : >> { %v4874_v58 = vadd.f32 %v4712_v26, %v4515_v41  ;;  %v4537_v26 = vld [vmem:[#allocation5 + $0xa8] sm:$0xff] }
 0x7c2   : >> { %v4801_v63 = vpop.f32.mrf.mxu1 }
 0x7c3   : >> { %v4875_v54 = vadd.f32 %v4801_v63, %v4516_v40  ;;  %4938 = vst [vmem:[#allocation5 + $0x1e0] sm:$0xff] %v4874_v58  ;;  %6249 = vmatmul.msk.bf16.gmra.mxu0 %vm2795_vm1, %v9403_v18  ;;  %v4538_v58 = vld [vmem:[#allocation5 + $0x1c8] sm:$0xff] }
 0x7c5   : >> { %4939 = vst [vmem:[#allocation5] sm:$0xff] %v4875_v54  ;;  %6265 = vmatmul.msk.bf16.gmra.mxu1 %vm2795_vm1, %v9403_v18 }
 0x7c8   : >> { %v4714_v61 = vpop.f32.mrf.mxu0 }
 0x7c9   : >> { %v4876_v27 = vadd.f32 %v4714_v61, %v4517_v2  ;;  %v4539_v61 = vld [vmem:[#allocation5 + $0x170] sm:$0xff] }
 0x7ca   : >> { %v4803_v0 = vpop.f32.mrf.mxu1 }
 0x7cb   : >> { %v4877_v3 = vadd.f32 %v4803_v0, %v4518_v57  ;;  %4940 = vst [vmem:[#allocation5 + $0xf0] sm:$0xff] %v4876_v27  ;;  %v4540_v27 = vld [vmem:[#allocation5 + $0x178] sm:$0xff] }
 0x7cd   : >> { %4941 = vst [vmem:[#allocation5 + $0x8] sm:$0xff] %v4877_v3 }
 0x7d0   : >> { %v4717_v36 = vpop.f32.mrf.mxu0 }
 0x7d1   : >> { %v4878_v62 = vadd.f32 %v4717_v36, %v4519_v17  ;;  %v4541_v36 = vld [vmem:[#allocation5 + $0x68] sm:$0xff] }
 0x7d2   : >> { %v4806_v29 = vpop.f32.mrf.mxu1 }
 0x7d3   : >> { %v4879_v24 = vadd.f32 %v4806_v29, %v4520_v8  ;;  %4942 = vst [vmem:[#allocation5 + $0x148] sm:$0xff] %v4878_v62  ;;  %v4542_v62 = vld [vmem:[#allocation5 + $0x190] sm:$0xff] }
 0x7d5   : >> { %4943 = vst [vmem:[#allocation5 + $0x1d0] sm:$0xff] %v4879_v24 }
 0x7d8   : >> { %v4719_v23 = vpop.f32.mrf.mxu0 }
 0x7d9   : >> { %v4880_v18 = vadd.f32 %v4719_v23, %v4521_v5  ;;  %v4543_v23 = vld [vmem:[#allocation5 + $0x198] sm:$0xff] }
 0x7da   : >> { %v4808_v51 = vpop.f32.mrf.mxu1 }
 0x7db   : >> { %v4881_v42 = vadd.f32 %v4808_v51, %v4522_v6  ;;  %4944 = vst [vmem:[#allocation5 + $0x100] sm:$0xff] %v4880_v18  ;;  %v4544_v18 = vld [vmem:[#allocation5 + $0x38] sm:$0xff] }
 0x7dd   : >> { %4945 = vst [vmem:[#allocation5 + $0xc8] sm:$0xff] %v4881_v42 }
 0x7e0   : >> { %v4722_v47 = vpop.f32.mrf.mxu0 }
 0x7e1   : >> { %v4882_v34 = vadd.f32 %v4722_v47, %v4523_v9  ;;  %v4545_v47 = vld [vmem:[#allocation5 + $0xc0] sm:$0xff] }
 0x7e2   : >> { %v4811_v4 = vpop.f32.mrf.mxu1 }
 0x7e3   : >> { %v4883_v7 = vadd.f32 %v4811_v4, %v4524_v52  ;;  %4946 = vst [vmem:[#allocation5 + $0x40] sm:$0xff] %v4882_v34  ;;  %v4546_v34 = vld [vmem:[#allocation5 + $0x1c0] sm:$0xff] }
 0x7e5   : >> { %4947 = vst [vmem:[#allocation5 + $0x1f8] sm:$0xff] %v4883_v7 }
 0x7e8   : >> { %v4724_v16 = vpop.f32.mrf.mxu0 }
 0x7e9   : >> { %v4884_v10 = vadd.f32 %v4724_v16, %v4525_v53  ;;  %v4547_v16 = vld [vmem:[#allocation5 + $0x158] sm:$0xff] }
 0x7ea   : >> { %v4813_v20 = vpop.f32.mrf.mxu1 }
 0x7eb   : >> { %v4885_v37 = vadd.f32 %v4813_v20, %v4526_v14  ;;  %4948 = vst [vmem:[#allocation5 + $0x20] sm:$0xff] %v4884_v10  ;;  %v4548_v10 = vld [vmem:[#allocation5 + $0x10] sm:$0xff] }
 0x7ed   : >> { %4949 = vst [vmem:[#allocation5 + $0x128] sm:$0xff] %v4885_v37 }
 0x7f0   : >> { %v4727_v31 = vpop.f32.mrf.mxu0 }
 0x7f1   : >> { %v4886_v50 = vadd.f32 %v4727_v31, %v4527_v12  ;;  %v4549_v31 = vld [vmem:[#allocation5 + $0x58] sm:$0xff] }
 0x7f2   : >> { %v4816_v21 = vpop.f32.mrf.mxu1 }
 0x7f3   : >> { %v4887_v59 = vadd.f32 %v4816_v21, %v4528_v48  ;;  %4950 = vst [vmem:[#allocation5 + $0x1a0] sm:$0xff] %v4886_v50  ;;  %v4550_v50 = vld [vmem:[#allocation5 + $0xa0] sm:$0xff] }
 0x7f5   : >> { %4951 = vst [vmem:[#allocation5 + $0x1f0] sm:$0xff] %v4887_v59 }
 0x7f8   : >> { %v4729_v55 = vpop.f32.mrf.mxu0 }
 0x7f9   : >> { %v4888_v13 = vadd.f32 %v4729_v55, %v4529_v35  ;;  %v4974_v55 = vld [vmem:[#allocation5 + $0xb0] sm:$0xff] (%p2578_p11) }
 0x7fa   : >> { %v4818_v19 = vpop.f32.mrf.mxu1 }
 0x7fb   : >> { %v4889_v45 = vadd.f32 %v4818_v19, %v4530_v32  ;;  %4952 = vst [vmem:[#allocation5 + $0xe8] sm:$0xff] %v4888_v13  ;;  %v5038_v13 = vld [vmem:[%s9630_s4] sm:$0x3] (%p2578_p11)  ;;  %v4975_v19 = vld [vmem:[#allocation5 + $0x1b0] sm:$0xff] (%p2578_p11) }
 0x7fd   : >> { %4953 = vst [vmem:[#allocation5 + $0x78] sm:$0xff] %v4889_v45  ;;  %v9439_v45 = vperm.slane (%p2578_p11), %v5038_v13, 0 }
 0x800   : >> { %v4732_v44 = vpop.f32.mrf.mxu0 }
 0x801   : >> { %v4890_v39 = vadd.f32 %v4732_v44, %v4531_v49  ;;  %v9441_v49 = vperm.slane (%p2578_p11), %v5038_v13, 1  ;;  %v4977_v44 = vld [vmem:[#allocation5 + $0x18] sm:$0xff] (%p2578_p11)  ;;  %v5006_v13 = vld [vmem:[#allocation5 + $0x148] sm:$0xff] (%p2578_p11) }
 0x802   : >> { %v4821_v60 = vpop.f32.mrf.mxu1 }
 0x803   : >> { %v4891_v25 = vadd.f32 %v4821_v60, %v4532_v28  ;;  %4954 = vst [vmem:[#allocation5 + $0x70] sm:$0xff] %v4890_v39  ;;  %v4976_v28 = vld [vmem:[#allocation5 + $0xd8] sm:$0xff] (%p2578_p11)  ;;  %v4978_v39 = vld [vmem:[#allocation5 + $0x50] sm:$0xff] (%p2578_p11)  ;;  %v5044_v60 = vadd.f32 (%p2578_p11), %v9439_v45, %v4974_v55 }
 0x805   : >> { %4955 = vst [vmem:[#allocation5 + $0x90] sm:$0xff] %v4891_v25  ;;  %v5045_v25 = vadd.f32 (%p2578_p11), %v9441_v49, %v4975_v19 }
 0x806   : > { %5108 = vst [vmem:[%s7449_s9] sm:$0xff] (%p2578_p11), %v5044_v60  ;;  %v5076_v60 = vadd.f32 (%p2578_p11), %v9439_v45, %v5006_v13 }
 0x807   : > { %5109 = vst [vmem:[%s7449_s9 + $0x8] sm:$0xff] (%p2578_p11), %v5045_v25  ;;  %v5009_v25 = vld [vmem:[#allocation5 + $0xc8] sm:$0xff] (%p2578_p11) }
 0x808   : >> { %v4734_v38 = vpop.f32.mrf.mxu0  ;;  %5140 = vst [vmem:[%s7449_s9 + $0x100] sm:$0xff] (%p2578_p11), %v5076_v60 }
 0x809   : >> { %v4892_v56 = vadd.f32 %v4734_v38, %v4533_v33  ;;  %v5046_v33 = vadd.f32 (%p2578_p11), %v9439_v45, %v4976_v28  ;;  %v5047_v38 = vadd.f32 (%p2578_p11), %v9441_v49, %v4977_v44  ;;  %v5007_v28 = vld [vmem:[#allocation5 + $0x1d0] sm:$0xff] (%p2578_p11) }
 0x80a   : >> { %v4823_v1 = vpop.f32.mrf.mxu1 }
 0x80b   : >> { %v4893_v30 = vadd.f32 %v4823_v1, %v4534_v46  ;;  %4956 = vst [vmem:[#allocation5 + $0x1d8] sm:$0xff] %v4892_v56  ;;  %v4979_v46 = vld [vmem:[#allocation5 + $0x168] sm:$0xff] (%p2578_p11)  ;;  %v4980_v56 = vld [vmem:[#allocation5 + $0x130] sm:$0xff] (%p2578_p11)  ;;  %v5048_v1 = vadd.f32 (%p2578_p11), %v9439_v45, %v4978_v39  ;;  %v5008_v39 = vld [vmem:[#allocation5 + $0x100] sm:$0xff] (%p2578_p11) }
 0x80c   : > { %5110 = vst [vmem:[%s7449_s9 + $0x10] sm:$0xff] (%p2578_p11), %v5046_v33  ;;  %v5077_v33 = vadd.f32 (%p2578_p11), %v9441_v49, %v5007_v28 }
 0x80d   : >> { %4957 = vst [vmem:[#allocation5 + $0xd0] sm:$0xff] %v4893_v30  ;;  %v4981_v30 = vld [vmem:[#allocation5 + $0x48] sm:$0xff] (%p2578_p11) }
 0x80e   : > { %5111 = vst [vmem:[%s7449_s9 + $0x18] sm:$0xff] (%p2578_p11), %v5047_v38  ;;  %v5078_v38 = vadd.f32 (%p2578_p11), %v9439_v45, %v5008_v39 }
 0x80f   : > { %5112 = vst [vmem:[%s7449_s9 + $0x20] sm:$0xff] (%p2578_p11), %v5048_v1  ;;  %v5079_v1 = vadd.f32 (%p2578_p11), %v9441_v49, %v5009_v25 }
 0x810   : >> { %v4737_v22 = vpop.f32.mrf.mxu0  ;;  %5141 = vst [vmem:[%s7449_s9 + $0x108] sm:$0xff] (%p2578_p11), %v5077_v33 }
 0x811   : >> { %v4894_v43 = vadd.f32 %v4737_v22, %v4535_v11  ;;  %v5049_v11 = vadd.f32 (%p2578_p11), %v9441_v49, %v4979_v46  ;;  %v5050_v22 = vadd.f32 (%p2578_p11), %v9439_v45, %v4980_v56  ;;  %v5010_v46 = vld [vmem:[#allocation5 + $0x40] sm:$0xff] (%p2578_p11)  ;;  %v5011_v56 = vld [vmem:[#allocation5 + $0x1f8] sm:$0xff] (%p2578_p11)  ;;  %5142 = vst [vmem:[%s7449_s9 + $0x110] sm:$0xff] (%p2578_p11), %v5078_v38 }
 0x812   : >> { %v4826_v41 = vpop.f32.mrf.mxu1  ;;  %5143 = vst [vmem:[%s7449_s9 + $0x118] sm:$0xff] (%p2578_p11), %v5079_v1 }
 0x813   : >> { %v4895_v40 = vadd.f32 %v4826_v41, %v4536_v15  ;;  %4958 = vst [vmem:[#allocation5 + $0xb8] sm:$0xff] %v4894_v43  ;;  %v4982_v15 = vld [vmem:[#allocation5 + $0x180] sm:$0xff] (%p2578_p11)  ;;  %v4983_v43 = vld [vmem:[#allocation5 + $0x110] sm:$0xff] (%p2578_p11)  ;;  %v5051_v41 = vadd.f32 (%p2578_p11), %v9441_v49, %v4981_v30 }
 0x814   : > { %5113 = vst [vmem:[%s7449_s9 + $0x28] sm:$0xff] (%p2578_p11), %v5049_v11  ;;  %v5012_v30 = vld [vmem:[#allocation5 + $0x20] sm:$0xff] (%p2578_p11)  ;;  %v5080_v11 = vadd.f32 (%p2578_p11), %v9439_v45, %v5010_v46 }
 0x815   : >> { %4959 = vst [vmem:[#allocation5 + $0x88] sm:$0xff] %v4895_v40  ;;  %v4984_v40 = vld [vmem:[#allocation5 + $0x118] sm:$0xff] (%p2578_p11) }
 0x816   : > { %5114 = vst [vmem:[%s7449_s9 + $0x30] sm:$0xff] (%p2578_p11), %v5050_v22  ;;  %v5081_v22 = vadd.f32 (%p2578_p11), %v9441_v49, %v5011_v56 }
 0x817   : > { %5115 = vst [vmem:[%s7449_s9 + $0x38] sm:$0xff] (%p2578_p11), %v5051_v41  ;;  %v5082_v41 = vadd.f32 (%p2578_p11), %v9439_v45, %v5012_v30 }
 0x818   : >> { %v4739_v63 = vpop.f32.mrf.mxu0  ;;  %5144 = vst [vmem:[%s7449_s9 + $0x120] sm:$0xff] (%p2578_p11), %v5080_v11 }
 0x819   : >> { %v4896_v54 = vadd.f32 %v4739_v63, %v4537_v26  ;;  %v5052_v26 = vadd.f32 (%p2578_p11), %v9439_v45, %v4982_v15  ;;  %v5053_v63 = vadd.f32 (%p2578_p11), %v9441_v49, %v4983_v43  ;;  %v5013_v15 = vld [vmem:[#allocation5 + $0x128] sm:$0xff] (%p2578_p11)  ;;  %v5014_v43 = vld [vmem:[#allocation5 + $0x1a0] sm:$0xff] (%p2578_p11)  ;;  %5145 = vst [vmem:[%s7449_s9 + $0x128] sm:$0xff] (%p2578_p11), %v5081_v22 }
 0x81a   : >> { %v4828_v2 = vpop.f32.mrf.mxu1  ;;  %5146 = vst [vmem:[%s7449_s9 + $0x130] sm:$0xff] (%p2578_p11), %v5082_v41 }
 0x81b   : >> { %v4897_v57 = vadd.f32 %v4828_v2, %v4538_v58  ;;  %4960 = vst [vmem:[#allocation5 + $0xa8] sm:$0xff] %v4896_v54  ;;  %v4985_v58 = vld [vmem:[#allocation5 + $0x98] sm:$0xff] (%p2578_p11)  ;;  %v4986_v54 = vld [vmem:[#allocation5 + $0x120] sm:$0xff] (%p2578_p11)  ;;  %v5054_v2 = vadd.f32 (%p2578_p11), %v9439_v45, %v4984_v40  ;;  %v5015_v40 = vld [vmem:[#allocation5 + $0x1f0] sm:$0xff] (%p2578_p11) }
 0x81c   : > { %5116 = vst [vmem:[%s7449_s9 + $0x40] sm:$0xff] (%p2578_p11), %v5052_v26  ;;  %v5083_v26 = vadd.f32 (%p2578_p11), %v9441_v49, %v5013_v15 }
 0x81d   : >> { %4961 = vst [vmem:[#allocation5 + $0x1c8] sm:$0xff] %v4897_v57  ;;  %v4987_v57 = vld [vmem:[#allocation5 + $0x150] sm:$0xff] (%p2578_p11) }
 0x81e   : > { %5117 = vst [vmem:[%s7449_s9 + $0x48] sm:$0xff] (%p2578_p11), %v5053_v63  ;;  %v5084_v63 = vadd.f32 (%p2578_p11), %v9439_v45, %v5014_v43 }
 0x81f   : > { %5118 = vst [vmem:[%s7449_s9 + $0x50] sm:$0xff] (%p2578_p11), %v5054_v2  ;;  %v5085_v2 = vadd.f32 (%p2578_p11), %v9441_v49, %v5015_v40 }
 0x820   : >> { %v4742_v0 = vpop.f32.mrf.mxu0  ;;  %5147 = vst [vmem:[%s7449_s9 + $0x138] sm:$0xff] (%p2578_p11), %v5083_v26 }
 0x821   : >> { %v4898_v3 = vadd.f32 %v4742_v0, %v4539_v61  ;;  %v5055_v61 = vadd.f32 (%p2578_p11), %v9441_v49, %v4985_v58  ;;  %v5056_v0 = vadd.f32 (%p2578_p11), %v9439_v45, %v4986_v54  ;;  %v5016_v58 = vld [vmem:[#allocation5 + $0xe8] sm:$0xff] (%p2578_p11)  ;;  %v5017_v54 = vld [vmem:[#allocation5 + $0x78] sm:$0xff] (%p2578_p11)  ;;  %5148 = vst [vmem:[%s7449_s9 + $0x140] sm:$0xff] (%p2578_p11), %v5084_v63 }
 0x822   : >> { %v4831_v17 = vpop.f32.mrf.mxu1  ;;  %5149 = vst [vmem:[%s7449_s9 + $0x148] sm:$0xff] (%p2578_p11), %v5085_v2 }
 0x823   : >> { %v4899_v8 = vadd.f32 %v4831_v17, %v4540_v27  ;;  %4962 = vst [vmem:[#allocation5 + $0x170] sm:$0xff] %v4898_v3  ;;  %v4988_v27 = vld [vmem:[#allocation5 + $0x108] sm:$0xff] (%p2578_p11)  ;;  %v4989_v3 = vld [vmem:[#allocation5 + $0x60] sm:$0xff] (%p2578_p11)  ;;  %v5057_v17 = vadd.f32 (%p2578_p11), %v9441_v49, %v4987_v57  ;;  %v5018_v57 = vld [vmem:[#allocation5 + $0x70] sm:$0xff] (%p2578_p11) }
 0x824   : > { %5119 = vst [vmem:[%s7449_s9 + $0x58] sm:$0xff] (%p2578_p11), %v5055_v61  ;;  %v5086_v61 = vadd.f32 (%p2578_p11), %v9439_v45, %v5016_v58 }
 0x825   : >> { %4963 = vst [vmem:[#allocation5 + $0x178] sm:$0xff] %v4899_v8  ;;  %v4990_v8 = vld [vmem:[#allocation5 + $0xe0] sm:$0xff] (%p2578_p11) }
 0x826   : > { %5120 = vst [vmem:[%s7449_s9 + $0x60] sm:$0xff] (%p2578_p11), %v5056_v0  ;;  %v5087_v0 = vadd.f32 (%p2578_p11), %v9441_v49, %v5017_v54 }
 0x827   : > { %5121 = vst [vmem:[%s7449_s9 + $0x68] sm:$0xff] (%p2578_p11), %v5057_v17  ;;  %v5088_v17 = vadd.f32 (%p2578_p11), %v9439_v45, %v5018_v57 }
 0x828   : >> { %v4744_v29 = vpop.f32.mrf.mxu0  ;;  %5150 = vst [vmem:[%s7449_s9 + $0x150] sm:$0xff] (%p2578_p11), %v5086_v61 }
 0x829   : >> { %v4900_v24 = vadd.f32 %v4744_v29, %v4541_v36  ;;  %v5058_v36 = vadd.f32 (%p2578_p11), %v9439_v45, %v4988_v27  ;;  %v5059_v29 = vadd.f32 (%p2578_p11), %v9441_v49, %v4989_v3  ;;  %v5019_v27 = vld [vmem:[#allocation5 + $0x90] sm:$0xff] (%p2578_p11)  ;;  %v5020_v3 = vld [vmem:[#allocation5 + $0x1d8] sm:$0xff] (%p2578_p11)  ;;  %5151 = vst [vmem:[%s7449_s9 + $0x158] sm:$0xff] (%p2578_p11), %v5087_v0 }
 0x82a   : >> { %v4833_v5 = vpop.f32.mrf.mxu1  ;;  %5152 = vst [vmem:[%s7449_s9 + $0x160] sm:$0xff] (%p2578_p11), %v5088_v17 }
 0x82b   : >> { %v4901_v6 = vadd.f32 %v4833_v5, %v4542_v62  ;;  %4964 = vst [vmem:[#allocation5 + $0x68] sm:$0xff] %v4900_v24  ;;  %v4991_v62 = vld [vmem:[#allocation5 + $0x188] sm:$0xff] (%p2578_p11)  ;;  %v4992_v24 = vld [vmem:[#allocation5 + $0x138] sm:$0xff] (%p2578_p11)  ;;  %v5060_v5 = vadd.f32 (%p2578_p11), %v9439_v45, %v4990_v8  ;;  %v5021_v8 = vld [vmem:[#allocation5 + $0xd0] sm:$0xff] (%p2578_p11) }
 0x82c   : > { %5122 = vst [vmem:[%s7449_s9 + $0x70] sm:$0xff] (%p2578_p11), %v5058_v36  ;;  %v5089_v36 = vadd.f32 (%p2578_p11), %v9441_v49, %v5019_v27 }
 0x82d   : >> { %4965 = vst [vmem:[#allocation5 + $0x190] sm:$0xff] %v4901_v6  ;;  %v4993_v6 = vld [vmem:[#allocation5 + $0x140] sm:$0xff] (%p2578_p11) }
 0x82e   : > { %5123 = vst [vmem:[%s7449_s9 + $0x78] sm:$0xff] (%p2578_p11), %v5059_v29  ;;  %v5090_v29 = vadd.f32 (%p2578_p11), %v9439_v45, %v5020_v3 }
 0x82f   : > { %5124 = vst [vmem:[%s7449_s9 + $0x80] sm:$0xff] (%p2578_p11), %v5060_v5  ;;  %v5091_v5 = vadd.f32 (%p2578_p11), %v9441_v49, %v5021_v8 }
 0x830   : >> { %v4747_v51 = vpop.f32.mrf.mxu0  ;;  %5153 = vst [vmem:[%s7449_s9 + $0x168] sm:$0xff] (%p2578_p11), %v5089_v36 }
 0x831   : >> { %v4902_v42 = vadd.f32 %v4747_v51, %v4543_v23  ;;  %v5061_v23 = vadd.f32 (%p2578_p11), %v9441_v49, %v4991_v62  ;;  %v5062_v51 = vadd.f32 (%p2578_p11), %v9439_v45, %v4992_v24  ;;  %v5022_v62 = vld [vmem:[#allocation5 + $0xb8] sm:$0xff] (%p2578_p11)  ;;  %v5023_v24 = vld [vmem:[#allocation5 + $0x88] sm:$0xff] (%p2578_p11)  ;;  %5154 = vst [vmem:[%s7449_s9 + $0x170] sm:$0xff] (%p2578_p11), %v5090_v29 }
 0x832   : >> { %v4836_v9 = vpop.f32.mrf.mxu1  ;;  %5155 = vst [vmem:[%s7449_s9 + $0x178] sm:$0xff] (%p2578_p11), %v5091_v5 }
 0x833   : >> { %v4903_v52 = vadd.f32 %v4836_v9, %v4544_v18  ;;  %4966 = vst [vmem:[#allocation5 + $0x198] sm:$0xff] %v4902_v42  ;;  %v4994_v18 = vld [vmem:[#allocation5 + $0x80] sm:$0xff] (%p2578_p11)  ;;  %v4995_v42 = vld [vmem:[#allocation5 + $0x1a8] sm:$0xff] (%p2578_p11)  ;;  %v5063_v9 = vadd.f32 (%p2578_p11), %v9441_v49, %v4993_v6 }
 0x834   : > { %5125 = vst [vmem:[%s7449_s9 + $0x88] sm:$0xff] (%p2578_p11), %v5061_v23  ;;  %v5024_v6 = vld [vmem:[#allocation5 + $0xa8] sm:$0xff] (%p2578_p11)  ;;  %v5092_v23 = vadd.f32 (%p2578_p11), %v9439_v45, %v5022_v62 }
 0x835   : >> { %4967 = vst [vmem:[#allocation5 + $0x38] sm:$0xff] %v4903_v52  ;;  %v4996_v52 = vld [vmem:[#allocation5 + $0x1b8] sm:$0xff] (%p2578_p11) }
 0x836   : > { %5126 = vst [vmem:[%s7449_s9 + $0x90] sm:$0xff] (%p2578_p11), %v5062_v51  ;;  %v5093_v51 = vadd.f32 (%p2578_p11), %v9441_v49, %v5023_v24 }
 0x837   : > { %5127 = vst [vmem:[%s7449_s9 + $0x98] sm:$0xff] (%p2578_p11), %v5063_v9  ;;  %v5094_v9 = vadd.f32 (%p2578_p11), %v9439_v45, %v5024_v6 }
 0x838   : >> { %v4749_v4 = vpop.f32.mrf.mxu0  ;;  %5156 = vst [vmem:[%s7449_s9 + $0x180] sm:$0xff] (%p2578_p11), %v5092_v23 }
 0x839   : >> { %v4904_v7 = vadd.f32 %v4749_v4, %v4545_v47  ;;  %v5064_v47 = vadd.f32 (%p2578_p11), %v9439_v45, %v4994_v18  ;;  %v5065_v4 = vadd.f32 (%p2578_p11), %v9441_v49, %v4995_v42  ;;  %v5025_v18 = vld [vmem:[#allocation5 + $0x1c8] sm:$0xff] (%p2578_p11)  ;;  %v5026_v42 = vld [vmem:[#allocation5 + $0x170] sm:$0xff] (%p2578_p11)  ;;  %5157 = vst [vmem:[%s7449_s9 + $0x188] sm:$0xff] (%p2578_p11), %v5093_v51 }
 0x83a   : >> { %v4838_v53 = vpop.f32.mrf.mxu1  ;;  %5158 = vst [vmem:[%s7449_s9 + $0x190] sm:$0xff] (%p2578_p11), %v5094_v9 }
 0x83b   : >> { %v4905_v14 = vadd.f32 %v4838_v53, %v4546_v34  ;;  %4968 = vst [vmem:[#allocation5 + $0xc0] sm:$0xff] %v4904_v7  ;;  %v4997_v34 = vld [vmem:[#allocation5 + $0x28] sm:$0xff] (%p2578_p11)  ;;  %v5066_v53 = vadd.f32 (%p2578_p11), %v9439_v45, %v4996_v52  ;;  %v5027_v52 = vld [vmem:[#allocation5 + $0x178] sm:$0xff] (%p2578_p11) }
 0x83c   : > { %v4998_v7 = vld [vmem:[#allocation5 + $0x1e8] sm:$0xff] (%p2578_p11)  ;;  %5128 = vst [vmem:[%s7449_s9 + $0xa0] sm:$0xff] (%p2578_p11), %v5064_v47  ;;  %v5095_v47 = vadd.f32 (%p2578_p11), %v9441_v49, %v5025_v18 }
 0x83d   : >> { %4969 = vst [vmem:[#allocation5 + $0x1c0] sm:$0xff] %v4905_v14  ;;  %v4999_v14 = vld [vmem:[#allocation5 + $0xf8] sm:$0xff] (%p2578_p11) }
 0x83e   : > { %5129 = vst [vmem:[%s7449_s9 + $0xa8] sm:$0xff] (%p2578_p11), %v5065_v4  ;;  %v5096_v4 = vadd.f32 (%p2578_p11), %v9439_v45, %v5026_v42 }
 0x83f   : > { %5130 = vst [vmem:[%s7449_s9 + $0xb0] sm:$0xff] (%p2578_p11), %v5066_v53  ;;  %v5097_v53 = vadd.f32 (%p2578_p11), %v9441_v49, %v5027_v52 }
 0x840   : >> { %v4752_v20 = vpop.f32.mrf.mxu0  ;;  %5159 = vst [vmem:[%s7449_s9 + $0x198] sm:$0xff] (%p2578_p11), %v5095_v47 }
 0x841   : >> { %v4906_v37 = vadd.f32 %v4752_v20, %v4547_v16  ;;  %v5067_v16 = vadd.f32 (%p2578_p11), %v9441_v49, %v4997_v34  ;;  %v5068_v20 = vadd.f32 (%p2578_p11), %v9439_v45, %v4998_v7  ;;  %v5028_v34 = vld [vmem:[#allocation5 + $0x68] sm:$0xff] (%p2578_p11)  ;;  %v5029_v7 = vld [vmem:[#allocation5 + $0x190] sm:$0xff] (%p2578_p11)  ;;  %5160 = vst [vmem:[%s7449_s9 + $0x1a0] sm:$0xff] (%p2578_p11), %v5096_v4 }
 0x842   : >> { %v4841_v12 = vpop.f32.mrf.mxu1  ;;  %5161 = vst [vmem:[%s7449_s9 + $0x1a8] sm:$0xff] (%p2578_p11), %v5097_v53 }
 0x843   : >> { %v4907_v48 = vadd.f32 %v4841_v12, %v4548_v10  ;;  %4970 = vst [vmem:[#allocation5 + $0x158] sm:$0xff] %v4906_v37  ;;  %v5000_v10 = vld [vmem:[#allocation5 + $0x160] sm:$0xff] (%p2578_p11)  ;;  %v5001_v37 = vld [vmem:[#allocation5 + $0x30] sm:$0xff] (%p2578_p11)  ;;  %v5069_v12 = vadd.f32 (%p2578_p11), %v9441_v49, %v4999_v14  ;;  %v5030_v14 = vld [vmem:[#allocation5 + $0x198] sm:$0xff] (%p2578_p11) }
 0x844   : > { %5131 = vst [vmem:[%s7449_s9 + $0xb8] sm:$0xff] (%p2578_p11), %v5067_v16  ;;  %v5098_v16 = vadd.f32 (%p2578_p11), %v9439_v45, %v5028_v34 }
 0x845   : >> { %4971 = vst [vmem:[#allocation5 + $0x10] sm:$0xff] %v4907_v48  ;;  %v5002_v48 = vld [vmem:[#allocation5 + $0x1e0] sm:$0xff] (%p2578_p11) }
 0x846   : > { %5132 = vst [vmem:[%s7449_s9 + $0xc0] sm:$0xff] (%p2578_p11), %v5068_v20  ;;  %v5099_v20 = vadd.f32 (%p2578_p11), %v9441_v49, %v5029_v7 }
 0x847   : > { %5133 = vst [vmem:[%s7449_s9 + $0xc8] sm:$0xff] (%p2578_p11), %v5069_v12  ;;  %v5100_v12 = vadd.f32 (%p2578_p11), %v9439_v45, %v5030_v14 }
 0x848   : >> { %v4754_v21 = vpop.f32.mrf.mxu0  ;;  %5162 = vst [vmem:[%s7449_s9 + $0x1b0] sm:$0xff] (%p2578_p11), %v5098_v16 }
 0x849   : >> { %v4908_v59 = vadd.f32 %v4754_v21, %v4549_v31  ;;  %2580 = sbr.rel (!%p2578_p11) target bundleno = 1069 (0x42d), region = 138  ;;  %v5070_v31 = vadd.f32 (%p2578_p11), %v9439_v45, %v5000_v10  ;;  %v5071_v21 = vadd.f32 (%p2578_p11), %v9441_v49, %v5001_v37  ;;  %v5031_v10 = vld [vmem:[#allocation5 + $0x38] sm:$0xff] (%p2578_p11)  ;;  %v5032_v37 = vld [vmem:[#allocation5 + $0xc0] sm:$0xff] (%p2578_p11)  ;;  %5163 = vst [vmem:[%s7449_s9 + $0x1b8] sm:$0xff] (%p2578_p11), %v5099_v20 }
 0x84a   : >> { %v4843_v35 = vpop.f32.mrf.mxu1  ;;  %5164 = vst [vmem:[%s7449_s9 + $0x1c0] sm:$0xff] (%p2578_p11), %v5100_v12 }
 0x84b   : >> { %v4909_v32 = vadd.f32 %v4843_v35, %v4550_v50  ;;  %4972 = vst [vmem:[#allocation5 + $0x58] sm:$0xff] %v4908_v59  ;;  %v5003_v50 = vld [vmem:[#allocation5] sm:$0xff] (%p2578_p11)  ;;  %v5004_v59 = vld [vmem:[#allocation5 + $0xf0] sm:$0xff] (%p2578_p11)  ;;  %v5072_v35 = vadd.f32 (%p2578_p11), %v9439_v45, %v5002_v48 }
 0x84c   : > { %v5073_v55 = vadd.f32 (%p2578_p11), %v9441_v49, %v5003_v50  ;;  %5134 = vst [vmem:[%s7449_s9 + $0xd0] sm:$0xff] (%p2578_p11), %v5070_v31  ;;  %v5074_v19 = vadd.f32 (%p2578_p11), %v9439_v45, %v5004_v59  ;;  %v5033_v48 = vld [vmem:[#allocation5 + $0x1c0] sm:$0xff] (%p2578_p11)  ;;  %v5101_v31 = vadd.f32 (%p2578_p11), %v9441_v49, %v5031_v10  ;;  %v5034_v50 = vld [vmem:[#allocation5 + $0x158] sm:$0xff] (%p2578_p11)  ;;  %v5035_v59 = vld [vmem:[#allocation5 + $0x10] sm:$0xff] (%p2578_p11) }
 0x84d   : >> { %4973 = vst [vmem:[#allocation5 + $0xa0] sm:$0xff] %v4909_v32  ;;  %v5005_v32 = vld [vmem:[#allocation5 + $0x8] sm:$0xff] (%p2578_p11) }
 0x84e   : > { %5135 = vst [vmem:[%s7449_s9 + $0xd8] sm:$0xff] %v5071_v21  ;;  %v5075_v44 = vadd.f32 %v9441_v49, %v5005_v32  ;;  %v5102_v21 = vadd.f32 %v9439_v45, %v5032_v37 }
 0x84f   : > { %5136 = vst [vmem:[%s7449_s9 + $0xe0] sm:$0xff] %v5072_v35  ;;  %v5103_v35 = vadd.f32 %v9441_v49, %v5033_v48 }
 0x850   : > { %5137 = vst [vmem:[%s7449_s9 + $0xe8] sm:$0xff] %v5073_v55  ;;  %v5104_v55 = vadd.f32 %v9439_v45, %v5034_v50 }
 0x851   : > { %5138 = vst [vmem:[%s7449_s9 + $0xf0] sm:$0xff] %v5074_v19  ;;  %v5105_v19 = vadd.f32 %v9441_v49, %v5035_v59 }
 0x852   : > { %5139 = vst [vmem:[%s7449_s9 + $0xf8] sm:$0xff] %v5075_v44  ;;  %v5036_v32 = vld [vmem:[#allocation5 + $0x58] sm:$0xff] }
 0x853   : > { %5165 = vst [vmem:[%s7449_s9 + $0x1c8] sm:$0xff] %v5101_v31  ;;  %v5106_v28 = vadd.f32 %v9439_v45, %v5036_v32 }
 0x854   : > { %v5037_v13 = vld [vmem:[#allocation5 + $0xa0] sm:$0xff]  ;;  %5166 = vst [vmem:[%s7449_s9 + $0x1d0] sm:$0xff] %v5102_v21 }
 0x855   : > { %5167 = vst [vmem:[%s7449_s9 + $0x1d8] sm:$0xff] %v5103_v35  ;;  %v5107_v44 = vadd.f32 %v9441_v49, %v5037_v13 }
 0x856   : > { %5168 = vst [vmem:[%s7449_s9 + $0x1e0] sm:$0xff] %v5104_v55 }
 0x857   : > { %5169 = vst [vmem:[%s7449_s9 + $0x1e8] sm:$0xff] %v5105_v19 }
 0x858   : > { %5170 = vst [vmem:[%s7449_s9 + $0x1f0] sm:$0xff] %v5106_v28 }
 0x859   : > { %5171 = vst [vmem:[%s7449_s9 + $0x1f8] sm:$0xff] %v5107_v44 }
 0x85a   : > { %7114 = shalt.err (!%p7111_p9)
}
 0x85b   : > { %s7242_s5 = smov 256   ;;  %s7243_s9 = smov 16  }
 0x85c   : > { %6506 = dma.vmem_to_hbm [thread:$0]  (%p7344_p6), %s5189_s21, 8192, %s5191_s30, %s5173_s15, %s7242_s5, %s7242_s5, %s7243_s9  }
 0x85d PF: > { %s9951_s1 = sld [smem:[#allocation19_spill]]  ;;  %p6533_p12 = scmp.ge.s32.totalorder %s7225_s28, 2 }
 0x85f   : > { %p6523_p13 = pnand %p6533_p12, %p7350_p10 }
 0x861   : > { %p6524_p4 = pneg %p6523_p13 }
 0x863   : > { %s5205_s29 = sand.u32 1, %s9951_s1  }
 0x864   : > { %s5206_s24 = scalar_lea.sflag [#allocation8], %s5205_s29 }
 0x865   : > { %7180 = dma.done.wait (%p6524_p4), %s5206_s24, 8192  }
 0x866   : > { %7182 = vsyncadd (%p6524_p4), %s5206_s24, 4294959104  ;;  %s23_s28 = sadd.s32 1, %s7225_s28   ;;  %s9953_s24 = sld [smem:[#allocation20_spill]] }
 0x867   : > { %p20_p1 = scmp.ge.s32.totalorder %s23_s28, 6   ;;  %s9954_s26 = sld [smem:[#allocation23_spill]] }
 0x868   : > { %s9955_s17 = sld [smem:[#allocation24_spill]]  ;;  %s9956_s18 = smov %s7189_s19 }
 0x869   : > { %s9957_s19 = smov %s7193_s20  ;;  %s9958_s20 = smov %s7417_s3 }
 0x86a   : > { %s9959_s21 = smov %s7201_s22  ;;  %s9960_s22 = smov %s7205_s23 }
 0x86b   : > { %s9961_s23 = smov %s7414_s11  ;;  %s9962_s25 = smov %s7221_s27 }
 0x86c   :  { %22 = sbr.rel (!%p20_p1) target bundleno = 16 (0x10), region = 149 }
 0x86e   : > { %s9963_s27 = smov %s9955_s17 }
 0x871   :  { %5212 = vsyncpa [#allocation7], 1 }
 0x872   :  { %5214 = vsyncpa [#allocation7 + $0x1], 1 }
 0x873   :  { %5215 = vsyncpa [#allocation10], 1 }
 0x874   :  { %5216 = vsyncpa [#allocation13], 1 }
 0x875   :  { %5217 = vsyncpa [#allocation8], 1 }
 0x876   :  { %5219 = vsyncpa [#allocation8 + $0x1], 1 }

</bundles_post_ra>
